<compile_context>
chip_gen: v7x
topology: tpu7x:2x2x1
jax: 0.10.0
libtpu: 0.0.40
codegen_flags: <defaults>
</compile_context>

<pallas_src>
import functools

import jax
import jax.numpy as jnp
from jax.experimental import pallas as pl
from jax.experimental.pallas import tpu as pltpu


def _mlp_kernel(x_ref, w0_ref, b0_ref, w1_ref, b1_ref, w2d_ref, b2d_ref, o_ref):
    # dense0 + ReLU   (x tile is (TM, nFeat) bf16; accumulate in f32 on the MXU)
    h0 = jnp.dot(x_ref[...], w0_ref[...], preferred_element_type=jnp.float32)
    h0 = jnp.maximum(h0 + b0_ref[...], 0.0).astype(jnp.bfloat16)
    # TODO(synk): nn.Dropout is identity in eval mode; training-mode random masking
    # (pltpu.prng_seed / prng_random_bits) intentionally omitted.
    # dense1 + ReLU
    h1 = jnp.dot(h0, w1_ref[...], preferred_element_type=jnp.float32)
    h1 = jnp.maximum(h1 + b1_ref[...], 0.0).astype(jnp.bfloat16)
    # 2-class softmax == sigmoid(l1 - l0); difference weights pre-folded in wrapper.
    # b2d comes in as an SMEM scalar.
    d = jnp.dot(h1, w2d_ref[...], preferred_element_type=jnp.float32) + b2d_ref[0, 0]
    p1 = pl.reciprocal(1.0 + jnp.exp(-d), approx=True)        # (TM, 1), EUP
    p1 = jnp.clip(p1, 0.0, 1.0)                               # approx recip can exceed 1
    o_ref[...] = jnp.concatenate([1.0 - p1, p1], axis=1)      # [p0, p1], rows sum to 1


def _round_up(x, m):
    return (x + m - 1) // m * m


def _round_down(x, m):
    return x // m * m


@functools.partial(jax.jit, static_argnames=("tile_m",))
def nn_class_forward(x, params, *, tile_m=4096):
    """Forward pass of NNClass as a fused, batch-tiled Pallas kernel.

    x: (N, nFeat) float32
    params: dict with w0 (nFeat, nHid1), b0 (1, nHid1), w1 (nHid1, nHid2),
            b1 (1, nHid2), w2 (nHid2, 2), b2 (1, 2)   (all float32)
    returns: (N, 2) float32 softmax probabilities
    """
    n, n_feat = x.shape
    n_hid1 = params["w0"].shape[1]
    n_hid2 = params["w1"].shape[1]

    # Fold softmax(dim=1) of the 2-class head into the output layer:
    # softmax([l0, l1])[1] == sigmoid(l1 - l0) -> only the logit difference is needed.
    w2d = params["w2"][:, 1:2] - params["w2"][:, 0:1]          # (nHid2, 1)
    b2d = (params["b2"][:, 1:2] - params["b2"][:, 0:1]).astype(jnp.float32)  # (1, 1)

    # bf16 MXU operands: x is essentially all the bytes moved, so this ~halves HBM
    # read traffic for a mem-bound kernel. Biases / epilogue math stay in f32.
    x = x.astype(jnp.bfloat16)
    w0 = params["w0"].astype(jnp.bfloat16)
    w1 = params["w1"].astype(jnp.bfloat16)
    w2d = w2d.astype(jnp.bfloat16)
    b0 = params["b0"].astype(jnp.float32)
    b1 = params["b1"].astype(jnp.float32)

    # ---- batch tile selection (no wrapper-side jnp.pad: Pallas handles the ragged
    # last block; out-of-range writes are clipped). Large tiles amortize the
    # ~0.35us/step pipeline overhead; keep >= 2 grid steps when the batch allows so
    # both v7x TensorCores get work. Tiles are multiples of 8 (sublane rule),
    # preferring multiples of 256 (MXU row granularity).
    tile_m = max(8, _round_down(int(tile_m), 8))
    if n <= 512:
        tm = min(tile_m, _round_up(n, 8))
    else:
        tm = min(tile_m, _round_up(pl.cdiv(n, 2), 256))        # >= 2 grid steps
        tm = max(256, _round_down(tm, 256))
    grid = (pl.cdiv(n, tm),)

    vmem_weights = (w0, b0, w1, b1, w2d)
    # Constant block index across the grid -> fetched once, stays VMEM-resident.
    resident = lambda a: pl.BlockSpec(a.shape, lambda i: (0, 0))

    cost = pl.CostEstimate(
        flops=2 * n * (n_feat * n_hid1 + n_hid1 * n_hid2 + n_hid2),
        transcendentals=n,
        bytes_accessed=n * n_feat * 2 + n * 2 * 4
        + sum(int(w.size) * w.dtype.itemsize for w in vmem_weights) + 4,
    )

    return pl.pallas_call(
        _mlp_kernel,
        out_shape=jax.ShapeDtypeStruct((n, 2), jnp.float32),
        grid=grid,
        in_specs=[pl.BlockSpec((tm, n_feat), lambda i: (i, 0))]
        + [resident(w) for w in vmem_weights]
        + [pl.BlockSpec(memory_space=pltpu.MemorySpace.SMEM)],   # b2d scalar
        out_specs=pl.BlockSpec((tm, 2), lambda i: (i, 0)),
        compiler_params=pltpu.CompilerParams(
            dimension_semantics=("parallel",),        # shards batch tiles across v7x TCs
            vmem_limit_bytes=32 * 1024 * 1024,        # explicit budget (v7x has 64 MiB)
        ),
        cost_estimate=cost,
    )(x, *vmem_weights, b2d)


def init_params(key, n_feat, n_hid1=20, n_hid2=10):
    """Deterministic PyTorch-Linear-style init (uniform +/- 1/sqrt(fan_in))."""
    ks = jax.random.split(key, 6)

    def linear(kw, kb, fan_in, fan_out):
        bound = 1.0 / jnp.sqrt(fan_in)
        w = jax.random.uniform(kw, (fan_in, fan_out), jnp.float32, -bound, bound)
        b = jax.random.uniform(kb, (1, fan_out), jnp.float32, -bound, bound)
        return w, b

    w0, b0 = linear(ks[0], ks[1], n_feat, n_hid1)
    w1, b1 = linear(ks[2], ks[3], n_hid1, n_hid2)
    w2, b2 = linear(ks[4], ks[5], n_hid2, 2)
    return {"w0": w0, "b0": b0, "w1": w1, "b1": b1, "w2": w2, "b2": b2}


if __name__ == "__main__":
    key = jax.random.PRNGKey(0)
    k_x, k_p = jax.random.split(key)

    # N chosen NOT to be a multiple of the batch tile -> exercises the ragged last
    # block path (no wrapper padding) and a grid of 2 (both v7x TensorCores).
    N, N_FEAT = 4000, 32
    x = jax.random.normal(k_x, (N, N_FEAT), dtype=jnp.float32)
    params = init_params(k_p, N_FEAT)

    out = jax.block_until_ready(nn_class_forward(x, params))

    # pure-JAX f32 reference (eval-mode forward of NNClass)
    h0 = jnp.maximum(x @ params["w0"] + params["b0"], 0.0)
    h1 = jnp.maximum(h0 @ params["w1"] + params["b1"], 0.0)
    ref = jax.nn.softmax(h1 @ params["w2"] + params["b2"], axis=1)

    assert out.shape == (N, 2)
    assert jnp.allclose(jnp.sum(out, axis=1), 1.0, atol=1e-5)
    # bf16 matmul operands -> compare against the f32 reference with a loose tolerance
    assert jnp.allclose(out, ref, atol=2e-2), float(jnp.max(jnp.abs(out - ref)))
    print("KERNEL_OK")
</pallas_src>

<mosaic_0001>
module attributes {stable_mosaic.version = 11 : i64} {
  func.func @_mlp_kernel(%arg0: i32, %arg1: memref<2048x32xbf16, #tpu.memory_space<vmem>>, %arg2: memref<32x20xbf16, #tpu.memory_space<vmem>>, %arg3: memref<1x20xf32, #tpu.memory_space<vmem>>, %arg4: memref<20x10xbf16, #tpu.memory_space<vmem>>, %arg5: memref<1x10xf32, #tpu.memory_space<vmem>>, %arg6: memref<10x1xbf16, #tpu.memory_space<vmem>>, %arg7: memref<1x1xf32, #tpu.memory_space<smem>>, %arg8: memref<2048x2xf32, #tpu.memory_space<vmem>>) attributes {dimension_semantics = [#tpu.dimension_semantics<parallel>], iteration_bounds = array<i64: 2>, scalar_prefetch = 0 : i64, scratch_operands = 0 : i64, tpu.core_type = #tpu.core_type<tc>, window_params = [{transform_indices = @transform_0, window_bounds = array<i64: 2048, 32>}, {pipeline_mode = #tpu.pipeline_mode<synchronous>, transform_indices = @transform_1, window_bounds = array<i64: 32, 20>}, {pipeline_mode = #tpu.pipeline_mode<synchronous>, transform_indices = @transform_2, window_bounds = array<i64: 1, 20>}, {pipeline_mode = #tpu.pipeline_mode<synchronous>, transform_indices = @transform_3, window_bounds = array<i64: 20, 10>}, {pipeline_mode = #tpu.pipeline_mode<synchronous>, transform_indices = @transform_4, window_bounds = array<i64: 1, 10>}, {pipeline_mode = #tpu.pipeline_mode<synchronous>, transform_indices = @transform_5, window_bounds = array<i64: 10, 1>}, {transform_indices = @transform_6, window_bounds = array<i64: 1, 1>}, {transform_indices = @transform_7, window_bounds = array<i64: 2048, 2>}]} {
    %c0 = arith.constant 0 : index
    %c0_0 = arith.constant 0 : index
    %0 = vector.load %arg1[%c0, %c0_0] : memref<2048x32xbf16, #tpu.memory_space<vmem>>, vector<2048x32xbf16>
    %c0_1 = arith.constant 0 : index
    %c0_2 = arith.constant 0 : index
    %1 = vector.load %arg2[%c0_1, %c0_2] : memref<32x20xbf16, #tpu.memory_space<vmem>>, vector<32x20xbf16>
    %cst = arith.constant dense<0.000000e+00> : vector<2048x20xf32>
    %2 = tpu.matmul %0, %1, %cst {dimension_numbers = #tpu.dot_dimension_numbers<[1], [0], [0], [1], [0, 0, 1, 1], [], []>} : vector<2048x32xbf16>, vector<32x20xbf16>, vector<2048x20xf32> -> vector<2048x20xf32>
    %c0_3 = arith.constant 0 : index
    %c0_4 = arith.constant 0 : index
    %3 = vector.load %arg3[%c0_3, %c0_4] : memref<1x20xf32, #tpu.memory_space<vmem>>, vector<1x20xf32>
    %4 = vector.broadcast %3 : vector<1x20xf32> to vector<2048x20xf32>
    %5 = arith.addf %2, %4 : vector<2048x20xf32>
    %cst_5 = arith.constant 0.000000e+00 : f32
    %6 = vector.broadcast %cst_5 : f32 to vector<2048x20xf32>
    %7 = arith.maximumf %5, %6 : vector<2048x20xf32>
    %8 = arith.truncf %7 : vector<2048x20xf32> to vector<2048x20xbf16>
    %c0_6 = arith.constant 0 : index
    %c0_7 = arith.constant 0 : index
    %9 = vector.load %arg4[%c0_6, %c0_7] : memref<20x10xbf16, #tpu.memory_space<vmem>>, vector<20x10xbf16>
    %cst_8 = arith.constant dense<0.000000e+00> : vector<2048x10xf32>
    %10 = tpu.matmul %8, %9, %cst_8 {dimension_numbers = #tpu.dot_dimension_numbers<[1], [0], [0], [1], [0, 0, 1, 1], [], []>} : vector<2048x20xbf16>, vector<20x10xbf16>, vector<2048x10xf32> -> vector<2048x10xf32>
    %c0_9 = arith.constant 0 : index
    %c0_10 = arith.constant 0 : index
    %11 = vector.load %arg5[%c0_9, %c0_10] : memref<1x10xf32, #tpu.memory_space<vmem>>, vector<1x10xf32>
    %12 = vector.broadcast %11 : vector<1x10xf32> to vector<2048x10xf32>
    %13 = arith.addf %10, %12 : vector<2048x10xf32>
    %cst_11 = arith.constant 0.000000e+00 : f32
    %14 = vector.broadcast %cst_11 : f32 to vector<2048x10xf32>
    %15 = arith.maximumf %13, %14 : vector<2048x10xf32>
    %16 = arith.truncf %15 : vector<2048x10xf32> to vector<2048x10xbf16>
    %c0_12 = arith.constant 0 : index
    %c0_13 = arith.constant 0 : index
    %17 = vector.load %arg6[%c0_12, %c0_13] : memref<10x1xbf16, #tpu.memory_space<vmem>>, vector<10x1xbf16>
    %cst_14 = arith.constant dense<0.000000e+00> : vector<2048x1xf32>
    %18 = tpu.matmul %16, %17, %cst_14 {dimension_numbers = #tpu.dot_dimension_numbers<[1], [0], [0], [1], [0, 0, 1, 1], [], []>} : vector<2048x10xbf16>, vector<10x1xbf16>, vector<2048x1xf32> -> vector<2048x1xf32>
    %c0_15 = arith.constant 0 : index
    %c0_16 = arith.constant 0 : index
    %19 = memref.load %arg7[%c0_15, %c0_16] : memref<1x1xf32, #tpu.memory_space<smem>>
    %20 = vector.broadcast %19 : f32 to vector<2048x1xf32>
    %21 = arith.addf %18, %20 : vector<2048x1xf32>
    %cst_17 = arith.constant 0.000000e+00 : f32
    %22 = vector.broadcast %cst_17 : f32 to vector<2048x1xf32>
    %23 = arith.subf %22, %21 : vector<2048x1xf32>
    %24 = math.exp %23 : vector<2048x1xf32>
    %cst_18 = arith.constant 1.000000e+00 : f32
    %25 = vector.broadcast %cst_18 : f32 to vector<2048x1xf32>
    %26 = arith.addf %25, %24 : vector<2048x1xf32>
    %27 = tpu.reciprocal %26 {approx = true} : vector<2048x1xf32> -> vector<2048x1xf32>
    %cst_19 = arith.constant 0.000000e+00 : f32
    %cst_20 = arith.constant 1.000000e+00 : f32
    %28 = vector.broadcast %cst_19 : f32 to vector<2048x1xf32>
    %29 = arith.maximumf %28, %27 : vector<2048x1xf32>
    %30 = vector.broadcast %cst_20 : f32 to vector<2048x1xf32>
    %31 = arith.minimumf %30, %29 : vector<2048x1xf32>
    %cst_21 = arith.constant 1.000000e+00 : f32
    %32 = vector.broadcast %cst_21 : f32 to vector<2048x1xf32>
    %33 = arith.subf %32, %31 : vector<2048x1xf32>
    %34 = tpu.concatenate %33, %31 in 1 : vector<2048x1xf32>, vector<2048x1xf32> -> vector<2048x2xf32>
    %c0_22 = arith.constant 0 : index
    %c0_23 = arith.constant 0 : index
    %35 = vector.load %arg8[%c0_22, %c0_23] : memref<2048x2xf32, #tpu.memory_space<vmem>>, vector<2048x2xf32>
    tpu.vector_store %arg8[%c0_22, %c0_23], %34 {strides = array<i32>} : memref<2048x2xf32, #tpu.memory_space<vmem>>, vector<2048x2xf32>,
    return
  }
  func.func @transform_0(%arg0: i32) -> (i32, i32) {
    %c0_i32 = arith.constant 0 : i32
    %c0_i32_0 = arith.constant 0 : i32
    return %arg0, %c0_i32 : i32, i32
  }
  func.func @transform_1(%arg0: i32) -> (i32, i32) {
    %c0_i32 = arith.constant 0 : i32
    %c0_i32_0 = arith.constant 0 : i32
    %c0_i32_1 = arith.constant 0 : i32
    return %c0_i32, %c0_i32_0 : i32, i32
  }
  func.func @transform_2(%arg0: i32) -> (i32, i32) {
    %c0_i32 = arith.constant 0 : i32
    %c0_i32_0 = arith.constant 0 : i32
    %c0_i32_1 = arith.constant 0 : i32
    return %c0_i32, %c0_i32_0 : i32, i32
  }
  func.func @transform_3(%arg0: i32) -> (i32, i32) {
    %c0_i32 = arith.constant 0 : i32
    %c0_i32_0 = arith.constant 0 : i32
    %c0_i32_1 = arith.constant 0 : i32
    return %c0_i32, %c0_i32_0 : i32, i32
  }
  func.func @transform_4(%arg0: i32) -> (i32, i32) {
    %c0_i32 = arith.constant 0 : i32
    %c0_i32_0 = arith.constant 0 : i32
    %c0_i32_1 = arith.constant 0 : i32
    return %c0_i32, %c0_i32_0 : i32, i32
  }
  func.func @transform_5(%arg0: i32) -> (i32, i32) {
    %c0_i32 = arith.constant 0 : i32
    %c0_i32_0 = arith.constant 0 : i32
    %c0_i32_1 = arith.constant 0 : i32
    return %c0_i32, %c0_i32_0 : i32, i32
  }
  func.func @transform_6(%arg0: i32) -> (i32, i32) {
    %c0_i32 = arith.constant 0 : i32
    %c0_i32_0 = arith.constant 0 : i32
    %c0_i32_1 = arith.constant 0 : i32
    return %c0_i32, %c0_i32_0 : i32, i32
  }
  func.func @transform_7(%arg0: i32) -> (i32, i32) {
    %c0_i32 = arith.constant 0 : i32
    %c0_i32_0 = arith.constant 0 : i32
    return %arg0, %c0_i32 : i32, i32
  }
}

</mosaic_0001>

<bundles_post_ra>
// kernel: nn_class_forward.1
= control target key start
LH: loop header
LB: loop body
LE: loop exit
PB: predicated region body
PF: predicated region fallthrough
CT: control target
= control target key end

     0   :  { %s20108_s0 = inlined_call_operand.vmem [shape: bf16[4000,32], index: 0, kind: input, shape index: {}]   ;;  %s20109_s1 = inlined_call_operand.vmem [shape: bf16[32,20], index: 1, kind: input, shape index: {}]   ;;  %s20110_s2 = inlined_call_operand.vmem [shape: f32[1,20], index: 2, kind: input, shape index: {}]   ;;  %s20111_s3 = inlined_call_operand.vmem [shape: bf16[20,10], index: 3, kind: input, shape index: {}]   ;;  %s20112_s4 = inlined_call_operand.vmem [shape: f32[1,10], index: 4, kind: input, shape index: {}]   ;;  %s20113_s5 = inlined_call_operand.vmem [shape: bf16[10,1], index: 5, kind: input, shape index: {}]   ;;  %s20114_s6 = inlined_call_operand.<no memory space> [shape: f32[1,1], index: 6, kind: input, shape index: {}]   ;;  %s20115_s7 = inlined_call_operand.vmem [shape: f32[4000,2], index: 7, kind: output, shape index: {}]  }
   0x1   :  { %12 = sst [smem:[#allocation2]] %s20114_s6 }
   0x2   :  { %s13507_s26 = smov 0   ;;  %s13509_s27 = smov 0  }
   0x3   :  { %s13511_s28 = smov 0  }
   0x4 LB: > { %s13520_s6 = sadd.s32 4294967295, %s13429_s28   ;;  %s13522_s29 = sadd.s32 1, %s13429_s28   ;;  %s13429_s28 = sphi %s13511_s28, %s21160_s28   ;;  %s13425_s27 = sphi %s13509_s27, %s21159_s27   ;;  %s13421_s26 = sphi %s13507_s26, %s21158_s26  }
   0x5   : > { %s174_s30 = ssub.s32 %s13429_s28, %s13522_s29  ;;  %s177_s8 = sadd.s32 1, %s13425_s27 }
   0x6   : > { %p175_p0 = scmp.eq.s32.totalorder %s174_s30, 0  ;;  %p187_p1 = scmp.ne.s32.totalorder %s13425_s27, %s13421_s26 }
   0x7   : > { %p188_p2 = scmp.eq.s32.totalorder %s13520_s6, 1  ;;  %p10407_p3 = scmp.ge.s32.totalorder %s13429_s28, 1 }
   0x8   : > { %s13530_s9 = scalar_select %p175_p0, %s13425_s27, %s177_s8  }
   0x9   : > { %p13532_p4 = por %p188_p2, %p187_p1  ;;  %p247_p5 = scmp.lt.s32.totalorder %s13429_s28, 3 }
   0xb   : > { %p248_p6 = pnand %p10407_p3, %p247_p5 }
   0xd   : > { %251 = sbr.rel (%p248_p6) target bundleno = 1660 (0x67c), region = 48 }
  0x14   : > { %v12212_v0 = vld [vmem:[%s20109_s1] sm:$0xff]   ;;  %s13540_s13 = sshll.u32 %s13520_s6, 8  ;;  %v12213_v1 = vld [vmem:[%s20109_s1 + $0x8] sm:$0xff]   ;;  %vm1221_vm0 = vcmask 261120   ;;  %vm3451_vm1 = vcmask 1041408   ;;  %vm5290_vm2 = vcmask 1044480  }
  0x15   : > { %p287_p7 = scmp.lt.s32.totalorder %s13540_s13, 499  ;;  %12117 = vmatprep.subr.bf16.mxu1 %v12212_v0  ;;  %11339 = vmatprep.subr.bf16.mxu0 %v12212_v0  ;;  %v12216_v2 = vld [vmem:[%s20111_s3] sm:$0xff]   ;;  %v12275_v35 = vld [vmem:[%s20111_s3 + $0x8] ss:$0 sps:$4 sm:$0x33]   ;;  %vm3066_vm3 = vcmask 162816  }
  0x16   : > { %12119 = vmatpush3.bf16.msra.mxu1 %v12212_v0  ;;  %11340 = vmatpush3.bf16.msra.mxu0 %v12212_v0  ;;  %v3453_v37 = vsel %vm3451_vm1, %v12275_v35, 0  ;;  %v12320_v60 = vld [vmem:[%s20113_s5] sm:$0x1f]   ;;  %vm4905_vm4 = vcmask 80896   ;;  %s279_s24 = sand.u32 1, %s13421_s26   ;;  %vm9423_vm5 = vcmask 7168  }
  0x17   : > { %s288_s16 = scalar_select %p287_p7, %s13540_s13, 499  ;;  %12118 = vmatprep.subr.bf16.mxu1 %v12213_v1  ;;  %11341 = vmatprep.subr.bf16.mxu0 %v12213_v1  ;;  %v5292_v62 = vsel %vm5290_vm2, %v12320_v60, 0  ;;  %vm9680_vm6 = vcmask 15360  }
  0x18   : > { %s15873_s26 = sshll.u32 %s279_s24, 11  ;;  %s9945_s12 = ssub.s32 (%p13532_p4), 500, %s13540_s13 }
  0x19   : > { %s10410_s19 = sshll.u32 %s288_s16, 2  ;;  %s4898_s16 = sld [smem:[#allocation2]] }
  0x1a   : > { %s13553_s22 = scalar_lea.vmem %s20108_s0, %s10410_s19  ;;  %12120 = vmatpush3.bf16.msra.mxu1 %v12213_v1  ;;  %11342 = vmatpush3.bf16.msra.mxu0 %v12213_v1  ;;  %s13463_s19 = smov 1  }
  0x1b   : > { %v12214_v3 = vld [vmem:[%s13553_s22 + $0x200] sm:$0xff]   ;;  %v12215_v4 = vld [vmem:[%s13553_s22 + $0x208] sm:$0xff]   ;;  %11599 = vmatprep.subr.bf16.mxu1 %v12216_v2  ;;  %v12217_v5 = vld [vmem:[%s13553_s22 + $0x210] sm:$0xff]   ;;  %12122 = vmatprep.subr.msk.bf16.mxu0 %vm5290_vm2, %v12320_v60  ;;  %s15908_s25 = scalar_lea.vmem [#allocation3], %s15873_s26   ;;  %s10947_s14 = sshll.u32 (%p13532_p4), %s13520_s6, 11 }
  0x1c   : > { %11471 = vmatprep.mubr.msk.bf16.mxu1 %vm1221_vm0, %v12214_v3  ;;  %v12218_v6 = vld [vmem:[%s13553_s22 + $0x218] sm:$0xff]   ;;  %v12219_v7 = vld [vmem:[%s13553_s22 + $0x220] sm:$0xff]   ;;  %v12225_v9 = vld [vmem:[%s13553_s22 + $0x8] sm:$0xff]   ;;  %p9946_p8 = scmp.lt.s32.totalorder (%p13532_p4), %s9945_s12, 256  ;;  %s19909_s17 = scalar_lea.vmem (%p13532_p4), %s20115_s7, %s10947_s14  }
  0x1d   : > { %11472 = vmatmul.mubr.msk.bf16.vlgmr.msra.gmra.mrb[0].mxu1 %vm1221_vm0, %v12215_v4  ;;  %v12223_v8 = vld [vmem:[%s13553_s22] sm:$0xff]   ;;  %v12227_v10 = vld [vmem:[%s13553_s22 + $0x10] sm:$0xff]   ;;  %v12220_v11 = vld [vmem:[%s13553_s22 + $0x228] sm:$0xff]  }
  0x1e   : > { %11600 = vmatpush3.bf16.msra.mxu1 %v12216_v2  ;;  %11475 = vmatprep.mubr.msk.bf16.mxu1 %vm1221_vm0, %v12217_v5  ;;  %v12221_v12 = vld [vmem:[%s13553_s22 + $0x230] sm:$0xff]   ;;  %v12229_v13 = vld [vmem:[%s13553_s22 + $0x18] sm:$0xff]   ;;  %v12231_v14 = vld [vmem:[%s13553_s22 + $0x20] sm:$0xff]  }
  0x1f   : > { %11343 = vmatprep.mubr.msk.bf16.mxu0 %vm1221_vm0, %v12223_v8  ;;  %v12222_v15 = vld [vmem:[%s13553_s22 + $0x238] sm:$0xff]   ;;  %v12224_v16 = vld [vmem:[%s13553_s22 + $0x240] sm:$0xff]   ;;  %v12233_v17 = vld [vmem:[%s13553_s22 + $0x28] sm:$0xff]   ;;  %12121 = vmatprep.subr.msk.bf16.mxu1 %vm3451_vm1, %v12275_v35 }
  0x20   : > { %11344 = vmatmul.mubr.msk.bf16.vlgmr.msra.gmra.mrb[0].mxu0 %vm1221_vm0, %v12225_v9  ;;  %v12235_v18 = vld [vmem:[%s13553_s22 + $0x30] sm:$0xff]   ;;  %v12226_v19 = vld [vmem:[%s13553_s22 + $0x248] sm:$0xff]   ;;  %v12237_v21 = vld [vmem:[%s13553_s22 + $0x38] sm:$0xff]  }
  0x21   : > { %11347 = vmatprep.mubr.msk.bf16.mxu0 %vm1221_vm0, %v12227_v10  ;;  %v12228_v20 = vld [vmem:[%s13553_s22 + $0x250] sm:$0xff]   ;;  %v12239_v22 = vld [vmem:[%s13553_s22 + $0x40] sm:$0xff]   ;;  %v12230_v23 = vld [vmem:[%s13553_s22 + $0x258] sm:$0xff]   ;;  %11860 = vmatpush3.bf16.msra.mxu0 %v5292_v62 }
  0x22   : > { %v12232_v24 = vld [vmem:[%s13553_s22 + $0x260] sm:$0xff]   ;;  %v12241_v25 = vld [vmem:[%s13553_s22 + $0x48] sm:$0xff]   ;;  %v12243_v26 = vld [vmem:[%s13553_s22 + $0x50] sm:$0xff]   ;;  %11602 = vmatpush3.bf16.msra.mxu1 %v3453_v37 }
  0x23   : > { %v12234_v27 = vld [vmem:[%s13553_s22 + $0x268] sm:$0xff]   ;;  %v12236_v28 = vld [vmem:[%s13553_s22 + $0x270] sm:$0xff]   ;;  %v12245_v29 = vld [vmem:[%s13553_s22 + $0x58] sm:$0xff]  }
  0x24   : > { %v12247_v30 = vld [vmem:[%s13553_s22 + $0x60] sm:$0xff]   ;;  %v12238_v31 = vld [vmem:[%s13553_s22 + $0x278] sm:$0xff]   ;;  %v12249_v33 = vld [vmem:[%s13553_s22 + $0x68] sm:$0xff]  }
  0x25   : > { %11476 = vmatmul.mubr.msk.bf16.gmra.mrb[4].mxu1 %vm1221_vm0, %v12218_v6  ;;  %v12240_v32 = vld [vmem:[%s13553_s22 + $0x280] sm:$0xff]   ;;  %v12251_v34 = vld [vmem:[%s13553_s22 + $0x70] sm:$0xff]   ;;  %v12242_v36 = vld [vmem:[%s13553_s22 + $0x288] sm:$0xff]  }
  0x26   : > { %11479 = vmatprep.mubr.msk.bf16.mxu1 %vm1221_vm0, %v12219_v7  ;;  %v12244_v38 = vld [vmem:[%s13553_s22 + $0x290] sm:$0xff]   ;;  %v12253_v39 = vld [vmem:[%s13553_s22 + $0x78] sm:$0xff]   ;;  %v12255_v40 = vld [vmem:[%s13553_s22 + $0x80] sm:$0xff]  }
  0x27   : > { %v12246_v41 = vld [vmem:[%s13553_s22 + $0x298] sm:$0xff]   ;;  %v12248_v42 = vld [vmem:[%s13553_s22 + $0x2a0] sm:$0xff]   ;;  %v12257_v43 = vld [vmem:[%s13553_s22 + $0x88] sm:$0xff]  }
  0x28   : > { %11348 = vmatmul.mubr.msk.bf16.gmra.mrb[4].mxu0 %vm1221_vm0, %v12229_v13  ;;  %v12259_v44 = vld [vmem:[%s13553_s22 + $0x90] sm:$0xff]   ;;  %v12250_v45 = vld [vmem:[%s13553_s22 + $0x2a8] sm:$0xff]   ;;  %v12261_v47 = vld [vmem:[%s13553_s22 + $0x98] sm:$0xff]  }
  0x29   : > { %11351 = vmatprep.mubr.msk.bf16.mxu0 %vm1221_vm0, %v12231_v14  ;;  %v12252_v46 = vld [vmem:[%s13553_s22 + $0x2b0] sm:$0xff]   ;;  %v12263_v48 = vld [vmem:[%s13553_s22 + $0xa0] sm:$0xff]   ;;  %v12254_v49 = vld [vmem:[%s13553_s22 + $0x2b8] sm:$0xff]  }
  0x2a   : > { %v12256_v50 = vld [vmem:[%s13553_s22 + $0x2c0] sm:$0xff]   ;;  %v12265_v51 = vld [vmem:[%s13553_s22 + $0xa8] sm:$0xff]   ;;  %v12267_v52 = vld [vmem:[%s13553_s22 + $0xb0] sm:$0xff]  }
  0x2b   : > { %v12258_v53 = vld [vmem:[%s13553_s22 + $0x2c8] sm:$0xff]   ;;  %v12260_v54 = vld [vmem:[%s13553_s22 + $0x2d0] sm:$0xff]   ;;  %v12269_v55 = vld [vmem:[%s13553_s22 + $0xb8] sm:$0xff]  }
  0x2c   : > { %v12271_v56 = vld [vmem:[%s13553_s22 + $0xc0] sm:$0xff]   ;;  %v12262_v57 = vld [vmem:[%s13553_s22 + $0x2d8] sm:$0xff]   ;;  %v12273_v59 = vld [vmem:[%s13553_s22 + $0xc8] sm:$0xff]  }
  0x2d   : > { %11480 = vmatmul.mubr.msk.bf16.gmra.mrb[8].mxu1 %vm1221_vm0, %v12220_v11  ;;  %v12264_v58 = vld [vmem:[%s13553_s22 + $0x2e0] sm:$0xff]   ;;  %v12276_v61 = vld [vmem:[%s13553_s22 + $0xd0] sm:$0xff]   ;;  %v12266_v63 = vld [vmem:[%s13553_s22 + $0x2e8] sm:$0xff]  }
  0x2e   : > { %11483 = vmatprep.mubr.msk.bf16.mxu1 %vm1221_vm0, %v12221_v12  ;;  %v12268_v0 = vld [vmem:[%s13553_s22 + $0x2f0] sm:$0xff]   ;;  %v12278_v1 = vld [vmem:[%s13553_s22 + $0xd8] sm:$0xff]   ;;  %v12280_v2 = vld [vmem:[%s13553_s22 + $0xe0] sm:$0xff]  }
  0x2f   : > { %v12270_v3 = vld [vmem:[%s13553_s22 + $0x2f8] sm:$0xff]   ;;  %v12272_v4 = vld [vmem:[%s13553_s22 + $0x300] sm:$0xff]   ;;  %v12282_v5 = vld [vmem:[%s13553_s22 + $0xe8] sm:$0xff]  }
  0x30   : > { %11352 = vmatmul.mubr.msk.bf16.gmra.mrb[8].mxu0 %vm1221_vm0, %v12233_v17  ;;  %v12284_v6 = vld [vmem:[%s13553_s22 + $0xf0] sm:$0xff]   ;;  %v12274_v7 = vld [vmem:[%s13553_s22 + $0x308] sm:$0xff]   ;;  %v12286_v9 = vld [vmem:[%s13553_s22 + $0xf8] sm:$0xff]  }
  0x31   : > { %11355 = vmatprep.mubr.msk.bf16.mxu0 %vm1221_vm0, %v12235_v18  ;;  %v12277_v8 = vld [vmem:[%s13553_s22 + $0x310] sm:$0xff]   ;;  %v12288_v10 = vld [vmem:[%s13553_s22 + $0x100] sm:$0xff]   ;;  %v12279_v11 = vld [vmem:[%s13553_s22 + $0x318] sm:$0xff]  }
  0x32   : > { %v12281_v12 = vld [vmem:[%s13553_s22 + $0x320] sm:$0xff]   ;;  %v12290_v13 = vld [vmem:[%s13553_s22 + $0x108] sm:$0xff]   ;;  %v12292_v14 = vld [vmem:[%s13553_s22 + $0x110] sm:$0xff]  }
  0x33   : > { %v12294_v17 = vld [vmem:[%s13553_s22 + $0x118] sm:$0xff]   ;;  %v12296_v18 = vld [vmem:[%s13553_s22 + $0x120] sm:$0xff]   ;;  %v12314_v37 = vld [vmem:[%s13553_s22 + $0x168] sm:$0xff]  }
  0x34   : > { %v12303_v35 = vld [vmem:[%s13553_s22 + $0x378] sm:$0xff]   ;;  %v12333_v62 = vld [vmem:[%s13553_s22 + $0x1b0] sm:$0xff]  }
  0x35   : > { %11484 = vmatmul.mubr.msk.bf16.gmra.mrb[12].mxu1 %vm1221_vm0, %v12222_v15  ;;  %v12283_v15 = vld [vmem:[%s13553_s22 + $0x328] sm:$0xff]  }
  0x36   : > { %11487 = vmatprep.mubr.msk.bf16.mxu1 %vm1221_vm0, %v12224_v16  ;;  %v12285_v16 = vld [vmem:[%s13553_s22 + $0x330] sm:$0xff]  }
  0x38   : > { %11356 = vmatmul.mubr.msk.bf16.gmra.mrb[12].mxu0 %vm1221_vm0, %v12237_v21  ;;  %v12298_v21 = vld [vmem:[%s13553_s22 + $0x128] sm:$0xff]  }
  0x39   : > { %11359 = vmatprep.mubr.msk.bf16.mxu0 %vm1221_vm0, %v12239_v22  ;;  %v12300_v22 = vld [vmem:[%s13553_s22 + $0x130] sm:$0xff]  }
  0x3d   : > { %11488 = vmatmul.mubr.msk.bf16.gmra.mrb[16].mxu1 %vm1221_vm0, %v12226_v19  ;;  %v12287_v19 = vld [vmem:[%s13553_s22 + $0x338] sm:$0xff]  }
  0x3e   : > { %11491 = vmatprep.mubr.msk.bf16.mxu1 %vm1221_vm0, %v12228_v20  ;;  %v12289_v20 = vld [vmem:[%s13553_s22 + $0x340] sm:$0xff]  }
  0x40   : > { %11360 = vmatmul.mubr.msk.bf16.gmra.mrb[16].mxu0 %vm1221_vm0, %v12241_v25  ;;  %v12302_v25 = vld [vmem:[%s13553_s22 + $0x138] sm:$0xff]  }
  0x41   : > { %11363 = vmatprep.mubr.msk.bf16.mxu0 %vm1221_vm0, %v12243_v26  ;;  %v12304_v26 = vld [vmem:[%s13553_s22 + $0x140] sm:$0xff]  }
  0x45   : > { %11492 = vmatmul.mubr.msk.bf16.gmra.mrb[20].mxu1 %vm1221_vm0, %v12230_v23  ;;  %v12291_v23 = vld [vmem:[%s13553_s22 + $0x348] sm:$0xff]  }
  0x46   : > { %11495 = vmatprep.mubr.msk.bf16.mxu1 %vm1221_vm0, %v12232_v24  ;;  %v12293_v24 = vld [vmem:[%s13553_s22 + $0x350] sm:$0xff]  }
  0x48   : > { %11364 = vmatmul.mubr.msk.bf16.gmra.mrb[20].mxu0 %vm1221_vm0, %v12245_v29  ;;  %v12306_v29 = vld [vmem:[%s13553_s22 + $0x148] sm:$0xff]  }
  0x49   : > { %11367 = vmatprep.mubr.msk.bf16.mxu0 %vm1221_vm0, %v12247_v30  ;;  %v12308_v30 = vld [vmem:[%s13553_s22 + $0x150] sm:$0xff]  }
  0x4d   : > { %11496 = vmatmul.mubr.msk.bf16.gmra.mrb[24].mxu1 %vm1221_vm0, %v12234_v27  ;;  %v12295_v27 = vld [vmem:[%s13553_s22 + $0x358] sm:$0xff]  }
  0x4e   : > { %11499 = vmatprep.mubr.msk.bf16.mxu1 %vm1221_vm0, %v12236_v28  ;;  %v12297_v28 = vld [vmem:[%s13553_s22 + $0x360] sm:$0xff]  }
  0x50   : > { %11368 = vmatmul.mubr.msk.bf16.gmra.mrb[24].mxu0 %vm1221_vm0, %v12249_v33  ;;  %v12310_v33 = vld [vmem:[%s13553_s22 + $0x158] sm:$0xff]  }
  0x51   : > { %11371 = vmatprep.mubr.msk.bf16.mxu0 %vm1221_vm0, %v12251_v34  ;;  %v12312_v34 = vld [vmem:[%s13553_s22 + $0x160] sm:$0xff]  }
  0x55   : > { %11500 = vmatmul.mubr.msk.bf16.gmra.mrb[28].mxu1 %vm1221_vm0, %v12238_v31  ;;  %v12299_v31 = vld [vmem:[%s13553_s22 + $0x368] sm:$0xff]  }
  0x56   : > { %11503 = vmatprep.mubr.msk.bf16.mxu1 %vm1221_vm0, %v12240_v32  ;;  %v12301_v32 = vld [vmem:[%s13553_s22 + $0x370] sm:$0xff]  }
  0x58   : > { %11372 = vmatmul.mubr.msk.bf16.gmra.mrb[28].mxu0 %vm1221_vm0, %v12253_v39  ;;  %v12307_v39 = vld [vmem:[%s13553_s22 + $0x388] sm:$0xff]  }
  0x59   : > { %11375 = vmatprep.mubr.msk.bf16.mxu0 %vm1221_vm0, %v12255_v40  ;;  %v12309_v40 = vld [vmem:[%s13553_s22 + $0x390] sm:$0xff]  }
  0x5d   : > { %11504 = vmatmul.mubr.msk.bf16.gmra.mrb[32].mxu1 %vm1221_vm0, %v12242_v36  ;;  %v12305_v36 = vld [vmem:[%s13553_s22 + $0x380] sm:$0xff]  }
  0x5e   : > { %11507 = vmatprep.mubr.msk.bf16.mxu1 %vm1221_vm0, %v12244_v38  ;;  %v12316_v38 = vld [vmem:[%s13553_s22 + $0x170] sm:$0xff]  }
  0x60   : > { %11376 = vmatmul.mubr.msk.bf16.gmra.mrb[32].mxu0 %vm1221_vm0, %v12257_v43  ;;  %v12311_v43 = vld [vmem:[%s13553_s22 + $0x398] sm:$0xff]  }
  0x61   : > { %11379 = vmatprep.mubr.msk.bf16.mxu0 %vm1221_vm0, %v12259_v44  ;;  %v12313_v44 = vld [vmem:[%s13553_s22 + $0x3a0] sm:$0xff]  }
  0x65   : > { %11508 = vmatmul.mubr.msk.bf16.gmra.mrb[36].mxu1 %vm1221_vm0, %v12246_v41  ;;  %v12318_v41 = vld [vmem:[%s13553_s22 + $0x178] sm:$0xff]  }
  0x66   : > { %11511 = vmatprep.mubr.msk.bf16.mxu1 %vm1221_vm0, %v12248_v42  ;;  %v12321_v42 = vld [vmem:[%s13553_s22 + $0x180] sm:$0xff]  }
  0x68   : > { %11380 = vmatmul.mubr.msk.bf16.gmra.mrb[36].mxu0 %vm1221_vm0, %v12261_v47  ;;  %v12315_v47 = vld [vmem:[%s13553_s22 + $0x3a8] sm:$0xff]  }
  0x69   : > { %11383 = vmatprep.mubr.msk.bf16.mxu0 %vm1221_vm0, %v12263_v48  ;;  %v12317_v48 = vld [vmem:[%s13553_s22 + $0x3b0] sm:$0xff]  }
  0x6d   : > { %11512 = vmatmul.mubr.msk.bf16.gmra.mrb[40].mxu1 %vm1221_vm0, %v12250_v45  ;;  %v12323_v45 = vld [vmem:[%s13553_s22 + $0x188] sm:$0xff]  }
  0x6e   : > { %11515 = vmatprep.mubr.msk.bf16.mxu1 %vm1221_vm0, %v12252_v46  ;;  %v12325_v46 = vld [vmem:[%s13553_s22 + $0x190] sm:$0xff]  }
  0x70   : > { %11384 = vmatmul.mubr.msk.bf16.gmra.mrb[40].mxu0 %vm1221_vm0, %v12265_v51  ;;  %v13777_v51 = vld [vmem:[%s20110_s2] ss:$0 sm:$0xff] }
  0x71   : > { %11387 = vmatprep.mubr.msk.bf16.mxu0 %vm1221_vm0, %v12267_v52 }
  0x75   : > { %11516 = vmatmul.mubr.msk.bf16.gmra.mrb[44].mxu1 %vm1221_vm0, %v12254_v49  ;;  %v12327_v49 = vld [vmem:[%s13553_s22 + $0x198] sm:$0xff]  }
  0x76   : > { %11519 = vmatprep.mubr.msk.bf16.mxu1 %vm1221_vm0, %v12256_v50  ;;  %v12329_v50 = vld [vmem:[%s13553_s22 + $0x1a0] sm:$0xff]  }
  0x78   : > { %11388 = vmatmul.mubr.msk.bf16.gmra.mrb[44].mxu0 %vm1221_vm0, %v12269_v55  ;;  %v12319_v55 = vld [vmem:[%s13553_s22 + $0x3b8] sm:$0xff]  }
  0x79   : > { %11391 = vmatprep.mubr.msk.bf16.mxu0 %vm1221_vm0, %v12271_v56 }
  0x7d   : > { %11520 = vmatmul.mubr.msk.bf16.gmra.mrb[48].mxu1 %vm1221_vm0, %v12258_v53 }
  0x7e   : > { %11523 = vmatprep.mubr.msk.bf16.mxu1 %vm1221_vm0, %v12260_v54 }
  0x80   : > { %11392 = vmatmul.mubr.msk.bf16.gmra.mrb[48].mxu0 %vm1221_vm0, %v12273_v59  ;;  %v12331_v59 = vld [vmem:[%s13553_s22 + $0x1a8] sm:$0xff]  }
  0x81   : > { %11395 = vmatprep.mubr.msk.bf16.mxu0 %vm1221_vm0, %v12276_v61 }
  0x85   : > { %11524 = vmatmul.mubr.msk.bf16.gmra.mrb[52].mxu1 %vm1221_vm0, %v12262_v57 }
  0x86   : > { %11527 = vmatprep.mubr.msk.bf16.mxu1 %vm1221_vm0, %v12264_v58  ;;  %v12322_v58 = vld [vmem:[%s13553_s22 + $0x3c0] sm:$0xff]  }
  0x88   : > { %11396 = vmatmul.mubr.msk.bf16.gmra.mrb[52].mxu0 %vm1221_vm0, %v12278_v1 }
  0x89   : > { %11399 = vmatprep.mubr.msk.bf16.mxu0 %vm1221_vm0, %v12280_v2 }
  0x8d   : > { %11528 = vmatmul.mubr.msk.bf16.gmra.mrb[56].mxu1 %vm1221_vm0, %v12266_v63 }
  0x8e   : > { %11531 = vmatprep.mubr.msk.bf16.mxu1 %vm1221_vm0, %v12268_v0 }
  0x90   : > { %11400 = vmatmul.mubr.msk.bf16.gmra.mrb[56].mxu0 %vm1221_vm0, %v12282_v5 }
  0x91   : > { %11403 = vmatprep.mubr.msk.bf16.mxu0 %vm1221_vm0, %v12284_v6 }
  0x95   : > { %11532 = vmatmul.mubr.msk.bf16.gmra.mrb[60].mxu1 %vm1221_vm0, %v12270_v3 }
  0x96   : > { %11535 = vmatprep.mubr.msk.bf16.mxu1 %vm1221_vm0, %v12272_v4 }
  0x98   : > { %11404 = vmatmul.mubr.msk.bf16.gmra.mrb[60].mxu0 %vm1221_vm0, %v12286_v9  ;;  %v12324_v9 = vld [vmem:[%s13553_s22 + $0x3c8] sm:$0xff]  }
  0x99   : > { %11407 = vmatprep.mubr.msk.bf16.mxu0 %vm1221_vm0, %v12288_v10 }
  0x9d   : > { %11536 = vmatmul.mubr.msk.bf16.gmra.mrb[64].mxu1 %vm1221_vm0, %v12274_v7 }
  0x9e   : > { %11539 = vmatprep.mubr.msk.bf16.mxu1 %vm1221_vm0, %v12277_v8 }
  0xa0   : > { %11408 = vmatmul.mubr.msk.bf16.gmra.mrb[64].mxu0 %vm1221_vm0, %v12290_v13  ;;  %v12326_v13 = vld [vmem:[%s13553_s22 + $0x3d0] sm:$0xff]  }
  0xa1   : > { %11411 = vmatprep.mubr.msk.bf16.mxu0 %vm1221_vm0, %v12292_v14 }
  0xa5   : > { %11540 = vmatmul.mubr.msk.bf16.gmra.mrb[68].mxu1 %vm1221_vm0, %v12279_v11 }
  0xa6   : > { %11543 = vmatprep.mubr.msk.bf16.mxu1 %vm1221_vm0, %v12281_v12 }
  0xa8   : > { %11412 = vmatmul.mubr.msk.bf16.gmra.mrb[68].mxu0 %vm1221_vm0, %v12294_v17 }
  0xa9   : > { %11415 = vmatprep.mubr.msk.bf16.mxu0 %vm1221_vm0, %v12296_v18 }
  0xad   : > { %11544 = vmatmul.mubr.msk.bf16.gmra.mrb[72].mxu1 %vm1221_vm0, %v12283_v15 }
  0xae   : > { %11547 = vmatprep.mubr.msk.bf16.mxu1 %vm1221_vm0, %v12285_v16  ;;  %v12335_v16 = vld [vmem:[%s13553_s22 + $0x1b8] sm:$0xff]  }
  0xb0   : > { %11416 = vmatmul.mubr.msk.bf16.gmra.mrb[72].mxu0 %vm1221_vm0, %v12298_v21  ;;  %v12337_v21 = vld [vmem:[%s13553_s22 + $0x1c0] sm:$0xff]  }
  0xb1   : > { %11419 = vmatprep.mubr.msk.bf16.mxu0 %vm1221_vm0, %v12300_v22 }
  0xb5   : > { %11548 = vmatmul.mubr.msk.bf16.gmra.mrb[76].mxu1 %vm1221_vm0, %v12287_v19 }
  0xb6   : > { %11551 = vmatprep.mubr.msk.bf16.mxu1 %vm1221_vm0, %v12289_v20 }
  0xb8   : > { %11420 = vmatmul.mubr.msk.bf16.gmra.mrb[76].mxu0 %vm1221_vm0, %v12302_v25 }
  0xb9   : > { %11423 = vmatprep.mubr.msk.bf16.mxu0 %vm1221_vm0, %v12304_v26 }
  0xbd   : > { %11552 = vmatmul.mubr.msk.bf16.gmra.mrb[80].mxu1 %vm1221_vm0, %v12291_v23 }
  0xbe   : > { %11555 = vmatprep.mubr.msk.bf16.mxu1 %vm1221_vm0, %v12293_v24 }
  0xc0   : > { %11424 = vmatmul.mubr.msk.bf16.gmra.mrb[80].mxu0 %vm1221_vm0, %v12306_v29 }
  0xc1   : > { %11427 = vmatprep.mubr.msk.bf16.mxu0 %vm1221_vm0, %v12308_v30 }
  0xc5   : > { %11556 = vmatmul.mubr.msk.bf16.gmra.mrb[84].mxu1 %vm1221_vm0, %v12295_v27 }
  0xc6   : > { %11559 = vmatprep.mubr.msk.bf16.mxu1 %vm1221_vm0, %v12297_v28 }
  0xc8   : > { %11428 = vmatmul.mubr.msk.bf16.gmra.mrb[84].mxu0 %vm1221_vm0, %v12310_v33 }
  0xc9   : > { %11431 = vmatprep.mubr.msk.bf16.mxu0 %vm1221_vm0, %v12312_v34 }
  0xcd   : > { %11560 = vmatmul.mubr.msk.bf16.gmra.mrb[88].mxu1 %vm1221_vm0, %v12299_v31 }
  0xce   : > { %11563 = vmatprep.mubr.msk.bf16.mxu1 %vm1221_vm0, %v12301_v32 }
  0xd0   : > { %11432 = vmatmul.mubr.msk.bf16.gmra.mrb[88].mxu0 %vm1221_vm0, %v12314_v37 }
  0xd1   : > { %11435 = vmatprep.mubr.msk.bf16.mxu0 %vm1221_vm0, %v12316_v38 }
  0xd5   : > { %11564 = vmatmul.mubr.msk.bf16.gmra.mrb[92].mxu1 %vm1221_vm0, %v12303_v35 }
  0xd6   : > { %11567 = vmatprep.mubr.msk.bf16.mxu1 %vm1221_vm0, %v12305_v36 }
  0xd8   : > { %11436 = vmatmul.mubr.msk.bf16.gmra.mrb[92].mxu0 %vm1221_vm0, %v12318_v41 }
  0xd9   : > { %11439 = vmatprep.mubr.msk.bf16.mxu0 %vm1221_vm0, %v12321_v42 }
  0xdd   : > { %11568 = vmatmul.mubr.msk.bf16.gmra.mrb[96].mxu1 %vm1221_vm0, %v12307_v39 }
  0xde   : > { %11571 = vmatprep.mubr.msk.bf16.mxu1 %vm1221_vm0, %v12309_v40  ;;  %v12328_v40 = vld [vmem:[%s13553_s22 + $0x3d8] sm:$0xff]  }
  0xe0   : > { %11440 = vmatmul.mubr.msk.bf16.gmra.mrb[96].mxu0 %vm1221_vm0, %v12323_v45  ;;  %v12330_v45 = vld [vmem:[%s13553_s22 + $0x3e0] sm:$0xff]  }
  0xe1   : > { %11443 = vmatprep.mubr.msk.bf16.mxu0 %vm1221_vm0, %v12325_v46 }
  0xe5   : > { %11572 = vmatmul.mubr.msk.bf16.gmra.mrb[100].mxu1 %vm1221_vm0, %v12311_v43 }
  0xe6   : > { %11575 = vmatprep.mubr.msk.bf16.mxu1 %vm1221_vm0, %v12313_v44 }
  0xe8   : > { %11444 = vmatmul.mubr.msk.bf16.gmra.mrb[100].mxu0 %vm1221_vm0, %v12327_v49 }
  0xe9   : > { %11447 = vmatprep.mubr.msk.bf16.mxu0 %vm1221_vm0, %v12329_v50 }
  0xed   : > { %11576 = vmatmul.mubr.msk.bf16.gmra.mrb[104].mxu1 %vm1221_vm0, %v12315_v47 }
  0xee   : > { %11579 = vmatprep.mubr.msk.bf16.mxu1 %vm1221_vm0, %v12317_v48  ;;  %v12338_v48 = vld [vmem:[%s13553_s22 + $0x1c8] sm:$0xff]  }
  0xf0   : > { %v11473_v52 = vpop.f32.mrb[0].mxu1  ;;  %11448 = vmatmul.mubr.msk.bf16.gmra.mrb[104].mxu0 %vm1221_vm0, %v12331_v59 }
  0xf1   : > { %v2161_v53 = vadd.f32 %v11473_v52, %v13777_v51  ;;  %v2152_v54 = vpop.f32.mrb[1].mxu1  ;;  %11451 = vmatprep.mubr.msk.bf16.mxu0 %vm1221_vm0, %v12333_v62 }
  0xf2   : > { %v2153_v56 = vadd.f32 %v13777_v51, %v2152_v54  ;;  %v11474_v57 = vpop.f32.mrb[2].mxu1  ;;  %v12339_v54 = vld [vmem:[%s13553_s22 + $0x1d0] sm:$0xff]  }
  0xf3   : > { %v2164_v60 = vadd.f32 %v11474_v57, %v13777_v51  ;;  %v2155_v61 = vpop.f32.mrb[3].mxu1  ;;  %v2793_v0 = vmax.f32 %v2161_v53, 0.0  ;;  %v11345_v10 = vpop.f32.mrb[0].mxu0 }
  0xf4   : > { %v2156_v63 = vadd.f32 %v13777_v51, %v2155_v61  ;;  %v2791_v2 = vmax.f32 %v2153_v56, 0.0  ;;  %v1649_v14 = vadd.f32 %v11345_v10, %v13777_v51  ;;  %v1640_v15 = vpop.f32.mrb[1].mxu0 }
  0xf5   : > { %v2794_v1 = vmax.f32 %v2164_v60, 0.0  ;;  %11580 = vmatmul.mubr.msk.bf16.gmra.mrb[108].mxu1 %vm1221_vm0, %v12319_v55  ;;  %v1641_v19 = vadd.f32 %v13777_v51, %v1640_v15  ;;  %v11346_v20 = vpop.f32.mrb[2].mxu0 }
  0xf6   : > { %v2792_v3 = vmax.f32 %v2156_v63, 0.0  ;;  %11583 = vmatprep.mubr.msk.bf16.mxu1 %vm1221_vm0, %v12322_v58  ;;  %v2665_v23 = vmax.f32 %v1649_v14, 0.0  ;;  %v1652_v24 = vadd.f32 %v11346_v20, %v13777_v51  ;;  %v1643_v25 = vpop.f32.mrb[3].mxu0 }
  0xf7   : > { %v13793_v4 = vpack.c.bf16 %v2794_v1, %v2793_v0  ;;  %v2663_v28 = vmax.f32 %v1641_v19, 0.0  ;;  %v1644_v29 = vadd.f32 %v13777_v51, %v1643_v25  ;;  %v12340_v19 = vld [vmem:[%s13553_s22 + $0x1d8] sm:$0xff]  }
  0xf8   : > { %v13796_v5 = vpack.c.bf16 %v2792_v3, %v2791_v2  ;;  %v11477_v6 = vpop.f32.mrb[4].mxu1  ;;  %v2666_v32 = vmax.f32 %v1652_v24, 0.0  ;;  %11452 = vmatmul.mubr.msk.bf16.gmra.mrb[108].mxu0 %vm1221_vm0, %v12335_v16  ;;  %v12334_v16 = vld [vmem:[%s13553_s22 + $0x3f0] sm:$0xff]   ;;  %v12341_v24 = vld [vmem:[%s13553_s22 + $0x1e0] sm:$0xff]  }
  0xf9   : > { %v2177_v7 = vadd.f32 %v11477_v6, %v13777_v51  ;;  %v2168_v8 = vpop.f32.mrb[5].mxu1  ;;  %v2664_v34 = vmax.f32 %v1644_v29, 0.0  ;;  %11455 = vmatprep.mubr.msk.bf16.mxu0 %vm1221_vm0, %v12337_v21 }
  0xfa   : > { %v2169_v11 = vadd.f32 %v13777_v51, %v2168_v8  ;;  %v11478_v12 = vpop.f32.mrb[6].mxu1  ;;  %v13818_v37 = vpack.c.bf16 %v2666_v32, %v2665_v23 }
  0xfb   : > { %v2180_v17 = vadd.f32 %v11478_v12, %v13777_v51  ;;  %v2171_v18 = vpop.f32.mrb[7].mxu1  ;;  %v2797_v26 = vmax.f32 %v2177_v7, 0.0  ;;  %v13822_v41 = vpack.c.bf16 %v2664_v34, %v2663_v28  ;;  %v11349_v42 = vpop.f32.mrb[4].mxu0 }
  0xfc   : > { %v2172_v22 = vadd.f32 %v13777_v51, %v2171_v18  ;;  %v2795_v30 = vmax.f32 %v2169_v11, 0.0  ;;  %v1665_v46 = vadd.f32 %v11349_v42, %v13777_v51  ;;  %v1656_v47 = vpop.f32.mrb[5].mxu0  ;;  %v12332_v11 = vld [vmem:[%s13553_s22 + $0x3e8] sm:$0xff]  }
  0xfd   : > { %v2798_v27 = vmax.f32 %v2180_v17, 0.0  ;;  %11584 = vmatmul.mubr.msk.bf16.gmra.mrb[112].mxu1 %vm1221_vm0, %v12324_v9  ;;  %v1657_v52 = vadd.f32 %v13777_v51, %v1656_v47  ;;  %v11350_v53 = vpop.f32.mrb[6].mxu0  ;;  %v12336_v47 = vld [vmem:[%s13553_s22 + $0x3f8] sm:$0xff]  }
  0xfe   : > { %v2796_v31 = vmax.f32 %v2172_v22, 0.0  ;;  %11587 = vmatprep.mubr.msk.bf16.mxu1 %vm1221_vm0, %v12326_v13  ;;  %v2669_v56 = vmax.f32 %v1665_v46, 0.0  ;;  %v1668_v57 = vadd.f32 %v11350_v53, %v13777_v51  ;;  %v1659_v58 = vpop.f32.mrb[7].mxu0 }
  0xff   : > { %v13813_v33 = vpack.c.bf16 %v2798_v27, %v2797_v26  ;;  %v2667_v61 = vmax.f32 %v1657_v52, 0.0  ;;  %v1660_v62 = vadd.f32 %v13777_v51, %v1659_v58 }
 0x100   : > { %v13816_v35 = vpack.c.bf16 %v2796_v31, %v2795_v30  ;;  %v11481_v36 = vpop.f32.mrb[8].mxu1  ;;  %v2670_v1 = vmax.f32 %v1668_v57, 0.0  ;;  %11456 = vmatmul.mubr.msk.bf16.gmra.mrb[112].mxu0 %vm1221_vm0, %v12338_v48 }
 0x101   : > { %v2193_v38 = vadd.f32 %v11481_v36, %v13777_v51  ;;  %v2184_v39 = vpop.f32.mrb[9].mxu1  ;;  %v2668_v3 = vmax.f32 %v1660_v62, 0.0  ;;  %11459 = vmatprep.mubr.msk.bf16.mxu0 %vm1221_vm0, %v12339_v54 }
 0x102   : > { %v2185_v43 = vadd.f32 %v13777_v51, %v2184_v39  ;;  %v11482_v44 = vpop.f32.mrb[10].mxu1  ;;  %v13842_v8 = vpack.c.bf16 %v2670_v1, %v2669_v56 }
 0x103   : > { %v2196_v49 = vadd.f32 %v11482_v44, %v13777_v51  ;;  %v2187_v50 = vpop.f32.mrb[11].mxu1  ;;  %v2801_v59 = vmax.f32 %v2193_v38, 0.0  ;;  %v13846_v12 = vpack.c.bf16 %v2668_v3, %v2667_v61  ;;  %v11353_v13 = vpop.f32.mrb[8].mxu0 }
 0x104   : > { %v2188_v55 = vadd.f32 %v13777_v51, %v2187_v50  ;;  %v2799_v63 = vmax.f32 %v2185_v43, 0.0  ;;  %v1681_v17 = vadd.f32 %v11353_v13, %v13777_v51  ;;  %v1672_v18 = vpop.f32.mrb[9].mxu0 }
 0x105   : > { %v2802_v60 = vmax.f32 %v2196_v49, 0.0  ;;  %11588 = vmatmul.mubr.msk.bf16.gmra.mrb[116].mxu1 %vm1221_vm0, %v12328_v40  ;;  %v1673_v22 = vadd.f32 %v13777_v51, %v1672_v18  ;;  %v11354_v23 = vpop.f32.mrb[10].mxu0 }
 0x106   : > { %v2800_v0 = vmax.f32 %v2188_v55, 0.0  ;;  %11591 = vmatprep.mubr.msk.bf16.mxu1 %vm1221_vm0, %v12330_v45  ;;  %v2673_v26 = vmax.f32 %v1681_v17, 0.0  ;;  %v1684_v27 = vadd.f32 %v11354_v23, %v13777_v51  ;;  %v1675_v28 = vpop.f32.mrb[11].mxu0  ;;  %v12342_v55 = vld [vmem:[%s13553_s22 + $0x1e8] sm:$0xff]  }
 0x107   : > { %v13837_v2 = vpack.c.bf16 %v2802_v60, %v2801_v59  ;;  %v2671_v31 = vmax.f32 %v1673_v22, 0.0  ;;  %v1676_v32 = vadd.f32 %v13777_v51, %v1675_v28  ;;  %v12343_v60 = vld [vmem:[%s13553_s22 + $0x1f0] sm:$0xff]  }
 0x108   : > { %v13840_v6 = vpack.c.bf16 %v2800_v0, %v2799_v63  ;;  %v11485_v7 = vpop.f32.mrb[12].mxu1  ;;  %v2674_v38 = vmax.f32 %v1684_v27, 0.0  ;;  %11460 = vmatmul.mubr.msk.bf16.gmra.mrb[116].mxu0 %vm1221_vm0, %v12340_v19 }
 0x109   : > { %v2209_v9 = vadd.f32 %v11485_v7, %v13777_v51  ;;  %v2200_v10 = vpop.f32.mrb[13].mxu1  ;;  %v2672_v40 = vmax.f32 %v1676_v32, 0.0  ;;  %11463 = vmatprep.mubr.msk.bf16.mxu0 %vm1221_vm0, %v12341_v24 }
 0x10a   : > { %v2201_v14 = vadd.f32 %v13777_v51, %v2200_v10  ;;  %v11486_v15 = vpop.f32.mrb[14].mxu1  ;;  %v13866_v44 = vpack.c.bf16 %v2674_v38, %v2673_v26  ;;  %v12344_v26 = vld [vmem:[%s13553_s22 + $0x1f8] sm:$0xff]  }
 0x10b   : > { %v2212_v20 = vadd.f32 %v11486_v15, %v13777_v51  ;;  %v2203_v21 = vpop.f32.mrb[15].mxu1  ;;  %v2805_v29 = vmax.f32 %v2209_v9, 0.0  ;;  %v13870_v48 = vpack.c.bf16 %v2672_v40, %v2671_v31  ;;  %v11357_v49 = vpop.f32.mrb[12].mxu0 }
 0x10c   : > { %v2204_v25 = vadd.f32 %v13777_v51, %v2203_v21  ;;  %v2803_v34 = vmax.f32 %v2201_v14, 0.0  ;;  %v1697_v53 = vadd.f32 %v11357_v49, %v13777_v51  ;;  %v1688_v54 = vpop.f32.mrb[13].mxu0 }
 0x10d   : > { %v2806_v30 = vmax.f32 %v2212_v20, 0.0  ;;  %11592 = vmatmul.mubr.msk.bf16.gmra.mrb[120].mxu1 %vm1221_vm0, %v12332_v11  ;;  %v1689_v58 = vadd.f32 %v13777_v51, %v1688_v54  ;;  %v11358_v59 = vpop.f32.mrb[14].mxu0 }
 0x10e   : > { %v2804_v36 = vmax.f32 %v2204_v25, 0.0  ;;  %11595 = vmatprep.mubr.msk.bf16.mxu1 %vm1221_vm0, %v12334_v16  ;;  %v2677_v62 = vmax.f32 %v1697_v53, 0.0  ;;  %v1700_v63 = vadd.f32 %v11358_v59, %v13777_v51  ;;  %v1691_v0 = vpop.f32.mrb[15].mxu0 }
 0x10f   : > { %v13861_v39 = vpack.c.bf16 %v2806_v30, %v2805_v29  ;;  %v2675_v7 = vmax.f32 %v1689_v58, 0.0  ;;  %v1692_v9 = vadd.f32 %v13777_v51, %v1691_v0 }
 0x110   : > { %v13864_v42 = vpack.c.bf16 %v2804_v36, %v2803_v34  ;;  %v11489_v43 = vpop.f32.mrb[16].mxu1  ;;  %v2678_v13 = vmax.f32 %v1700_v63, 0.0  ;;  %11464 = vmatmul.mubr.msk.bf16.gmra.mrb[120].mxu0 %vm1221_vm0, %v12342_v55 }
 0x111   : > { %v2225_v45 = vadd.f32 %v11489_v43, %v13777_v51  ;;  %v2216_v46 = vpop.f32.mrb[17].mxu1  ;;  %v2676_v15 = vmax.f32 %v1692_v9, 0.0  ;;  %11467 = vmatprep.mubr.msk.bf16.mxu0 %vm1221_vm0, %v12343_v60 }
 0x112   : > { %v2217_v50 = vadd.f32 %v13777_v51, %v2216_v46  ;;  %v11490_v52 = vpop.f32.mrb[18].mxu1  ;;  %v13890_v18 = vpack.c.bf16 %v2678_v13, %v2677_v62 }
 0x113   : > { %v2228_v56 = vadd.f32 %v11490_v52, %v13777_v51  ;;  %v2219_v57 = vpop.f32.mrb[19].mxu1  ;;  %v2809_v1 = vmax.f32 %v2225_v45, 0.0  ;;  %v13893_v21 = vpack.c.bf16 %v2676_v15, %v2675_v7 }
 0x114   : > { %v2220_v61 = vadd.f32 %v13777_v51, %v2219_v57  ;;  %v2807_v10 = vmax.f32 %v2217_v50, 0.0 }
 0x115   : > { %v2810_v3 = vmax.f32 %v2228_v56, 0.0  ;;  %11596 = vmatmul.mubr.msk.bf16.gmra.mrb[124].mxu1 %vm1221_vm0, %v12336_v47 }
 0x116   : > { %v2808_v11 = vmax.f32 %v2220_v61, 0.0  ;;  %11603 = vmatprep.mubr.msk.bf16.mxu1 %vm3066_vm3, %v13822_v41  ;;  %v11361_v41 = vpop.f32.mrb[16].mxu0 }
 0x117   : > { %v13885_v14 = vpack.c.bf16 %v2810_v3, %v2809_v1  ;;  %v1713_v24 = vadd.f32 %v11361_v41, %v13777_v51  ;;  %v1704_v25 = vpop.f32.mrb[17].mxu0 }
 0x118   : > { %v13888_v16 = vpack.c.bf16 %v2808_v11, %v2807_v10  ;;  %v11493_v17 = vpop.f32.mrb[20].mxu1  ;;  %v1705_v29 = vadd.f32 %v13777_v51, %v1704_v25  ;;  %v11362_v30 = vpop.f32.mrb[18].mxu0  ;;  %11468 = vmatmul.mubr.msk.bf16.gmra.mrb[124].mxu0 %vm1221_vm0, %v12344_v26 }
 0x119   : > { %v2241_v19 = vadd.f32 %v11493_v17, %v13777_v51  ;;  %v2232_v20 = vpop.f32.mrb[21].mxu1  ;;  %v2681_v32 = vmax.f32 %v1713_v24, 0.0  ;;  %v1716_v34 = vadd.f32 %v11362_v30, %v13777_v51  ;;  %v1707_v36 = vpop.f32.mrb[19].mxu0 }
 0x11a   : > { %v2233_v22 = vadd.f32 %v13777_v51, %v2232_v20  ;;  %v11494_v23 = vpop.f32.mrb[22].mxu1  ;;  %v2679_v43 = vmax.f32 %v1705_v29, 0.0  ;;  %v1708_v45 = vadd.f32 %v13777_v51, %v1707_v36 }
 0x11b   : > { %v2244_v27 = vadd.f32 %v11494_v23, %v13777_v51  ;;  %v2235_v28 = vpop.f32.mrb[23].mxu1  ;;  %v2813_v38 = vmax.f32 %v2241_v19, 0.0  ;;  %v2682_v49 = vmax.f32 %v1716_v34, 0.0  ;;  %v11365_v58 = vpop.f32.mrb[20].mxu0 }
 0x11c   : > { %v2236_v31 = vadd.f32 %v13777_v51, %v2235_v28  ;;  %v2811_v46 = vmax.f32 %v2233_v22, 0.0  ;;  %v2680_v52 = vmax.f32 %v1708_v45, 0.0  ;;  %v1729_v60 = vadd.f32 %v11365_v58, %v13777_v51  ;;  %v1720_v61 = vpop.f32.mrb[21].mxu0 }
 0x11d   : > { %v2814_v40 = vmax.f32 %v2244_v27, 0.0  ;;  %11604 = vmatmul.mubr.msk.bf16.vlgmr.msra.gmra.mrb[128].mxu1 %vm3066_vm3, %v13818_v37  ;;  %v13912_v55 = vpack.c.bf16 %v2682_v49, %v2681_v32  ;;  %v1721_v0 = vadd.f32 %v13777_v51, %v1720_v61  ;;  %v11366_v1 = vpop.f32.mrb[22].mxu0 }
 0x11e   : > { %v2812_v47 = vmax.f32 %v2236_v31, 0.0  ;;  %11607 = vmatprep.mubr.msk.bf16.mxu1 %vm3066_vm3, %v13846_v12  ;;  %v13915_v57 = vpack.c.bf16 %v2680_v52, %v2679_v43  ;;  %v2685_v7 = vmax.f32 %v1729_v60, 0.0  ;;  %v1732_v9 = vadd.f32 %v11366_v1, %v13777_v51  ;;  %v1723_v10 = vpop.f32.mrb[23].mxu0 }
 0x11f   : > { %v13908_v50 = vpack.c.bf16 %v2814_v40, %v2813_v38  ;;  %v2683_v15 = vmax.f32 %v1721_v0, 0.0  ;;  %v1724_v17 = vadd.f32 %v13777_v51, %v1723_v10 }
 0x120   : > { %v13910_v53 = vpack.c.bf16 %v2812_v47, %v2811_v46  ;;  %v11497_v54 = vpop.f32.mrb[24].mxu1  ;;  %v2686_v41 = vmax.f32 %v1732_v9, 0.0 }
 0x121   : > { %v2257_v37 = vadd.f32 %v11497_v54, %v13777_v51  ;;  %v2248_v56 = vpop.f32.mrb[25].mxu1  ;;  %v2684_v23 = vmax.f32 %v1724_v17, 0.0 }
 0x122   : > { %v2249_v59 = vadd.f32 %v13777_v51, %v2248_v56  ;;  %v11498_v12 = vpop.f32.mrb[26].mxu1  ;;  %v13932_v26 = vpack.c.bf16 %v2686_v41, %v2685_v7 }
 0x123   : > { %v2260_v62 = vadd.f32 %v11498_v12, %v13777_v51  ;;  %v2251_v63 = vpop.f32.mrb[27].mxu1  ;;  %v2817_v11 = vmax.f32 %v2257_v37, 0.0  ;;  %v13935_v28 = vpack.c.bf16 %v2684_v23, %v2683_v15  ;;  %v11369_v29 = vpop.f32.mrb[24].mxu0 }
 0x124   : > { %v2252_v3 = vadd.f32 %v13777_v51, %v2251_v63  ;;  %v2815_v19 = vmax.f32 %v2249_v59, 0.0  ;;  %v1736_v32 = vpop.f32.mrb[25].mxu0 }
 0x125   : > { %v2818_v13 = vmax.f32 %v2260_v62, 0.0  ;;  %11608 = vmatmul.mubr.msk.bf16.gmra.mrb[132].mxu1 %vm3066_vm3, %v13842_v8  ;;  %v1737_v38 = vadd.f32 %v13777_v51, %v1736_v32  ;;  %v11370_v40 = vpop.f32.mrb[26].mxu0 }
 0x126   : > { %v2816_v20 = vmax.f32 %v2252_v3, 0.0  ;;  %11611 = vmatprep.mubr.msk.bf16.mxu1 %vm3066_vm3, %v13870_v48  ;;  %v1745_v48 = vadd.f32 %v11369_v29, %v13777_v51  ;;  %v1748_v46 = vadd.f32 %v11370_v40, %v13777_v51  ;;  %v1739_v47 = vpop.f32.mrb[27].mxu0 }
 0x127   : > { %v13928_v22 = vpack.c.bf16 %v2818_v13, %v2817_v11  ;;  %v2687_v54 = vmax.f32 %v1737_v38, 0.0  ;;  %v1740_v37 = vadd.f32 %v13777_v51, %v1739_v47 }
 0x128   : > { %v13930_v24 = vpack.c.bf16 %v2816_v20, %v2815_v19  ;;  %v11501_v25 = vpop.f32.mrb[28].mxu1  ;;  %v2689_v45 = vmax.f32 %v1745_v48, 0.0  ;;  %v2690_v59 = vmax.f32 %v1748_v46, 0.0 }
 0x129   : > { %v2273_v27 = vadd.f32 %v11501_v25, %v13777_v51  ;;  %v2264_v8 = vpop.f32.mrb[29].mxu1  ;;  %v2688_v60 = vmax.f32 %v1740_v37, 0.0 }
 0x12a   : > { %v2265_v30 = vadd.f32 %v13777_v51, %v2264_v8  ;;  %v11502_v31 = vpop.f32.mrb[30].mxu1  ;;  %v13952_v63 = vpack.c.bf16 %v2690_v59, %v2689_v45 }
 0x12b   : > { %v2276_v34 = vadd.f32 %v11502_v31, %v13777_v51  ;;  %v2267_v36 = vpop.f32.mrb[31].mxu1  ;;  %v2821_v49 = vmax.f32 %v2273_v27, 0.0  ;;  %v13955_v1 = vpack.c.bf16 %v2688_v60, %v2687_v54  ;;  %v11373_v3 = vpop.f32.mrb[28].mxu0 }
 0x12c   : > { %v2268_v43 = vadd.f32 %v13777_v51, %v2267_v36  ;;  %v2819_v56 = vmax.f32 %v2265_v30, 0.0  ;;  %v1752_v10 = vpop.f32.mrb[29].mxu0 }
 0x12d   : > { %v2822_v52 = vmax.f32 %v2276_v34, 0.0  ;;  %11612 = vmatmul.mubr.msk.bf16.gmra.mrb[136].mxu1 %vm3066_vm3, %v13866_v44  ;;  %v1753_v15 = vadd.f32 %v13777_v51, %v1752_v10  ;;  %v11374_v17 = vpop.f32.mrb[30].mxu0 }
 0x12e   : > { %v2820_v58 = vmax.f32 %v2268_v43, 0.0  ;;  %11615 = vmatprep.mubr.msk.bf16.mxu1 %vm3066_vm3, %v13893_v21  ;;  %v1761_v21 = vadd.f32 %v11373_v3, %v13777_v51  ;;  %v1764_v41 = vadd.f32 %v11374_v17, %v13777_v51  ;;  %v1755_v23 = vpop.f32.mrb[31].mxu0 }
 0x12f   : > { %v13948_v12 = vpack.c.bf16 %v2822_v52, %v2821_v49  ;;  %v2691_v8 = vmax.f32 %v1753_v15, 0.0  ;;  %v1756_v29 = vadd.f32 %v13777_v51, %v1755_v23 }
 0x130   : > { %v13950_v61 = vpack.c.bf16 %v2820_v58, %v2819_v56  ;;  %v11505_v62 = vpop.f32.mrb[32].mxu1  ;;  %v2693_v20 = vmax.f32 %v1761_v21, 0.0  ;;  %v2694_v48 = vmax.f32 %v1764_v41, 0.0 }
 0x131   : > { %v2289_v0 = vadd.f32 %v11505_v62, %v13777_v51  ;;  %v2280_v44 = vpop.f32.mrb[33].mxu1  ;;  %v2692_v34 = vmax.f32 %v1756_v29, 0.0 }
 0x132   : > { %v2281_v7 = vadd.f32 %v13777_v51, %v2280_v44  ;;  %v11506_v9 = vpop.f32.mrb[34].mxu1  ;;  %v13972_v40 = vpack.c.bf16 %v2694_v48, %v2693_v20 }
 0x133   : > { %v2292_v11 = vadd.f32 %v11506_v9, %v13777_v51  ;;  %v2283_v13 = vpop.f32.mrb[35].mxu1  ;;  %v2825_v25 = vmax.f32 %v2289_v0, 0.0  ;;  %v13975_v45 = vpack.c.bf16 %v2692_v34, %v2691_v8  ;;  %v11377_v46 = vpop.f32.mrb[32].mxu0 }
 0x134   : > { %v2284_v19 = vadd.f32 %v13777_v51, %v2283_v13  ;;  %v2823_v30 = vmax.f32 %v2281_v7, 0.0  ;;  %v1768_v52 = vpop.f32.mrb[33].mxu0 }
 0x135   : > { %v2826_v27 = vmax.f32 %v2292_v11, 0.0  ;;  %11616 = vmatmul.mubr.msk.bf16.gmra.mrb[140].mxu1 %vm3066_vm3, %v13890_v18  ;;  %v1769_v56 = vadd.f32 %v13777_v51, %v1768_v52  ;;  %v11378_v58 = vpop.f32.mrb[34].mxu0 }
 0x136   : > { %v2824_v31 = vmax.f32 %v2284_v19, 0.0  ;;  %11619 = vmatprep.mubr.msk.bf16.mxu1 %vm3066_vm3, %v13915_v57  ;;  %v1777_v57 = vadd.f32 %v11377_v46, %v13777_v51  ;;  %v1780_v62 = vadd.f32 %v11378_v58, %v13777_v51  ;;  %v1771_v0 = vpop.f32.mrb[35].mxu0 }
 0x137   : > { %v13968_v32 = vpack.c.bf16 %v2826_v27, %v2825_v25  ;;  %v2695_v7 = vmax.f32 %v1769_v56, 0.0  ;;  %v1772_v9 = vadd.f32 %v13777_v51, %v1771_v0 }
 0x138   : > { %v13970_v36 = vpack.c.bf16 %v2824_v31, %v2823_v30  ;;  %v11509_v38 = vpop.f32.mrb[36].mxu1  ;;  %v2697_v60 = vmax.f32 %v1777_v57, 0.0  ;;  %v2698_v11 = vmax.f32 %v1780_v62, 0.0 }
 0x139   : > { %v2305_v43 = vadd.f32 %v11509_v38, %v13777_v51  ;;  %v2296_v18 = vpop.f32.mrb[37].mxu1  ;;  %v2696_v15 = vmax.f32 %v1772_v9, 0.0 }
 0x13a   : > { %v2297_v47 = vadd.f32 %v13777_v51, %v2296_v18  ;;  %v11510_v49 = vpop.f32.mrb[38].mxu1  ;;  %v13992_v20 = vpack.c.bf16 %v2698_v11, %v2697_v60 }
 0x13b   : > { %v2308_v54 = vadd.f32 %v11510_v49, %v13777_v51  ;;  %v2299_v37 = vpop.f32.mrb[39].mxu1  ;;  %v2829_v44 = vmax.f32 %v2305_v43, 0.0  ;;  %v13995_v23 = vpack.c.bf16 %v2696_v15, %v2695_v7  ;;  %v11381_v25 = vpop.f32.mrb[36].mxu0 }
 0x13c   : > { %v2300_v59 = vadd.f32 %v13777_v51, %v2299_v37  ;;  %v2827_v21 = vmax.f32 %v2297_v47, 0.0  ;;  %v1784_v29 = vpop.f32.mrb[37].mxu0 }
 0x13d   : > { %v2830_v3 = vmax.f32 %v2308_v54, 0.0  ;;  %11620 = vmatmul.mubr.msk.bf16.gmra.mrb[144].mxu1 %vm3066_vm3, %v13912_v55  ;;  %v1785_v48 = vadd.f32 %v13777_v51, %v1784_v29  ;;  %v11382_v34 = vpop.f32.mrb[38].mxu0 }
 0x13e   : > { %v2828_v10 = vmax.f32 %v2300_v59, 0.0  ;;  %11623 = vmatprep.mubr.msk.bf16.mxu1 %vm3066_vm3, %v13935_v28  ;;  %v1793_v28 = vadd.f32 %v11381_v25, %v13777_v51  ;;  %v1796_v18 = vadd.f32 %v11382_v34, %v13777_v51  ;;  %v1787_v46 = vpop.f32.mrb[39].mxu0 }
 0x13f   : > { %v13988_v13 = vpack.c.bf16 %v2830_v3, %v2829_v44  ;;  %v2699_v57 = vmax.f32 %v1785_v48, 0.0  ;;  %v1788_v52 = vadd.f32 %v13777_v51, %v1787_v46 }
 0x140   : > { %v13990_v17 = vpack.c.bf16 %v2828_v10, %v2827_v21  ;;  %v11513_v19 = vpop.f32.mrb[40].mxu1  ;;  %v2701_v43 = vmax.f32 %v1793_v28, 0.0  ;;  %v2702_v56 = vmax.f32 %v1796_v18, 0.0 }
 0x141   : > { %v2321_v41 = vadd.f32 %v11513_v19, %v13777_v51  ;;  %v2312_v55 = vpop.f32.mrb[41].mxu1  ;;  %v2700_v59 = vmax.f32 %v1788_v52, 0.0 }
 0x142   : > { %v2313_v27 = vadd.f32 %v13777_v51, %v2312_v55  ;;  %v11514_v8 = vpop.f32.mrb[42].mxu1  ;;  %v14012_v0 = vpack.c.bf16 %v2702_v56, %v2701_v43 }
 0x143   : > { %v2324_v30 = vadd.f32 %v11514_v8, %v13777_v51  ;;  %v2315_v31 = vpop.f32.mrb[43].mxu1  ;;  %v2833_v47 = vmax.f32 %v2321_v41, 0.0  ;;  %v14015_v3 = vpack.c.bf16 %v2700_v59, %v2699_v57  ;;  %v11385_v7 = vpop.f32.mrb[40].mxu0 }
 0x144   : > { %v2316_v38 = vadd.f32 %v13777_v51, %v2315_v31  ;;  %v2831_v54 = vmax.f32 %v2313_v27, 0.0  ;;  %v1800_v10 = vpop.f32.mrb[41].mxu0 }
 0x145   : > { %v2834_v49 = vmax.f32 %v2324_v30, 0.0  ;;  %11624 = vmatmul.mubr.msk.bf16.gmra.mrb[148].mxu1 %vm3066_vm3, %v13932_v26  ;;  %v1801_v19 = vadd.f32 %v13777_v51, %v1800_v10  ;;  %v11386_v41 = vpop.f32.mrb[42].mxu0 }
 0x146   : > { %v2832_v37 = vmax.f32 %v2316_v38, 0.0  ;;  %11627 = vmatprep.mubr.msk.bf16.mxu1 %vm3066_vm3, %v13955_v1  ;;  %v1809_v1 = vadd.f32 %v11385_v7, %v13777_v51  ;;  %v1812_v27 = vadd.f32 %v11386_v41, %v13777_v51  ;;  %v1803_v8 = vpop.f32.mrb[43].mxu0 }
 0x147   : > { %v14008_v58 = vpack.c.bf16 %v2834_v49, %v2833_v47  ;;  %v2703_v30 = vmax.f32 %v1801_v19, 0.0  ;;  %v1804_v31 = vadd.f32 %v13777_v51, %v1803_v8 }
 0x148   : > { %v14010_v60 = vpack.c.bf16 %v2832_v37, %v2831_v54  ;;  %v11517_v62 = vpop.f32.mrb[44].mxu1  ;;  %v2705_v25 = vmax.f32 %v1809_v1, 0.0  ;;  %v2706_v38 = vmax.f32 %v1812_v27, 0.0 }
 0x149   : > { %v2337_v44 = vadd.f32 %v11517_v62, %v13777_v51  ;;  %v2328_v26 = vpop.f32.mrb[45].mxu1  ;;  %v2704_v18 = vmax.f32 %v1804_v31, 0.0 }
 0x14a   : > { %v2329_v9 = vadd.f32 %v13777_v51, %v2328_v26  ;;  %v11518_v21 = vpop.f32.mrb[46].mxu1  ;;  %v14032_v49 = vpack.c.bf16 %v2706_v38, %v2705_v25 }
 0x14b   : > { %v2340_v11 = vadd.f32 %v11518_v21, %v13777_v51  ;;  %v2331_v15 = vpop.f32.mrb[47].mxu1  ;;  %v2837_v28 = vmax.f32 %v2337_v44, 0.0  ;;  %v14035_v52 = vpack.c.bf16 %v2704_v18, %v2703_v30  ;;  %v11389_v54 = vpop.f32.mrb[44].mxu0 }
 0x14c   : > { %v2332_v55 = vadd.f32 %v13777_v51, %v2331_v15  ;;  %v2835_v48 = vmax.f32 %v2329_v9, 0.0  ;;  %v1816_v59 = vpop.f32.mrb[45].mxu0 }
 0x14d   : > { %v2838_v29 = vmax.f32 %v2340_v11, 0.0  ;;  %11628 = vmatmul.mubr.msk.bf16.gmra.mrb[152].mxu1 %vm3066_vm3, %v13952_v63  ;;  %v1817_v26 = vadd.f32 %v13777_v51, %v1816_v59  ;;  %v11390_v7 = vpop.f32.mrb[46].mxu0 }
 0x14e   : > { %v2836_v34 = vmax.f32 %v2332_v55, 0.0  ;;  %11631 = vmatprep.mubr.msk.bf16.mxu1 %vm3066_vm3, %v13975_v45  ;;  %v1825_v45 = vadd.f32 %v11389_v54, %v13777_v51  ;;  %v1828_v1 = vadd.f32 %v11390_v7, %v13777_v51  ;;  %v1819_v10 = vpop.f32.mrb[47].mxu0 }
 0x14f   : > { %v14028_v43 = vpack.c.bf16 %v2838_v29, %v2837_v28  ;;  %v2707_v19 = vmax.f32 %v1817_v26, 0.0  ;;  %v1820_v41 = vadd.f32 %v13777_v51, %v1819_v10 }
 0x150   : > { %v14030_v46 = vpack.c.bf16 %v2836_v34, %v2835_v48  ;;  %v11521_v47 = vpop.f32.mrb[48].mxu1  ;;  %v2709_v21 = vmax.f32 %v1825_v45, 0.0  ;;  %v2710_v27 = vmax.f32 %v1828_v1, 0.0 }
 0x151   : > { %v2353_v57 = vadd.f32 %v11521_v47, %v13777_v51  ;;  %v2344_v63 = vpop.f32.mrb[49].mxu1  ;;  %v2708_v28 = vmax.f32 %v1820_v41, 0.0 }
 0x152   : > { %v2345_v37 = vadd.f32 %v13777_v51, %v2344_v63  ;;  %v11522_v56 = vpop.f32.mrb[50].mxu1  ;;  %v14052_v31 = vpack.c.bf16 %v2710_v27, %v2709_v21 }
 0x153   : > { %v2356_v62 = vadd.f32 %v11522_v56, %v13777_v51  ;;  %v2347_v44 = vpop.f32.mrb[51].mxu1  ;;  %v2841_v11 = vmax.f32 %v2353_v57, 0.0  ;;  %v14055_v34 = vpack.c.bf16 %v2708_v28, %v2707_v19  ;;  %v11393_v38 = vpop.f32.mrb[48].mxu0 }
 0x154   : > { %v2348_v9 = vadd.f32 %v13777_v51, %v2347_v44  ;;  %v2839_v55 = vmax.f32 %v2345_v37, 0.0  ;;  %v1832_v57 = vpop.f32.mrb[49].mxu0 }
 0x155   : > { %v2842_v15 = vmax.f32 %v2356_v62, 0.0  ;;  %11632 = vmatmul.mubr.msk.bf16.gmra.mrb[156].mxu1 %vm3066_vm3, %v13972_v40  ;;  %v1833_v37 = vadd.f32 %v13777_v51, %v1832_v57  ;;  %v11394_v56 = vpop.f32.mrb[50].mxu0 }
 0x156   : > { %v2840_v25 = vmax.f32 %v2348_v9, 0.0  ;;  %11635 = vmatprep.mubr.msk.bf16.mxu1 %vm3066_vm3, %v13995_v23  ;;  %v1841_v23 = vadd.f32 %v11393_v38, %v13777_v51  ;;  %v1844_v62 = vadd.f32 %v11394_v56, %v13777_v51  ;;  %v1835_v44 = vpop.f32.mrb[51].mxu0 }
 0x157   : > { %v14048_v8 = vpack.c.bf16 %v2842_v15, %v2841_v11  ;;  %v2711_v9 = vmax.f32 %v1833_v37, 0.0  ;;  %v1836_v21 = vadd.f32 %v13777_v51, %v1835_v44 }
 0x158   : > { %v14050_v29 = vpack.c.bf16 %v2840_v25, %v2839_v55  ;;  %v11525_v30 = vpop.f32.mrb[52].mxu1  ;;  %v2713_v59 = vmax.f32 %v1841_v23, 0.0  ;;  %v2714_v11 = vmax.f32 %v1844_v62, 0.0 }
 0x159   : > { %v2369_v48 = vadd.f32 %v11525_v30, %v13777_v51  ;;  %v2360_v40 = vpop.f32.mrb[53].mxu1  ;;  %v2712_v19 = vmax.f32 %v1836_v21, 0.0 }
 0x15a   : > { %v2361_v18 = vadd.f32 %v13777_v51, %v2360_v40  ;;  %v11526_v47 = vpop.f32.mrb[54].mxu1  ;;  %v14072_v25 = vpack.c.bf16 %v2714_v11, %v2713_v59 }
 0x15b   : > { %v2372_v63 = vadd.f32 %v11526_v47, %v13777_v51  ;;  %v2363_v54 = vpop.f32.mrb[55].mxu1  ;;  %v2845_v26 = vmax.f32 %v2369_v48, 0.0  ;;  %v14075_v28 = vpack.c.bf16 %v2712_v19, %v2711_v9  ;;  %v11397_v30 = vpop.f32.mrb[52].mxu0 }
 0x15c   : > { %v2364_v45 = vadd.f32 %v13777_v51, %v2363_v54  ;;  %v2843_v1 = vmax.f32 %v2361_v18, 0.0  ;;  %v1848_v38 = vpop.f32.mrb[53].mxu0 }
 0x15d   : > { %v2846_v7 = vmax.f32 %v2372_v63, 0.0  ;;  %11636 = vmatmul.mubr.msk.bf16.gmra.mrb[160].mxu1 %vm3066_vm3, %v13992_v20  ;;  %v1849_v23 = vadd.f32 %v13777_v51, %v1848_v38  ;;  %v11398_v57 = vpop.f32.mrb[54].mxu0 }
 0x15e   : > { %v2844_v10 = vmax.f32 %v2364_v45, 0.0  ;;  %11639 = vmatprep.mubr.msk.bf16.mxu1 %vm3066_vm3, %v14015_v3  ;;  %v1857_v3 = vadd.f32 %v11397_v30, %v13777_v51  ;;  %v1860_v37 = vadd.f32 %v11398_v57, %v13777_v51  ;;  %v1851_v56 = vpop.f32.mrb[55].mxu0 }
 0x15f   : > { %v14068_v15 = vpack.c.bf16 %v2846_v7, %v2845_v26  ;;  %v2715_v62 = vmax.f32 %v1849_v23, 0.0  ;;  %v1852_v44 = vadd.f32 %v13777_v51, %v1851_v56 }
 0x160   : > { %v14070_v41 = vpack.c.bf16 %v2844_v10, %v2843_v1  ;;  %v11529_v55 = vpop.f32.mrb[56].mxu1  ;;  %v2717_v54 = vmax.f32 %v1857_v3, 0.0  ;;  %v2718_v9 = vmax.f32 %v1860_v37, 0.0 }
 0x161   : > { %v2385_v27 = vadd.f32 %v11529_v55, %v13777_v51  ;;  %v2376_v20 = vpop.f32.mrb[57].mxu1  ;;  %v2716_v1 = vmax.f32 %v1852_v44, 0.0 }
 0x162   : > { %v2377_v48 = vadd.f32 %v13777_v51, %v2376_v20  ;;  %v11530_v40 = vpop.f32.mrb[58].mxu1  ;;  %v14092_v19 = vpack.c.bf16 %v2718_v9, %v2717_v54 }
 0x163   : > { %v2388_v18 = vadd.f32 %v11530_v40, %v13777_v51  ;;  %v2379_v47 = vpop.f32.mrb[59].mxu1  ;;  %v2849_v45 = vmax.f32 %v2385_v27, 0.0  ;;  %v14095_v27 = vpack.c.bf16 %v2716_v1, %v2715_v62  ;;  %v11401_v20 = vpop.f32.mrb[56].mxu0 }
 0x164   : > { %v2380_v63 = vadd.f32 %v13777_v51, %v2379_v47  ;;  %v2847_v26 = vmax.f32 %v2377_v48, 0.0  ;;  %v1864_v40 = vpop.f32.mrb[57].mxu0 }
 0x165   : > { %v2850_v59 = vmax.f32 %v2388_v18, 0.0  ;;  %11640 = vmatmul.mubr.msk.bf16.gmra.mrb[164].mxu1 %vm3066_vm3, %v14012_v0  ;;  %v1865_v18 = vadd.f32 %v13777_v51, %v1864_v40  ;;  %v11402_v47 = vpop.f32.mrb[58].mxu0 }
 0x166   : > { %v2848_v7 = vmax.f32 %v2380_v63, 0.0  ;;  %11643 = vmatprep.mubr.msk.bf16.mxu1 %vm3066_vm3, %v14035_v52  ;;  %v1873_v52 = vadd.f32 %v11401_v20, %v13777_v51  ;;  %v1876_v63 = vadd.f32 %v11402_v47, %v13777_v51  ;;  %v1867_v54 = vpop.f32.mrb[59].mxu0 }
 0x167   : > { %v14088_v21 = vpack.c.bf16 %v2850_v59, %v2849_v45  ;;  %v2719_v45 = vmax.f32 %v1865_v18, 0.0  ;;  %v1868_v59 = vadd.f32 %v13777_v51, %v1867_v54  ;;  %v14123_v18 = vld [vmem:[%s20110_s2] ss:$0 sm:$0xff] }
 0x168   : > { %v14090_v10 = vpack.c.bf16 %v2848_v7, %v2847_v26  ;;  %v11533_v11 = vpop.f32.mrb[60].mxu1  ;;  %v2721_v57 = vmax.f32 %v1873_v52, 0.0  ;;  %v2722_v26 = vmax.f32 %v1876_v63, 0.0 }
 0x169   : > { %v2401_v55 = vadd.f32 %v11533_v11, %v13777_v51  ;;  %v2392_v0 = vpop.f32.mrb[61].mxu1  ;;  %v2720_v9 = vmax.f32 %v1868_v59, 0.0 }
 0x16a   : > { %v2393_v30 = vadd.f32 %v13777_v51, %v2392_v0  ;;  %v11534_v48 = vpop.f32.mrb[62].mxu1 }
 0x16b   : > { %v2404_v3 = vadd.f32 %v11534_v48, %v13777_v51  ;;  %v2395_v38 = vpop.f32.mrb[63].mxu1  ;;  %v2853_v37 = vmax.f32 %v2401_v55, 0.0  ;;  %v14112_v55 = vpack.c.bf16 %v2722_v26, %v2721_v57  ;;  %v14115_v20 = vpack.c.bf16 %v2720_v9, %v2719_v45  ;;  %v11405_v48 = vpop.f32.mrb[60].mxu0 }
 0x16c   : > { %v2396_v23 = vadd.f32 %v13777_v51, %v2395_v38  ;;  %v2851_v62 = vmax.f32 %v2393_v30, 0.0  ;;  %v1880_v40 = vpop.f32.mrb[61].mxu0 }
 0x16d   : > { %v2854_v56 = vmax.f32 %v2404_v3, 0.0  ;;  %11644 = vmatmul.mubr.msk.bf16.gmra.mrb[168].mxu1 %vm3066_vm3, %v14032_v49  ;;  %v1881_v47 = vadd.f32 %v14123_v18, %v1880_v40 }
 0x16e   : > { %v2852_v44 = vmax.f32 %v2396_v23, 0.0  ;;  %11647 = vmatprep.mubr.msk.bf16.mxu1 %vm3066_vm3, %v14055_v34  ;;  %v1889_v34 = vadd.f32 %v11405_v48, %v13777_v51  ;;  %v11406_v23 = vpop.f32.mrb[62].mxu0 }
 0x16f   : > { %v14108_v7 = vpack.c.bf16 %v2854_v56, %v2853_v37  ;;  %v1892_v54 = vadd.f32 %v14123_v18, %v11406_v23  ;;  %v1883_v37 = vpop.f32.mrb[63].mxu0 }
 0x170   : > { %v14110_v1 = vpack.c.bf16 %v2852_v44, %v2851_v62  ;;  %v11537_v11 = vpop.f32.mrb[64].mxu1  ;;  %v2725_v63 = vmax.f32 %v1889_v34, 0.0  ;;  %v1884_v59 = vadd.f32 %v14123_v18, %v1883_v37 }
 0x171   : > { %v2417_v0 = vadd.f32 %v11537_v11, %v13777_v51  ;;  %v2408_v49 = vpop.f32.mrb[65].mxu1  ;;  %v2726_v26 = vmax.f32 %v1892_v54, 0.0 }
 0x172   : > { %v2409_v30 = vadd.f32 %v13777_v51, %v2408_v49  ;;  %v11538_v52 = vpop.f32.mrb[66].mxu1  ;;  %v2724_v11 = vmax.f32 %v1884_v59, 0.0 }
 0x173   : > { %v2420_v3 = vadd.f32 %v11538_v52, %v13777_v51  ;;  %v2411_v38 = vpop.f32.mrb[67].mxu1  ;;  %v2857_v56 = vmax.f32 %v2417_v0, 0.0  ;;  %v2723_v51 = vmax.f32 %v1881_v47, 0.0  ;;  %v14137_v0 = vpack.c.bf16 %v2726_v26, %v2725_v63  ;;  %v11409_v40 = vpop.f32.mrb[64].mxu0 }
 0x174   : > { %v2412_v57 = vadd.f32 %v14123_v18, %v2411_v38  ;;  %v2855_v62 = vmax.f32 %v2409_v30, 0.0  ;;  %v1896_v38 = vpop.f32.mrb[65].mxu0 }
 0x175   : > { %v2858_v45 = vmax.f32 %v2420_v3, 0.0  ;;  %11648 = vmatmul.mubr.msk.bf16.gmra.mrb[172].mxu1 %vm3066_vm3, %v14052_v31  ;;  %v14140_v34 = vpack.c.bf16 %v2724_v11, %v2723_v51  ;;  %v11410_v54 = vpop.f32.mrb[66].mxu0 }
 0x176   : > { %v2856_v44 = vmax.f32 %v2412_v57, 0.0  ;;  %11651 = vmatprep.mubr.msk.bf16.mxu1 %vm3066_vm3, %v14075_v28  ;;  %v1905_v28 = vadd.f32 %v14123_v18, %v11409_v40  ;;  %v1897_v57 = vadd.f32 %v14123_v18, %v1896_v38 }
 0x177   : > { %v14133_v9 = vpack.c.bf16 %v2858_v45, %v2857_v56  ;;  %v1908_v56 = vadd.f32 %v14123_v18, %v11410_v54  ;;  %v1899_v45 = vpop.f32.mrb[67].mxu0 }
 0x178   : > { %v14135_v49 = vpack.c.bf16 %v2856_v44, %v2855_v62  ;;  %v11541_v48 = vpop.f32.mrb[68].mxu1  ;;  %v2729_v37 = vmax.f32 %v1905_v28, 0.0  ;;  %v2727_v62 = vmax.f32 %v1897_v57, 0.0  ;;  %v1900_v44 = vadd.f32 %v14123_v18, %v1899_v45 }
 0x179   : > { %v2433_v52 = vadd.f32 %v14123_v18, %v11541_v48  ;;  %v2424_v31 = vpop.f32.mrb[69].mxu1  ;;  %v2730_v48 = vmax.f32 %v1908_v56, 0.0 }
 0x17a   : > { %v2425_v30 = vadd.f32 %v14123_v18, %v2424_v31  ;;  %v11542_v3 = vpop.f32.mrb[70].mxu1  ;;  %v2728_v40 = vmax.f32 %v1900_v44, 0.0 }
 0x17b   : > { %v2436_v47 = vadd.f32 %v14123_v18, %v11542_v3  ;;  %v2427_v23 = vpop.f32.mrb[71].mxu1  ;;  %v2861_v51 = vmax.f32 %v2433_v52, 0.0  ;;  %v14157_v52 = vpack.c.bf16 %v2730_v48, %v2729_v37 }
 0x17c   : > { %v2428_v63 = vadd.f32 %v14123_v18, %v2427_v23  ;;  %v2859_v26 = vmax.f32 %v2425_v30, 0.0  ;;  %v11413_v23 = vpop.f32.mrb[68].mxu0 }
 0x17d   : > { %v2862_v59 = vmax.f32 %v2436_v47, 0.0  ;;  %11652 = vmatmul.mubr.msk.bf16.gmra.mrb[176].mxu1 %vm3066_vm3, %v14072_v25  ;;  %v14160_v47 = vpack.c.bf16 %v2728_v40, %v2727_v62  ;;  %v1912_v54 = vpop.f32.mrb[69].mxu0 }
 0x17e   : > { %v2860_v11 = vmax.f32 %v2428_v63, 0.0  ;;  %11655 = vmatprep.mubr.msk.bf16.mxu1 %vm3066_vm3, %v14095_v27  ;;  %v1921_v27 = vadd.f32 %v14123_v18, %v11413_v23  ;;  %v1913_v45 = vadd.f32 %v14123_v18, %v1912_v54 }
 0x17f   : > { %v14153_v31 = vpack.c.bf16 %v2862_v59, %v2861_v51  ;;  %v11414_v51 = vpop.f32.mrb[70].mxu0 }
 0x180   : > { %v14155_v3 = vpack.c.bf16 %v2860_v11, %v2859_v26  ;;  %v11545_v28 = vpop.f32.mrb[72].mxu1  ;;  %v2733_v59 = vmax.f32 %v1921_v27, 0.0  ;;  %v1924_v44 = vadd.f32 %v14123_v18, %v11414_v51  ;;  %v1915_v62 = vpop.f32.mrb[71].mxu0  ;;  %v2731_v48 = vmax.f32 %v1913_v45, 0.0 }
 0x181   : > { %20325 = vst [vmem:[#allocation4_spill] sm:$0xff] %v14153_v31  ;;  %v2449_v38 = vadd.f32 %v14123_v18, %v11545_v28  ;;  %v2440_v25 = vpop.f32.mrb[73].mxu1  ;;  %v1916_v40 = vadd.f32 %v14123_v18, %v1915_v62 }
 0x182   : > { %v2441_v30 = vadd.f32 %v14123_v18, %v2440_v25  ;;  %v11546_v57 = vpop.f32.mrb[74].mxu1  ;;  %v2734_v23 = vmax.f32 %v1924_v44, 0.0 }
 0x183   : > { %v2452_v63 = vadd.f32 %v14123_v18, %v11546_v57  ;;  %v2443_v56 = vpop.f32.mrb[75].mxu1  ;;  %v2865_v26 = vmax.f32 %v2449_v38, 0.0  ;;  %v2732_v27 = vmax.f32 %v1916_v40, 0.0  ;;  %v11417_v51 = vpop.f32.mrb[72].mxu0 }
 0x184   : > { %v2444_v37 = vadd.f32 %v14123_v18, %v2443_v56  ;;  %v2863_v28 = vmax.f32 %v2441_v30, 0.0  ;;  %v14177_v38 = vpack.c.bf16 %v2734_v23, %v2733_v59  ;;  %v1928_v44 = vpop.f32.mrb[73].mxu0 }
 0x185   : > { %v2866_v11 = vmax.f32 %v2452_v63, 0.0  ;;  %11656 = vmatmul.mubr.msk.bf16.gmra.mrb[180].mxu1 %vm3066_vm3, %v14092_v19  ;;  %v14180_v45 = vpack.c.bf16 %v2732_v27, %v2731_v48  ;;  %v11418_v40 = vpop.f32.mrb[74].mxu0 }
 0x186   : > { %v2864_v25 = vmax.f32 %v2444_v37, 0.0  ;;  %11659 = vmatprep.mubr.msk.bf16.mxu1 %vm3066_vm3, %v14115_v20  ;;  %v1937_v20 = vadd.f32 %v14123_v18, %v11417_v51  ;;  %v1931_v48 = vpop.f32.mrb[75].mxu0 }
 0x187   : > { %v14173_v57 = vpack.c.bf16 %v2866_v11, %v2865_v26  ;;  %v1929_v11 = vadd.f32 %v14123_v18, %v1928_v44 }
 0x188   : > { %v14175_v54 = vpack.c.bf16 %v2864_v25, %v2863_v28  ;;  %v11549_v56 = vpop.f32.mrb[76].mxu1  ;;  %v2737_v28 = vmax.f32 %v1937_v20, 0.0  ;;  %v1940_v25 = vadd.f32 %v14123_v18, %v11418_v40 }
 0x189   : > { %20326 = vst [vmem:[#allocation5_spill] sm:$0xff] %v14173_v57  ;;  %v2465_v63 = vadd.f32 %v14123_v18, %v11549_v56  ;;  %v2456_v19 = vpop.f32.mrb[77].mxu1  ;;  %v2735_v56 = vmax.f32 %v1929_v11, 0.0 }
 0x18a   : > { %20327 = vst [vmem:[#allocation6_spill] sm:$0xff] %v14175_v54  ;;  %v2457_v30 = vadd.f32 %v14123_v18, %v2456_v19  ;;  %v11550_v37 = vpop.f32.mrb[78].mxu1  ;;  %v1932_v19 = vadd.f32 %v14123_v18, %v1931_v48  ;;  %v2738_v44 = vmax.f32 %v1940_v25, 0.0 }
 0x18b   : > { %v2468_v62 = vadd.f32 %v14123_v18, %v11550_v37  ;;  %v2459_v26 = vpop.f32.mrb[79].mxu1  ;;  %v2869_v23 = vmax.f32 %v2465_v63, 0.0  ;;  %v11421_v48 = vpop.f32.mrb[76].mxu0 }
 0x18c   : > { %v2460_v59 = vadd.f32 %v14123_v18, %v2459_v26  ;;  %v2867_v51 = vmax.f32 %v2457_v30, 0.0  ;;  %v2736_v20 = vmax.f32 %v1932_v19, 0.0  ;;  %v14197_v63 = vpack.c.bf16 %v2738_v44, %v2737_v28  ;;  %v1944_v25 = vpop.f32.mrb[77].mxu0 }
 0x18d   : > { %v2870_v27 = vmax.f32 %v2468_v62, 0.0  ;;  %11660 = vmatmul.mubr.msk.bf16.gmra.mrb[184].mxu1 %vm3066_vm3, %v14112_v55  ;;  %v1945_v19 = vadd.f32 %v14123_v18, %v1944_v25 }
 0x18e   : > { %v2868_v37 = vmax.f32 %v2460_v59, 0.0  ;;  %11663 = vmatprep.mubr.msk.bf16.mxu1 %vm3066_vm3, %v14140_v34  ;;  %v14200_v11 = vpack.c.bf16 %v2736_v20, %v2735_v56  ;;  %v1953_v34 = vadd.f32 %v14123_v18, %v11421_v48 }
 0x18f   : > { %v14193_v57 = vpack.c.bf16 %v2870_v27, %v2869_v23 }
 0x190   : > { %v14195_v26 = vpack.c.bf16 %v2868_v37, %v2867_v51  ;;  %v11553_v40 = vpop.f32.mrb[80].mxu1  ;;  %v11422_v51 = vpop.f32.mrb[78].mxu0  ;;  %v2741_v37 = vmax.f32 %v1953_v34, 0.0 }
 0x191   : > { %20328 = vst [vmem:[#allocation7_spill] sm:$0xff] %v14193_v57  ;;  %v2481_v62 = vadd.f32 %v14123_v18, %v11553_v40  ;;  %v2472_v55 = vpop.f32.mrb[81].mxu1  ;;  %v1956_v44 = vadd.f32 %v14123_v18, %v11422_v51  ;;  %v1947_v56 = vpop.f32.mrb[79].mxu0 }
 0x192   : > { %20329 = vst [vmem:[#allocation8_spill] sm:$0xff] %v14195_v26  ;;  %v2473_v30 = vadd.f32 %v14123_v18, %v2472_v55  ;;  %v11554_v59 = vpop.f32.mrb[82].mxu1  ;;  %v2739_v55 = vmax.f32 %v1945_v19, 0.0  ;;  %v1948_v48 = vadd.f32 %v14123_v18, %v1947_v56 }
 0x193   : > { %v2484_v23 = vadd.f32 %v14123_v18, %v11554_v59  ;;  %v2475_v27 = vpop.f32.mrb[83].mxu1  ;;  %v2873_v20 = vmax.f32 %v2481_v62, 0.0  ;;  %v2742_v25 = vmax.f32 %v1956_v44, 0.0  ;;  %v11425_v56 = vpop.f32.mrb[80].mxu0 }
 0x194   : > { %v2476_v28 = vadd.f32 %v14123_v18, %v2475_v27  ;;  %v2871_v57 = vmax.f32 %v2473_v30, 0.0  ;;  %v2740_v34 = vmax.f32 %v1948_v48, 0.0  ;;  %v1960_v44 = vpop.f32.mrb[81].mxu0 }
 0x195   : > { %v2874_v40 = vmax.f32 %v2484_v23, 0.0  ;;  %11664 = vmatmul.mubr.msk.bf16.gmra.mrb[188].mxu1 %vm3066_vm3, %v14137_v0  ;;  %v14217_v62 = vpack.c.bf16 %v2742_v25, %v2741_v37  ;;  %v11426_v48 = vpop.f32.mrb[82].mxu0 }
 0x196   : > { %v2872_v59 = vmax.f32 %v2476_v28, 0.0  ;;  %11667 = vmatprep.mubr.msk.bf16.mxu1 %vm3066_vm3, %v14160_v47  ;;  %v14220_v19 = vpack.c.bf16 %v2740_v34, %v2739_v55  ;;  %v1969_v47 = vadd.f32 %v14123_v18, %v11425_v56  ;;  %v1972_v25 = vadd.f32 %v14123_v18, %v11426_v48  ;;  %v1963_v55 = vpop.f32.mrb[83].mxu0 }
 0x197   : > { %v14213_v26 = vpack.c.bf16 %v2874_v40, %v2873_v20  ;;  %v1964_v56 = vadd.f32 %v14123_v18, %v1963_v55 }
 0x198   : > { %v14215_v27 = vpack.c.bf16 %v2872_v59, %v2871_v57  ;;  %v11557_v51 = vpop.f32.mrb[84].mxu1  ;;  %v1961_v57 = vadd.f32 %v14123_v18, %v1960_v44  ;;  %v2745_v59 = vmax.f32 %v1969_v47, 0.0  ;;  %v2746_v44 = vmax.f32 %v1972_v25, 0.0 }
 0x199   : > { %20330 = vst [vmem:[#allocation9_spill] sm:$0xff] %v14213_v26  ;;  %v2497_v23 = vadd.f32 %v14123_v18, %v11557_v51  ;;  %v2488_v0 = vpop.f32.mrb[85].mxu1  ;;  %v2744_v47 = vmax.f32 %v1964_v56, 0.0 }
 0x19a   : > { %20331 = vst [vmem:[#allocation10_spill] sm:$0xff] %v14215_v27  ;;  %v2489_v30 = vadd.f32 %v14123_v18, %v2488_v0  ;;  %v11558_v28 = vpop.f32.mrb[86].mxu1  ;;  %v2743_v0 = vmax.f32 %v1961_v57, 0.0 }
 0x19b   : > { %v2500_v20 = vadd.f32 %v14123_v18, %v11558_v28  ;;  %v2491_v40 = vpop.f32.mrb[87].mxu1  ;;  %v2877_v34 = vmax.f32 %v2497_v23, 0.0  ;;  %v14237_v23 = vpack.c.bf16 %v2746_v44, %v2745_v59  ;;  %v11429_v55 = vpop.f32.mrb[84].mxu0 }
 0x19c   : > { %v2492_v37 = vadd.f32 %v14123_v18, %v2491_v40  ;;  %v2875_v26 = vmax.f32 %v2489_v30, 0.0  ;;  %v14240_v57 = vpack.c.bf16 %v2744_v47, %v2743_v0  ;;  %v1976_v25 = vpop.f32.mrb[85].mxu0 }
 0x19d   : > { %v2878_v51 = vmax.f32 %v2500_v20, 0.0  ;;  %11668 = vmatmul.mubr.msk.bf16.gmra.mrb[192].mxu1 %vm3066_vm3, %v14157_v52  ;;  %v11430_v56 = vpop.f32.mrb[86].mxu0 }
 0x19e   : > { %v2876_v28 = vmax.f32 %v2492_v37, 0.0  ;;  %11671 = vmatprep.mubr.msk.bf16.mxu1 %vm3066_vm3, %v14180_v45  ;;  %v1985_v45 = vadd.f32 %v14123_v18, %v11429_v55  ;;  %v1988_v44 = vadd.f32 %v14123_v18, %v11430_v56  ;;  %v1979_v0 = vpop.f32.mrb[87].mxu0 }
 0x19f   : > { %v14233_v27 = vpack.c.bf16 %v2878_v51, %v2877_v34  ;;  %v1980_v55 = vadd.f32 %v14123_v18, %v1979_v0 }
 0x1a0   : > { %v14235_v40 = vpack.c.bf16 %v2876_v28, %v2875_v26  ;;  %v11561_v48 = vpop.f32.mrb[88].mxu1  ;;  %v1977_v26 = vadd.f32 %v14123_v18, %v1976_v25  ;;  %v2749_v28 = vmax.f32 %v1985_v45, 0.0  ;;  %v2750_v25 = vmax.f32 %v1988_v44, 0.0 }
 0x1a1   : > { %20332 = vst [vmem:[#allocation11_spill] sm:$0xff] %v14233_v27  ;;  %v2513_v20 = vadd.f32 %v14123_v18, %v11561_v48  ;;  %v2504_v52 = vpop.f32.mrb[89].mxu1  ;;  %v2748_v45 = vmax.f32 %v1980_v55, 0.0 }
 0x1a2   : > { %20333 = vst [vmem:[#allocation12_spill] sm:$0xff] %v14235_v40  ;;  %v2505_v30 = vadd.f32 %v14123_v18, %v2504_v52  ;;  %v11562_v37 = vpop.f32.mrb[90].mxu1  ;;  %v2747_v52 = vmax.f32 %v1977_v26, 0.0 }
 0x1a3   : > { %v2516_v34 = vadd.f32 %v14123_v18, %v11562_v37  ;;  %v2507_v51 = vpop.f32.mrb[91].mxu1  ;;  %v2881_v47 = vmax.f32 %v2513_v20, 0.0  ;;  %v14257_v20 = vpack.c.bf16 %v2750_v25, %v2749_v28  ;;  %v11433_v0 = vpop.f32.mrb[88].mxu0 }
 0x1a4   : > { %v2508_v59 = vadd.f32 %v14123_v18, %v2507_v51  ;;  %v2879_v27 = vmax.f32 %v2505_v30, 0.0  ;;  %v14260_v26 = vpack.c.bf16 %v2748_v45, %v2747_v52  ;;  %v1992_v44 = vpop.f32.mrb[89].mxu0 }
 0x1a5   : > { %v2882_v48 = vmax.f32 %v2516_v34, 0.0  ;;  %11672 = vmatmul.mubr.msk.bf16.gmra.mrb[196].mxu1 %vm3066_vm3, %v14177_v38  ;;  %v11434_v55 = vpop.f32.mrb[90].mxu0 }
 0x1a6   : > { %v2880_v37 = vmax.f32 %v2508_v59, 0.0  ;;  %11675 = vmatprep.mubr.msk.bf16.mxu1 %vm3066_vm3, %v14200_v11  ;;  %v2001_v11 = vadd.f32 %v14123_v18, %v11433_v0  ;;  %v2004_v25 = vadd.f32 %v14123_v18, %v11434_v55  ;;  %v1995_v52 = vpop.f32.mrb[91].mxu0 }
 0x1a7   : > { %v14253_v40 = vpack.c.bf16 %v2882_v48, %v2881_v47  ;;  %v1996_v0 = vadd.f32 %v14123_v18, %v1995_v52 }
 0x1a8   : > { %v14255_v51 = vpack.c.bf16 %v2880_v37, %v2879_v27  ;;  %v11565_v56 = vpop.f32.mrb[92].mxu1  ;;  %v1993_v27 = vadd.f32 %v14123_v18, %v1992_v44  ;;  %v2753_v37 = vmax.f32 %v2001_v11, 0.0  ;;  %v2754_v44 = vmax.f32 %v2004_v25, 0.0 }
 0x1a9   : > { %20334 = vst [vmem:[#allocation13_spill] sm:$0xff] %v14253_v40  ;;  %v2529_v34 = vadd.f32 %v14123_v18, %v11565_v56  ;;  %v2520_v38 = vpop.f32.mrb[93].mxu1  ;;  %v2752_v11 = vmax.f32 %v1996_v0, 0.0 }
 0x1aa   : > { %20335 = vst [vmem:[#allocation14_spill] sm:$0xff] %v14255_v51  ;;  %v2521_v30 = vadd.f32 %v14123_v18, %v2520_v38  ;;  %v11566_v59 = vpop.f32.mrb[94].mxu1  ;;  %v2751_v38 = vmax.f32 %v1993_v27, 0.0 }
 0x1ab   : > { %v2532_v47 = vadd.f32 %v14123_v18, %v11566_v59  ;;  %v2523_v48 = vpop.f32.mrb[95].mxu1  ;;  %v2885_v45 = vmax.f32 %v2529_v34, 0.0  ;;  %v14277_v34 = vpack.c.bf16 %v2754_v44, %v2753_v37  ;;  %v11437_v52 = vpop.f32.mrb[92].mxu0 }
 0x1ac   : > { %v2524_v28 = vadd.f32 %v14123_v18, %v2523_v48  ;;  %v2883_v40 = vmax.f32 %v2521_v30, 0.0  ;;  %v14280_v27 = vpack.c.bf16 %v2752_v11, %v2751_v38  ;;  %v2008_v25 = vpop.f32.mrb[93].mxu0 }
 0x1ad   : > { %v2886_v56 = vmax.f32 %v2532_v47, 0.0  ;;  %11676 = vmatmul.mubr.msk.bf16.gmra.mrb[200].mxu1 %vm3066_vm3, %v14197_v63  ;;  %v11438_v0 = vpop.f32.mrb[94].mxu0 }
 0x1ae   : > { %v2884_v59 = vmax.f32 %v2524_v28, 0.0  ;;  %11679 = vmatprep.mubr.msk.bf16.mxu1 %vm3066_vm3, %v14220_v19  ;;  %v2017_v19 = vadd.f32 %v14123_v18, %v11437_v52  ;;  %v2020_v44 = vadd.f32 %v14123_v18, %v11438_v0  ;;  %v2011_v38 = vpop.f32.mrb[95].mxu0 }
 0x1af   : > { %v14273_v51 = vpack.c.bf16 %v2886_v56, %v2885_v45  ;;  %v2012_v52 = vadd.f32 %v14123_v18, %v2011_v38 }
 0x1b0   : > { %v14275_v48 = vpack.c.bf16 %v2884_v59, %v2883_v40  ;;  %v11569_v55 = vpop.f32.mrb[96].mxu1  ;;  %v2009_v40 = vadd.f32 %v14123_v18, %v2008_v25  ;;  %v2757_v59 = vmax.f32 %v2017_v19, 0.0  ;;  %v2758_v25 = vmax.f32 %v2020_v44, 0.0 }
 0x1b1   : > { %20336 = vst [vmem:[#allocation15_spill] sm:$0xff] %v14273_v51  ;;  %v2545_v47 = vadd.f32 %v14123_v18, %v11569_v55  ;;  %v2536_v63 = vpop.f32.mrb[97].mxu1  ;;  %v2756_v19 = vmax.f32 %v2012_v52, 0.0 }
 0x1b2   : > { %20337 = vst [vmem:[#allocation16_spill] sm:$0xff] %v14275_v48  ;;  %v2537_v30 = vadd.f32 %v14123_v18, %v2536_v63  ;;  %v11570_v28 = vpop.f32.mrb[98].mxu1  ;;  %v2755_v63 = vmax.f32 %v2009_v40, 0.0 }
 0x1b3   : > { %v2548_v45 = vadd.f32 %v14123_v18, %v11570_v28  ;;  %v2539_v56 = vpop.f32.mrb[99].mxu1  ;;  %v2889_v11 = vmax.f32 %v2545_v47, 0.0  ;;  %v14297_v47 = vpack.c.bf16 %v2758_v25, %v2757_v59  ;;  %v11441_v38 = vpop.f32.mrb[96].mxu0 }
 0x1b4   : > { %v2540_v37 = vadd.f32 %v14123_v18, %v2539_v56  ;;  %v2887_v51 = vmax.f32 %v2537_v30, 0.0  ;;  %v14300_v40 = vpack.c.bf16 %v2756_v19, %v2755_v63  ;;  %v2024_v44 = vpop.f32.mrb[97].mxu0 }
 0x1b5   : > { %v2890_v55 = vmax.f32 %v2548_v45, 0.0  ;;  %11680 = vmatmul.mubr.msk.bf16.gmra.mrb[204].mxu1 %vm3066_vm3, %v14217_v62  ;;  %v11442_v52 = vpop.f32.mrb[98].mxu0 }
 0x1b6   : > { %v2888_v28 = vmax.f32 %v2540_v37, 0.0  ;;  %11683 = vmatprep.mubr.msk.bf16.mxu1 %vm3066_vm3, %v14240_v57  ;;  %v2033_v57 = vadd.f32 %v14123_v18, %v11441_v38  ;;  %v2036_v25 = vadd.f32 %v14123_v18, %v11442_v52  ;;  %v2027_v63 = vpop.f32.mrb[99].mxu0 }
 0x1b7   : > { %v14293_v48 = vpack.c.bf16 %v2890_v55, %v2889_v11  ;;  %v2028_v38 = vadd.f32 %v14123_v18, %v2027_v63 }
 0x1b8   : > { %v14295_v56 = vpack.c.bf16 %v2888_v28, %v2887_v51  ;;  %v11573_v0 = vpop.f32.mrb[100].mxu1  ;;  %v2025_v51 = vadd.f32 %v14123_v18, %v2024_v44  ;;  %v2761_v28 = vmax.f32 %v2033_v57, 0.0  ;;  %v2762_v44 = vmax.f32 %v2036_v25, 0.0 }
 0x1b9   : > { %20338 = vst [vmem:[#allocation17_spill] sm:$0xff] %v14293_v48  ;;  %v2561_v45 = vadd.f32 %v14123_v18, %v11573_v0  ;;  %v2552_v62 = vpop.f32.mrb[101].mxu1  ;;  %v2760_v57 = vmax.f32 %v2028_v38, 0.0 }
 0x1ba   : > { %20339 = vst [vmem:[#allocation18_spill] sm:$0xff] %v14295_v56  ;;  %v2553_v30 = vadd.f32 %v14123_v18, %v2552_v62  ;;  %v11574_v37 = vpop.f32.mrb[102].mxu1  ;;  %v2759_v62 = vmax.f32 %v2025_v51, 0.0 }
 0x1bb   : > { %v2564_v11 = vadd.f32 %v14123_v18, %v11574_v37  ;;  %v2555_v55 = vpop.f32.mrb[103].mxu1  ;;  %v2893_v19 = vmax.f32 %v2561_v45, 0.0  ;;  %v14317_v45 = vpack.c.bf16 %v2762_v44, %v2761_v28  ;;  %v11445_v63 = vpop.f32.mrb[100].mxu0 }
 0x1bc   : > { %v2556_v59 = vadd.f32 %v14123_v18, %v2555_v55  ;;  %v2891_v48 = vmax.f32 %v2553_v30, 0.0  ;;  %v14320_v51 = vpack.c.bf16 %v2760_v57, %v2759_v62  ;;  %v2040_v25 = vpop.f32.mrb[101].mxu0 }
 0x1bd   : > { %v2894_v0 = vmax.f32 %v2564_v11, 0.0  ;;  %11684 = vmatmul.mubr.msk.bf16.gmra.mrb[208].mxu1 %vm3066_vm3, %v14237_v23  ;;  %v11446_v38 = vpop.f32.mrb[102].mxu0 }
 0x1be   : > { %v2892_v37 = vmax.f32 %v2556_v59, 0.0  ;;  %11687 = vmatprep.mubr.msk.bf16.mxu1 %vm3066_vm3, %v14260_v26  ;;  %v2049_v26 = vadd.f32 %v14123_v18, %v11445_v63  ;;  %v2052_v44 = vadd.f32 %v14123_v18, %v11446_v38  ;;  %v2043_v62 = vpop.f32.mrb[103].mxu0 }
 0x1bf   : > { %v14313_v56 = vpack.c.bf16 %v2894_v0, %v2893_v19  ;;  %v2044_v63 = vadd.f32 %v14123_v18, %v2043_v62 }
 0x1c0   : > { %v14315_v55 = vpack.c.bf16 %v2892_v37, %v2891_v48  ;;  %v11577_v52 = vpop.f32.mrb[104].mxu1  ;;  %v2041_v48 = vadd.f32 %v14123_v18, %v2040_v25  ;;  %v2765_v37 = vmax.f32 %v2049_v26, 0.0  ;;  %v2766_v25 = vmax.f32 %v2052_v44, 0.0 }
 0x1c1   : > { %20340 = vst [vmem:[#allocation19_spill] sm:$0xff] %v14313_v56  ;;  %v2577_v11 = vadd.f32 %v14123_v18, %v11577_v52  ;;  %v2568_v23 = vpop.f32.mrb[105].mxu1  ;;  %v2764_v26 = vmax.f32 %v2044_v63, 0.0 }
 0x1c2   : > { %20341 = vst [vmem:[#allocation20_spill] sm:$0xff] %v14315_v55  ;;  %v2569_v30 = vadd.f32 %v14123_v18, %v2568_v23  ;;  %v11578_v59 = vpop.f32.mrb[106].mxu1  ;;  %v2763_v23 = vmax.f32 %v2041_v48, 0.0 }
 0x1c3   : > { %v2580_v19 = vadd.f32 %v14123_v18, %v11578_v59  ;;  %v2571_v0 = vpop.f32.mrb[107].mxu1  ;;  %v2897_v57 = vmax.f32 %v2577_v11, 0.0  ;;  %v14337_v11 = vpack.c.bf16 %v2766_v25, %v2765_v37  ;;  %v11449_v62 = vpop.f32.mrb[104].mxu0 }
 0x1c4   : > { %v2572_v28 = vadd.f32 %v14123_v18, %v2571_v0  ;;  %v2895_v56 = vmax.f32 %v2569_v30, 0.0  ;;  %v14340_v48 = vpack.c.bf16 %v2764_v26, %v2763_v23  ;;  %v2056_v44 = vpop.f32.mrb[105].mxu0 }
 0x1c5   : > { %v2898_v52 = vmax.f32 %v2580_v19, 0.0  ;;  %11688 = vmatmul.mubr.msk.bf16.gmra.mrb[212].mxu1 %vm3066_vm3, %v14257_v20  ;;  %v11450_v63 = vpop.f32.mrb[106].mxu0 }
 0x1c6   : > { %v2896_v59 = vmax.f32 %v2572_v28, 0.0  ;;  %11691 = vmatprep.mubr.msk.bf16.mxu1 %vm3066_vm3, %v14280_v27  ;;  %v2065_v27 = vadd.f32 %v14123_v18, %v11449_v62  ;;  %v2068_v25 = vadd.f32 %v14123_v18, %v11450_v63  ;;  %v2059_v23 = vpop.f32.mrb[107].mxu0 }
 0x1c7   : > { %v14333_v55 = vpack.c.bf16 %v2898_v52, %v2897_v57  ;;  %v2060_v62 = vadd.f32 %v14123_v18, %v2059_v23 }
 0x1c8   : > { %v14335_v0 = vpack.c.bf16 %v2896_v59, %v2895_v56  ;;  %v11581_v38 = vpop.f32.mrb[108].mxu1  ;;  %v2057_v56 = vadd.f32 %v14123_v18, %v2056_v44  ;;  %v2769_v59 = vmax.f32 %v2065_v27, 0.0  ;;  %v2770_v44 = vmax.f32 %v2068_v25, 0.0 }
 0x1c9   : > { %20342 = vst [vmem:[#allocation21_spill] sm:$0xff] %v14333_v55  ;;  %v2593_v19 = vadd.f32 %v14123_v18, %v11581_v38  ;;  %v2584_v20 = vpop.f32.mrb[109].mxu1  ;;  %v2768_v27 = vmax.f32 %v2060_v62, 0.0 }
 0x1ca   : > { %20343 = vst [vmem:[#allocation22_spill] sm:$0xff] %v14335_v0  ;;  %v2585_v30 = vadd.f32 %v14123_v18, %v2584_v20  ;;  %v11582_v28 = vpop.f32.mrb[110].mxu1  ;;  %v2767_v20 = vmax.f32 %v2057_v56, 0.0 }
 0x1cb   : > { %v2596_v57 = vadd.f32 %v14123_v18, %v11582_v28  ;;  %v2587_v52 = vpop.f32.mrb[111].mxu1  ;;  %v2901_v26 = vmax.f32 %v2593_v19, 0.0  ;;  %v14357_v19 = vpack.c.bf16 %v2770_v44, %v2769_v59  ;;  %v11453_v23 = vpop.f32.mrb[108].mxu0 }
 0x1cc   : > { %v2588_v37 = vadd.f32 %v14123_v18, %v2587_v52  ;;  %v2899_v55 = vmax.f32 %v2585_v30, 0.0  ;;  %v14360_v56 = vpack.c.bf16 %v2768_v27, %v2767_v20  ;;  %v2072_v25 = vpop.f32.mrb[109].mxu0 }
 0x1cd   : > { %v2902_v38 = vmax.f32 %v2596_v57, 0.0  ;;  %11692 = vmatmul.mubr.msk.bf16.gmra.mrb[216].mxu1 %vm3066_vm3, %v14277_v34  ;;  %v11454_v62 = vpop.f32.mrb[110].mxu0 }
 0x1ce   : > { %v2900_v28 = vmax.f32 %v2588_v37, 0.0  ;;  %11695 = vmatprep.mubr.msk.bf16.mxu1 %vm3066_vm3, %v14300_v40  ;;  %v2081_v40 = vadd.f32 %v14123_v18, %v11453_v23  ;;  %v2084_v44 = vadd.f32 %v14123_v18, %v11454_v62  ;;  %v2075_v20 = vpop.f32.mrb[111].mxu0 }
 0x1cf   : > { %v14353_v0 = vpack.c.bf16 %v2902_v38, %v2901_v26  ;;  %v2076_v23 = vadd.f32 %v14123_v18, %v2075_v20 }
 0x1d0   : > { %v14355_v52 = vpack.c.bf16 %v2900_v28, %v2899_v55  ;;  %v11585_v63 = vpop.f32.mrb[112].mxu1  ;;  %v2073_v55 = vadd.f32 %v14123_v18, %v2072_v25  ;;  %v2773_v28 = vmax.f32 %v2081_v40, 0.0  ;;  %v2774_v25 = vmax.f32 %v2084_v44, 0.0 }
 0x1d1   : > { %20344 = vst [vmem:[#allocation23_spill] sm:$0xff] %v14353_v0  ;;  %v2609_v57 = vadd.f32 %v14123_v18, %v11585_v63  ;;  %v2600_v34 = vpop.f32.mrb[113].mxu1  ;;  %v2772_v40 = vmax.f32 %v2076_v23, 0.0 }
 0x1d2   : > { %20345 = vst [vmem:[#allocation24_spill] sm:$0xff] %v14355_v52  ;;  %v2601_v30 = vadd.f32 %v14123_v18, %v2600_v34  ;;  %v11586_v37 = vpop.f32.mrb[114].mxu1  ;;  %v2771_v34 = vmax.f32 %v2073_v55, 0.0 }
 0x1d3   : > { %v2612_v26 = vadd.f32 %v14123_v18, %v11586_v37  ;;  %v2603_v38 = vpop.f32.mrb[115].mxu1  ;;  %v2905_v27 = vmax.f32 %v2609_v57, 0.0  ;;  %v14377_v57 = vpack.c.bf16 %v2774_v25, %v2773_v28  ;;  %v11457_v20 = vpop.f32.mrb[112].mxu0 }
 0x1d4   : > { %v2604_v59 = vadd.f32 %v14123_v18, %v2603_v38  ;;  %v2903_v0 = vmax.f32 %v2601_v30, 0.0  ;;  %v14380_v55 = vpack.c.bf16 %v2772_v40, %v2771_v34  ;;  %v2088_v44 = vpop.f32.mrb[113].mxu0 }
 0x1d5   : > { %v2906_v63 = vmax.f32 %v2612_v26, 0.0  ;;  %11696 = vmatmul.mubr.msk.bf16.gmra.mrb[220].mxu1 %vm3066_vm3, %v14297_v47  ;;  %v11458_v23 = vpop.f32.mrb[114].mxu0 }
 0x1d6   : > { %v2904_v37 = vmax.f32 %v2604_v59, 0.0  ;;  %11699 = vmatprep.mubr.msk.bf16.mxu1 %vm3066_vm3, %v14320_v51  ;;  %v2097_v51 = vadd.f32 %v14123_v18, %v11457_v20  ;;  %v2100_v25 = vadd.f32 %v14123_v18, %v11458_v23  ;;  %v2091_v34 = vpop.f32.mrb[115].mxu0 }
 0x1d7   : > { %v14373_v52 = vpack.c.bf16 %v2906_v63, %v2905_v27  ;;  %v2092_v20 = vadd.f32 %v14123_v18, %v2091_v34 }
 0x1d8   : > { %v14375_v38 = vpack.c.bf16 %v2904_v37, %v2903_v0  ;;  %v11589_v62 = vpop.f32.mrb[116].mxu1  ;;  %v2089_v0 = vadd.f32 %v14123_v18, %v2088_v44  ;;  %v2777_v37 = vmax.f32 %v2097_v51, 0.0  ;;  %v2778_v44 = vmax.f32 %v2100_v25, 0.0 }
 0x1d9   : > { %20346 = vst [vmem:[#allocation25_spill] sm:$0xff] %v14373_v52  ;;  %v2625_v26 = vadd.f32 %v14123_v18, %v11589_v62  ;;  %v2616_v47 = vpop.f32.mrb[117].mxu1  ;;  %v2776_v51 = vmax.f32 %v2092_v20, 0.0 }
 0x1da   : > { %20347 = vst [vmem:[#allocation26_spill] sm:$0xff] %v14375_v38  ;;  %v2617_v30 = vadd.f32 %v14123_v18, %v2616_v47  ;;  %v11590_v59 = vpop.f32.mrb[118].mxu1  ;;  %v2775_v47 = vmax.f32 %v2089_v0, 0.0 }
 0x1db   : > { %v2628_v27 = vadd.f32 %v14123_v18, %v11590_v59  ;;  %v2619_v63 = vpop.f32.mrb[119].mxu1  ;;  %v2909_v40 = vmax.f32 %v2625_v26, 0.0  ;;  %v14397_v26 = vpack.c.bf16 %v2778_v44, %v2777_v37  ;;  %v11461_v34 = vpop.f32.mrb[116].mxu0 }
 0x1dc   : > { %v2620_v28 = vadd.f32 %v14123_v18, %v2619_v63  ;;  %v2907_v52 = vmax.f32 %v2617_v30, 0.0  ;;  %v14400_v0 = vpack.c.bf16 %v2776_v51, %v2775_v47  ;;  %v2104_v25 = vpop.f32.mrb[117].mxu0 }
 0x1dd   : > { %v2910_v62 = vmax.f32 %v2628_v27, 0.0  ;;  %11700 = vmatmul.mubr.msk.bf16.gmra.mrb[224].mxu1 %vm3066_vm3, %v14317_v45  ;;  %v11462_v20 = vpop.f32.mrb[118].mxu0 }
 0x1de   : > { %v2908_v59 = vmax.f32 %v2620_v28, 0.0  ;;  %11703 = vmatprep.mubr.msk.bf16.mxu1 %vm3066_vm3, %v14340_v48  ;;  %v2113_v48 = vadd.f32 %v14123_v18, %v11461_v34  ;;  %v2116_v44 = vadd.f32 %v14123_v18, %v11462_v20  ;;  %v2107_v47 = vpop.f32.mrb[119].mxu0 }
 0x1df   : > { %v14393_v38 = vpack.c.bf16 %v2910_v62, %v2909_v40  ;;  %v2108_v34 = vadd.f32 %v14123_v18, %v2107_v47 }
 0x1e0   : > { %v14395_v63 = vpack.c.bf16 %v2908_v59, %v2907_v52  ;;  %v11593_v23 = vpop.f32.mrb[120].mxu1  ;;  %v2105_v52 = vadd.f32 %v14123_v18, %v2104_v25  ;;  %v2781_v59 = vmax.f32 %v2113_v48, 0.0  ;;  %v2782_v25 = vmax.f32 %v2116_v44, 0.0 }
 0x1e1   : > { %20348 = vst [vmem:[#allocation27_spill] sm:$0xff] %v14393_v38  ;;  %v2641_v27 = vadd.f32 %v14123_v18, %v11593_v23  ;;  %v2632_v45 = vpop.f32.mrb[121].mxu1  ;;  %v2780_v48 = vmax.f32 %v2108_v34, 0.0 }
 0x1e2   : > { %20349 = vst [vmem:[#allocation28_spill] sm:$0xff] %v14395_v63  ;;  %v2633_v30 = vadd.f32 %v14123_v18, %v2632_v45  ;;  %v11594_v28 = vpop.f32.mrb[122].mxu1  ;;  %v2779_v45 = vmax.f32 %v2105_v52, 0.0 }
 0x1e3   : > { %v2644_v40 = vadd.f32 %v14123_v18, %v11594_v28  ;;  %v2635_v62 = vpop.f32.mrb[123].mxu1  ;;  %v2913_v51 = vmax.f32 %v2641_v27, 0.0  ;;  %v14417_v27 = vpack.c.bf16 %v2782_v25, %v2781_v59  ;;  %v11465_v47 = vpop.f32.mrb[120].mxu0 }
 0x1e4   : > { %v2636_v37 = vadd.f32 %v14123_v18, %v2635_v62  ;;  %v2911_v38 = vmax.f32 %v2633_v30, 0.0  ;;  %v14420_v52 = vpack.c.bf16 %v2780_v48, %v2779_v45  ;;  %v2120_v44 = vpop.f32.mrb[121].mxu0 }
 0x1e5   : > { %v2914_v23 = vmax.f32 %v2644_v40, 0.0  ;;  %11704 = vmatmul.mubr.msk.bf16.gmra.mrb[228].mxu1 %vm3066_vm3, %v14337_v11  ;;  %v11466_v34 = vpop.f32.mrb[122].mxu0 }
 0x1e6   : > { %v2912_v28 = vmax.f32 %v2636_v37, 0.0  ;;  %11707 = vmatprep.mubr.msk.bf16.mxu1 %vm3066_vm3, %v14360_v56  ;;  %v2129_v56 = vadd.f32 %v14123_v18, %v11465_v47  ;;  %v2132_v25 = vadd.f32 %v14123_v18, %v11466_v34  ;;  %v2123_v45 = vpop.f32.mrb[123].mxu0 }
 0x1e7   : > { %v14413_v63 = vpack.c.bf16 %v2914_v23, %v2913_v51  ;;  %v2124_v47 = vadd.f32 %v14123_v18, %v2123_v45 }
 0x1e8   : > { %v14415_v62 = vpack.c.bf16 %v2912_v28, %v2911_v38  ;;  %v11597_v20 = vpop.f32.mrb[124].mxu1  ;;  %v2121_v38 = vadd.f32 %v14123_v18, %v2120_v44  ;;  %v2785_v28 = vmax.f32 %v2129_v56, 0.0  ;;  %v14434_v44 = vld [vmem:[%s20112_s4] ss:$0 sm:$0xff]  ;;  %v2786_v56 = vmax.f32 %v2132_v25, 0.0 }
 0x1e9   : > { %20350 = vst [vmem:[#allocation29_spill] sm:$0xff] %v14413_v63  ;;  %v2657_v40 = vadd.f32 %v14123_v18, %v11597_v20  ;;  %v2648_v11 = vpop.f32.mrb[125].mxu1 }
 0x1ea   : > { %20351 = vst [vmem:[#allocation30_spill] sm:$0xff] %v14415_v62  ;;  %v2649_v30 = vadd.f32 %v14123_v18, %v2648_v11  ;;  %v11598_v37 = vpop.f32.mrb[126].mxu1  ;;  %v2783_v11 = vmax.f32 %v2121_v38, 0.0  ;;  %v14442_v38 = vpack.c.bf16 %v2786_v56, %v2785_v28 }
 0x1eb   : > { %v2660_v51 = vadd.f32 %v14123_v18, %v11598_v37  ;;  %v2651_v23 = vpop.f32.mrb[127].mxu1  ;;  %v2917_v48 = vmax.f32 %v2657_v40, 0.0  ;;  %v2784_v40 = vmax.f32 %v2124_v47, 0.0  ;;  %v11469_v45 = vpop.f32.mrb[124].mxu0 }
 0x1ec   : > { %v2652_v59 = vadd.f32 %v14123_v18, %v2651_v23  ;;  %v2915_v63 = vmax.f32 %v2649_v30, 0.0  ;;  %v2145_v31 = vadd.f32 %v14123_v18, %v11469_v45 }
 0x1ed   : > { %v2918_v20 = vmax.f32 %v2660_v51, 0.0  ;;  %11708 = vmatmul.mubr.msk.bf16.gmra.mrb[232].mxu1 %vm3066_vm3, %v14357_v19 }
 0x1ee   : > { %v2916_v37 = vmax.f32 %v2652_v59, 0.0  ;;  %11711 = vmatprep.mubr.msk.bf16.mxu1 %vm3066_vm3, %v14380_v55  ;;  %v2979_v59 = vpack.c.bf16 %v2784_v40, %v2783_v11  ;;  %v2136_v55 = vpop.f32.mrb[125].mxu0  ;;  %v2789_v47 = vmax.f32 %v2145_v31, 0.0 }
 0x1ef   : > { %v14438_v23 = vpack.c.bf16 %v2918_v20, %v2917_v48  ;;  %v11470_v20 = vpop.f32.mrb[126].mxu0 }
 0x1f0   : > { %v14440_v51 = vpack.c.bf16 %v2916_v37, %v2915_v63  ;;  %v11605_v19 = vpop.f32.mrb[128].mxu1  ;;  %v2137_v63 = vadd.f32 %v14123_v18, %v2136_v55  ;;  %v2148_v37 = vadd.f32 %v14123_v18, %v11470_v20  ;;  %v2139_v56 = vpop.f32.mrb[127].mxu0 }
 0x1f1   : > { %20352 = vst [vmem:[#allocation31_spill] sm:$0xff] %v14438_v23  ;;  %v3498_v30 = vadd.f32 %v11605_v19, %v14434_v44  ;;  %v3489_v34 = vpop.f32.mrb[129].mxu1 }
 0x1f2   : > { %20353 = vst [vmem:[#allocation32_spill] sm:$0xff] %v14440_v51  ;;  %v3490_v62 = vadd.f32 %v14434_v44, %v3489_v34  ;;  %v11606_v54 = vpop.f32.mrb[130].mxu1  ;;  %v2787_v19 = vmax.f32 %v2137_v63, 0.0  ;;  %v2140_v34 = vadd.f32 %v14123_v18, %v2139_v56  ;;  %v2790_v55 = vmax.f32 %v2148_v37, 0.0 }
 0x1f3   : > { %v3501_v25 = vadd.f32 %v11606_v54, %v14434_v44  ;;  %v3492_v48 = vpop.f32.mrb[131].mxu1  ;;  %v4514_v11 = vmax.f32 %v3498_v30, 0.0 }
 0x1f4   : > { %v3493_v28 = vadd.f32 %v14434_v44, %v3492_v48  ;;  %v4512_v45 = vmax.f32 %v3490_v62, 0.0  ;;  %v2788_v31 = vmax.f32 %v2140_v34, 0.0  ;;  %v14456_v51 = vpack.c.bf16 %v2790_v55, %v2789_v47 }
 0x1f5   : > { %v4515_v40 = vmax.f32 %v3501_v25, 0.0  ;;  %11712 = vmatmul.mubr.msk.bf16.gmra.mrb[236].mxu1 %vm3066_vm3, %v14377_v57 }
 0x1f6   : > { %v4513_v54 = vmax.f32 %v3493_v28, 0.0  ;;  %11715 = vmatprep.mubr.msk.bf16.mxu1 %vm3066_vm3, %v14400_v0  ;;  %v2981_v57 = vpack.c.bf16 %v2788_v31, %v2787_v19 }
 0x1f7   : > { %v4769_v23 = vpack.c.bf16 %v4515_v40, %v4514_v11 }
 0x1f8   : > { %v4768_v48 = vpack.c.bf16 %v4513_v54, %v4512_v45  ;;  %v11609_v20 = vpop.f32.mrb[132].mxu1 }
 0x1f9   : > { %v3514_v30 = vadd.f32 %v11609_v20, %v14434_v44  ;;  %v3505_v25 = vpop.f32.mrb[133].mxu1 }
 0x1fa   : > { %v3506_v63 = vadd.f32 %v14434_v44, %v3505_v25  ;;  %v11610_v18 = vpop.f32.mrb[134].mxu1  ;;  %11861 = vmatprep.mubr.msk.bf16.mxu0 %vm4905_vm4, %v4768_v48 }
 0x1fb   : > { %v3517_v62 = vadd.f32 %v11610_v18, %v14434_v44  ;;  %v3508_v0 = vpop.f32.mrb[135].mxu1  ;;  %11862 = vmatmul.mubr.msk.bf16.vlgmr.msra.gmra.mrb[128].mxu0 %vm4905_vm4, %v4769_v23  ;;  %v4518_v37 = vmax.f32 %v3514_v30, 0.0 }
 0x1fc   : > { %v3509_v28 = vadd.f32 %v14434_v44, %v3508_v0  ;;  %v4516_v47 = vmax.f32 %v3506_v63, 0.0 }
 0x1fd   : > { %v4519_v56 = vmax.f32 %v3517_v62, 0.0  ;;  %11716 = vmatmul.mubr.msk.bf16.gmra.mrb[240].mxu1 %vm3066_vm3, %v14397_v26 }
 0x1fe   : > { %v4517_v11 = vmax.f32 %v3509_v28, 0.0  ;;  %11719 = vmatprep.mubr.msk.bf16.mxu1 %vm3066_vm3, %v14420_v52 }
 0x1ff   : > { %v4771_v40 = vpack.c.bf16 %v4519_v56, %v4518_v37 }
 0x200   : > { %v4770_v19 = vpack.c.bf16 %v4517_v11, %v4516_v47  ;;  %v11613_v34 = vpop.f32.mrb[136].mxu1 }
 0x201   : > { %v3530_v45 = vadd.f32 %v11613_v34, %v14434_v44  ;;  %v3521_v54 = vpop.f32.mrb[137].mxu1 }
 0x202   : > { %v3522_v23 = vadd.f32 %v14434_v44, %v3521_v54  ;;  %v11614_v55 = vpop.f32.mrb[138].mxu1  ;;  %11865 = vmatprep.mubr.msk.bf16.mxu0 %vm4905_vm4, %v4770_v19 }
 0x203   : > { %v3533_v31 = vadd.f32 %v11614_v55, %v14434_v44  ;;  %v3524_v48 = vpop.f32.mrb[139].mxu1  ;;  %11866 = vmatmul.mubr.msk.bf16.gmra.mrb[132].mxu0 %vm4905_vm4, %v4771_v40  ;;  %v4522_v20 = vmax.f32 %v3530_v45, 0.0 }
 0x204   : > { %v3525_v26 = vadd.f32 %v14434_v44, %v3524_v48  ;;  %v4520_v30 = vmax.f32 %v3522_v23, 0.0 }
 0x205   : > { %v4523_v52 = vmax.f32 %v3533_v31, 0.0  ;;  %11720 = vmatmul.mubr.msk.bf16.gmra.mrb[244].mxu1 %vm3066_vm3, %v14417_v27 }
 0x206   : > { %v4521_v25 = vmax.f32 %v3525_v26, 0.0  ;;  %11723 = vmatprep.mubr.msk.bf16.mxu1 %vm3066_vm3, %v2979_v59 }
 0x207   : > { %v4773_v63 = vpack.c.bf16 %v4523_v52, %v4522_v20 }
 0x208   : > { %v4772_v18 = vpack.c.bf16 %v4521_v25, %v4520_v30  ;;  %v11617_v62 = vpop.f32.mrb[140].mxu1 }
 0x209   : > { %v3546_v0 = vadd.f32 %v11617_v62, %v14434_v44  ;;  %v3537_v28 = vpop.f32.mrb[141].mxu1 }
 0x20a   : > { %v3538_v37 = vadd.f32 %v14434_v44, %v3537_v28  ;;  %v11618_v56 = vpop.f32.mrb[142].mxu1  ;;  %11869 = vmatprep.mubr.msk.bf16.mxu0 %vm4905_vm4, %v4772_v18 }
 0x20b   : > { %v3549_v47 = vadd.f32 %v11618_v56, %v14434_v44  ;;  %v3540_v11 = vpop.f32.mrb[143].mxu1  ;;  %11870 = vmatmul.mubr.msk.bf16.gmra.mrb[136].mxu0 %vm4905_vm4, %v4773_v63  ;;  %v4526_v40 = vmax.f32 %v3546_v0, 0.0 }
 0x20c   : > { %v3541_v27 = vadd.f32 %v14434_v44, %v3540_v11  ;;  %v4524_v19 = vmax.f32 %v3538_v37, 0.0 }
 0x20d   : > { %v4527_v59 = vmax.f32 %v3549_v47, 0.0  ;;  %11724 = vmatmul.mubr.msk.bf16.gmra.mrb[248].mxu1 %vm3066_vm3, %v14442_v38 }
 0x20e   : > { %v4525_v34 = vmax.f32 %v3541_v27, 0.0  ;;  %11727 = vmatprep.mubr.msk.bf16.mxu1 %vm3066_vm3, %v2981_v57 }
 0x20f   : > { %v4775_v45 = vpack.c.bf16 %v4527_v59, %v4526_v40 }
 0x210   : > { %v4774_v54 = vpack.c.bf16 %v4525_v34, %v4524_v19  ;;  %v11621_v23 = vpop.f32.mrb[144].mxu1 }
 0x211   : > { %v3562_v55 = vadd.f32 %v11621_v23, %v14434_v44  ;;  %v3553_v31 = vpop.f32.mrb[145].mxu1 }
 0x212   : > { %v3554_v48 = vadd.f32 %v14434_v44, %v3553_v31  ;;  %v11622_v26 = vpop.f32.mrb[146].mxu1  ;;  %11873 = vmatprep.mubr.msk.bf16.mxu0 %vm4905_vm4, %v4774_v54 }
 0x213   : > { %v3565_v20 = vadd.f32 %v11622_v26, %v14434_v44  ;;  %v3556_v52 = vpop.f32.mrb[147].mxu1  ;;  %11874 = vmatmul.mubr.msk.bf16.gmra.mrb[140].mxu0 %vm4905_vm4, %v4775_v45  ;;  %v4530_v30 = vmax.f32 %v3562_v55, 0.0 }
 0x214   : > { %v3557_v38 = vadd.f32 %v14434_v44, %v3556_v52  ;;  %v4528_v25 = vmax.f32 %v3554_v48, 0.0 }
 0x215   : > { %v4531_v57 = vmax.f32 %v3565_v20, 0.0  ;;  %11728 = vmatmul.mubr.msk.bf16.gmra.mrb[252].mxu1 %vm3066_vm3, %v14456_v51 }
 0x216   : > { %v4529_v63 = vmax.f32 %v3557_v38, 0.0  ;;  %11731 = vmatprep.mubr.msk.bf16.mxu1 %vm3066_vm3, %v13796_v5 }
 0x217   : > { %v4777_v18 = vpack.c.bf16 %v4531_v57, %v4530_v30 }
 0x218   : > { %v4776_v62 = vpack.c.bf16 %v4529_v63, %v4528_v25  ;;  %v11625_v0 = vpop.f32.mrb[148].mxu1 }
 0x219   : > { %v3578_v28 = vadd.f32 %v11625_v0, %v14434_v44  ;;  %v3569_v37 = vpop.f32.mrb[149].mxu1 }
 0x21a   : > { %v3570_v56 = vadd.f32 %v14434_v44, %v3569_v37  ;;  %v11626_v47 = vpop.f32.mrb[150].mxu1  ;;  %11877 = vmatprep.mubr.msk.bf16.mxu0 %vm4905_vm4, %v4776_v62 }
 0x21b   : > { %v3581_v11 = vadd.f32 %v11626_v47, %v14434_v44  ;;  %v3572_v27 = vpop.f32.mrb[151].mxu1  ;;  %11878 = vmatmul.mubr.msk.bf16.gmra.mrb[144].mxu0 %vm4905_vm4, %v4777_v18  ;;  %v4534_v40 = vmax.f32 %v3578_v28, 0.0 }
 0x21c   : > { %v3573_v51 = vadd.f32 %v14434_v44, %v3572_v27  ;;  %v4532_v59 = vmax.f32 %v3570_v56, 0.0 }
 0x21d   : > { %v4535_v5 = vmax.f32 %v3581_v11, 0.0  ;;  %11732 = vmatmul.mubr.msk.bf16.gmra.mrb[0].mxu1 %vm3066_vm3, %v13793_v4 }
 0x21e   : > { %v4533_v19 = vmax.f32 %v3573_v51, 0.0  ;;  %11735 = vmatprep.mubr.msk.bf16.mxu1 %vm3066_vm3, %v13816_v35 }
 0x21f   : > { %v4779_v34 = vpack.c.bf16 %v4535_v5, %v4534_v40 }
 0x220   : > { %v4778_v45 = vpack.c.bf16 %v4533_v19, %v4532_v59  ;;  %v11629_v54 = vpop.f32.mrb[152].mxu1 }
 0x221   : > { %v3594_v23 = vadd.f32 %v11629_v54, %v14434_v44  ;;  %v3585_v55 = vpop.f32.mrb[153].mxu1 }
 0x222   : > { %v3586_v31 = vadd.f32 %v14434_v44, %v3585_v55  ;;  %v11630_v48 = vpop.f32.mrb[154].mxu1  ;;  %11881 = vmatprep.mubr.msk.bf16.mxu0 %vm4905_vm4, %v4778_v45 }
 0x223   : > { %v3597_v26 = vadd.f32 %v11630_v48, %v14434_v44  ;;  %v3588_v20 = vpop.f32.mrb[155].mxu1  ;;  %11882 = vmatmul.mubr.msk.bf16.gmra.mrb[148].mxu0 %vm4905_vm4, %v4779_v34  ;;  %v4538_v52 = vmax.f32 %v3594_v23, 0.0 }
 0x224   : > { %v3589_v4 = vadd.f32 %v14434_v44, %v3588_v20  ;;  %v4536_v38 = vmax.f32 %v3586_v31, 0.0 }
 0x225   : > { %v4539_v35 = vmax.f32 %v3597_v26, 0.0  ;;  %11736 = vmatmul.mubr.msk.bf16.gmra.mrb[4].mxu1 %vm3066_vm3, %v13813_v33 }
 0x226   : > { %v4537_v30 = vmax.f32 %v3589_v4, 0.0  ;;  %11739 = vmatprep.mubr.msk.bf16.mxu1 %vm3066_vm3, %v13840_v6 }
 0x227   : > { %v4781_v57 = vpack.c.bf16 %v4539_v35, %v4538_v52 }
 0x228   : > { %v4780_v25 = vpack.c.bf16 %v4537_v30, %v4536_v38  ;;  %v11633_v63 = vpop.f32.mrb[156].mxu1 }
 0x229   : > { %v3610_v18 = vadd.f32 %v11633_v63, %v14434_v44  ;;  %v3601_v62 = vpop.f32.mrb[157].mxu1 }
 0x22a   : > { %v3602_v0 = vadd.f32 %v14434_v44, %v3601_v62  ;;  %v11634_v28 = vpop.f32.mrb[158].mxu1  ;;  %11885 = vmatprep.mubr.msk.bf16.mxu0 %vm4905_vm4, %v4780_v25 }
 0x22b   : > { %v3613_v37 = vadd.f32 %v11634_v28, %v14434_v44  ;;  %v3604_v56 = vpop.f32.mrb[159].mxu1  ;;  %11886 = vmatmul.mubr.msk.bf16.gmra.mrb[152].mxu0 %vm4905_vm4, %v4781_v57  ;;  %v4542_v47 = vmax.f32 %v3610_v18, 0.0 }
 0x22c   : > { %v3605_v33 = vadd.f32 %v14434_v44, %v3604_v56  ;;  %v4540_v11 = vmax.f32 %v3602_v0, 0.0 }
 0x22d   : > { %v4543_v6 = vmax.f32 %v3613_v37, 0.0  ;;  %11740 = vmatmul.mubr.msk.bf16.gmra.mrb[8].mxu1 %vm3066_vm3, %v13837_v2 }
 0x22e   : > { %v4541_v27 = vmax.f32 %v3605_v33, 0.0  ;;  %11743 = vmatprep.mubr.msk.bf16.mxu1 %vm3066_vm3, %v13864_v42 }
 0x22f   : > { %v4783_v51 = vpack.c.bf16 %v4543_v6, %v4542_v47 }
 0x230   : > { %v4782_v40 = vpack.c.bf16 %v4541_v27, %v4540_v11  ;;  %v11637_v5 = vpop.f32.mrb[160].mxu1 }
 0x231   : > { %v3626_v59 = vadd.f32 %v11637_v5, %v14434_v44  ;;  %v3617_v19 = vpop.f32.mrb[161].mxu1 }
 0x232   : > { %v3618_v34 = vadd.f32 %v14434_v44, %v3617_v19  ;;  %v11638_v45 = vpop.f32.mrb[162].mxu1  ;;  %11889 = vmatprep.mubr.msk.bf16.mxu0 %vm4905_vm4, %v4782_v40 }
 0x233   : > { %v3629_v54 = vadd.f32 %v11638_v45, %v14434_v44  ;;  %v3620_v23 = vpop.f32.mrb[163].mxu1  ;;  %11890 = vmatmul.mubr.msk.bf16.gmra.mrb[156].mxu0 %vm4905_vm4, %v4783_v51  ;;  %v4546_v55 = vmax.f32 %v3626_v59, 0.0 }
 0x234   : > { %v3621_v2 = vadd.f32 %v14434_v44, %v3620_v23  ;;  %v4544_v31 = vmax.f32 %v3618_v34, 0.0 }
 0x235   : > { %v4547_v42 = vmax.f32 %v3629_v54, 0.0  ;;  %11744 = vmatmul.mubr.msk.bf16.gmra.mrb[12].mxu1 %vm3066_vm3, %v13861_v39 }
 0x236   : > { %v4545_v48 = vmax.f32 %v3621_v2, 0.0  ;;  %11747 = vmatprep.mubr.msk.bf16.mxu1 %vm3066_vm3, %v13888_v16 }
 0x237   : > { %v4785_v26 = vpack.c.bf16 %v4547_v42, %v4546_v55 }
 0x238   : > { %v4784_v20 = vpack.c.bf16 %v4545_v48, %v4544_v31  ;;  %v11641_v4 = vpop.f32.mrb[164].mxu1 }
 0x239   : > { %v3642_v52 = vadd.f32 %v11641_v4, %v14434_v44  ;;  %v3633_v35 = vpop.f32.mrb[165].mxu1 }
 0x23a   : > { %v3634_v38 = vadd.f32 %v14434_v44, %v3633_v35  ;;  %v11642_v30 = vpop.f32.mrb[166].mxu1  ;;  %11893 = vmatprep.mubr.msk.bf16.mxu0 %vm4905_vm4, %v4784_v20 }
 0x23b   : > { %v3645_v57 = vadd.f32 %v11642_v30, %v14434_v44  ;;  %v3636_v25 = vpop.f32.mrb[167].mxu1  ;;  %11894 = vmatmul.mubr.msk.bf16.gmra.mrb[160].mxu0 %vm4905_vm4, %v4785_v26  ;;  %v4550_v63 = vmax.f32 %v3642_v52, 0.0 }
 0x23c   : > { %v3637_v39 = vadd.f32 %v14434_v44, %v3636_v25  ;;  %v4548_v18 = vmax.f32 %v3634_v38, 0.0 }
 0x23d   : > { %v4551_v16 = vmax.f32 %v3645_v57, 0.0  ;;  %11748 = vmatmul.mubr.msk.bf16.gmra.mrb[16].mxu1 %vm3066_vm3, %v13885_v14 }
 0x23e   : > { %v4549_v62 = vmax.f32 %v3637_v39, 0.0  ;;  %11751 = vmatprep.mubr.msk.bf16.mxu1 %vm3066_vm3, %v13910_v53 }
 0x23f   : > { %v4787_v0 = vpack.c.bf16 %v4551_v16, %v4550_v63 }
 0x240   : > { %v4786_v28 = vpack.c.bf16 %v4549_v62, %v4548_v18  ;;  %v11645_v37 = vpop.f32.mrb[168].mxu1 }
 0x241   : > { %v3658_v56 = vadd.f32 %v11645_v37, %v14434_v44  ;;  %v3649_v33 = vpop.f32.mrb[169].mxu1 }
 0x242   : > { %v3650_v47 = vadd.f32 %v14434_v44, %v3649_v33  ;;  %v11646_v6 = vpop.f32.mrb[170].mxu1  ;;  %11897 = vmatprep.mubr.msk.bf16.mxu0 %vm4905_vm4, %v4786_v28 }
 0x243   : > { %v3661_v11 = vadd.f32 %v11646_v6, %v14434_v44  ;;  %v3652_v27 = vpop.f32.mrb[171].mxu1  ;;  %11898 = vmatmul.mubr.msk.bf16.gmra.mrb[164].mxu0 %vm4905_vm4, %v4787_v0  ;;  %v4554_v51 = vmax.f32 %v3658_v56, 0.0 }
 0x244   : > { %v3653_v14 = vadd.f32 %v14434_v44, %v3652_v27  ;;  %v4552_v40 = vmax.f32 %v3650_v47, 0.0 }
 0x245   : > { %v4555_v53 = vmax.f32 %v3661_v11, 0.0  ;;  %11752 = vmatmul.mubr.msk.bf16.gmra.mrb[20].mxu1 %vm3066_vm3, %v13908_v50 }
 0x246   : > { %v4553_v5 = vmax.f32 %v3653_v14, 0.0  ;;  %11755 = vmatprep.mubr.msk.bf16.mxu1 %vm3066_vm3, %v13930_v24 }
 0x247   : > { %v4789_v59 = vpack.c.bf16 %v4555_v53, %v4554_v51 }
 0x248   : > { %v4788_v19 = vpack.c.bf16 %v4553_v5, %v4552_v40  ;;  %v11649_v34 = vpop.f32.mrb[172].mxu1 }
 0x249   : > { %v3674_v45 = vadd.f32 %v11649_v34, %v14434_v44  ;;  %v3665_v54 = vpop.f32.mrb[173].mxu1 }
 0x24a   : > { %v3666_v23 = vadd.f32 %v14434_v44, %v3665_v54  ;;  %v11650_v2 = vpop.f32.mrb[174].mxu1  ;;  %11901 = vmatprep.mubr.msk.bf16.mxu0 %vm4905_vm4, %v4788_v19 }
 0x24b   : > { %v3677_v55 = vadd.f32 %v11650_v2, %v14434_v44  ;;  %v3668_v42 = vpop.f32.mrb[175].mxu1  ;;  %11902 = vmatmul.mubr.msk.bf16.gmra.mrb[168].mxu0 %vm4905_vm4, %v4789_v59  ;;  %v4558_v31 = vmax.f32 %v3674_v45, 0.0 }
 0x24c   : > { %v3669_v50 = vadd.f32 %v14434_v44, %v3668_v42  ;;  %v4556_v48 = vmax.f32 %v3666_v23, 0.0 }
 0x24d   : > { %v4559_v24 = vmax.f32 %v3677_v55, 0.0  ;;  %11756 = vmatmul.mubr.msk.bf16.gmra.mrb[24].mxu1 %vm3066_vm3, %v13928_v22 }
 0x24e   : > { %v4557_v26 = vmax.f32 %v3669_v50, 0.0  ;;  %11759 = vmatprep.mubr.msk.bf16.mxu1 %vm3066_vm3, %v13950_v61 }
 0x24f   : > { %v4791_v20 = vpack.c.bf16 %v4559_v24, %v4558_v31 }
 0x250   : > { %v4790_v4 = vpack.c.bf16 %v4557_v26, %v4556_v48  ;;  %v11653_v52 = vpop.f32.mrb[176].mxu1 }
 0x251   : > { %v3690_v35 = vadd.f32 %v11653_v52, %v14434_v44  ;;  %v3681_v38 = vpop.f32.mrb[177].mxu1 }
 0x252   : > { %v3682_v30 = vadd.f32 %v14434_v44, %v3681_v38  ;;  %v11654_v57 = vpop.f32.mrb[178].mxu1  ;;  %11905 = vmatprep.mubr.msk.bf16.mxu0 %vm4905_vm4, %v4790_v4 }
 0x253   : > { %v3693_v25 = vadd.f32 %v11654_v57, %v14434_v44  ;;  %v3684_v39 = vpop.f32.mrb[179].mxu1  ;;  %11906 = vmatmul.mubr.msk.bf16.gmra.mrb[172].mxu0 %vm4905_vm4, %v4791_v20  ;;  %v4562_v63 = vmax.f32 %v3690_v35, 0.0 }
 0x254   : > { %v3685_v22 = vadd.f32 %v14434_v44, %v3684_v39  ;;  %v4560_v16 = vmax.f32 %v3682_v30, 0.0 }
 0x255   : > { %v4563_v61 = vmax.f32 %v3693_v25, 0.0  ;;  %11760 = vmatmul.mubr.msk.bf16.gmra.mrb[28].mxu1 %vm3066_vm3, %v13948_v12 }
 0x256   : > { %v4561_v18 = vmax.f32 %v3685_v22, 0.0  ;;  %11763 = vmatprep.mubr.msk.bf16.mxu1 %vm3066_vm3, %v13970_v36 }
 0x257   : > { %v4793_v62 = vpack.c.bf16 %v4563_v61, %v4562_v63 }
 0x258   : > { %v4792_v0 = vpack.c.bf16 %v4561_v18, %v4560_v16  ;;  %v11657_v28 = vpop.f32.mrb[180].mxu1 }
 0x259   : > { %v3706_v37 = vadd.f32 %v11657_v28, %v14434_v44  ;;  %v3697_v56 = vpop.f32.mrb[181].mxu1 }
 0x25a   : > { %v3698_v33 = vadd.f32 %v14434_v44, %v3697_v56  ;;  %v11658_v47 = vpop.f32.mrb[182].mxu1  ;;  %11909 = vmatprep.mubr.msk.bf16.mxu0 %vm4905_vm4, %v4792_v0 }
 0x25b   : > { %v3709_v6 = vadd.f32 %v11658_v47, %v14434_v44  ;;  %v3700_v11 = vpop.f32.mrb[183].mxu1  ;;  %11910 = vmatmul.mubr.msk.bf16.gmra.mrb[176].mxu0 %vm4905_vm4, %v4793_v62  ;;  %v4566_v27 = vmax.f32 %v3706_v37, 0.0 }
 0x25c   : > { %v3701_v12 = vadd.f32 %v14434_v44, %v3700_v11  ;;  %v4564_v14 = vmax.f32 %v3698_v33, 0.0 }
 0x25d   : > { %v4567_v36 = vmax.f32 %v3709_v6, 0.0  ;;  %11764 = vmatmul.mubr.msk.bf16.gmra.mrb[32].mxu1 %vm3066_vm3, %v13968_v32 }
 0x25e   : > { %v4565_v51 = vmax.f32 %v3701_v12, 0.0  ;;  %11767 = vmatprep.mubr.msk.bf16.mxu1 %vm3066_vm3, %v13990_v17 }
 0x25f   : > { %v4795_v53 = vpack.c.bf16 %v4567_v36, %v4566_v27 }
 0x260   : > { %v4794_v40 = vpack.c.bf16 %v4565_v51, %v4564_v14  ;;  %v11661_v5 = vpop.f32.mrb[184].mxu1 }
 0x261   : > { %v3722_v59 = vadd.f32 %v11661_v5, %v14434_v44  ;;  %v3713_v19 = vpop.f32.mrb[185].mxu1 }
 0x262   : > { %v3714_v34 = vadd.f32 %v14434_v44, %v3713_v19  ;;  %v11662_v45 = vpop.f32.mrb[186].mxu1  ;;  %11913 = vmatprep.mubr.msk.bf16.mxu0 %vm4905_vm4, %v4794_v40 }
 0x263   : > { %v3725_v54 = vadd.f32 %v11662_v45, %v14434_v44  ;;  %v3716_v23 = vpop.f32.mrb[187].mxu1  ;;  %11914 = vmatmul.mubr.msk.bf16.gmra.mrb[180].mxu0 %vm4905_vm4, %v4795_v53  ;;  %v4570_v2 = vmax.f32 %v3722_v59, 0.0 }
 0x264   : > { %v3717_v32 = vadd.f32 %v14434_v44, %v3716_v23  ;;  %v4568_v55 = vmax.f32 %v3714_v34, 0.0 }
 0x265   : > { %v4571_v17 = vmax.f32 %v3725_v54, 0.0  ;;  %11768 = vmatmul.mubr.msk.bf16.gmra.mrb[36].mxu1 %vm3066_vm3, %v13988_v13 }
 0x266   : > { %v4569_v42 = vmax.f32 %v3717_v32, 0.0  ;;  %11771 = vmatprep.mubr.msk.bf16.mxu1 %vm3066_vm3, %v14010_v60 }
 0x267   : > { %v4797_v50 = vpack.c.bf16 %v4571_v17, %v4570_v2 }
 0x268   : > { %v4796_v31 = vpack.c.bf16 %v4569_v42, %v4568_v55  ;;  %v11665_v24 = vpop.f32.mrb[188].mxu1 }
 0x269   : > { %v3738_v48 = vadd.f32 %v11665_v24, %v14434_v44  ;;  %v3729_v26 = vpop.f32.mrb[189].mxu1 }
 0x26a   : > { %v3730_v20 = vadd.f32 %v14434_v44, %v3729_v26  ;;  %v11666_v4 = vpop.f32.mrb[190].mxu1  ;;  %11917 = vmatprep.mubr.msk.bf16.mxu0 %vm4905_vm4, %v4796_v31 }
 0x26b   : > { %v3741_v52 = vadd.f32 %v11666_v4, %v14434_v44  ;;  %v3732_v35 = vpop.f32.mrb[191].mxu1  ;;  %11918 = vmatmul.mubr.msk.bf16.gmra.mrb[184].mxu0 %vm4905_vm4, %v4797_v50  ;;  %v4574_v38 = vmax.f32 %v3738_v48, 0.0 }
 0x26c   : > { %v3733_v13 = vadd.f32 %v14434_v44, %v3732_v35  ;;  %v4572_v30 = vmax.f32 %v3730_v20, 0.0 }
 0x26d   : > { %v4575_v60 = vmax.f32 %v3741_v52, 0.0  ;;  %11772 = vmatmul.mubr.msk.bf16.gmra.mrb[40].mxu1 %vm3066_vm3, %v14008_v58 }
 0x26e   : > { %v4573_v57 = vmax.f32 %v3733_v13, 0.0  ;;  %11775 = vmatprep.mubr.msk.bf16.mxu1 %vm3066_vm3, %v14030_v46 }
 0x26f   : > { %v4799_v25 = vpack.c.bf16 %v4575_v60, %v4574_v38 }
 0x270   : > { %v4798_v39 = vpack.c.bf16 %v4573_v57, %v4572_v30  ;;  %v11669_v22 = vpop.f32.mrb[192].mxu1 }
 0x271   : > { %v3754_v63 = vadd.f32 %v11669_v22, %v14434_v44  ;;  %v3745_v61 = vpop.f32.mrb[193].mxu1 }
 0x272   : > { %v3746_v16 = vadd.f32 %v14434_v44, %v3745_v61  ;;  %v11670_v18 = vpop.f32.mrb[194].mxu1  ;;  %11921 = vmatprep.mubr.msk.bf16.mxu0 %vm4905_vm4, %v4798_v39 }
 0x273   : > { %v3757_v62 = vadd.f32 %v11670_v18, %v14434_v44  ;;  %v3748_v0 = vpop.f32.mrb[195].mxu1  ;;  %11922 = vmatmul.mubr.msk.bf16.gmra.mrb[188].mxu0 %vm4905_vm4, %v4799_v25  ;;  %v4578_v28 = vmax.f32 %v3754_v63, 0.0 }
 0x274   : > { %v3749_v58 = vadd.f32 %v14434_v44, %v3748_v0  ;;  %v4576_v37 = vmax.f32 %v3746_v16, 0.0 }
 0x275   : > { %v4579_v46 = vmax.f32 %v3757_v62, 0.0  ;;  %11776 = vmatmul.mubr.msk.bf16.gmra.mrb[44].mxu1 %vm3066_vm3, %v14028_v43 }
 0x276   : > { %v4577_v56 = vmax.f32 %v3749_v58, 0.0  ;;  %11779 = vmatprep.mubr.msk.bf16.mxu1 %vm3066_vm3, %v14050_v29 }
 0x277   : > { %v4801_v33 = vpack.c.bf16 %v4579_v46, %v4578_v28 }
 0x278   : > { %v4800_v47 = vpack.c.bf16 %v4577_v56, %v4576_v37  ;;  %v11673_v6 = vpop.f32.mrb[196].mxu1 }
 0x279   : > { %v3770_v11 = vadd.f32 %v11673_v6, %v14434_v44  ;;  %v3761_v12 = vpop.f32.mrb[197].mxu1 }
 0x27a   : > { %v3762_v27 = vadd.f32 %v14434_v44, %v3761_v12  ;;  %v11674_v36 = vpop.f32.mrb[198].mxu1  ;;  %11925 = vmatprep.mubr.msk.bf16.mxu0 %vm4905_vm4, %v4800_v47 }
 0x27b   : > { %v3773_v14 = vadd.f32 %v11674_v36, %v14434_v44  ;;  %v3764_v51 = vpop.f32.mrb[199].mxu1  ;;  %11926 = vmatmul.mubr.msk.bf16.gmra.mrb[192].mxu0 %vm4905_vm4, %v4801_v33  ;;  %v4582_v53 = vmax.f32 %v3770_v11, 0.0 }
 0x27c   : > { %v3765_v43 = vadd.f32 %v14434_v44, %v3764_v51  ;;  %v4580_v40 = vmax.f32 %v3762_v27, 0.0 }
 0x27d   : > { %v4583_v29 = vmax.f32 %v3773_v14, 0.0  ;;  %11780 = vmatmul.mubr.msk.bf16.gmra.mrb[48].mxu1 %vm3066_vm3, %v14048_v8 }
 0x27e   : > { %v4581_v5 = vmax.f32 %v3765_v43, 0.0  ;;  %11783 = vmatprep.mubr.msk.bf16.mxu1 %vm3066_vm3, %v14070_v41 }
 0x27f   : > { %v4803_v59 = vpack.c.bf16 %v4583_v29, %v4582_v53 }
 0x280   : > { %v4802_v19 = vpack.c.bf16 %v4581_v5, %v4580_v40  ;;  %v11677_v34 = vpop.f32.mrb[200].mxu1 }
 0x281   : > { %v3786_v45 = vadd.f32 %v11677_v34, %v14434_v44  ;;  %v3777_v54 = vpop.f32.mrb[201].mxu1 }
 0x282   : > { %v3778_v23 = vadd.f32 %v14434_v44, %v3777_v54  ;;  %v11678_v32 = vpop.f32.mrb[202].mxu1  ;;  %11929 = vmatprep.mubr.msk.bf16.mxu0 %vm4905_vm4, %v4802_v19 }
 0x283   : > { %v3789_v2 = vadd.f32 %v11678_v32, %v14434_v44  ;;  %v3780_v17 = vpop.f32.mrb[203].mxu1  ;;  %11930 = vmatmul.mubr.msk.bf16.gmra.mrb[196].mxu0 %vm4905_vm4, %v4803_v59  ;;  %v4586_v55 = vmax.f32 %v3786_v45, 0.0 }
 0x284   : > { %v3781_v8 = vadd.f32 %v14434_v44, %v3780_v17  ;;  %v4584_v42 = vmax.f32 %v3778_v23, 0.0  ;;  %v20354_v23 = vld [vmem:[#allocation4_spill] sm:$0xff]  ;;  %v20355_v17 = vld [vmem:[#allocation6_spill] sm:$0xff] }
 0x285   : > { %v4587_v41 = vmax.f32 %v3789_v2, 0.0  ;;  %11784 = vmatmul.mubr.msk.bf16.gmra.mrb[52].mxu1 %vm3066_vm3, %v14068_v15 }
 0x286   : > { %v4585_v50 = vmax.f32 %v3781_v8, 0.0  ;;  %11787 = vmatprep.mubr.msk.bf16.mxu1 %vm3066_vm3, %v14090_v10 }
 0x287   : > { %v4805_v31 = vpack.c.bf16 %v4587_v41, %v4586_v55 }
 0x288   : > { %v4804_v24 = vpack.c.bf16 %v4585_v50, %v4584_v42  ;;  %v11681_v48 = vpop.f32.mrb[204].mxu1 }
 0x289   : > { %v3802_v26 = vadd.f32 %v11681_v48, %v14434_v44  ;;  %v3793_v20 = vpop.f32.mrb[205].mxu1 }
 0x28a   : > { %v3794_v4 = vadd.f32 %v14434_v44, %v3793_v20  ;;  %v11682_v52 = vpop.f32.mrb[206].mxu1  ;;  %11933 = vmatprep.mubr.msk.bf16.mxu0 %vm4905_vm4, %v4804_v24 }
 0x28b   : > { %v3805_v35 = vadd.f32 %v11682_v52, %v14434_v44  ;;  %v3796_v13 = vpop.f32.mrb[207].mxu1  ;;  %11934 = vmatmul.mubr.msk.bf16.gmra.mrb[200].mxu0 %vm4905_vm4, %v4805_v31  ;;  %v4590_v38 = vmax.f32 %v3802_v26, 0.0 }
 0x28c   : > { %v3797_v15 = vadd.f32 %v14434_v44, %v3796_v13  ;;  %v4588_v60 = vmax.f32 %v3794_v4, 0.0 }
 0x28d   : > { %v4591_v10 = vmax.f32 %v3805_v35, 0.0  ;;  %11788 = vmatmul.mubr.msk.bf16.gmra.mrb[56].mxu1 %vm3066_vm3, %v14088_v21  ;;  %v20356_v35 = vld [vmem:[#allocation5_spill] sm:$0xff] }
 0x28e   : > { %v4589_v30 = vmax.f32 %v3797_v15, 0.0  ;;  %11791 = vmatprep.mubr.msk.bf16.mxu1 %vm3066_vm3, %v14110_v1 }
 0x28f   : > { %v4807_v57 = vpack.c.bf16 %v4591_v10, %v4590_v38  ;;  %v20357_v38 = vld [vmem:[#allocation8_spill] sm:$0xff] }
 0x290   : > { %v4806_v25 = vpack.c.bf16 %v4589_v30, %v4588_v60  ;;  %v11685_v39 = vpop.f32.mrb[208].mxu1 }
 0x291   : > { %v3818_v22 = vadd.f32 %v11685_v39, %v14434_v44  ;;  %v3809_v63 = vpop.f32.mrb[209].mxu1 }
 0x292   : > { %v3810_v61 = vadd.f32 %v14434_v44, %v3809_v63  ;;  %v11686_v16 = vpop.f32.mrb[210].mxu1  ;;  %11937 = vmatprep.mubr.msk.bf16.mxu0 %vm4905_vm4, %v4806_v25 }
 0x293   : > { %v3821_v18 = vadd.f32 %v11686_v16, %v14434_v44  ;;  %v3812_v62 = vpop.f32.mrb[211].mxu1  ;;  %11938 = vmatmul.mubr.msk.bf16.gmra.mrb[204].mxu0 %vm4905_vm4, %v4807_v57  ;;  %v4594_v0 = vmax.f32 %v3818_v22, 0.0 }
 0x294   : > { %v3813_v21 = vadd.f32 %v14434_v44, %v3812_v62  ;;  %v4592_v58 = vmax.f32 %v3810_v61, 0.0 }
 0x295   : > { %v4595_v1 = vmax.f32 %v3821_v18, 0.0  ;;  %11792 = vmatmul.mubr.msk.bf16.gmra.mrb[60].mxu1 %vm3066_vm3, %v14108_v7 }
 0x296   : > { %v4593_v28 = vmax.f32 %v3813_v21, 0.0  ;;  %11795 = vmatprep.mubr.msk.bf16.mxu1 %vm3066_vm3, %v14135_v49  ;;  %v20358_v21 = vld [vmem:[#allocation7_spill] sm:$0xff] }
 0x297   : > { %v4809_v46 = vpack.c.bf16 %v4595_v1, %v4594_v0 }
 0x298   : > { %v4808_v37 = vpack.c.bf16 %v4593_v28, %v4592_v58  ;;  %v11689_v56 = vpop.f32.mrb[212].mxu1  ;;  %v20359_v58 = vld [vmem:[#allocation10_spill] sm:$0xff] }
 0x299   : > { %v3834_v33 = vadd.f32 %v11689_v56, %v14434_v44  ;;  %v3825_v47 = vpop.f32.mrb[213].mxu1 }
 0x29a   : > { %v3826_v6 = vadd.f32 %v14434_v44, %v3825_v47  ;;  %v11690_v11 = vpop.f32.mrb[214].mxu1  ;;  %11941 = vmatprep.mubr.msk.bf16.mxu0 %vm4905_vm4, %v4808_v37 }
 0x29b   : > { %v3837_v12 = vadd.f32 %v11690_v11, %v14434_v44  ;;  %v3828_v27 = vpop.f32.mrb[215].mxu1  ;;  %11942 = vmatmul.mubr.msk.bf16.gmra.mrb[208].mxu0 %vm4905_vm4, %v4809_v46  ;;  %v4598_v36 = vmax.f32 %v3834_v33, 0.0 }
 0x29c   : > { %v3829_v7 = vadd.f32 %v14434_v44, %v3828_v27  ;;  %v4596_v14 = vmax.f32 %v3826_v6, 0.0 }
 0x29d   : > { %v4599_v49 = vmax.f32 %v3837_v12, 0.0  ;;  %11796 = vmatmul.mubr.msk.bf16.gmra.mrb[64].mxu1 %vm3066_vm3, %v14133_v9 }
 0x29e   : > { %v4597_v51 = vmax.f32 %v3829_v7, 0.0  ;;  %11799 = vmatprep.mubr.msk.bf16.mxu1 %vm3066_vm3, %v14155_v3 }
 0x29f   : > { %v4811_v43 = vpack.c.bf16 %v4599_v49, %v4598_v36  ;;  %v20360_v49 = vld [vmem:[#allocation9_spill] sm:$0xff] }
 0x2a0   : > { %v4810_v53 = vpack.c.bf16 %v4597_v51, %v4596_v14  ;;  %v11693_v29 = vpop.f32.mrb[216].mxu1 }
 0x2a1   : > { %v3850_v40 = vadd.f32 %v11693_v29, %v14434_v44  ;;  %v3841_v5 = vpop.f32.mrb[217].mxu1 }
 0x2a2   : > { %v3842_v59 = vadd.f32 %v14434_v44, %v3841_v5  ;;  %v11694_v19 = vpop.f32.mrb[218].mxu1  ;;  %11945 = vmatprep.mubr.msk.bf16.mxu0 %vm4905_vm4, %v4810_v53 }
 0x2a3   : > { %v3853_v34 = vadd.f32 %v11694_v19, %v14434_v44  ;;  %v3844_v45 = vpop.f32.mrb[219].mxu1  ;;  %11946 = vmatmul.mubr.msk.bf16.gmra.mrb[212].mxu0 %vm4905_vm4, %v4811_v43  ;;  %v4602_v54 = vmax.f32 %v3850_v40, 0.0  ;;  %v20361_v43 = vld [vmem:[#allocation12_spill] sm:$0xff] }
 0x2a4   : > { %v3845_v9 = vadd.f32 %v14434_v44, %v3844_v45  ;;  %v4600_v32 = vmax.f32 %v3842_v59, 0.0 }
 0x2a5   : > { %v4603_v3 = vmax.f32 %v3853_v34, 0.0  ;;  %11800 = vmatmul.mubr.msk.bf16.gmra.mrb[68].mxu1 %vm3066_vm3, %v20354_v23 }
 0x2a6   : > { %v4601_v2 = vmax.f32 %v3845_v9, 0.0  ;;  %11803 = vmatprep.mubr.msk.bf16.mxu1 %vm3066_vm3, %v20355_v17 }
 0x2a7   : > { %v4813_v8 = vpack.c.bf16 %v4603_v3, %v4602_v54 }
 0x2a8   : > { %v4812_v55 = vpack.c.bf16 %v4601_v2, %v4600_v32  ;;  %v11697_v41 = vpop.f32.mrb[220].mxu1  ;;  %v20362_v32 = vld [vmem:[#allocation11_spill] sm:$0xff] }
 0x2a9   : > { %v3866_v42 = vadd.f32 %v11697_v41, %v14434_v44  ;;  %v3857_v50 = vpop.f32.mrb[221].mxu1 }
 0x2aa   : > { %v3858_v31 = vadd.f32 %v14434_v44, %v3857_v50  ;;  %v11698_v24 = vpop.f32.mrb[222].mxu1  ;;  %11949 = vmatprep.mubr.msk.bf16.mxu0 %vm4905_vm4, %v4812_v55 }
 0x2ab   : > { %v3869_v48 = vadd.f32 %v11698_v24, %v14434_v44  ;;  %v3860_v26 = vpop.f32.mrb[223].mxu1  ;;  %11950 = vmatmul.mubr.msk.bf16.gmra.mrb[216].mxu0 %vm4905_vm4, %v4813_v8  ;;  %v4606_v4 = vmax.f32 %v3866_v42, 0.0  ;;  %v20363_v8 = vld [vmem:[#allocation14_spill] sm:$0xff] }
 0x2ac   : > { %v3861_v20 = vadd.f32 %v14434_v44, %v3860_v26  ;;  %v4604_v13 = vmax.f32 %v3858_v31, 0.0  ;;  %v14722_v26 = vld [vmem:[%s20112_s4] ss:$0 sm:$0xff] }
 0x2ad   : > { %v4607_v52 = vmax.f32 %v3869_v48, 0.0  ;;  %11804 = vmatmul.mubr.msk.bf16.gmra.mrb[72].mxu1 %vm3066_vm3, %v20356_v35  ;;  %v14727_v35 = vstv %s4898_s16 }
 0x2ae   : > { %v4605_v15 = vmax.f32 %v3861_v20, 0.0  ;;  %11807 = vmatprep.mubr.msk.bf16.mxu1 %vm3066_vm3, %v20357_v38 }
 0x2af   : > { %v4815_v10 = vpack.c.bf16 %v4607_v52, %v4606_v4 }
 0x2b0   : > { %v4814_v60 = vpack.c.bf16 %v4605_v15, %v4604_v13  ;;  %v11701_v30 = vpop.f32.mrb[224].mxu1 }
 0x2b1   : > { %v3882_v57 = vadd.f32 %v11701_v30, %v14434_v44  ;;  %v3873_v25 = vpop.f32.mrb[225].mxu1 }
 0x2b2   : > { %v3874_v39 = vadd.f32 %v14434_v44, %v3873_v25  ;;  %v11702_v22 = vpop.f32.mrb[226].mxu1  ;;  %11953 = vmatprep.mubr.msk.bf16.mxu0 %vm4905_vm4, %v4814_v60  ;;  %v20365_v60 = vld [vmem:[#allocation16_spill] sm:$0xff] }
 0x2b3   : > { %v3885_v63 = vadd.f32 %v11702_v22, %v14434_v44  ;;  %v3876_v61 = vpop.f32.mrb[227].mxu1  ;;  %11954 = vmatmul.mubr.msk.bf16.gmra.mrb[220].mxu0 %vm4905_vm4, %v4815_v10  ;;  %v4610_v18 = vmax.f32 %v3882_v57, 0.0 }
 0x2b4   : > { %v3877_v16 = vadd.f32 %v14434_v44, %v3876_v61  ;;  %v4608_v0 = vmax.f32 %v3874_v39, 0.0 }
 0x2b5   : > { %v4611_v62 = vmax.f32 %v3885_v63, 0.0  ;;  %11808 = vmatmul.mubr.msk.bf16.gmra.mrb[76].mxu1 %vm3066_vm3, %v20358_v21 }
 0x2b6   : > { %v4609_v1 = vmax.f32 %v3877_v16, 0.0  ;;  %11811 = vmatprep.mubr.msk.bf16.mxu1 %vm3066_vm3, %v20359_v58 }
 0x2b7   : > { %v4817_v28 = vpack.c.bf16 %v4611_v62, %v4610_v18 }
 0x2b8   : > { %v4816_v46 = vpack.c.bf16 %v4609_v1, %v4608_v0  ;;  %v11705_v37 = vpop.f32.mrb[228].mxu1 }
 0x2b9   : > { %v3898_v56 = vadd.f32 %v11705_v37, %v14434_v44  ;;  %v3889_v33 = vpop.f32.mrb[229].mxu1 }
 0x2ba   : > { %v3890_v47 = vadd.f32 %v14434_v44, %v3889_v33  ;;  %v11706_v6 = vpop.f32.mrb[230].mxu1  ;;  %11957 = vmatprep.mubr.msk.bf16.mxu0 %vm4905_vm4, %v4816_v46 }
 0x2bb   : > { %v3901_v11 = vadd.f32 %v11706_v6, %v14434_v44  ;;  %v3892_v12 = vpop.f32.mrb[231].mxu1  ;;  %11958 = vmatmul.mubr.msk.bf16.gmra.mrb[224].mxu0 %vm4905_vm4, %v4817_v28  ;;  %v4614_v7 = vmax.f32 %v3898_v56, 0.0 }
 0x2bc   : > { %v3893_v27 = vadd.f32 %v14434_v44, %v3892_v12  ;;  %v4612_v14 = vmax.f32 %v3890_v47, 0.0 }
 0x2bd   : > { %v4615_v36 = vmax.f32 %v3901_v11, 0.0  ;;  %11812 = vmatmul.mubr.msk.bf16.gmra.mrb[80].mxu1 %vm3066_vm3, %v20360_v49  ;;  %v20366_v49 = vld [vmem:[#allocation15_spill] sm:$0xff] }
 0x2be   : > { %v4613_v51 = vmax.f32 %v3893_v27, 0.0  ;;  %11815 = vmatprep.mubr.msk.bf16.mxu1 %vm3066_vm3, %v20361_v43 }
 0x2bf   : > { %v4819_v53 = vpack.c.bf16 %v4615_v36, %v4614_v7 }
 0x2c0   : > { %v4818_v29 = vpack.c.bf16 %v4613_v51, %v4612_v14  ;;  %v11709_v40 = vpop.f32.mrb[232].mxu1 }
 0x2c1   : > { %v3914_v5 = vadd.f32 %v11709_v40, %v14434_v44  ;;  %v3905_v59 = vpop.f32.mrb[233].mxu1 }
 0x2c2   : > { %v3906_v19 = vadd.f32 %v14434_v44, %v3905_v59  ;;  %v11710_v34 = vpop.f32.mrb[234].mxu1  ;;  %11961 = vmatprep.mubr.msk.bf16.mxu0 %vm4905_vm4, %v4818_v29 }
 0x2c3   : > { %v3917_v45 = vadd.f32 %v11710_v34, %v14434_v44  ;;  %v3908_v9 = vpop.f32.mrb[235].mxu1  ;;  %11962 = vmatmul.mubr.msk.bf16.gmra.mrb[228].mxu0 %vm4905_vm4, %v4819_v53  ;;  %v4618_v3 = vmax.f32 %v3914_v5, 0.0  ;;  %v20367_v53 = vld [vmem:[#allocation18_spill] sm:$0xff] }
 0x2c4   : > { %v3909_v54 = vadd.f32 %v14434_v44, %v3908_v9  ;;  %v4616_v2 = vmax.f32 %v3906_v19, 0.0 }
 0x2c5   : > { %v4619_v23 = vmax.f32 %v3917_v45, 0.0  ;;  %11816 = vmatmul.mubr.msk.bf16.gmra.mrb[84].mxu1 %vm3066_vm3, %v20362_v32 }
 0x2c6   : > { %v4617_v17 = vmax.f32 %v3909_v54, 0.0  ;;  %11819 = vmatprep.mubr.msk.bf16.mxu1 %vm3066_vm3, %v20363_v8 }
 0x2c7   : > { %v4821_v55 = vpack.c.bf16 %v4619_v23, %v4618_v3 }
 0x2c8   : > { %v4820_v41 = vpack.c.bf16 %v4617_v17, %v4616_v2  ;;  %v11713_v42 = vpop.f32.mrb[236].mxu1 }
 0x2c9   : > { %v3930_v50 = vadd.f32 %v11713_v42, %v14434_v44  ;;  %v3921_v31 = vpop.f32.mrb[237].mxu1 }
 0x2ca   : > { %v3922_v24 = vadd.f32 %v14434_v44, %v3921_v31  ;;  %v11714_v48 = vpop.f32.mrb[238].mxu1  ;;  %11965 = vmatprep.mubr.msk.bf16.mxu0 %vm4905_vm4, %v4820_v41  ;;  %v20364_v44 = vld [vmem:[#allocation13_spill] sm:$0xff] }
 0x2cb   : > { %v3933_v20 = vadd.f32 %v14722_v26, %v11714_v48  ;;  %v3924_v4 = vpop.f32.mrb[239].mxu1  ;;  %11966 = vmatmul.mubr.msk.bf16.gmra.mrb[232].mxu0 %vm4905_vm4, %v4821_v55  ;;  %v4622_v13 = vmax.f32 %v3930_v50, 0.0 }
 0x2cc   : > { %v3925_v52 = vadd.f32 %v14722_v26, %v3924_v4  ;;  %v4620_v38 = vmax.f32 %v3922_v24, 0.0 }
 0x2cd   : > { %v4623_v15 = vmax.f32 %v3933_v20, 0.0  ;;  %11820 = vmatmul.mubr.msk.bf16.gmra.mrb[88].mxu1 %vm3066_vm3, %v20364_v44 }
 0x2ce   : > { %v4621_v10 = vmax.f32 %v3925_v52, 0.0  ;;  %11823 = vmatprep.mubr.msk.bf16.mxu1 %vm3066_vm3, %v20365_v60  ;;  %v11863_v30 = vpop.f32.mrb[128].mxu0 }
 0x2cf   : > { %v4823_v57 = vpack.c.bf16 %v4623_v15, %v4622_v13  ;;  %v5337_v25 = vadd.f32 %v11863_v30, %v14727_v35  ;;  %v5328_v39 = vpop.f32.mrb[129].mxu0 }
 0x2d0   : > { %v4822_v22 = vpack.c.bf16 %v4621_v10, %v4620_v38  ;;  %v5329_v63 = vadd.f32 %v5328_v39, %v14727_v35  ;;  %v11717_v61 = vpop.f32.mrb[240].mxu1  ;;  %v11864_v16 = vpop.f32.mrb[130].mxu0  ;;  %v20368_v38 = vld [vmem:[#allocation17_spill] sm:$0xff] }
 0x2d1   : > { %v6353_v18 = vsub.f32 0.0, %v5337_v25  ;;  %v3946_v62 = vadd.f32 %v14722_v26, %v11717_v61  ;;  %v5340_v21 = vadd.f32 %v11864_v16, %v14727_v35  ;;  %v3937_v0 = vpop.f32.mrb[241].mxu1  ;;  %v5331_v1 = vpop.f32.mrb[131].mxu0 }
 0x2d2   : > { %v3938_v58 = vadd.f32 %v14722_v26, %v3937_v0  ;;  %v5332_v28 = vadd.f32 %v5331_v1, %v14727_v35  ;;  %v11718_v46 = vpop.f32.mrb[242].mxu1  ;;  %11969 = vmatprep.mubr.msk.bf16.mxu0 %vm4905_vm4, %v4822_v22  ;;  %v6351_v56 = vsub.f32 0.0, %v5329_v63 }
 0x2d3   : > { %v6611_v37 = vmul.f32 1.442695, %v6353_v18  ;;  %v6354_v33 = vsub.f32 0.0, %v5340_v21  ;;  %v3949_v47 = vadd.f32 %v14722_v26, %v11718_v46  ;;  %v3940_v6 = vpop.f32.mrb[243].mxu1  ;;  %11970 = vmatmul.mubr.msk.bf16.gmra.mrb[236].mxu0 %vm4905_vm4, %v4823_v57  ;;  %v4626_v27 = vmax.f32 %v3946_v62, 0.0  ;;  %v20369_v57 = vld [vmem:[#allocation20_spill] sm:$0xff] }
 0x2d4   : > { %v6352_v11 = vsub.f32 0.0, %v5332_v28  ;;  %v3941_v12 = vadd.f32 %v14722_v26, %v3940_v6  ;;  %v4624_v14 = vmax.f32 %v3938_v58, 0.0  ;;  %v6607_v40 = vmul.f32 1.442695, %v6351_v56 }
 0x2d5   : > { %v6613_v7 = vmul.f32 1.442695, %v6354_v33  ;;  %v4627_v36 = vmax.f32 %v3949_v47, 0.0  ;;  %11824 = vmatmul.mubr.msk.bf16.gmra.mrb[92].mxu1 %vm3066_vm3, %v20366_v49  ;;  %12345 = vpow2.f32 %v6611_v37 }
 0x2d6   : > { %v6609_v51 = vmul.f32 1.442695, %v6352_v11  ;;  %v4625_v43 = vmax.f32 %v3941_v12, 0.0  ;;  %11827 = vmatprep.mubr.msk.bf16.mxu1 %vm3066_vm3, %v20367_v53  ;;  %v11867_v29 = vpop.f32.mrb[132].mxu0 }
 0x2d7   : > { %12347 = vpow2.f32 %v6613_v7  ;;  %v4825_v5 = vpack.c.bf16 %v4627_v36, %v4626_v27  ;;  %v5353_v59 = vadd.f32 %v11867_v29, %v14727_v35  ;;  %v5344_v19 = vpop.f32.mrb[133].mxu0 }
 0x2d8   : > { %12349 = vpow2.f32 %v6609_v51  ;;  %v4824_v34 = vpack.c.bf16 %v4625_v43, %v4624_v14  ;;  %v5345_v45 = vadd.f32 %v5344_v19, %v14727_v35  ;;  %v11721_v9 = vpop.f32.mrb[244].mxu1  ;;  %v11868_v54 = vpop.f32.mrb[134].mxu0 }
 0x2d9   : > { %v6357_v3 = vsub.f32 0.0, %v5353_v59  ;;  %v3962_v23 = vadd.f32 %v14722_v26, %v11721_v9  ;;  %v5356_v32 = vadd.f32 %v11868_v54, %v14727_v35  ;;  %v3953_v2 = vpop.f32.mrb[245].mxu1  ;;  %v5347_v17 = vpop.f32.mrb[135].mxu0  ;;  %12351 = vpow2.f32 %v6607_v40  ;;  %v20370_v59 = vld [vmem:[#allocation19_spill] sm:$0xff]  ;;  %v20371_v9 = vld [vmem:[#allocation22_spill] sm:$0xff] }
 0x2da   : > { %v6355_v8 = vsub.f32 0.0, %v5345_v45  ;;  %v3954_v55 = vadd.f32 %v14722_v26, %v3953_v2  ;;  %v5348_v41 = vadd.f32 %v5347_v17, %v14727_v35  ;;  %v11722_v42 = vpop.f32.mrb[246].mxu1  ;;  %11973 = vmatprep.mubr.msk.bf16.mxu0 %vm4905_vm4, %v4824_v34 }
 0x2db   : > { %v6619_v50 = vmul.f32 1.442695, %v6357_v3  ;;  %v6358_v31 = vsub.f32 0.0, %v5356_v32  ;;  %v3965_v24 = vadd.f32 %v14722_v26, %v11722_v42  ;;  %v3956_v48 = vpop.f32.mrb[247].mxu1  ;;  %11974 = vmatmul.mubr.msk.bf16.gmra.mrb[240].mxu0 %vm4905_vm4, %v4825_v5  ;;  %v4630_v13 = vmax.f32 %v3962_v23, 0.0 }
 0x2dc   : > { %v6615_v20 = vmul.f32 1.442695, %v6355_v8  ;;  %v6356_v4 = vsub.f32 0.0, %v5348_v41  ;;  %v3957_v52 = vadd.f32 %v14722_v26, %v3956_v48  ;;  %v4628_v10 = vmax.f32 %v3954_v55, 0.0 }
 0x2dd   : > { %12353 = vpow2.f32 %v6619_v50  ;;  %v6621_v15 = vmul.f32 1.442695, %v6358_v31  ;;  %v4631_v44 = vmax.f32 %v3965_v24, 0.0  ;;  %11828 = vmatmul.mubr.msk.bf16.gmra.mrb[96].mxu1 %vm3066_vm3, %v20368_v38 }
 0x2de   : > { %12355 = vpow2.f32 %v6615_v20  ;;  %v6617_v60 = vmul.f32 1.442695, %v6356_v4  ;;  %v4629_v30 = vmax.f32 %v3957_v52, 0.0  ;;  %11831 = vmatprep.mubr.msk.bf16.mxu1 %vm3066_vm3, %v20369_v57  ;;  %v11871_v25 = vpop.f32.mrb[136].mxu0 }
 0x2df   : > { %12357 = vpow2.f32 %v6621_v15  ;;  %v4827_v39 = vpack.c.bf16 %v4631_v44, %v4630_v13  ;;  %v5369_v22 = vadd.f32 %v11871_v25, %v14727_v35  ;;  %v5360_v63 = vpop.f32.mrb[137].mxu0  ;;  %v12346_v61 = vpop.eup %12345 }
 0x2e0   : > { %12359 = vpow2.f32 %v6617_v60  ;;  %v4826_v16 = vpack.c.bf16 %v4629_v30, %v4628_v10  ;;  %v5361_v18 = vadd.f32 %v5360_v63, %v14727_v35  ;;  %v11725_v62 = vpop.f32.mrb[248].mxu1  ;;  %v11872_v21 = vpop.f32.mrb[138].mxu0  ;;  %v14769_v14 = vadd.f32 1.0, %v12346_v61 }
 0x2e1   : > { %v12348_v0 = vpop.eup %12347  ;;  %v6361_v1 = vsub.f32 0.0, %v5369_v22  ;;  %v3978_v58 = vadd.f32 %v14722_v26, %v11725_v62  ;;  %v5372_v28 = vadd.f32 %v11872_v21, %v14727_v35  ;;  %v3969_v46 = vpop.f32.mrb[249].mxu1  ;;  %v20372_v21 = vld [vmem:[#allocation21_spill] sm:$0xff] }
 0x2e2   : > { %v5363_v37 = vpop.f32.mrb[139].mxu0  ;;  %v12350_v56 = vpop.eup %12349  ;;  %v7122_v33 = vadd.f32 1.0, %v12348_v0  ;;  %v6359_v47 = vsub.f32 0.0, %v5361_v18  ;;  %v3970_v6 = vadd.f32 %v14722_v26, %v3969_v46  ;;  %11977 = vmatprep.mubr.msk.bf16.mxu0 %vm4905_vm4, %v4826_v16  ;;  %v20373_v46 = vld [vmem:[#allocation24_spill] sm:$0xff] }
 0x2e3   : > { %v5364_v11 = vadd.f32 %v5363_v37, %v14727_v35  ;;  %v11726_v12 = vpop.f32.mrb[250].mxu1  ;;  %v7120_v27 = vadd.f32 1.0, %v12350_v56  ;;  %v6627_v7 = vmul.f32 1.442695, %v6361_v1  ;;  %v6362_v36 = vsub.f32 0.0, %v5372_v28  ;;  %11978 = vmatmul.mubr.msk.bf16.gmra.mrb[244].mxu0 %vm4905_vm4, %v4827_v39  ;;  %v12352_v53 = vpop.eup %12351 }
 0x2e4   : > { %v3972_v49 = vpop.f32.mrb[251].mxu1  ;;  %12361 = vrcp.f32 %v7122_v33  ;;  %v6623_v51 = vmul.f32 1.442695, %v6359_v47  ;;  %v3981_v40 = vadd.f32 %v14722_v26, %v11726_v12  ;;  %v4634_v19 = vmax.f32 %v3978_v58, 0.0 }
 0x2e5   : > { %v6360_v43 = vsub.f32 0.0, %v5364_v11  ;;  %12363 = vrcp.f32 %v7120_v27  ;;  %v6629_v29 = vmul.f32 1.442695, %v6362_v36  ;;  %v3973_v5 = vadd.f32 %v14722_v26, %v3972_v49  ;;  %11832 = vmatmul.mubr.msk.bf16.gmra.mrb[100].mxu1 %vm3066_vm3, %v20370_v59 }
 0x2e6   : > { %12365 = vpow2.f32 %v6627_v7  ;;  %v4632_v34 = vmax.f32 %v3970_v6, 0.0  ;;  %11835 = vmatprep.mubr.msk.bf16.mxu1 %vm3066_vm3, %v20371_v9  ;;  %v11875_v54 = vpop.f32.mrb[140].mxu0  ;;  %v4635_v23 = vmax.f32 %v3981_v40, 0.0  ;;  %v14778_v55 = vadd.f32 1.0, %v12352_v53 }
 0x2e7   : > { %v6625_v45 = vmul.f32 1.442695, %v6360_v43  ;;  %v12354_v3 = vpop.eup %12353  ;;  %12367 = vpow2.f32 %v6623_v51  ;;  %v4633_v32 = vmax.f32 %v3973_v5, 0.0  ;;  %v5385_v2 = vadd.f32 %v11875_v54, %v14727_v35  ;;  %v5376_v17 = vpop.f32.mrb[141].mxu0 }
 0x2e8   : > { %v12356_v8 = vpop.eup %12355  ;;  %v7125_v41 = vadd.f32 1.0, %v12354_v3  ;;  %12369 = vpow2.f32 %v6629_v29  ;;  %v5377_v42 = vadd.f32 %v5376_v17, %v14727_v35  ;;  %v11729_v50 = vpop.f32.mrb[252].mxu1  ;;  %v4829_v20 = vpack.c.bf16 %v4635_v23, %v4634_v19 }
 0x2e9   : > { %v11876_v31 = vpop.f32.mrb[142].mxu0  ;;  %v12358_v24 = vpop.eup %12357  ;;  %v7123_v48 = vadd.f32 1.0, %v12356_v8  ;;  %12371 = vpow2.f32 %v6625_v45  ;;  %v4828_v4 = vpack.c.bf16 %v4633_v32, %v4632_v34  ;;  %v6365_v38 = vsub.f32 0.0, %v5385_v2 }
 0x2ea   : > { %v3985_v52 = vpop.f32.mrb[253].mxu1  ;;  %v5379_v13 = vpop.f32.mrb[143].mxu0  ;;  %12373 = vrcp.f32 %v7125_v41  ;;  %v7126_v44 = vadd.f32 1.0, %v12358_v24  ;;  %v6363_v10 = vsub.f32 0.0, %v5377_v42  ;;  %v3994_v57 = vadd.f32 %v14722_v26, %v11729_v50 }
 0x2eb   : > { %v12360_v15 = vpop.eup %12359  ;;  %v11730_v60 = vpop.f32.mrb[254].mxu1  ;;  %12375 = vrcp.f32 %v7123_v48  ;;  %v5388_v25 = vadd.f32 %v11876_v31, %v14727_v35  ;;  %11981 = vmatprep.mubr.msk.bf16.mxu0 %vm4905_vm4, %v4828_v4  ;;  %v6635_v22 = vmul.f32 1.442695, %v6365_v38  ;;  %v3986_v61 = vadd.f32 %v14722_v26, %v3985_v52  ;;  %v20374_v4 = vld [vmem:[#allocation23_spill] sm:$0xff]  ;;  %v20375_v38 = vld [vmem:[#allocation26_spill] sm:$0xff] }
 0x2ec   : > { %v7124_v30 = vadd.f32 1.0, %v12360_v15  ;;  %v3988_v39 = vpop.f32.mrb[255].mxu1  ;;  %12377 = vrcp.f32 %v7126_v44  ;;  %v6631_v63 = vmul.f32 1.442695, %v6363_v10  ;;  %11982 = vmatmul.mubr.msk.bf16.gmra.mrb[248].mxu0 %vm4905_vm4, %v4829_v20  ;;  %v4638_v16 = vmax.f32 %v3994_v57, 0.0 }
 0x2ed   : > { %v6366_v18 = vsub.f32 0.0, %v5388_v25  ;;  %v5380_v62 = vadd.f32 %v5379_v13, %v14727_v35  ;;  %11836 = vmatmul.mubr.msk.bf16.gmra.mrb[104].mxu1 %vm3066_vm3, %v20372_v21  ;;  %v4636_v1 = vmax.f32 %v3986_v61, 0.0  ;;  %v3997_v58 = vadd.f32 %v14722_v26, %v11730_v60 }
 0x2ee   : > { %12379 = vrcp.f32 %v7124_v30  ;;  %v14789_v0 = vpop.eup %12361  ;;  %v3989_v28 = vadd.f32 %v14722_v26, %v3988_v39  ;;  %11839 = vmatprep.mubr.msk.bf16.mxu1 %vm3066_vm3, %v20373_v46  ;;  %v11879_v37 = vpop.f32.mrb[144].mxu0 }
 0x2ef   : > { %12381 = vpow2.f32 %v6635_v22  ;;  %v14795_v56 = vpop.eup %12363  ;;  %v6637_v33 = vmul.f32 1.442695, %v6366_v18  ;;  %v6364_v47 = vsub.f32 0.0, %v5380_v62  ;;  %v5401_v6 = vadd.f32 %v11879_v37, %v14727_v35  ;;  %v5392_v11 = vpop.f32.mrb[145].mxu0 }
 0x2f0   : > { %12383 = vpow2.f32 %v6631_v63  ;;  %v12366_v12 = vpop.eup %12365  ;;  %v4639_v27 = vmax.f32 %v3997_v58, 0.0  ;;  %v4637_v7 = vmax.f32 %v3989_v28, 0.0  ;;  %v5393_v36 = vadd.f32 %v5392_v11, %v14727_v35  ;;  %v11733_v49 = vpop.f32.mrb[0].mxu1 }
 0x2f1   : > { %v11880_v51 = vpop.f32.mrb[146].mxu0  ;;  %12385 = vrcp.f32 %v14769_v14  ;;  %v12368_v43 = vpop.eup %12367  ;;  %v7129_v53 = vadd.f32 1.0, %v12366_v12  ;;  %v6633_v29 = vmul.f32 1.442695, %v6364_v47  ;;  %v6369_v40 = vsub.f32 0.0, %v5401_v6 }
 0x2f2   : > { %12387 = vpow2.f32 %v6637_v33  ;;  %v4001_v5 = vpop.f32.mrb[1].mxu1  ;;  %v5395_v59 = vpop.f32.mrb[147].mxu0  ;;  %v7127_v34 = vadd.f32 1.0, %v12368_v43  ;;  %v4831_v45 = vpack.c.bf16 %v4639_v27, %v4638_v16  ;;  %v4830_v9 = vpack.c.bf16 %v4637_v7, %v4636_v1 }
 0x2f3   : > { %v12370_v19 = vpop.eup %12369  ;;  %v6367_v54 = vsub.f32 0.0, %v5393_v36  ;;  %v11734_v3 = vpop.f32.mrb[2].mxu1  ;;  %12389 = vrcp.f32 %v7129_v53  ;;  %v6643_v2 = vmul.f32 1.442695, %v6369_v40  ;;  %v4010_v17 = vadd.f32 %v14722_v26, %v11733_v49 }
 0x2f4   : > { %v12372_v23 = vpop.eup %12371  ;;  %v7130_v32 = vadd.f32 1.0, %v12370_v19  ;;  %v4004_v14 = vpop.f32.mrb[3].mxu1  ;;  %12391 = vrcp.f32 %v7127_v34  ;;  %v5404_v50 = vadd.f32 %v11880_v51, %v14727_v35  ;;  %11985 = vmatprep.mubr.msk.bf16.mxu0 %vm4905_vm4, %v4830_v9  ;;  %v4002_v48 = vadd.f32 %v14722_v26, %v4001_v5  ;;  %v20378_v19 = vld [vmem:[#allocation25_spill] sm:$0xff] }
 0x2f5   : > { %v14801_v8 = vpop.eup %12373  ;;  %v7128_v41 = vadd.f32 1.0, %v12372_v23  ;;  %v6639_v42 = vmul.f32 1.442695, %v6367_v54  ;;  %v4642_v24 = vmax.f32 %v4010_v17, 0.0  ;;  %v5396_v20 = vadd.f32 %v5395_v59, %v14727_v35  ;;  %11986 = vmatmul.mubr.msk.bf16.gmra.mrb[252].mxu0 %vm4905_vm4, %v4831_v45  ;;  %11840 = vmatmul.mubr.msk.bf16.gmra.mrb[108].mxu1 %vm3066_vm3, %v20374_v4  ;;  %v20380_v54 = vld [vmem:[#allocation28_spill] sm:$0xff] }
 0x2f6   : > { %v14805_v31 = vpop.eup %12375  ;;  %12393 = vrcp.f32 %v7130_v32  ;;  %v6370_v13 = vsub.f32 0.0, %v5404_v50  ;;  %v4013_v15 = vadd.f32 %v14722_v26, %v11734_v3  ;;  %v4005_v44 = vadd.f32 %v14722_v26, %v4004_v14  ;;  %11843 = vmatprep.mubr.msk.bf16.mxu1 %vm3066_vm3, %v20375_v38  ;;  %v11883_v10 = vpop.f32.mrb[148].mxu0 }
 0x2f7   : > { %v14812_v52 = vpop.eup %12377  ;;  %12395 = vrcp.f32 %v7128_v41  ;;  %v4640_v30 = vmax.f32 %v4002_v48, 0.0  ;;  %v6368_v57 = vsub.f32 0.0, %v5396_v20  ;;  %v7634_v25 = vmax.f32 %v14789_v0, 0.0  ;;  %v5408_v39 = vpop.f32.mrb[149].mxu0 }
 0x2f8   : > { %v14818_v60 = vpop.eup %12379  ;;  %12397 = vpow2.f32 %v6633_v29  ;;  %v6645_v63 = vmul.f32 1.442695, %v6370_v13  ;;  %v4643_v61 = vmax.f32 %v4013_v15, 0.0  ;;  %v4641_v16 = vmax.f32 %v4005_v44, 0.0  ;;  %v11737_v18 = vpop.f32.mrb[4].mxu1 }
 0x2f9   : > { %v12382_v22 = vpop.eup %12381  ;;  %12399 = vpow2.f32 %v6643_v2  ;;  %v11884_v62 = vpop.f32.mrb[150].mxu0  ;;  %v6641_v58 = vmul.f32 1.442695, %v6368_v57  ;;  %v14821_v28 = vmin.f32 %v7634_v25, 1.0  ;;  %v5417_v36 = vadd.f32 %v11883_v10, %v14727_v35 }
 0x2fa   : > { %v12384_v21 = vpop.eup %12383  ;;  %v7133_v1 = vadd.f32 1.0, %v12382_v22  ;;  %12401 = vpow2.f32 %v6639_v42  ;;  %v4017_v46 = vpop.f32.mrb[5].mxu1  ;;  %v4833_v0 = vpack.c.bf16 %v4643_v61, %v4642_v24  ;;  %v4832_v6 = vpack.c.bf16 %v4641_v16, %v4640_v30 }
 0x2fb   : > { %20376 = vst [vmem:[#allocation4_spill] sm:$0xff] %v14821_v28  ;;  %v5411_v37 = vpop.f32.mrb[151].mxu0  ;;  %v12386_v33 = vpop.eup %12385  ;;  %v7131_v47 = vadd.f32 1.0, %v12384_v21  ;;  %12403 = vpow2.f32 %v6645_v63  ;;  %v7632_v43 = vmax.f32 %v14795_v56, 0.0  ;;  %v5409_v53 = vadd.f32 %v5408_v39, %v14727_v35 }
 0x2fc   : > { %v11738_v11 = vpop.f32.mrb[6].mxu1  ;;  %v12388_v12 = vpop.eup %12387  ;;  %12405 = vrcp.f32 %v7133_v1  ;;  %v7633_v27 = vmax.f32 %v12386_v33, 0.0  ;;  %11989 = vmatprep.mubr.msk.bf16.mxu0 %vm4905_vm4, %v4832_v6  ;;  %v6373_v5 = vsub.f32 0.0, %v5417_v36  ;;  %v4026_v59 = vadd.f32 %v14722_v26, %v11737_v18  ;;  %v20382_v6 = vld [vmem:[#allocation27_spill] sm:$0xff] }
 0x2fd   : > { %v4020_v49 = vpop.f32.mrb[7].mxu1  ;;  %12407 = vrcp.f32 %v7131_v47  ;;  %v7134_v51 = vadd.f32 1.0, %v12388_v12  ;;  %v14828_v29 = vpop.eup %12389  ;;  %11990 = vmatmul.mubr.msk.bf16.gmra.mrb[0].mxu0 %vm4905_vm4, %v4833_v0  ;;  %11844 = vmatmul.mubr.msk.bf16.gmra.mrb[112].mxu1 %vm3066_vm3, %v20378_v19  ;;  %v14838_v56 = vmin.f32 %v7632_v43, 1.0  ;;  %v6371_v45 = vsub.f32 0.0, %v5409_v53 }
 0x2fe   : > { %v14830_v40 = vmin.f32 %v7633_v27, 1.0  ;;  %12409 = vpow2.f32 %v6641_v58  ;;  %v14836_v34 = vpop.eup %12391  ;;  %v5420_v9 = vadd.f32 %v11884_v62, %v14727_v35  ;;  %11847 = vmatprep.mubr.msk.bf16.mxu1 %vm3066_vm3, %v20380_v54  ;;  %v11887_v3 = vpop.f32.mrb[152].mxu0  ;;  %v6651_v2 = vmul.f32 1.442695, %v6373_v5 }
 0x2ff   : > { %12411 = vrcp.f32 %v7134_v51  ;;  %20379 = vst [vmem:[#allocation5_spill] sm:$0xff] %v14838_v56  ;;  %v4646_v17 = vmax.f32 %v4026_v59, 0.0  ;;  %v5424_v14 = vpop.f32.mrb[153].mxu0  ;;  %v6647_v50 = vmul.f32 1.442695, %v6371_v45  ;;  %v4018_v48 = vadd.f32 %v14722_v26, %v4017_v46 }
 0x300   : > { %20377 = vst [vmem:[#allocation6_spill] sm:$0xff] %v14830_v40  ;;  %v14843_v23 = vpop.eup %12393  ;;  %8659 = vrot.lane.b32.xlu1 %v14830_v40, %s13463_s19  ;;  %12413 = vrcp.f32 %v14778_v55  ;;  %v6374_v24 = vsub.f32 0.0, %v5420_v9  ;;  %v14853_v20 = vpop.f32.mrb[8].mxu1  ;;  %v5412_v15 = vadd.f32 %v5411_v37, %v14727_v35  ;;  %v4029_v55 = vadd.f32 %v14722_v26, %v11738_v11 }
 0x301   : > { %v14849_v41 = vpop.eup %12395  ;;  %v14855_v4 = vpop.f32.mrb[154].mxu0  ;;  %12415 = vpow2.f32 %v6651_v2  ;;  %v7637_v44 = vmax.f32 %v14801_v8, 0.0  ;;  %v4644_v39 = vmax.f32 %v4018_v48, 0.0  ;;  %v4021_v58 = vadd.f32 %v14722_v26, %v4020_v49  ;;  %v20384_v49 = vld [vmem:[#allocation30_spill] sm:$0xff] }
 0x302   : > { %v12398_v13 = vpop.eup %12397  ;;  %v14860_v38 = vpop.f32.mrb[9].mxu1  ;;  %12417 = vpow2.f32 %v6647_v50  ;;  %v6653_v25 = vmul.f32 1.442695, %v6374_v24  ;;  %v6372_v16 = vsub.f32 0.0, %v5412_v15  ;;  %v4647_v18 = vmax.f32 %v4029_v55, 0.0 }
 0x303   : > { %v14862_v10 = vpop.f32.mrb[155].mxu0  ;;  %v12400_v30 = vpop.eup %12399  ;;  %v7132_v57 = vadd.f32 1.0, %v12398_v13  ;;  %v14868_v62 = vmin.f32 %v7637_v44, 1.0  ;;  %v7638_v46 = vmax.f32 %v14812_v52, 0.0  ;;  %v4645_v27 = vmax.f32 %v4021_v58, 0.0 }
 0x304   : > { %v14864_v22 = vpop.f32.mrb[10].mxu1  ;;  %v12402_v63 = vpop.eup %12401  ;;  %v7137_v61 = vadd.f32 1.0, %v12400_v30  ;;  %8661 = vrot.lane.b32.xlu1 %v14821_v28, %s13463_s19  ;;  %v6649_v47 = vmul.f32 1.442695, %v6372_v16  ;;  %v4835_v0 = vpack.c.bf16 %v4647_v18, %v4646_v17  ;;  %v5433_v43 = vadd.f32 %v11887_v3, %v14727_v35 }
 0x305   : > { %20381 = vst [vmem:[#allocation8_spill] sm:$0xff] %v14868_v62  ;;  %v14870_v8 = vpop.f32.mrb[11].mxu1  ;;  %v12404_v21 = vpop.eup %12403  ;;  %12419 = vrcp.f32 %v7132_v57  ;;  %v7135_v1 = vadd.f32 1.0, %v12402_v63  ;;  %11848 = vmatmul.mubr.msk.bf16.gmra.mrb[116].mxu1 %vm3066_vm3, %v20382_v6  ;;  %v14881_v36 = vmin.f32 %v7638_v46, 1.0  ;;  %v7635_v53 = vmax.f32 %v14805_v31, 0.0 }
 0x306   : > { %v14874_v37 = vpop.eup %12405  ;;  %12421 = vrcp.f32 %v7137_v61  ;;  %v7138_v33 = vadd.f32 1.0, %v12404_v21  ;;  %11851 = vmatprep.mubr.msk.bf16.mxu1 %vm3066_vm3, %v20384_v49  ;;  %v14885_v52 = vpop.f32.mrb[156].mxu0  ;;  %v5425_v5 = vadd.f32 %v5424_v14, %v14727_v35  ;;  %v4834_v9 = vpack.c.bf16 %v4645_v27, %v4644_v39 }
 0x307   : > { %v14878_v11 = vpop.eup %12407  ;;  %12423 = vrcp.f32 %v7135_v1  ;;  %20383 = vst [vmem:[#allocation7_spill] sm:$0xff] %v14881_v36  ;;  %v14890_v59 = vpop.f32.mrb[157].mxu0  ;;  %v6377_v31 = vsub.f32 0.0, %v5433_v43  ;;  %v14901_v14 = vmin.f32 %v7635_v53, 1.0  ;;  %v7636_v15 = vmax.f32 %v14818_v60, 0.0  ;;  %v20389_v53 = vld [vmem:[#allocation32_spill] sm:$0xff] }
 0x308   : > { %v12410_v51 = vpop.eup %12409  ;;  %12425 = vrcp.f32 %v7138_v33  ;;  %8669 = vrot.lane.b32.xlu1 %v14881_v36, %s13463_s19  ;;  %v14897_v2 = vpop.f32.mrb[12].mxu1  ;;  %v6375_v50 = vsub.f32 0.0, %v5425_v5  ;;  %v4042_v55 = vadd.f32 %v14722_v26, %v14853_v20  ;;  %11993 = vmatprep.mubr.msk.bf16.mxu0 %vm4905_vm4, %v4834_v9  ;;  %v5436_v63 = vadd.f32 %v14855_v4, %v14727_v35  ;;  %v20388_v33 = vld [vmem:[#allocation29_spill] sm:$0xff] }
 0x309   : > { %v14892_v19 = vpop.eup %12411  ;;  %v7136_v45 = vadd.f32 1.0, %v12410_v51  ;;  %12427 = vpow2.f32 %v6653_v25  ;;  %v14899_v17 = vpop.f32.mrb[158].mxu0  ;;  %20385 = vst [vmem:[#allocation10_spill] sm:$0xff] %v14901_v14  ;;  %v6659_v57 = vmul.f32 1.442695, %v6377_v31  ;;  %11994 = vmatmul.mubr.msk.bf16.gmra.mrb[4].mxu0 %vm4905_vm4, %v4835_v0  ;;  %v14921_v18 = vmin.f32 %v7636_v15, 1.0 }
 0x30a   : > { %v12414_v3 = vpop.eup %12413  ;;  %12429 = vpow2.f32 %v6649_v47  ;;  %v14903_v24 = vpop.f32.mrb[13].mxu1  ;;  %v6655_v39 = vmul.f32 1.442695, %v6375_v50  ;;  %v4650_v21 = vmax.f32 %v4042_v55, 0.0  ;;  %v6378_v58 = vsub.f32 0.0, %v5436_v63 }
 0x30b   : > { %v14905_v48 = vpop.f32.mrb[159].mxu0  ;;  %12431 = vrcp.f32 %v7136_v45  ;;  %v7631_v13 = vmax.f32 %v12414_v3, 0.0  ;;  %v14911_v44 = vpop.f32.mrb[14].mxu1  ;;  %20387 = vst [vmem:[#allocation12_spill] sm:$0xff] %v14921_v18  ;;  %v4034_v46 = vadd.f32 %v14722_v26, %v14860_v38  ;;  %v5428_v6 = vadd.f32 %v14862_v10, %v14727_v35 }
 0x30c   : > { %v12416_v30 = vpop.eup %12415  ;;  %v14917_v61 = vpop.f32.mrb[15].mxu1  ;;  %12433 = vpow2.f32 %v6659_v57  ;;  %8665 = vrot.lane.b32.xlu1 %v14921_v18, %s13463_s19  ;;  %v6661_v49 = vmul.f32 1.442695, %v6378_v58  ;;  %v4045_v43 = vadd.f32 %v14722_v26, %v14864_v22  ;;  %v7641_v10 = vmax.f32 %v14828_v29, 0.0 }
 0x30d   : > { %v12418_v60 = vpop.eup %12417  ;;  %v14919_v16 = vmin.f32 %v7631_v13, 1.0  ;;  %v7141_v20 = vadd.f32 1.0, %v12416_v30  ;;  %11852 = vmatmul.mubr.msk.bf16.gmra.mrb[120].mxu1 %vm3066_vm3, %v20388_v33  ;;  %v4648_v51 = vmax.f32 %v4034_v46, 0.0  ;;  %v6376_v9 = vsub.f32 0.0, %v5428_v6 }
 0x30e   : > { %v7139_v1 = vadd.f32 1.0, %v12418_v60  ;;  %v14937_v38 = vpop.f32.mrb[160].mxu0  ;;  %11855 = vmatprep.mubr.msk.bf16.mxu1 %vm3066_vm3, %v20389_v53  ;;  %v4037_v3 = vadd.f32 %v14722_v26, %v14870_v8  ;;  %v4651_v22 = vmax.f32 %v4045_v43, 0.0  ;;  %v7642_v15 = vmax.f32 %v14843_v23, 0.0 }
 0x30f   : > { %20386 = vst [vmem:[#allocation9_spill] sm:$0xff] %v14919_v16  ;;  %v14927_v4 = vpop.eup %12419  ;;  %8655 = vrot.lane.b32.xlu0 %v14919_v16, %s13463_s19  ;;  %12435 = vrcp.f32 %v7141_v20  ;;  %v14945_v5 = vpop.f32.mrb[161].mxu0  ;;  %v5449_v55 = vadd.f32 %v14885_v52, %v14727_v35  ;;  %v6657_v8 = vmul.f32 1.442695, %v6376_v9  ;;  %v7639_v60 = vmax.f32 %v14836_v34, 0.0 }
 0x310   : > { %v14939_v27 = vpop.eup %12421  ;;  %12437 = vrcp.f32 %v7139_v1  ;;  %v14952_v31 = vpop.f32.mrb[16].mxu1  ;;  %v4649_v63 = vmax.f32 %v4037_v3, 0.0  ;;  %v4837_v58 = vpack.c.bf16 %v4651_v22, %v4650_v21  ;;  %v14972_v52 = vmin.f32 %v7642_v15, 1.0 }
 0x311   : > { %v14947_v45 = vpop.eup %12423  ;;  %12439 = vpow2.f32 %v6655_v39  ;;  %v14954_v50 = vpop.f32.mrb[162].mxu0  ;;  %v14967_v39 = vmin.f32 %v7641_v10, 1.0  ;;  %v6381_v46 = vsub.f32 0.0, %v5449_v55  ;;  %v14982_v21 = vmin.f32 %v7639_v60, 1.0  ;;  %v20393_v10 = vld [vmem:[#allocation31_spill] sm:$0xff] }
 0x312   : > { %v14956_v13 = vpop.eup %12425  ;;  %12441 = vpow2.f32 %v6661_v49  ;;  %v14961_v30 = vpop.f32.mrb[17].mxu1  ;;  %20391 = vst [vmem:[#allocation14_spill] sm:$0xff] %v14972_v52  ;;  %v4836_v53 = vpack.c.bf16 %v4649_v63, %v4648_v51  ;;  %8677 = vrot.lane.b32.xlu1 %v14972_v52, %s13463_s19  ;;  %v5441_v3 = vadd.f32 %v14890_v59, %v14727_v35  ;;  %v7640_v51 = vmax.f32 %v14849_v41, 0.0 }
 0x313   : > { %v14963_v57 = vpop.f32.mrb[163].mxu0  ;;  %v12428_v29 = vpop.eup %12427  ;;  %8657 = vrot.lane.b32.xlu0 %v14838_v56, %s13463_s19  ;;  %20390 = vst [vmem:[#allocation11_spill] sm:$0xff] %v14967_v39  ;;  %12443 = vpow2.f32 %v6657_v8  ;;  %v6667_v9 = vmul.f32 1.442695, %v6381_v46  ;;  %20392 = vst [vmem:[#allocation13_spill] sm:$0xff] %v14982_v21  ;;  %v4058_v22 = vadd.f32 %v14722_v26, %v14897_v2  ;;  %v5452_v8 = vadd.f32 %v14899_v17, %v14727_v35 }
 0x314   : > { %v14970_v20 = vpop.f32.mrb[18].mxu1  ;;  %v12430_v23 = vpop.eup %12429  ;;  %v7142_v1 = vadd.f32 1.0, %v12428_v29  ;;  %11997 = vmatprep.mubr.msk.bf16.mxu0 %vm4905_vm4, %v4836_v53  ;;  %v4050_v63 = vadd.f32 %v14722_v26, %v14903_v24  ;;  %v6379_v60 = vsub.f32 0.0, %v5441_v3  ;;  %v5444_v24 = vadd.f32 %v14905_v48, %v14727_v35 }
 0x315   : > { %v14974_v33 = vpop.f32.mrb[19].mxu1  ;;  %v14976_v6 = vpop.eup %12431  ;;  %v7140_v49 = vadd.f32 1.0, %v12430_v23  ;;  %11856 = vmatmul.mubr.msk.bf16.gmra.mrb[124].mxu1 %vm3066_vm3, %v20393_v10  ;;  %11998 = vmatmul.mubr.msk.bf16.gmra.mrb[8].mxu0 %vm4905_vm4, %v4837_v58  ;;  %v15006_v23 = vmin.f32 %v7640_v51, 1.0  ;;  %v6382_v17 = vsub.f32 0.0, %v5452_v8  ;;  %v4061_v58 = vadd.f32 %v14722_v26, %v14911_v44 }
 0x316   : > { %12445 = vrcp.f32 %v7142_v1  ;;  %v14994_v15 = vpop.f32.mrb[164].mxu0  ;;  %v12434_v55 = vpop.eup %12433  ;;  %v4654_v1 = vmax.f32 %v4058_v22, 0.0  ;;  %v6663_v22 = vmul.f32 1.442695, %v6379_v60  ;;  %v7645_v48 = vmax.f32 %v14874_v37, 0.0 }
 0x317   : > { %12447 = vrcp.f32 %v7140_v49  ;;  %8667 = vrot.lane.b32.xlu0 %v14868_v62, %s13463_s19  ;;  %v15002_v41 = vpop.f32.mrb[165].mxu0  ;;  %v7145_v2 = vadd.f32 1.0, %v12434_v55  ;;  %20394 = vst [vmem:[#allocation16_spill] sm:$0xff] %v15006_v23  ;;  %8673 = vrot.lane.b32.xlu1 %v15006_v23, %s13463_s19  ;;  %v6669_v29 = vmul.f32 1.442695, %v6382_v17  ;;  %v6380_v34 = vsub.f32 0.0, %v5444_v24 }
 0x318   : > { %12449 = vpow2.f32 %v6667_v9  ;;  %v15008_v46 = vpop.f32.mrb[20].mxu1  ;;  %v15010_v49 = vpop.f32.mrb[166].mxu0  ;;  %v4652_v9 = vmax.f32 %v4050_v63, 0.0  ;;  %v4655_v43 = vmax.f32 %v4061_v58, 0.0  ;;  %v15032_v25 = vmin.f32 %v7645_v48, 1.0 }
 0x319   : > { %v15004_v59 = vpop.eup %12435  ;;  %v15018_v10 = vpop.f32.mrb[21].mxu1  ;;  %12451 = vrcp.f32 %v7145_v2  ;;  %v4053_v60 = vadd.f32 %v14722_v26, %v14917_v61  ;;  %v6665_v55 = vmul.f32 1.442695, %v6380_v34  ;;  %v7646_v37 = vmax.f32 %v14892_v19, 0.0 }
 0x31a   : > { %v15012_v53 = vpop.eup %12437  ;;  %v15020_v3 = vpop.f32.mrb[167].mxu0  ;;  %12453 = vpow2.f32 %v6663_v22  ;;  %20395 = vst [vmem:[#allocation15_spill] sm:$0xff] %v15032_v25  ;;  %v4839_v54 = vpack.c.bf16 %v4655_v43, %v4654_v1  ;;  %v5465_v58 = vadd.f32 %v14937_v38, %v14727_v35  ;;  %v7643_v19 = vmax.f32 %v14878_v11, 0.0 }
 0x31b   : > { %v12440_v51 = vpop.eup %12439  ;;  %8663 = vrot.lane.b32.xlu0 %v14901_v14, %s13463_s19  ;;  %v15028_v8 = vpop.f32.mrb[22].mxu1  ;;  %v4653_v24 = vmax.f32 %v4053_v60, 0.0  ;;  %v15046_v61 = vmin.f32 %v7646_v37, 1.0  ;;  %v5457_v38 = vadd.f32 %v14945_v5, %v14727_v35 }
 0x31c   : > { %v12442_v44 = vpop.eup %12441  ;;  %v7143_v63 = vadd.f32 1.0, %v12440_v51  ;;  %v15030_v0 = vpop.f32.mrb[23].mxu1  ;;  %v6385_v48 = vsub.f32 0.0, %v5465_v58  ;;  %v15062_v11 = vmin.f32 %v7643_v19, 1.0 }
 0x31d   : > { %v7146_v2 = vadd.f32 1.0, %v12442_v44  ;;  %v12444_v12 = vpop.eup %12443  ;;  %20396 = vst [vmem:[#allocation18_spill] sm:$0xff] %v15046_v61  ;;  %v4838_v1 = vpack.c.bf16 %v4653_v24, %v4652_v9  ;;  %8685 = vrot.lane.b32.xlu1 %v15046_v61, %s13463_s19  ;;  %v6383_v37 = vsub.f32 0.0, %v5457_v38  ;;  %v15074_v24 = vld [vmem:[%s20112_s4] ss:$0 sm:$0xff] }
 0x31e   : > { %12455 = vrcp.f32 %v7143_v63  ;;  %v15042_v51 = vpop.f32.mrb[168].mxu0  ;;  %v7144_v26 = vadd.f32 1.0, %v12444_v12  ;;  %20397 = vst [vmem:[#allocation17_spill] sm:$0xff] %v15062_v11  ;;  %v6675_v60 = vmul.f32 1.442695, %v6385_v48  ;;  %v4074_v58 = vadd.f32 %v15074_v24, %v14952_v31 }
 0x31f   : > { %12457 = vrcp.f32 %v7146_v2  ;;  %8675 = vrot.lane.b32.xlu0 %v14967_v39, %s13463_s19  ;;  %v15049_v43 = vpop.f32.mrb[169].mxu0  ;;  %12001 = vmatprep.mubr.msk.bf16.mxu0 %vm4905_vm4, %v4838_v1  ;;  %v5468_v48 = vadd.f32 %v14954_v50, %v14727_v35  ;;  %v4066_v38 = vadd.f32 %v15074_v24, %v14961_v30  ;;  %v6671_v31 = vmul.f32 1.442695, %v6383_v37 }
 0x320   : > { %v15044_v22 = vpop.eup %12445  ;;  %12459 = vpow2.f32 %v6669_v29  ;;  %v15055_v44 = vpop.f32.mrb[24].mxu1  ;;  %12002 = vmatmul.mubr.msk.bf16.gmra.mrb[12].mxu0 %vm4905_vm4, %v4839_v54  ;;  %v4658_v1 = vmax.f32 %v4074_v58, 0.0  ;;  %v7649_v37 = vmax.f32 %v14939_v27, 0.0  ;;  %v5481_v27 = vadd.f32 %v14994_v15, %v14727_v35 }
 0x321   : > { %v15051_v34 = vpop.eup %12447  ;;  %12461 = vpow2.f32 %v6665_v55  ;;  %v15057_v63 = vpop.f32.mrb[170].mxu0  ;;  %v7644_v55 = vmax.f32 %v14927_v4, 0.0  ;;  %v6386_v50 = vsub.f32 0.0, %v5468_v48  ;;  %v4656_v30 = vmax.f32 %v4066_v38, 0.0 }
 0x322   : > { %v12450_v12 = vpop.eup %12449  ;;  %12463 = vrcp.f32 %v7144_v26  ;;  %v15065_v9 = vpop.f32.mrb[25].mxu1  ;;  %v5460_v26 = vadd.f32 %v14963_v57, %v14727_v35  ;;  %v4069_v48 = vadd.f32 %v15074_v24, %v14974_v33  ;;  %v7650_v38 = vmax.f32 %v14956_v13, 0.0 }
 0x323   : > { %v15067_v2 = vpop.f32.mrb[171].mxu0  ;;  %v7149_v5 = vadd.f32 1.0, %v12450_v12  ;;  %8671 = vrot.lane.b32.xlu0 %v14982_v21, %s13463_s19  ;;  %v15079_v4 = vpop.f32.mrb[26].mxu1  ;;  %v15082_v19 = vmin.f32 %v7644_v55, 1.0  ;;  %v6677_v55 = vmul.f32 1.442695, %v6386_v50 }
 0x324   : > { %v15089_v12 = vpop.f32.mrb[27].mxu1  ;;  %v15091_v29 = vpop.eup %12451  ;;  %v6384_v54 = vsub.f32 0.0, %v5460_v26  ;;  %v4657_v33 = vmax.f32 %v4069_v48, 0.0  ;;  %v15122_v32 = vmin.f32 %v7650_v38, 1.0  ;;  %v7647_v13 = vmax.f32 %v14947_v45, 0.0 }
 0x325   : > { %20398 = vst [vmem:[#allocation20_spill] sm:$0xff] %v15082_v19  ;;  %12465 = vrcp.f32 %v7149_v5  ;;  %8681 = vrot.lane.b32.xlu1 %v15082_v19, %s13463_s19  ;;  %v12454_v17 = vpop.eup %12453  ;;  %v4077_v5 = vadd.f32 %v15074_v24, %v14970_v20  ;;  %v15114_v20 = vmin.f32 %v7649_v37, 1.0 }
 0x326   : > { %12467 = vpow2.f32 %v6675_v60  ;;  %v15103_v57 = vpop.f32.mrb[172].mxu0  ;;  %v7147_v58 = vadd.f32 1.0, %v12454_v17  ;;  %v6673_v26 = vmul.f32 1.442695, %v6384_v54  ;;  %20400 = vst [vmem:[#allocation22_spill] sm:$0xff] %v15122_v32  ;;  %v4840_v45 = vpack.c.bf16 %v4657_v33, %v4656_v30 }
 0x327   : > { %8683 = vrot.lane.b32.xlu0 %v15032_v25, %s13463_s19  ;;  %12469 = vpow2.f32 %v6671_v31  ;;  %v15110_v42 = vpop.f32.mrb[173].mxu0  ;;  %v4659_v7 = vmax.f32 %v4077_v5, 0.0  ;;  %20399 = vst [vmem:[#allocation19_spill] sm:$0xff] %v15114_v20  ;;  %v4090_v30 = vadd.f32 %v15074_v24, %v15008_v46 }
 0x328   : > { %v15105_v60 = vpop.eup %12455  ;;  %v15118_v47 = vpop.f32.mrb[28].mxu1  ;;  %12471 = vrcp.f32 %v7147_v58  ;;  %12005 = vmatprep.mubr.msk.bf16.mxu0 %vm4905_vm4, %v4840_v45  ;;  %v5476_v45 = vadd.f32 %v15020_v3, %v14727_v35 }
 0x329   : > { %v15112_v31 = vpop.eup %12457  ;;  %v15120_v17 = vpop.f32.mrb[174].mxu0  ;;  %12473 = vpow2.f32 %v6677_v55  ;;  %v4841_v15 = vpack.c.bf16 %v4659_v7, %v4658_v1  ;;  %8693 = vrot.lane.b32.xlu1 %v15122_v32, %s13463_s19  ;;  %v15141_v55 = vmin.f32 %v7647_v13, 1.0  ;;  %v5473_v7 = vadd.f32 %v15002_v41, %v14727_v35 }
 0x32a   : > { %v12460_v50 = vpop.eup %12459  ;;  %v15125_v19 = vpop.f32.mrb[29].mxu1  ;;  %12475 = vpow2.f32 %v6673_v26  ;;  %v7648_v1 = vmax.f32 %v14976_v6, 0.0  ;;  %v5484_v26 = vadd.f32 %v15010_v49, %v14727_v35  ;;  %v4082_v6 = vadd.f32 %v15074_v24, %v15018_v10 }
 0x32b   : > { %v15127_v54 = vpop.f32.mrb[175].mxu0  ;;  %v12462_v5 = vpop.eup %12461  ;;  %v7150_v37 = vadd.f32 1.0, %v12460_v50  ;;  %8679 = vrot.lane.b32.xlu0 %v15062_v11, %s13463_s19  ;;  %v6389_v11 = vsub.f32 0.0, %v5481_v27  ;;  %20401 = vst [vmem:[#allocation21_spill] sm:$0xff] %v15141_v55  ;;  %v6387_v41 = vsub.f32 0.0, %v5473_v7  ;;  %12006 = vmatmul.mubr.msk.bf16.gmra.mrb[16].mxu0 %vm4905_vm4, %v4841_v15 }
 0x32c   : > { %v15132_v25 = vpop.f32.mrb[30].mxu1  ;;  %v15134_v58 = vpop.eup %12463  ;;  %v7148_v48 = vadd.f32 1.0, %v12462_v5  ;;  %v15161_v49 = vmin.f32 %v7648_v1, 1.0  ;;  %v4660_v61 = vmax.f32 %v4082_v6, 0.0  ;;  %v4085_v6 = vadd.f32 %v15074_v24, %v15030_v0 }
 0x32d   : > { %v15139_v50 = vpop.f32.mrb[31].mxu1  ;;  %12477 = vrcp.f32 %v7150_v37  ;;  %v6683_v27 = vmul.f32 1.442695, %v6389_v11  ;;  %v4662_v37 = vmax.f32 %v4090_v30, 0.0  ;;  %v6679_v7 = vmul.f32 1.442695, %v6387_v41 }
 0x32e   : > { %12479 = vrcp.f32 %v7148_v48  ;;  %v15159_v46 = vpop.f32.mrb[176].mxu0  ;;  %20402 = vst [vmem:[#allocation24_spill] sm:$0xff] %v15161_v49  ;;  %v6390_v48 = vsub.f32 0.0, %v5484_v26  ;;  %8689 = vrot.lane.b32.xlu1 %v15161_v49, %s13463_s19  ;;  %v6388_v26 = vsub.f32 0.0, %v5476_v45  ;;  %v7653_v41 = vmax.f32 %v15004_v59, 0.0 }
 0x32f   : > { %v15151_v33 = vpop.eup %12465  ;;  %8691 = vrot.lane.b32.xlu0 %v15114_v20, %s13463_s19  ;;  %v15165_v38 = vpop.f32.mrb[177].mxu0  ;;  %12481 = vpow2.f32 %v6683_v27  ;;  %v4093_v27 = vadd.f32 %v15074_v24, %v15028_v8  ;;  %v5497_v1 = vadd.f32 %v15042_v51, %v14727_v35  ;;  %v4661_v0 = vmax.f32 %v4085_v6, 0.0 }
 0x330   : > { %v12468_v5 = vpop.eup %12467  ;;  %v15167_v10 = vpop.f32.mrb[32].mxu1  ;;  %v6685_v30 = vmul.f32 1.442695, %v6390_v48  ;;  %v6681_v45 = vmul.f32 1.442695, %v6388_v26  ;;  %v5489_v6 = vadd.f32 %v15049_v43, %v14727_v35 }
 0x331   : > { %v12470_v11 = vpop.eup %12469  ;;  %v7153_v13 = vadd.f32 1.0, %v12468_v5  ;;  %v15169_v15 = vpop.f32.mrb[178].mxu0  ;;  %v4663_v59 = vmax.f32 %v4093_v27, 0.0 }
 0x332   : > { %v7151_v32 = vadd.f32 1.0, %v12470_v11  ;;  %v15174_v3 = vpop.f32.mrb[33].mxu1  ;;  %v15183_v5 = vpop.f32.mrb[179].mxu0 }
 0x333   : > { %12483 = vrcp.f32 %v7153_v13  ;;  %8687 = vrot.lane.b32.xlu0 %v15141_v55, %s13463_s19  ;;  %v15185_v11 = vpop.f32.mrb[34].mxu1  ;;  %v15187_v48 = vpop.eup %12471  ;;  %v7654_v13 = vmax.f32 %v15044_v22, 0.0  ;;  %v15194_v55 = vmin.f32 %v7653_v41, 1.0  ;;  %v4843_v52 = vpack.c.bf16 %v4663_v59, %v4662_v37 }
 0x334   : > { %12485 = vrcp.f32 %v7151_v32  ;;  %v15192_v49 = vpop.f32.mrb[35].mxu1  ;;  %v12474_v8 = vpop.eup %12473  ;;  %v6393_v32 = vsub.f32 0.0, %v5497_v1  ;;  %v4842_v41 = vpack.c.bf16 %v4661_v0, %v4660_v61  ;;  %v7651_v37 = vmax.f32 %v15012_v53, 0.0 }
 0x335   : > { %12487 = vpow2.f32 %v6679_v7  ;;  %20403 = vst [vmem:[#allocation23_spill] sm:$0xff] %v15194_v55  ;;  %v12476_v20 = vpop.eup %12475  ;;  %v7154_v23 = vadd.f32 1.0, %v12474_v8  ;;  %v15196_v21 = vmin.f32 %v7654_v13, 1.0  ;;  %v4106_v61 = vadd.f32 %v15074_v24, %v15055_v44 }
 0x336   : > { %12489 = vpow2.f32 %v6685_v30  ;;  %v7152_v22 = vadd.f32 1.0, %v12476_v20  ;;  %v15203_v7 = vpop.f32.mrb[180].mxu0  ;;  %v6691_v1 = vmul.f32 1.442695, %v6393_v32  ;;  %v5500_v8 = vadd.f32 %v15057_v63, %v14727_v35  ;;  %12009 = vmatprep.mubr.msk.bf16.mxu0 %vm4905_vm4, %v4842_v41 }
 0x337   : > { %20404 = vst [vmem:[#allocation26_spill] sm:$0xff] %v15196_v21  ;;  %v15198_v26 = vpop.eup %12477  ;;  %12491 = vpow2.f32 %v6681_v45  ;;  %8699 = vrot.lane.b32.xlu0 %v15194_v55, %s13463_s19  ;;  %8701 = vrot.lane.b32.xlu1 %v15196_v21, %s13463_s19  ;;  %v15210_v20 = vpop.f32.mrb[181].mxu0  ;;  %v7652_v45 = vmax.f32 %v15051_v34, 0.0  ;;  %v4098_v59 = vadd.f32 %v15074_v24, %v15065_v9  ;;  %v15231_v0 = vmin.f32 %v7651_v37, 1.0 }
 0x338   : > { %v15205_v27 = vpop.eup %12479  ;;  %12493 = vrcp.f32 %v7154_v23  ;;  %v15216_v13 = vpop.f32.mrb[36].mxu1  ;;  %v6391_v32 = vsub.f32 0.0, %v5489_v6  ;;  %v5492_v44 = vadd.f32 %v15067_v2, %v14727_v35  ;;  %12010 = vmatmul.mubr.msk.bf16.gmra.mrb[20].mxu0 %vm4905_vm4, %v4843_v52  ;;  %v6394_v41 = vsub.f32 0.0, %v5500_v8 }
 0x339   : > { %12495 = vrcp.f32 %v7152_v22  ;;  %v15218_v23 = vpop.f32.mrb[182].mxu0  ;;  %v15227_v53 = vpop.f32.mrb[37].mxu1  ;;  %20405 = vst [vmem:[#allocation25_spill] sm:$0xff] %v15231_v0  ;;  %v15233_v22 = vmin.f32 %v7652_v45, 1.0  ;;  %v4664_v30 = vmax.f32 %v4098_v59, 0.0  ;;  %v4109_v8 = vadd.f32 %v15074_v24, %v15079_v4 }
 0x33a   : > { %12497 = vpow2.f32 %v6691_v1  ;;  %v15229_v43 = vpop.f32.mrb[183].mxu0  ;;  %v12482_v34 = vpop.eup %12481  ;;  %v4666_v1 = vmax.f32 %v4106_v61, 0.0  ;;  %v6687_v6 = vmul.f32 1.442695, %v6391_v32  ;;  %v6392_v52 = vsub.f32 0.0, %v5492_v44 }
 0x33b   : > { %20406 = vst [vmem:[#allocation28_spill] sm:$0xff] %v15233_v22  ;;  %v15238_v63 = vpop.f32.mrb[38].mxu1  ;;  %v7157_v9 = vadd.f32 1.0, %v12482_v34  ;;  %8695 = vrot.lane.b32.xlu0 %v15231_v0, %s13463_s19  ;;  %8697 = vrot.lane.b32.xlu1 %v15233_v22, %s13463_s19  ;;  %v6693_v61 = vmul.f32 1.442695, %v6394_v41  ;;  %v7657_v59 = vmax.f32 %v15091_v29, 0.0  ;;  %v4101_v32 = vadd.f32 %v15074_v24, %v15089_v12 }
 0x33c   : > { %v15240_v51 = vpop.f32.mrb[39].mxu1  ;;  %v6689_v37 = vmul.f32 1.442695, %v6392_v52  ;;  %v7658_v2 = vmax.f32 %v15112_v31, 0.0 }
 0x33d   : > { %v15242_v21 = vpop.eup %12483  ;;  %12499 = vrcp.f32 %v7157_v9  ;;  %v4667_v9 = vmax.f32 %v4109_v8, 0.0  ;;  %v15260_v41 = vmin.f32 %v7657_v59, 1.0  ;;  %v5505_v8 = vadd.f32 %v15110_v42, %v14727_v35 }
 0x33e   : > { %v15250_v45 = vpop.eup %12485  ;;  %12501 = vpow2.f32 %v6687_v6  ;;  %v15258_v0 = vpop.f32.mrb[184].mxu0  ;;  %v4665_v6 = vmax.f32 %v4101_v32, 0.0  ;;  %v15264_v52 = vmin.f32 %v7658_v2, 1.0  ;;  %v4114_v42 = vadd.f32 %v15074_v24, %v15125_v19 }
 0x33f   : > { %v12488_v34 = vpop.eup %12487  ;;  %12503 = vpow2.f32 %v6693_v61  ;;  %20407 = vst [vmem:[#allocation27_spill] sm:$0xff] %v15260_v41  ;;  %v15262_v55 = vpop.f32.mrb[185].mxu0  ;;  %v4845_v61 = vpack.c.bf16 %v4667_v9, %v4666_v1  ;;  %8707 = vrot.lane.b32.xlu0 %v15260_v41, %s13463_s19 }
 0x340   : > { %v12490_v44 = vpop.eup %12489  ;;  %v7155_v22 = vadd.f32 1.0, %v12488_v34  ;;  %12505 = vpow2.f32 %v6689_v37  ;;  %20408 = vst [vmem:[#allocation30_spill] sm:$0xff] %v15264_v52  ;;  %v15266_v39 = vpop.f32.mrb[40].mxu1  ;;  %v4844_v32 = vpack.c.bf16 %v4665_v6, %v4664_v30  ;;  %8709 = vrot.lane.b32.xlu1 %v15264_v52, %s13463_s19  ;;  %v4122_v52 = vadd.f32 %v15074_v24, %v15118_v47 }
 0x341   : > { %v12492_v4 = vpop.eup %12491  ;;  %v7158_v29 = vadd.f32 1.0, %v12490_v44  ;;  %v15268_v12 = vpop.f32.mrb[186].mxu0  ;;  %v4668_v19 = vmax.f32 %v4114_v42, 0.0  ;;  %v7661_v42 = vmax.f32 %v15151_v33, 0.0 }
 0x342   : > { %v15270_v31 = vpop.eup %12493  ;;  %12507 = vrcp.f32 %v7155_v22  ;;  %v7156_v34 = vadd.f32 1.0, %v12492_v4  ;;  %v15275_v59 = vpop.f32.mrb[41].mxu1  ;;  %v5513_v22 = vadd.f32 %v15103_v57, %v14727_v35  ;;  %v7655_v4 = vmax.f32 %v15105_v60, 0.0  ;;  %12013 = vmatprep.mubr.msk.bf16.mxu0 %vm4905_vm4, %v4844_v32 }
 0x343   : > { %v15277_v37 = vpop.f32.mrb[187].mxu0  ;;  %v15279_v2 = vpop.eup %12495  ;;  %12509 = vrcp.f32 %v7158_v29  ;;  %v7656_v29 = vmax.f32 %v15134_v58, 0.0  ;;  %v5516_v57 = vadd.f32 %v15120_v17, %v14727_v35  ;;  %v6395_v60 = vsub.f32 0.0, %v5505_v8  ;;  %12014 = vmatmul.mubr.msk.bf16.gmra.mrb[24].mxu0 %vm4905_vm4, %v4845_v61 }
 0x344   : > { %v15286_v1 = vpop.f32.mrb[42].mxu1  ;;  %v12498_v9 = vpop.eup %12497  ;;  %12511 = vrcp.f32 %v7156_v34  ;;  %v6397_v44 = vsub.f32 0.0, %v5513_v22  ;;  %v15299_v34 = vmin.f32 %v7655_v4, 1.0  ;;  %v4670_v22 = vmax.f32 %v4122_v52, 0.0 }
 0x345   : > { %v15292_v30 = vpop.f32.mrb[43].mxu1  ;;  %v7161_v6 = vadd.f32 1.0, %v12498_v9  ;;  %v15301_v41 = vmin.f32 %v7656_v29, 1.0  ;;  %v6398_v9 = vsub.f32 0.0, %v5516_v57  ;;  %v6695_v8 = vmul.f32 1.442695, %v6395_v60 }
 0x346   : > { %20409 = vst [vmem:[#allocation29_spill] sm:$0xff] %v15299_v34  ;;  %v6699_v58 = vmul.f32 1.442695, %v6397_v44  ;;  %v15306_v47 = vpop.f32.mrb[188].mxu0  ;;  %8703 = vrot.lane.b32.xlu0 %v15299_v34, %s13463_s19  ;;  %v5508_v4 = vadd.f32 %v15127_v54, %v14727_v35  ;;  %v4125_v29 = vadd.f32 %v15074_v24, %v15132_v25  ;;  %v4117_v17 = vadd.f32 %v15074_v24, %v15139_v50 }
 0x347   : > { %20410 = vst [vmem:[#allocation32_spill] sm:$0xff] %v15301_v41  ;;  %12513 = vrcp.f32 %v7161_v6  ;;  %v15308_v18 = vpop.eup %12499  ;;  %8705 = vrot.lane.b32.xlu1 %v15301_v41, %s13463_s19  ;;  %v15316_v61 = vpop.f32.mrb[189].mxu0  ;;  %v6701_v44 = vmul.f32 1.442695, %v6398_v9 }
 0x348   : > { %v12502_v52 = vpop.eup %12501  ;;  %12515 = vpow2.f32 %v6699_v58  ;;  %v15322_v6 = vpop.f32.mrb[44].mxu1  ;;  %v6396_v25 = vsub.f32 0.0, %v5508_v4  ;;  %v4671_v34 = vmax.f32 %v4125_v29, 0.0  ;;  %v4669_v33 = vmax.f32 %v4117_v17, 0.0 }
 0x349   : > { %v15324_v57 = vpop.f32.mrb[190].mxu0  ;;  %v12504_v60 = vpop.eup %12503  ;;  %v7159_v32 = vadd.f32 1.0, %v12502_v52  ;;  %12517 = vpow2.f32 %v6695_v8  ;;  %v15337_v52 = vmin.f32 %v7661_v42, 1.0  ;;  %v5529_v17 = vadd.f32 %v15159_v46, %v14727_v35 }
 0x34a   : > { %v15329_v58 = vpop.f32.mrb[45].mxu1  ;;  %v15331_v9 = vpop.f32.mrb[191].mxu0  ;;  %v7162_v41 = vadd.f32 1.0, %v12504_v60  ;;  %12519 = vpow2.f32 %v6701_v44  ;;  %v6697_v56 = vmul.f32 1.442695, %v6396_v25  ;;  %v4847_v28 = vpack.c.bf16 %v4671_v34, %v4670_v22 }
 0x34b   : > { %v12506_v54 = vpop.eup %12505  ;;  %v15333_v14 = vpop.f32.mrb[46].mxu1  ;;  %12521 = vrcp.f32 %v7159_v32  ;;  %20411 = vst [vmem:[#allocation31_spill] sm:$0xff] %v15337_v52  ;;  %v7662_v44 = vmax.f32 %v15198_v26, 0.0  ;;  %8715 = vrot.lane.b32.xlu0 %v15337_v52, %s13463_s19  ;;  %v4846_v32 = vpack.c.bf16 %v4669_v33, %v4668_v19  ;;  %v5521_v26 = vadd.f32 %v15165_v38, %v14727_v35 }
 0x34c   : > { %v15335_v36 = vpop.eup %12507  ;;  %v7160_v8 = vadd.f32 1.0, %v12506_v54  ;;  %v15339_v62 = vpop.f32.mrb[47].mxu1  ;;  %12523 = vrcp.f32 %v7162_v41  ;;  %v7659_v41 = vmax.f32 %v15187_v48, 0.0  ;;  %v6401_v22 = vsub.f32 0.0, %v5529_v17 }
 0x34d   : > { %v15341_v50 = vpop.eup %12509  ;;  %v15351_v60 = vmin.f32 %v7662_v44, 1.0  ;;  %v7660_v42 = vmax.f32 %v15205_v27, 0.0  ;;  %v4138_v54 = vadd.f32 %v15074_v24, %v15167_v10  ;;  %v5532_v19 = vadd.f32 %v15169_v15, %v14727_v35  ;;  %12017 = vmatprep.mubr.msk.bf16.mxu0 %vm4905_vm4, %v4846_v32 }
 0x34e   : > { %v15344_v4 = vpop.eup %12511  ;;  %12525 = vrcp.f32 %v7160_v8  ;;  %v15356_v34 = vpop.f32.mrb[192].mxu0  ;;  %v15371_v38 = vmin.f32 %v7659_v41, 1.0  ;;  %v6399_v27 = vsub.f32 0.0, %v5521_v26  ;;  %v4130_v10 = vadd.f32 %v15074_v24, %v15174_v3  ;;  %12018 = vmatmul.mubr.msk.bf16.gmra.mrb[28].mxu0 %vm4905_vm4, %v4847_v28 }
 0x34f   : > { %12527 = vpow2.f32 %v6697_v56  ;;  %20412 = vst [vmem:[#allocation33_spill] sm:$0xff] %v15351_v60  ;;  %v15364_v56 = vpop.f32.mrb[193].mxu0  ;;  %8717 = vrot.lane.b32.xlu1 %v15351_v60, %s13463_s19  ;;  %v6707_v8 = vmul.f32 1.442695, %v6401_v22  ;;  %v15380_v33 = vmin.f32 %v7660_v42, 1.0  ;;  %v4674_v44 = vmax.f32 %v4138_v54, 0.0 }
 0x350   : > { %20413 = vst [vmem:[#allocation34_spill] sm:$0xff] %v15371_v38  ;;  %v15376_v15 = vpop.f32.mrb[48].mxu1  ;;  %v15378_v25 = vpop.f32.mrb[194].mxu0  ;;  %v6402_v32 = vsub.f32 0.0, %v5532_v19  ;;  %8711 = vrot.lane.b32.xlu0 %v15371_v38, %s13463_s19  ;;  %v6703_v3 = vmul.f32 1.442695, %v6399_v27  ;;  %v5524_v28 = vadd.f32 %v15183_v5, %v14727_v35  ;;  %v4141_v5 = vadd.f32 %v15074_v24, %v15185_v11 }
 0x351   : > { %v15366_v46 = vpop.eup %12513  ;;  %20414 = vst [vmem:[#allocation35_spill] sm:$0xff] %v15380_v33  ;;  %v15382_v17 = vpop.f32.mrb[49].mxu1  ;;  %v4672_v26 = vmax.f32 %v4130_v10, 0.0  ;;  %12529 = vpow2.f32 %v6707_v8  ;;  %v7665_v8 = vmax.f32 %v15242_v21, 0.0  ;;  %v5545_v21 = vadd.f32 %v15203_v7, %v14727_v35 }
 0x352   : > { %v12516_v48 = vpop.eup %12515  ;;  %v15389_v29 = vpop.f32.mrb[195].mxu0  ;;  %v6709_v60 = vmul.f32 1.442695, %v6402_v32  ;;  %12531 = vpow2.f32 %v6703_v3  ;;  %v6400_v27 = vsub.f32 0.0, %v5524_v28  ;;  %v4133_v32 = vadd.f32 %v15074_v24, %v15192_v49 }
 0x353   : > { %v15391_v22 = vpop.f32.mrb[50].mxu1  ;;  %v12518_v42 = vpop.eup %12517  ;;  %v7165_v54 = vadd.f32 1.0, %v12516_v48  ;;  %8713 = vrot.lane.b32.xlu1 %v15380_v33, %s13463_s19  ;;  %v7666_v33 = vmax.f32 %v15270_v31, 0.0  ;;  %v15412_v11 = vmin.f32 %v7665_v8, 1.0  ;;  %v7663_v31 = vmax.f32 %v15250_v45, 0.0 }
 0x354   : > { %v15394_v52 = vpop.f32.mrb[51].mxu1  ;;  %v12520_v41 = vpop.eup %12519  ;;  %v7163_v16 = vadd.f32 1.0, %v12518_v42  ;;  %v6705_v3 = vmul.f32 1.442695, %v6400_v27  ;;  %v4675_v42 = vmax.f32 %v4141_v5, 0.0  ;;  %v6405_v45 = vsub.f32 0.0, %v5545_v21 }
 0x355   : > { %v15400_v10 = vpop.eup %12521  ;;  %12533 = vrcp.f32 %v7165_v54  ;;  %v7166_v48 = vadd.f32 1.0, %v12520_v41  ;;  %20415 = vst [vmem:[#allocation36_spill] sm:$0xff] %v15412_v11  ;;  %v4673_v41 = vmax.f32 %v4133_v32, 0.0  ;;  %v15418_v27 = vmin.f32 %v7666_v33, 1.0  ;;  %8723 = vrot.lane.b32.xlu0 %v15412_v11, %s13463_s19 }
 0x356   : > { %v15405_v19 = vpop.eup %12523  ;;  %12535 = vrcp.f32 %v7163_v16  ;;  %v15408_v28 = vpop.f32.mrb[196].mxu0  ;;  %v4849_v16 = vpack.c.bf16 %v4675_v42, %v4674_v44  ;;  %v15435_v44 = vmin.f32 %v7663_v31, 1.0  ;;  %v6715_v21 = vmul.f32 1.442695, %v6405_v45 }
 0x357   : > { %12537 = vrcp.f32 %v7166_v48  ;;  %v15416_v54 = vpop.f32.mrb[197].mxu0  ;;  %20416 = vst [vmem:[#allocation37_spill] sm:$0xff] %v15418_v27  ;;  %v4848_v7 = vpack.c.bf16 %v4673_v41, %v4672_v26  ;;  %8725 = vrot.lane.b32.xlu1 %v15418_v27, %s13463_s19  ;;  %v7664_v26 = vmax.f32 %v15279_v2, 0.0  ;;  %v4154_v41 = vadd.f32 %v15074_v24, %v15216_v13 }
 0x358   : > { %v15410_v38 = vpop.eup %12525  ;;  %12539 = vpow2.f32 %v6709_v60  ;;  %v15421_v5 = vpop.f32.mrb[52].mxu1  ;;  %20417 = vst [vmem:[#allocation38_spill] sm:$0xff] %v15435_v44 }
 0x359   : > { %v12528_v49 = vpop.eup %12527  ;;  %v15423_v40 = vpop.f32.mrb[198].mxu0  ;;  %12541 = vpow2.f32 %v6705_v3  ;;  %v5537_v3 = vadd.f32 %v15210_v20, %v14727_v35  ;;  %12021 = vmatprep.mubr.msk.bf16.mxu0 %vm4905_vm4, %v4848_v7  ;;  %v4146_v20 = vadd.f32 %v15074_v24, %v15227_v53  ;;  %8719 = vrot.lane.b32.xlu0 %v15435_v44, %s13463_s19  ;;  %v15455_v13 = vmin.f32 %v7664_v26, 1.0 }
 0x35a   : > { %v7164_v48 = vadd.f32 1.0, %v12528_v49  ;;  %v15428_v32 = vpop.f32.mrb[53].mxu1  ;;  %v15430_v60 = vpop.f32.mrb[199].mxu0  ;;  %v5548_v49 = vadd.f32 %v15218_v23, %v14727_v35  ;;  %12022 = vmatmul.mubr.msk.bf16.gmra.mrb[32].mxu0 %vm4905_vm4, %v4849_v16  ;;  %v4678_v23 = vmax.f32 %v4154_v41, 0.0  ;;  %v5540_v7 = vadd.f32 %v15229_v43, %v14727_v35 }
 0x35b   : > { %v15439_v42 = vpop.f32.mrb[54].mxu1  ;;  %v6403_v8 = vsub.f32 0.0, %v5537_v3  ;;  %v12530_v2 = vpop.eup %12529  ;;  %20419 = vst [vmem:[#allocation40_spill] sm:$0xff] %v15455_v13  ;;  %v4676_v31 = vmax.f32 %v4146_v20, 0.0  ;;  %8721 = vrot.lane.b32.xlu1 %v15455_v13, %s13463_s19  ;;  %v4149_v20 = vadd.f32 %v15074_v24, %v15240_v51 }
 0x35c   : > { %12543 = vrcp.f32 %v7164_v48  ;;  %v15447_v33 = vpop.f32.mrb[55].mxu1  ;;  %v6406_v48 = vsub.f32 0.0, %v5548_v49  ;;  %v12532_v45 = vpop.eup %12531  ;;  %v7169_v27 = vadd.f32 1.0, %v12530_v2  ;;  %v6404_v41 = vsub.f32 0.0, %v5540_v7 }
 0x35d   : > { %20418 = vst [vmem:[#allocation39_spill] sm:$0xff] %v15447_v33  ;;  %12545 = vpow2.f32 %v6715_v21  ;;  %v6711_v3 = vmul.f32 1.442695, %v6403_v8  ;;  %v7167_v16 = vadd.f32 1.0, %v12532_v45  ;;  %v4157_v8 = vadd.f32 %v15074_v24, %v15238_v63 }
 0x35e   : > { %v15459_v11 = vpop.f32.mrb[200].mxu0  ;;  %v6717_v26 = vmul.f32 1.442695, %v6406_v48  ;;  %12547 = vrcp.f32 %v7169_v27  ;;  %v7669_v21 = vmax.f32 %v15308_v18, 0.0  ;;  %v6713_v48 = vmul.f32 1.442695, %v6404_v41 }
 0x35f   : > { %20420 = vst [vmem:[#allocation41_spill] sm:$0xff] %v15459_v11  ;;  %v15461_v53 = vpop.eup %12533  ;;  %v15466_v49 = vpop.f32.mrb[201].mxu0  ;;  %12549 = vrcp.f32 %v7167_v16  ;;  %v7670_v7 = vmax.f32 %v15341_v50, 0.0  ;;  %v5561_v27 = vadd.f32 %v15258_v0, %v14727_v35  ;;  %v4679_v51 = vmax.f32 %v4157_v8, 0.0 }
 0x360   : > { %20421 = vst [vmem:[#allocation42_spill] sm:$0xff] %v15466_v49  ;;  %v15468_v43 = vpop.eup %12535  ;;  %v15475_v2 = vpop.f32.mrb[56].mxu1  ;;  %12551 = vpow2.f32 %v6711_v3  ;;  %v15488_v44 = vmin.f32 %v7669_v21, 1.0 }
 0x361   : > { %20422 = vst [vmem:[#allocation43_spill] sm:$0xff] %v15475_v2  ;;  %v15477_v45 = vpop.f32.mrb[202].mxu0  ;;  %v15479_v33 = vpop.eup %12537  ;;  %v4677_v2 = vmax.f32 %v4149_v20, 0.0  ;;  %12553 = vpow2.f32 %v6717_v26  ;;  %v15492_v41 = vmin.f32 %v7670_v7, 1.0  ;;  %v6409_v50 = vsub.f32 0.0, %v5561_v27 }
 0x362   : > { %20423 = vst [vmem:[#allocation44_spill] sm:$0xff] %v15477_v45  ;;  %v15484_v13 = vpop.f32.mrb[57].mxu1  ;;  %v15486_v63 = vpop.f32.mrb[203].mxu0  ;;  %20426 = vst [vmem:[#allocation47_spill] sm:$0xff] %v15488_v44  ;;  %12555 = vpow2.f32 %v6713_v48  ;;  %8731 = vrot.lane.b32.xlu0 %v15488_v44, %s13463_s19  ;;  %v7668_v20 = vmax.f32 %v15344_v4, 0.0  ;;  %v4162_v7 = vadd.f32 %v15074_v24, %v15275_v59 }
 0x363   : > { %20424 = vst [vmem:[#allocation45_spill] sm:$0xff] %v15484_v13  ;;  %20425 = vst [vmem:[#allocation46_spill] sm:$0xff] %v15486_v63  ;;  %v12540_v18 = vpop.eup %12539  ;;  %v15490_v45 = vpop.f32.mrb[58].mxu1  ;;  %v4851_v13 = vpack.c.bf16 %v4679_v51, %v4678_v23  ;;  %v4850_v8 = vpack.c.bf16 %v4677_v2, %v4676_v31  ;;  %8733 = vrot.lane.b32.xlu1 %v15492_v41, %s13463_s19  ;;  %v6723_v26 = vmul.f32 1.442695, %v6409_v50 }
 0x364   : > { %v12542_v49 = vpop.eup %12541  ;;  %v7170_v16 = vadd.f32 1.0, %v12540_v18  ;;  %20427 = vst [vmem:[#allocation48_spill] sm:$0xff] %v15492_v41  ;;  %v15494_v11 = vpop.f32.mrb[59].mxu1  ;;  %v5553_v23 = vadd.f32 %v15262_v55, %v14727_v35  ;;  %v4170_v31 = vadd.f32 %v15074_v24, %v15266_v39  ;;  %v5564_v2 = vadd.f32 %v15268_v12, %v14727_v35 }
 0x365   : > { %v7168_v0 = vadd.f32 1.0, %v12542_v49  ;;  %v7667_v49 = vmax.f32 %v15335_v36, 0.0  ;;  %12025 = vmatprep.mubr.msk.bf16.mxu0 %vm4905_vm4, %v4850_v8  ;;  %v15521_v18 = vmin.f32 %v7668_v20, 1.0  ;;  %v5556_v51 = vadd.f32 %v15277_v37, %v14727_v35 }
 0x366   : > { %v15499_v3 = vpop.eup %12543  ;;  %12557 = vrcp.f32 %v7170_v16  ;;  %v15508_v48 = vpop.f32.mrb[204].mxu0  ;;  %v6407_v4 = vsub.f32 0.0, %v5553_v23  ;;  %12026 = vmatmul.mubr.msk.bf16.gmra.mrb[36].mxu0 %vm4905_vm4, %v4851_v13  ;;  %v4682_v16 = vmax.f32 %v4170_v31, 0.0  ;;  %v6410_v50 = vsub.f32 0.0, %v5564_v2 }
 0x367   : > { %12559 = vrcp.f32 %v7168_v0  ;;  %v15517_v36 = vpop.f32.mrb[205].mxu0  ;;  %v12546_v27 = vpop.eup %12545  ;;  %v15519_v55 = vmin.f32 %v7667_v49, 1.0  ;;  %20429 = vst [vmem:[#allocation50_spill] sm:$0xff] %v15521_v18  ;;  %v4680_v0 = vmax.f32 %v4162_v7, 0.0  ;;  %8729 = vrot.lane.b32.xlu1 %v15521_v18, %s13463_s19  ;;  %v6408_v20 = vsub.f32 0.0, %v5556_v51 }
 0x368   : > { %12561 = vpow2.f32 %v6723_v26  ;;  %v15526_v39 = vpop.f32.mrb[60].mxu1  ;;  %v15528_v12 = vpop.f32.mrb[206].mxu0  ;;  %v7173_v59 = vadd.f32 1.0, %v12546_v27  ;;  %v6719_v37 = vmul.f32 1.442695, %v6407_v4  ;;  %v4173_v27 = vadd.f32 %v15074_v24, %v15286_v1 }
 0x369   : > { %20428 = vst [vmem:[#allocation49_spill] sm:$0xff] %v15519_v55  ;;  %v15530_v8 = vpop.f32.mrb[61].mxu1  ;;  %v15532_v26 = vpop.f32.mrb[207].mxu0  ;;  %8727 = vrot.lane.b32.xlu0 %v15519_v55, %s13463_s19  ;;  %v6725_v7 = vmul.f32 1.442695, %v6410_v50  ;;  %v7673_v23 = vmax.f32 %v15366_v46, 0.0  ;;  %v4165_v63 = vadd.f32 %v15074_v24, %v15292_v30 }
 0x36a   : > { %v15534_v49 = vpop.eup %12547  ;;  %v15542_v31 = vpop.f32.mrb[62].mxu1  ;;  %12563 = vrcp.f32 %v7173_v59  ;;  %v6721_v13 = vmul.f32 1.442695, %v6408_v20  ;;  %v7674_v51 = vmax.f32 %v15405_v19, 0.0  ;;  %v4683_v59 = vmax.f32 %v4173_v27, 0.0 }
 0x36b   : > { %v15544_v2 = vpop.eup %12549  ;;  %v15549_v21 = vpop.f32.mrb[63].mxu1  ;;  %12565 = vpow2.f32 %v6719_v37  ;;  %v15554_v50 = vmin.f32 %v7673_v23, 1.0  ;;  %v4681_v46 = vmax.f32 %v4165_v63, 0.0  ;;  %v7671_v27 = vmax.f32 %v15400_v10, 0.0 }
 0x36c   : > { %20430 = vst [vmem:[#allocation51_spill] sm:$0xff] %v15549_v21  ;;  %v12552_v4 = vpop.eup %12551  ;;  %12567 = vpow2.f32 %v6725_v7  ;;  %v15556_v44 = vmin.f32 %v7674_v51, 1.0  ;;  %v4853_v20 = vpack.c.bf16 %v4683_v59, %v4682_v16 }
 0x36d   : > { %v12554_v18 = vpop.eup %12553  ;;  %v7171_v55 = vadd.f32 1.0, %v12552_v4  ;;  %20431 = vst [vmem:[#allocation52_spill] sm:$0xff] %v15554_v50  ;;  %12569 = vpow2.f32 %v6721_v13  ;;  %8739 = vrot.lane.b32.xlu0 %v15554_v50, %s13463_s19  ;;  %v4852_v63 = vpack.c.bf16 %v4681_v46, %v4680_v0  ;;  %v5569_v4 = vadd.f32 %v15316_v61, %v14727_v35 }
 0x36e   : > { %v12556_v41 = vpop.eup %12555  ;;  %v7174_v1 = vadd.f32 1.0, %v12554_v18  ;;  %20432 = vst [vmem:[#allocation53_spill] sm:$0xff] %v15556_v44  ;;  %v15558_v21 = vpop.f32.mrb[208].mxu0  ;;  %8741 = vrot.lane.b32.xlu1 %v15556_v44, %s13463_s19  ;;  %v7672_v0 = vmax.f32 %v15410_v38, 0.0  ;;  %v5580_v18 = vadd.f32 %v15324_v57, %v14727_v35  ;;  %v15595_v61 = vmin.f32 %v7671_v27, 1.0 }
 0x36f   : > { %12571 = vrcp.f32 %v7171_v55  ;;  %v7172_v30 = vadd.f32 1.0, %v12556_v41  ;;  %v15565_v23 = vpop.f32.mrb[209].mxu0  ;;  %v5577_v41 = vadd.f32 %v15306_v47, %v14727_v35  ;;  %v4186_v47 = vadd.f32 %v15074_v24, %v15322_v6  ;;  %12029 = vmatprep.mubr.msk.bf16.mxu0 %vm4905_vm4, %v4852_v63 }
 0x370   : > { %v15560_v37 = vpop.eup %12557  ;;  %12573 = vrcp.f32 %v7174_v1  ;;  %v15574_v55 = vpop.f32.mrb[64].mxu1  ;;  %20434 = vst [vmem:[#allocation55_spill] sm:$0xff] %v15595_v61  ;;  %v6411_v38 = vsub.f32 0.0, %v5569_v4  ;;  %v15597_v19 = vmin.f32 %v7672_v0, 1.0  ;;  %12030 = vmatmul.mubr.msk.bf16.gmra.mrb[40].mxu0 %vm4905_vm4, %v4853_v20  ;;  %v6414_v63 = vsub.f32 0.0, %v5580_v18 }
 0x371   : > { %v15567_v7 = vpop.eup %12559  ;;  %v15576_v16 = vpop.f32.mrb[210].mxu0  ;;  %12575 = vrcp.f32 %v7172_v30  ;;  %v6413_v46 = vsub.f32 0.0, %v5577_v41  ;;  %v4178_v41 = vadd.f32 %v15074_v24, %v15329_v58  ;;  %8735 = vrot.lane.b32.xlu0 %v15595_v61, %s13463_s19  ;;  %v5572_v18 = vadd.f32 %v15331_v9, %v14727_v35  ;;  %v15617_v0 = vld [vmem:[%s20112_s4] ss:$0 sm:$0xff] }
 0x372   : > { %v12562_v13 = vpop.eup %12561  ;;  %v15582_v51 = vpop.permute.xlu1 %8659  ;;  %20435 = vst [vmem:[#allocation56_spill] sm:$0xff] %v15597_v19  ;;  %v6727_v27 = vmul.f32 1.442695, %v6411_v38  ;;  %8737 = vrot.lane.b32.xlu1 %v15597_v19, %s13463_s19  ;;  %v6733_v20 = vmul.f32 1.442695, %v6414_v63  ;;  %v4181_v9 = vadd.f32 %v15617_v0, %v15339_v62 }
 0x373   : > { %v15584_v59 = vpop.f32.mrb[65].mxu1  ;;  %v7177_v1 = vadd.f32 1.0, %v12562_v13  ;;  %v15591_v10 = vpop.f32.mrb[211].mxu0  ;;  %v6731_v57 = vmul.f32 1.442695, %v6413_v46  ;;  %v4686_v13 = vmax.f32 %v4186_v47, 0.0 }
 0x374   : > { %v15593_v30 = vpop.f32.mrb[66].mxu1  ;;  %v15604_v44 = vpop.eup %12563  ;;  %v4684_v24 = vmax.f32 %v4178_v41, 0.0  ;;  %v6412_v19 = vsub.f32 0.0, %v5572_v18 }
 0x375   : > { %20433 = vst [vmem:[#allocation54_spill] sm:$0xff] %v15593_v30  ;;  %v15602_v6 = vpop.f32.mrb[67].mxu1  ;;  %12577 = vrcp.f32 %v7177_v1  ;;  %v12566_v58 = vpop.eup %12565  ;;  %v4189_v1 = vadd.f32 %v15617_v0, %v15333_v14 }
 0x376   : > { %20436 = vst [vmem:[#allocation57_spill] sm:$0xff] %v15602_v6  ;;  %12579 = vpow2.f32 %v6731_v57  ;;  %v15621_v46 = vpop.permute.xlu1 %8661  ;;  %v15623_v47 = vpop.f32.mrb[212].mxu0  ;;  %v7175_v41 = vadd.f32 1.0, %v12566_v58  ;;  %v7677_v57 = vmax.f32 %v15461_v53, 0.0  ;;  %v4685_v53 = vmax.f32 %v4181_v9, 0.0 }
 0x377   : > { %20437 = vst [vmem:[#allocation58_spill] sm:$0xff] %v15623_v47  ;;  %v12568_v38 = vpop.eup %12567  ;;  %12581 = vpow2.f32 %v6727_v27  ;;  %v15628_v63 = vpop.f32.mrb[213].mxu0  ;;  %v4687_v61 = vmax.f32 %v4189_v1, 0.0  ;;  %v7678_v1 = vmax.f32 %v15479_v33, 0.0 }
 0x378   : > { %20438 = vst [vmem:[#allocation59_spill] sm:$0xff] %v15628_v63  ;;  %v12570_v4 = vpop.eup %12569  ;;  %v7178_v50 = vadd.f32 1.0, %v12568_v38  ;;  %12583 = vpow2.f32 %v6733_v20  ;;  %v15630_v14 = vpop.f32.mrb[68].mxu1  ;;  %v15636_v58 = vmin.f32 %v7677_v57, 1.0  ;;  %v6729_v20 = vmul.f32 1.442695, %v6412_v19 }
 0x379   : > { %v15632_v6 = vpop.f32.mrb[214].mxu0  ;;  %v15634_v47 = vpop.eup %12571  ;;  %12585 = vrcp.f32 %v7175_v41  ;;  %v7176_v27 = vadd.f32 1.0, %v12570_v4  ;;  %v4855_v18 = vpack.c.bf16 %v4687_v61, %v4686_v13  ;;  %v4854_v57 = vpack.c.bf16 %v4685_v53, %v4684_v24 }
 0x37a   : > { %20439 = vst [vmem:[#allocation60_spill] sm:$0xff] %v15632_v6  ;;  %20440 = vst [vmem:[#allocation61_spill] sm:$0xff] %v15636_v58  ;;  %v15638_v30 = vpop.f32.mrb[69].mxu1  ;;  %v15640_v62 = vpop.f32.mrb[215].mxu0  ;;  %12587 = vrcp.f32 %v7178_v50  ;;  %8747 = vrot.lane.b32.xlu0 %v15636_v58, %s13463_s19  ;;  %v5593_v50 = vadd.f32 %v15356_v34, %v14727_v35  ;;  %v15658_v33 = vmin.f32 %v7678_v1, 1.0  ;;  %v7675_v61 = vmax.f32 %v15468_v43, 0.0 }
 0x37b   : > { %v15642_v63 = vpop.eup %12573  ;;  %v15645_v38 = vpop.permute.xlu1 %8669  ;;  %12589 = vrcp.f32 %v7176_v27  ;;  %v5585_v13 = vadd.f32 %v15364_v56, %v14727_v35  ;;  %v7676_v27 = vmax.f32 %v15499_v3, 0.0  ;;  %v4202_v4 = vadd.f32 %v15617_v0, %v15376_v15  ;;  %12033 = vmatprep.mubr.msk.bf16.mxu0 %vm4905_vm4, %v4854_v57 }
 0x37c   : > { %v15647_v6 = vpop.f32.mrb[70].mxu1  ;;  %v15649_v41 = vpop.eup %12575  ;;  %12591 = vpow2.f32 %v6729_v20  ;;  %20441 = vst [vmem:[#allocation62_spill] sm:$0xff] %v15658_v33  ;;  %v6417_v9 = vsub.f32 0.0, %v5593_v50  ;;  %v5596_v24 = vadd.f32 %v15378_v25, %v14727_v35  ;;  %8749 = vrot.lane.b32.xlu1 %v15658_v33, %s13463_s19  ;;  %v15674_v43 = vmin.f32 %v7675_v61, 1.0  ;;  %12034 = vmatmul.mubr.msk.bf16.gmra.mrb[44].mxu0 %vm4905_vm4, %v4855_v18 }
 0x37d   : > { %v15656_v19 = vpop.f32.mrb[71].mxu1  ;;  %v6415_v56 = vsub.f32 0.0, %v5585_v13  ;;  %v4194_v3 = vadd.f32 %v15617_v0, %v15382_v17  ;;  %v15681_v20 = vmin.f32 %v7676_v27, 1.0  ;;  %v4690_v1 = vmax.f32 %v4202_v4, 0.0 }
 0x37e   : > { %20442 = vst [vmem:[#allocation63_spill] sm:$0xff] %v15674_v43  ;;  %v15679_v15 = vpop.f32.mrb[216].mxu0  ;;  %v6739_v25 = vmul.f32 1.442695, %v6417_v9  ;;  %v6418_v57 = vsub.f32 0.0, %v5596_v24  ;;  %8743 = vrot.lane.b32.xlu0 %v15674_v43, %s13463_s19  ;;  %v5588_v17 = vadd.f32 %v15389_v29, %v14727_v35  ;;  %v7681_v24 = vmax.f32 %v15534_v49, 0.0 }
 0x37f   : > { %v15669_v34 = vpop.eup %12577  ;;  %20443 = vst [vmem:[#allocation64_spill] sm:$0xff] %v15679_v15  ;;  %20444 = vst [vmem:[#allocation65_spill] sm:$0xff] %v15681_v20  ;;  %v15683_v50 = vpop.f32.mrb[217].mxu0  ;;  %v6735_v61 = vmul.f32 1.442695, %v6415_v56  ;;  %v4688_v13 = vmax.f32 %v4194_v3, 0.0  ;;  %v4205_v3 = vadd.f32 %v15617_v0, %v15391_v22 }
 0x380   : > { %20445 = vst [vmem:[#allocation66_spill] sm:$0xff] %v15683_v50  ;;  %v12580_v53 = vpop.eup %12579  ;;  %v15692_v9 = vpop.permute.xlu1 %8665  ;;  %12593 = vpow2.f32 %v6739_v25  ;;  %v6741_v58 = vmul.f32 1.442695, %v6418_v57  ;;  %8745 = vrot.lane.b32.xlu1 %v15681_v20, %s13463_s19  ;;  %v6416_v29 = vsub.f32 0.0, %v5588_v17  ;;  %v15723_v49 = vmin.f32 %v7681_v24, 1.0 }
 0x381   : > { %v15690_v18 = vpop.permute.xlu0 %8655  ;;  %v12582_v27 = vpop.eup %12581  ;;  %v7181_v4 = vadd.f32 1.0, %v12580_v53  ;;  %12595 = vpow2.f32 %v6735_v61  ;;  %v4197_v61 = vadd.f32 %v15617_v0, %v15394_v52  ;;  %v4691_v22 = vmax.f32 %v4205_v3, 0.0 }
 0x382   : > { %v15695_v50 = vpop.f32.mrb[72].mxu1  ;;  %v15697_v33 = vpop.f32.mrb[218].mxu0  ;;  %v7179_v56 = vadd.f32 1.0, %v12582_v27  ;;  %v6737_v17 = vmul.f32 1.442695, %v6416_v29  ;;  %20452 = vst [vmem:[#allocation73_spill] sm:$0xff] %v15723_v49  ;;  %v5609_v52 = vadd.f32 %v15408_v28, %v14727_v35  ;;  %8755 = vrot.lane.b32.xlu0 %v15723_v49, %s13463_s19 }
 0x383   : > { %20446 = vst [vmem:[#allocation67_spill] sm:$0xff] %v15695_v50  ;;  %20447 = vst [vmem:[#allocation68_spill] sm:$0xff] %v15697_v33  ;;  %v12584_v43 = vpop.eup %12583  ;;  %v15703_v15 = vpop.f32.mrb[73].mxu1  ;;  %12597 = vrcp.f32 %v7181_v4 }
 0x384   : > { %20448 = vst [vmem:[#allocation69_spill] sm:$0xff] %v15703_v15  ;;  %v15705_v53 = vpop.f32.mrb[219].mxu0  ;;  %v15707_v25 = vpop.eup %12585  ;;  %v7182_v57 = vadd.f32 1.0, %v12584_v43  ;;  %12599 = vrcp.f32 %v7179_v56  ;;  %v7682_v15 = vmax.f32 %v15560_v37, 0.0  ;;  %v4689_v43 = vmax.f32 %v4197_v61, 0.0 }
 0x385   : > { %20449 = vst [vmem:[#allocation70_spill] sm:$0xff] %v15705_v53  ;;  %v15712_v27 = vpop.f32.mrb[74].mxu1  ;;  %v15714_v20 = vpop.eup %12587  ;;  %v4857_v56 = vpack.c.bf16 %v4691_v22, %v4690_v1  ;;  %v7679_v37 = vmax.f32 %v15544_v2, 0.0  ;;  %v6421_v2 = vsub.f32 0.0, %v5609_v52  ;;  %v5601_v1 = vadd.f32 %v15416_v54, %v14727_v35 }
 0x386   : > { %20450 = vst [vmem:[#allocation71_spill] sm:$0xff] %v15712_v27  ;;  %v15717_v33 = vpop.permute.xlu0 %8657  ;;  %v15719_v53 = vpop.f32.mrb[75].mxu1  ;;  %12601 = vrcp.f32 %v7182_v57  ;;  %v15727_v29 = vmin.f32 %v7682_v15, 1.0  ;;  %v4856_v24 = vpack.c.bf16 %v4689_v43, %v4688_v13  ;;  %v7680_v13 = vmax.f32 %v15567_v7, 0.0 }
 0x387   : > { %20451 = vst [vmem:[#allocation72_spill] sm:$0xff] %v15719_v53  ;;  %v15721_v4 = vpop.eup %12589  ;;  %12603 = vpow2.f32 %v6741_v58  ;;  %v15730_v3 = vpop.f32.mrb[220].mxu0  ;;  %v15742_v15 = vmin.f32 %v7679_v37, 1.0  ;;  %v5612_v22 = vadd.f32 %v15423_v40, %v14727_v35  ;;  %v6747_v54 = vmul.f32 1.442695, %v6421_v2 }
 0x388   : > { %v12592_v27 = vpop.eup %12591  ;;  %20453 = vst [vmem:[#allocation74_spill] sm:$0xff] %v15727_v29  ;;  %20454 = vst [vmem:[#allocation75_spill] sm:$0xff] %v15730_v3  ;;  %12605 = vpow2.f32 %v6737_v17  ;;  %v15735_v57 = vpop.permute.xlu1 %8677  ;;  %8757 = vrot.lane.b32.xlu1 %v15727_v29, %s13463_s19  ;;  %v4218_v17 = vadd.f32 %v15617_v0, %v15421_v5  ;;  %12037 = vmatprep.mubr.msk.bf16.mxu0 %vm4905_vm4, %v4856_v24  ;;  %v6419_v58 = vsub.f32 0.0, %v5601_v1  ;;  %v15770_v24 = vmin.f32 %v7680_v13, 1.0 }
 0x389   : > { %v7180_v50 = vadd.f32 1.0, %v12592_v27  ;;  %v15737_v28 = vpop.f32.mrb[221].mxu0  ;;  %20456 = vst [vmem:[#allocation77_spill] sm:$0xff] %v15742_v15  ;;  %v15748_v27 = vpop.f32.mrb[76].mxu1  ;;  %12038 = vmatmul.mubr.msk.bf16.gmra.mrb[48].mxu0 %vm4905_vm4, %v4857_v56  ;;  %8751 = vrot.lane.b32.xlu0 %v15742_v15, %s13463_s19  ;;  %v6422_v2 = vsub.f32 0.0, %v5612_v22  ;;  %v5604_v1 = vadd.f32 %v15430_v60, %v14727_v35 }
 0x38a   : > { %20455 = vst [vmem:[#allocation76_spill] sm:$0xff] %v15737_v28  ;;  %v15746_v61 = vpop.permute.xlu0 %8667  ;;  %20457 = vst [vmem:[#allocation78_spill] sm:$0xff] %v15748_v27  ;;  %v15756_v43 = vpop.f32.mrb[222].mxu0  ;;  %v4694_v53 = vmax.f32 %v4218_v17, 0.0  ;;  %v6743_v56 = vmul.f32 1.442695, %v6419_v58  ;;  %v4221_v58 = vadd.f32 %v15617_v0, %v15439_v42 }
 0x38b   : > { %12607 = vrcp.f32 %v7180_v50  ;;  %20458 = vst [vmem:[#allocation79_spill] sm:$0xff] %v15756_v43  ;;  %v15758_v52 = vpop.f32.mrb[77].mxu1  ;;  %v4210_v50 = vadd.f32 %v15617_v0, %v15428_v32  ;;  %v15764_v7 = vpop.f32.mrb[223].mxu0  ;;  %20462 = vst [vmem:[#allocation83_spill] sm:$0xff] %v15770_v24  ;;  %v6749_v17 = vmul.f32 1.442695, %v6422_v2 }
 0x38c   : > { %20459 = vst [vmem:[#allocation80_spill] sm:$0xff] %v15758_v52  ;;  %20460 = vst [vmem:[#allocation81_spill] sm:$0xff] %v15764_v7  ;;  %v15766_v5 = vpop.f32.mrb[78].mxu1  ;;  %v12594_v40 = vpop.eup %12593  ;;  %12609 = vpow2.f32 %v6747_v54  ;;  %8753 = vrot.lane.b32.xlu1 %v15770_v24, %s13463_s19  ;;  %v6420_v22 = vsub.f32 0.0, %v5604_v1  ;;  %v7685_v54 = vmax.f32 %v15604_v44, 0.0  ;;  %v7686_v1 = vmax.f32 %v15642_v63, 0.0 }
 0x38d   : > { %20461 = vst [vmem:[#allocation82_spill] sm:$0xff] %v15766_v5  ;;  %v15774_v37 = vpop.f32.mrb[79].mxu1  ;;  %v12596_v32 = vpop.eup %12595  ;;  %v7185_v29 = vadd.f32 1.0, %v12594_v40  ;;  %v4692_v49 = vmax.f32 %v4210_v50, 0.0  ;;  %v20464_v50 = vld [vmem:[#allocation39_spill] sm:$0xff]  ;;  %v20466_v24 = vld [vmem:[#allocation41_spill] sm:$0xff] }
 0x38e   : > { %20463 = vst [vmem:[#allocation84_spill] sm:$0xff] %v15774_v37  ;;  %v15776_v7 = vpop.permute.xlu0 %8663  ;;  %v15778_v5 = vpop.eup %12597  ;;  %v7183_v52 = vadd.f32 1.0, %v12596_v32  ;;  %v4213_v40 = vadd.f32 %v15617_v0, %v20464_v50  ;;  %v6745_v2 = vmul.f32 1.442695, %v6420_v22  ;;  %v5625_v37 = vadd.f32 %v20466_v24, %v14727_v35 }
 0x38f   : > { %v15783_v60 = vpop.permute.xlu1 %8673  ;;  %v15785_v15 = vpop.eup %12599  ;;  %12611 = vrcp.f32 %v7185_v29  ;;  %v4695_v42 = vmax.f32 %v4221_v58, 0.0  ;;  %v15801_v44 = vmin.f32 %v7685_v54, 1.0  ;;  %v15807_v22 = vmin.f32 %v7686_v1, 1.0 }
 0x390   : > { %v15792_v32 = vpop.f32.mrb[224].mxu0  ;;  %v15794_v13 = vpop.eup %12601  ;;  %12613 = vrcp.f32 %v7183_v52  ;;  %v4693_v27 = vmax.f32 %v4213_v40, 0.0  ;;  %v6425_v63 = vsub.f32 0.0, %v5625_v37  ;;  %v7683_v1 = vmax.f32 %v15634_v47, 0.0 }
 0x391   : > { %20465 = vst [vmem:[#allocation39_spill] sm:$0xff] %v15792_v32  ;;  %v15799_v29 = vpop.f32.mrb[225].mxu0  ;;  %v12604_v43 = vpop.eup %12603  ;;  %12615 = vpow2.f32 %v6743_v56  ;;  %20468 = vst [vmem:[#allocation85_spill] sm:$0xff] %v15801_v44  ;;  %v4859_v56 = vpack.c.bf16 %v4695_v42, %v4694_v53  ;;  %8763 = vrot.lane.b32.xlu0 %v15801_v44, %s13463_s19  ;;  %8765 = vrot.lane.b32.xlu1 %v15807_v22, %s13463_s19  ;;  %v20476_v42 = vld [vmem:[#allocation42_spill] sm:$0xff]  ;;  %v20479_v44 = vld [vmem:[#allocation45_spill] sm:$0xff] }
 0x392   : > { %20467 = vst [vmem:[#allocation41_spill] sm:$0xff] %v15799_v29  ;;  %v15803_v50 = vpop.permute.xlu0 %8675  ;;  %v15805_v32 = vpop.f32.mrb[80].mxu1  ;;  %v7186_v52 = vadd.f32 1.0, %v12604_v43  ;;  %12617 = vpow2.f32 %v6749_v17  ;;  %20470 = vst [vmem:[#allocation87_spill] sm:$0xff] %v15807_v22  ;;  %v4858_v37 = vpack.c.bf16 %v4693_v27, %v4692_v49  ;;  %v5617_v58 = vadd.f32 %v20476_v42, %v14727_v35  ;;  %v20477_v27 = vld [vmem:[#allocation43_spill] sm:$0xff] }
 0x393   : > { %20469 = vst [vmem:[#allocation86_spill] sm:$0xff] %v15805_v32  ;;  %v12606_v28 = vpop.eup %12605  ;;  %v15809_v3 = vpop.f32.mrb[226].mxu0  ;;  %12619 = vpow2.f32 %v6745_v2  ;;  %v4234_v17 = vadd.f32 %v15617_v0, %v20477_v27 }
 0x394   : > { %20471 = vst [vmem:[#allocation88_spill] sm:$0xff] %v15809_v3  ;;  %v15811_v24 = vpop.f32.mrb[81].mxu1  ;;  %v7184_v29 = vadd.f32 1.0, %v12606_v28  ;;  %v15816_v54 = vpop.f32.mrb[227].mxu0  ;;  %12621 = vrcp.f32 %v7186_v52  ;;  %v6755_v28 = vmul.f32 1.442695, %v6425_v63  ;;  %12041 = vmatprep.mubr.msk.bf16.mxu0 %vm4905_vm4, %v4858_v37 }
 0x395   : > { %20472 = vst [vmem:[#allocation89_spill] sm:$0xff] %v15811_v24  ;;  %20473 = vst [vmem:[#allocation90_spill] sm:$0xff] %v15816_v54  ;;  %v15818_v40 = vpop.f32.mrb[82].mxu1  ;;  %v15820_v43 = vpop.eup %12607  ;;  %v7684_v52 = vmax.f32 %v15649_v41, 0.0  ;;  %v20478_v63 = vld [vmem:[#allocation44_spill] sm:$0xff]  ;;  %v6423_v42 = vsub.f32 0.0, %v5617_v58  ;;  %12042 = vmatmul.mubr.msk.bf16.gmra.mrb[52].mxu0 %vm4905_vm4, %v4859_v56  ;;  %v4237_v58 = vadd.f32 %v15617_v0, %v15490_v45 }
 0x396   : > { %20474 = vst [vmem:[#allocation91_spill] sm:$0xff] %v15818_v40  ;;  %v15825_v53 = vpop.permute.xlu1 %8685  ;;  %v15827_v2 = vpop.f32.mrb[83].mxu1  ;;  %12623 = vrcp.f32 %v7184_v29  ;;  %v5628_v22 = vadd.f32 %v20478_v63, %v14727_v35  ;;  %v4226_v29 = vadd.f32 %v15617_v0, %v20479_v44  ;;  %v20482_v41 = vld [vmem:[#allocation46_spill] sm:$0xff]  ;;  %v4698_v54 = vmax.f32 %v4234_v17, 0.0 }
 0x397   : > { %20475 = vst [vmem:[#allocation92_spill] sm:$0xff] %v15827_v2  ;;  %v15833_v49 = vpop.permute.xlu0 %8671  ;;  %12625 = vpow2.f32 %v6755_v28  ;;  %v12610_v47 = vpop.eup %12609  ;;  %v15842_v2 = vmin.f32 %v7683_v1, 1.0  ;;  %v15844_v40 = vmin.f32 %v7684_v52, 1.0  ;;  %v5620_v28 = vadd.f32 %v20482_v41, %v14727_v35 }
 0x398   : > { %v15850_v27 = vpop.f32.mrb[228].mxu0  ;;  %v7189_v63 = vadd.f32 1.0, %v12610_v47  ;;  %v6426_v24 = vsub.f32 0.0, %v5628_v22  ;;  %v4696_v44 = vmax.f32 %v4226_v29, 0.0  ;;  %v6751_v52 = vmul.f32 1.442695, %v6423_v42 }
 0x399   : > { %20480 = vst [vmem:[#allocation42_spill] sm:$0xff] %v15842_v2  ;;  %20481 = vst [vmem:[#allocation43_spill] sm:$0xff] %v15844_v40  ;;  %v15854_v37 = vpop.f32.mrb[229].mxu0  ;;  %v15856_v1 = vpop.eup %12611  ;;  %8759 = vrot.lane.b32.xlu0 %v15842_v2, %s13463_s19  ;;  %8761 = vrot.lane.b32.xlu1 %v15844_v40, %s13463_s19  ;;  %v6424_v17 = vsub.f32 0.0, %v5620_v28  ;;  %v7689_v2 = vmax.f32 %v15669_v34, 0.0  ;;  %v4699_v34 = vmax.f32 %v4237_v58, 0.0 }
 0x39a   : > { %20483 = vst [vmem:[#allocation44_spill] sm:$0xff] %v15850_v27  ;;  %v15852_v3 = vpop.permute.xlu1 %8681  ;;  %20484 = vst [vmem:[#allocation45_spill] sm:$0xff] %v15854_v37  ;;  %v15866_v29 = vpop.f32.mrb[84].mxu1  ;;  %12627 = vrcp.f32 %v7189_v63  ;;  %v6757_v41 = vmul.f32 1.442695, %v6426_v24 }
 0x39b   : > { %v15864_v22 = vpop.permute.xlu0 %8683  ;;  %20485 = vst [vmem:[#allocation46_spill] sm:$0xff] %v15866_v29  ;;  %v15868_v47 = vpop.eup %12613  ;;  %12629 = vpow2.f32 %v6751_v52  ;;  %v6753_v40 = vmul.f32 1.442695, %v6424_v17  ;;  %v4229_v29 = vadd.f32 %v15617_v0, %v15494_v11  ;;  %v15885_v27 = vmin.f32 %v7689_v2, 1.0 }
 0x39c   : > { %v15875_v42 = vpop.f32.mrb[230].mxu0  ;;  %v15877_v56 = vpop.f32.mrb[85].mxu1  ;;  %12631 = vpow2.f32 %v6757_v41 }
 0x39d   : > { %20486 = vst [vmem:[#allocation93_spill] sm:$0xff] %v15875_v42  ;;  %20487 = vst [vmem:[#allocation94_spill] sm:$0xff] %v15877_v56  ;;  %v12616_v28 = vpop.eup %12615  ;;  %v15881_v63 = vpop.f32.mrb[231].mxu0  ;;  %12633 = vpow2.f32 %v6753_v40  ;;  %v4697_v52 = vmax.f32 %v4229_v29, 0.0  ;;  %8771 = vrot.lane.b32.xlu0 %v15885_v27, %s13463_s19  ;;  %v20491_v29 = vld [vmem:[#allocation6_spill] sm:$0xff] }
 0x39e   : > { %20488 = vst [vmem:[#allocation95_spill] sm:$0xff] %v15881_v63  ;;  %v15883_v24 = vpop.f32.mrb[86].mxu1  ;;  %v12618_v45 = vpop.eup %12617  ;;  %v7187_v37 = vadd.f32 1.0, %v12616_v28  ;;  %20490 = vst [vmem:[#allocation97_spill] sm:$0xff] %v15885_v27  ;;  %v4861_v63 = vpack.c.bf16 %v4699_v34, %v4698_v54  ;;  %v20492_v28 = vsub.f32 1.0, %v20491_v29  ;;  %v20504_v27 = vld [vmem:[#allocation5_spill] sm:$0xff] }
 0x39f   : > { %20489 = vst [vmem:[#allocation96_spill] sm:$0xff] %v15883_v24  ;;  %v15887_v42 = vpop.f32.mrb[87].mxu1  ;;  %v12620_v56 = vpop.eup %12619  ;;  %v7190_v32 = vadd.f32 1.0, %v12618_v45  ;;  %v4860_v40 = vpack.c.bf16 %v4697_v52, %v4696_v44 }
 0x3a0   : > { %v15889_v17 = vpop.permute.xlu0 %8679  ;;  %v15891_v11 = vpop.eup %12621  ;;  %12635 = vrcp.f32 %v7187_v37  ;;  %v7188_v24 = vadd.f32 1.0, %v12620_v56  ;;  %v9426_v45 = vsel %vm9423_vm5, %v20492_v28, %v15582_v51  ;;  %v7690_v37 = vmax.f32 %v15714_v20, 0.0  ;;  %v20496_v28 = vld [vmem:[#allocation4_spill] sm:$0xff] }
 0x3a1   : > { %v15896_v2 = vpop.permute.xlu1 %8693  ;;  %v15898_v58 = vpop.eup %12623  ;;  %12637 = vrcp.f32 %v7190_v32  ;;  %9683 = vst.msk [vmem:[%s15908_s25 + $0x10] sm:$0xff] %vm9680_vm6, %v9426_v45  ;;  %v20493_v32 = vld [vmem:[#allocation9_spill] sm:$0xff]  ;;  %v5641_v51 = vadd.f32 %v15508_v48, %v14727_v35  ;;  %v7687_v20 = vmax.f32 %v15707_v25, 0.0  ;;  %v20497_v45 = vsub.f32 1.0, %v20496_v28  ;;  %12045 = vmatprep.mubr.msk.bf16.mxu0 %vm4905_vm4, %v4860_v40 }
 0x3a2   : > { %v15905_v56 = vpop.f32.mrb[232].mxu0  ;;  %v12626_v54 = vpop.eup %12625  ;;  %12639 = vrcp.f32 %v7188_v24  ;;  %v20494_v44 = vsub.f32 1.0, %v20493_v32  ;;  %v15921_v29 = vmin.f32 %v7690_v37, 1.0  ;;  %v7688_v37 = vmax.f32 %v15721_v4, 0.0  ;;  %12046 = vmatmul.mubr.msk.bf16.gmra.mrb[56].mxu0 %vm4905_vm4, %v4861_v63 }
 0x3a3   : > { %v15919_v52 = vpop.f32.mrb[233].mxu0  ;;  %v7193_v24 = vadd.f32 1.0, %v12626_v54  ;;  %v9427_v41 = vsel %vm9423_vm5, %v20497_v45, %v15621_v46  ;;  %v15934_v25 = vpop.f32.mrb[88].mxu1  ;;  %v6429_v32 = vsub.f32 0.0, %v5641_v51  ;;  %v15936_v54 = vmin.f32 %v7687_v20, 1.0 }
 0x3a4   : > { %v9424_v34 = vsel %vm9423_vm5, %v20494_v44, %v15690_v18  ;;  %20495 = vst [vmem:[#allocation6_spill] sm:$0xff] %v15921_v29  ;;  %v5633_v18 = vadd.f32 %v15517_v36, %v14727_v35  ;;  %v15932_v48 = vpop.permute.xlu0 %8691  ;;  %9684 = vst.msk [vmem:[%s15908_s25 + $0x18] sm:$0xff] %vm9680_vm6, %v9427_v41  ;;  %v15943_v44 = vadd.f32 %v15617_v0, %v15526_v39  ;;  %v15946_v36 = vpop.f32.mrb[234].mxu0  ;;  %8773 = vrot.lane.b32.xlu1 %v15921_v29, %s13463_s19 }
 0x3a5   : > { %9681 = vst.msk [vmem:[%s15908_s25] sm:$0xff] %vm9680_vm6, %v9424_v34  ;;  %20498 = vst [vmem:[#allocation9_spill] sm:$0xff] %v15936_v54  ;;  %v15948_v46 = vpop.f32.mrb[89].mxu1  ;;  %12641 = vrcp.f32 %v7193_v24  ;;  %v5644_v4 = vadd.f32 %v15528_v12, %v14727_v35  ;;  %v15955_v41 = vpop.f32.mrb[235].mxu0  ;;  %v6763_v63 = vmul.f32 1.442695, %v6429_v32  ;;  %8767 = vrot.lane.b32.xlu0 %v15936_v54, %s13463_s19 }
 0x3a6   : > { %20499 = vst [vmem:[#allocation4_spill] sm:$0xff] %v15948_v46  ;;  %v6427_v34 = vsub.f32 0.0, %v5633_v18  ;;  %20500 = vst [vmem:[#allocation98_spill] sm:$0xff] %v15955_v41  ;;  %v15957_v39 = vpop.f32.mrb[90].mxu1  ;;  %v15959_v51 = vpop.eup %12627  ;;  %v15964_v24 = vmin.f32 %v7688_v37, 1.0  ;;  %v4702_v28 = vmax.f32 %v15943_v44, 0.0 }
 0x3a7   : > { %20501 = vst [vmem:[#allocation99_spill] sm:$0xff] %v15957_v39  ;;  %v15967_v45 = vpop.permute.xlu1 %8689  ;;  %v15969_v12 = vpop.f32.mrb[91].mxu1  ;;  %v6430_v29 = vsub.f32 0.0, %v5644_v4  ;;  %v20505_v32 = vsub.f32 1.0, %v20504_v27  ;;  %v4242_v39 = vadd.f32 %v15617_v0, %v15530_v8  ;;  %12643 = vpow2.f32 %v6763_v63 }
 0x3a8   : > { %20502 = vst [vmem:[#allocation100_spill] sm:$0xff] %v15964_v24  ;;  %20503 = vst [vmem:[#allocation101_spill] sm:$0xff] %v15969_v12  ;;  %v12630_v18 = vpop.eup %12629  ;;  %v6759_v40 = vmul.f32 1.442695, %v6427_v34  ;;  %v15977_v54 = vpop.permute.xlu0 %8687  ;;  %v5636_v34 = vadd.f32 %v15532_v26, %v14727_v35  ;;  %8769 = vrot.lane.b32.xlu1 %v15964_v24, %s13463_s19 }
 0x3a9   : > { %v9425_v20 = vsel %vm9423_vm5, %v20505_v32, %v15717_v33  ;;  %v12632_v37 = vpop.eup %12631  ;;  %v7191_v41 = vadd.f32 1.0, %v12630_v18  ;;  %v6765_v33 = vmul.f32 1.442695, %v6430_v29  ;;  %v4700_v8 = vmax.f32 %v4242_v39, 0.0  ;;  %v15986_v27 = vpop.f32.mrb[236].mxu0 }
 0x3aa   : > { %9682 = vst.msk [vmem:[%s15908_s25 + $0x8] sm:$0xff] %vm9680_vm6, %v9425_v20  ;;  %v12634_v4 = vpop.eup %12633  ;;  %v7194_v12 = vadd.f32 1.0, %v12632_v37  ;;  %12645 = vpow2.f32 %v6759_v40  ;;  %20506 = vst [vmem:[#allocation5_spill] sm:$0xff] %v15986_v27  ;;  %v6428_v18 = vsub.f32 0.0, %v5636_v34  ;;  %v4253_v20 = vadd.f32 %v15617_v0, %v15542_v31  ;;  %v15992_v44 = vpop.f32.mrb[237].mxu0  ;;  %v20508_v37 = vld [vmem:[#allocation51_spill] sm:$0xff] }
 0x3ab   : > { %v15988_v32 = vpop.eup %12635  ;;  %12647 = vrcp.f32 %v7191_v41  ;;  %v7192_v63 = vadd.f32 1.0, %v12634_v4  ;;  %20507 = vst [vmem:[#allocation102_spill] sm:$0xff] %v15992_v44  ;;  %v7693_v40 = vmax.f32 %v15778_v5, 0.0  ;;  %v4245_v29 = vadd.f32 %v15617_v0, %v20508_v37  ;;  %v16002_v41 = vpop.f32.mrb[92].mxu1  ;;  %v20510_v44 = vld [vmem:[#allocation8_spill] sm:$0xff] }
 0x3ac   : > { %v15994_v26 = vpop.eup %12637  ;;  %12649 = vrcp.f32 %v7194_v12  ;;  %v7694_v39 = vmax.f32 %v15794_v13, 0.0  ;;  %v16000_v24 = vpop.permute.xlu0 %8699  ;;  %20509 = vst [vmem:[#allocation51_spill] sm:$0xff] %v16002_v41  ;;  %v6761_v31 = vmul.f32 1.442695, %v6428_v18  ;;  %v4703_v4 = vmax.f32 %v4253_v20, 0.0 }
 0x3ad   : > { %v16004_v34 = vpop.eup %12639  ;;  %12651 = vrcp.f32 %v7192_v63  ;;  %v20511_v12 = vsub.f32 1.0, %v20510_v44  ;;  %v16010_v27 = vpop.permute.xlu1 %8701  ;;  %v16014_v13 = vmin.f32 %v7693_v40, 1.0  ;;  %v4701_v37 = vmax.f32 %v4245_v29, 0.0 }
 0x3ae   : > { %v16012_v46 = vpop.f32.mrb[238].mxu0  ;;  %12653 = vpow2.f32 %v6765_v33  ;;  %v16016_v41 = vmin.f32 %v7694_v39, 1.0  ;;  %v16020_v63 = vpop.f32.mrb[93].mxu1  ;;  %v4863_v44 = vpack.c.bf16 %v4703_v4, %v4702_v28  ;;  %v5657_v33 = vadd.f32 %v15558_v21, %v14727_v35 }
 0x3af   : > { %v9430_v5 = vsel %vm9423_vm5, %v20511_v12, %v15746_v61  ;;  %20512 = vst [vmem:[#allocation8_spill] sm:$0xff] %v16014_v13  ;;  %v16022_v18 = vpop.f32.mrb[239].mxu0  ;;  %12655 = vpow2.f32 %v6761_v31  ;;  %v20514_v61 = vld [vmem:[#allocation7_spill] sm:$0xff]  ;;  %v16030_v40 = vpop.f32.mrb[94].mxu1  ;;  %8779 = vrot.lane.b32.xlu0 %v16014_v13, %s13463_s19  ;;  %v5649_v4 = vadd.f32 %v15565_v23, %v14727_v35  ;;  %v5652_v13 = vadd.f32 %v15591_v10, %v14727_v35 }
 0x3b0   : > { %20513 = vst [vmem:[#allocation103_spill] sm:$0xff] %v16016_v41  ;;  %9687 = vst.msk [vmem:[%s15908_s25 + $0x30] sm:$0xff] %vm9680_vm6, %v9430_v5  ;;  %v20515_v20 = vsub.f32 1.0, %v20514_v61  ;;  %v16032_v29 = vpop.eup %12641  ;;  %v4862_v5 = vpack.c.bf16 %v4701_v37, %v4700_v8  ;;  %8781 = vrot.lane.b32.xlu1 %v16016_v41, %s13463_s19  ;;  %v16043_v21 = vpop.f32.mrb[95].mxu1  ;;  %v6433_v31 = vsub.f32 0.0, %v5657_v33  ;;  %v7692_v61 = vmax.f32 %v15820_v43, 0.0 }
 0x3b1   : > { %20516 = vst [vmem:[#allocation7_spill] sm:$0xff] %v16030_v40  ;;  %20517 = vst [vmem:[#allocation104_spill] sm:$0xff] %v16043_v21  ;;  %v16050_v8 = vadd.f32 %v15617_v0, %v15574_v55  ;;  %v16062_v33 = vadd.f32 %v15617_v0, %v15584_v59  ;;  %v16065_v23 = vpop.permute.xlu0 %8695  ;;  %v12644_v55 = vpop.eup %12643  ;;  %v7697_v10 = vmax.f32 %v15856_v1, 0.0 }
 0x3b2   : > { %v9431_v12 = vsel %vm9423_vm5, %v20515_v20, %v15645_v38  ;;  %v7691_v38 = vmax.f32 %v15785_v15, 0.0  ;;  %v5660_v20 = vadd.f32 %v15576_v16, %v14727_v35  ;;  %v20519_v15 = vld [vmem:[#allocation10_spill] sm:$0xff]  ;;  %12049 = vmatprep.mubr.msk.bf16.mxu0 %vm4905_vm4, %v4862_v5  ;;  %v6771_v43 = vmul.f32 1.442695, %v6433_v31 }
 0x3b3   : > { %9688 = vst.msk [vmem:[%s15908_s25 + $0x38] sm:$0xff] %vm9680_vm6, %v9431_v12  ;;  %v20520_v12 = vsub.f32 1.0, %v20519_v15  ;;  %v16067_v39 = vmin.f32 %v7692_v61, 1.0  ;;  %v4706_v16 = vmax.f32 %v16050_v8, 0.0  ;;  %12050 = vmatmul.mubr.msk.bf16.gmra.mrb[60].mxu0 %vm4905_vm4, %v4863_v44  ;;  %v16075_v15 = vpop.f32.mrb[240].mxu0  ;;  %v16083_v8 = vpop.f32.mrb[96].mxu1 }
 0x3b4   : > { %v16052_v37 = vmin.f32 %v7691_v38, 1.0  ;;  %v6431_v38 = vsub.f32 0.0, %v5649_v4  ;;  %20522 = vst [vmem:[#allocation106_spill] sm:$0xff] %v16075_v15  ;;  %v12646_v59 = vpop.eup %12645  ;;  %v6434_v31 = vsub.f32 0.0, %v5660_v20  ;;  %v4704_v4 = vmax.f32 %v16062_v33, 0.0  ;;  %v16081_v61 = vpop.f32.mrb[241].mxu0 }
 0x3b5   : > { %v9428_v28 = vsel %vm9423_vm5, %v20520_v12, %v15776_v7  ;;  %20521 = vst [vmem:[#allocation10_spill] sm:$0xff] %v16067_v39  ;;  %v16073_v7 = vpop.permute.xlu1 %8697  ;;  %v7197_v12 = vadd.f32 1.0, %v12644_v55  ;;  %20523 = vst [vmem:[#allocation107_spill] sm:$0xff] %v16081_v61  ;;  %v7195_v44 = vadd.f32 1.0, %v12646_v59  ;;  %12657 = vpow2.f32 %v6771_v43  ;;  %8777 = vrot.lane.b32.xlu1 %v16067_v39, %s13463_s19  ;;  %v16090_v5 = vpop.f32.mrb[242].mxu0  ;;  %v20527_v59 = vld [vmem:[#allocation12_spill] sm:$0xff] }
 0x3b6   : > { %20518 = vst [vmem:[#allocation105_spill] sm:$0xff] %v16052_v37  ;;  %9685 = vst.msk [vmem:[%s15908_s25 + $0x20] sm:$0xff] %vm9680_vm6, %v9428_v28  ;;  %8775 = vrot.lane.b32.xlu0 %v16052_v37, %s13463_s19  ;;  %v16085_v28 = vpop.eup %12647  ;;  %v6767_v41 = vmul.f32 1.442695, %v6431_v38  ;;  %v16092_v20 = vpop.f32.mrb[97].mxu1  ;;  %v20528_v43 = vsub.f32 1.0, %v20527_v59 }
 0x3b7   : > { %20524 = vst [vmem:[#allocation108_spill] sm:$0xff] %v16083_v8  ;;  %20525 = vst [vmem:[#allocation109_spill] sm:$0xff] %v16090_v5  ;;  %v16094_v33 = vpop.eup %12649  ;;  %12659 = vrcp.f32 %v7197_v12  ;;  %v6773_v37 = vmul.f32 1.442695, %v6434_v31  ;;  %v16102_v55 = vpop.f32.mrb[243].mxu0  ;;  %v20532_v31 = vld [vmem:[#allocation57_spill] sm:$0xff] }
 0x3b8   : > { %20526 = vst [vmem:[#allocation110_spill] sm:$0xff] %v16092_v20  ;;  %v9429_v38 = vsel %vm9423_vm5, %v20528_v43, %v15692_v9  ;;  %20529 = vst [vmem:[#allocation12_spill] sm:$0xff] %v16102_v55  ;;  %v16104_v8 = vpop.f32.mrb[98].mxu1  ;;  %v16106_v39 = vpop.eup %12651  ;;  %12661 = vrcp.f32 %v7195_v44  ;;  %v20531_v20 = vld [vmem:[#allocation54_spill] sm:$0xff]  ;;  %v4261_v59 = vadd.f32 %v15617_v0, %v20532_v31  ;;  %v7698_v44 = vmax.f32 %v15891_v11, 0.0 }
 0x3b9   : > { %20530 = vst [vmem:[#allocation111_spill] sm:$0xff] %v16104_v8  ;;  %9686 = vst.msk [vmem:[%s15908_s25 + $0x28] sm:$0xff] %vm9680_vm6, %v9429_v38  ;;  %v4269_v12 = vadd.f32 %v15617_v0, %v20531_v20  ;;  %v16115_v5 = vpop.permute.xlu0 %8707  ;;  %v16117_v9 = vpop.f32.mrb[99].mxu1  ;;  %12663 = vpow2.f32 %v6767_v41  ;;  %v6432_v8 = vsub.f32 0.0, %v5652_v13  ;;  %v20534_v38 = vld [vmem:[#allocation11_spill] sm:$0xff]  ;;  %v16124_v21 = vmin.f32 %v7697_v10, 1.0 }
 0x3ba   : > { %20533 = vst [vmem:[#allocation54_spill] sm:$0xff] %v16117_v9  ;;  %v12654_v43 = vpop.eup %12653  ;;  %v20535_v55 = vsub.f32 1.0, %v20534_v38  ;;  %12665 = vpow2.f32 %v6773_v37  ;;  %v4705_v41 = vmax.f32 %v4261_v59, 0.0  ;;  %v16128_v13 = vmin.f32 %v7698_v44, 1.0  ;;  %v16130_v11 = vpop.permute.xlu1 %8709  ;;  %v20538_v37 = vld [vmem:[#allocation14_spill] sm:$0xff] }
 0x3bb   : > { %v12656_v20 = vpop.eup %12655  ;;  %v7198_v15 = vadd.f32 1.0, %v12654_v43  ;;  %v4707_v1 = vmax.f32 %v4269_v12, 0.0  ;;  %20536 = vst [vmem:[#allocation57_spill] sm:$0xff] %v16124_v21  ;;  %v6769_v9 = vmul.f32 1.442695, %v6432_v8  ;;  %v16132_v40 = vpop.f32.mrb[244].mxu0  ;;  %8787 = vrot.lane.b32.xlu0 %v16124_v21, %s13463_s19 }
 0x3bc   : > { %v9434_v61 = vsel %vm9423_vm5, %v20535_v55, %v15803_v50  ;;  %v7196_v31 = vadd.f32 1.0, %v12656_v20  ;;  %20537 = vst [vmem:[#allocation11_spill] sm:$0xff] %v16128_v13  ;;  %v16141_v8 = vpop.f32.mrb[245].mxu0  ;;  %v4864_v10 = vpack.c.bf16 %v4705_v41, %v4704_v4  ;;  %8789 = vrot.lane.b32.xlu1 %v16128_v13, %s13463_s19  ;;  %v16150_v43 = vpop.f32.mrb[100].mxu1  ;;  %v20541_v4 = vld [vmem:[#allocation59_spill] sm:$0xff]  ;;  %v7696_v20 = vmax.f32 %v15898_v58, 0.0 }
 0x3bd   : > { %9691 = vst.msk [vmem:[%s15908_s25 + $0x50] sm:$0xff] %vm9680_vm6, %v9434_v61  ;;  %12667 = vrcp.f32 %v7198_v15  ;;  %v4865_v50 = vpack.c.bf16 %v4707_v1, %v4706_v16  ;;  %v20539_v61 = vsub.f32 1.0, %v20538_v37  ;;  %v20540_v16 = vld [vmem:[#allocation58_spill] sm:$0xff]  ;;  %v16152_v44 = vpop.f32.mrb[246].mxu0  ;;  %v5665_v38 = vadd.f32 %v20541_v4, %v14727_v35  ;;  %v16158_v1 = vpop.permute.xlu0 %8703  ;;  %v20542_v37 = vld [vmem:[#allocation60_spill] sm:$0xff] }
 0x3be   : > { %12669 = vrcp.f32 %v7196_v31  ;;  %v5673_v15 = vadd.f32 %v20540_v16, %v14727_v35  ;;  %v16162_v41 = vadd.f32 %v15617_v0, %v15630_v14  ;;  %12053 = vmatprep.mubr.msk.bf16.mxu0 %vm4905_vm4, %v4864_v10  ;;  %v16171_v16 = vpop.f32.mrb[101].mxu1  ;;  %v16173_v58 = vpop.f32.mrb[247].mxu0  ;;  %v16177_v14 = vmin.f32 %v7696_v20, 1.0  ;;  %v20550_v21 = vld [vmem:[#allocation16_spill] sm:$0xff] }
 0x3bf   : > { %v9435_v12 = vsel %vm9423_vm5, %v20539_v61, %v15735_v57  ;;  %12671 = vpow2.f32 %v6769_v9  ;;  %v7695_v57 = vmax.f32 %v15868_v47, 0.0  ;;  %v5676_v61 = vadd.f32 %v20542_v37, %v14727_v35  ;;  %v20543_v9 = vld [vmem:[#allocation13_spill] sm:$0xff]  ;;  %20545 = vst [vmem:[#allocation14_spill] sm:$0xff] %v16173_v58  ;;  %v12658_v4 = vpop.eup %12657  ;;  %12054 = vmatmul.mubr.msk.bf16.gmra.mrb[64].mxu0 %vm4905_vm4, %v4865_v50  ;;  %v16189_v13 = vpop.permute.xlu1 %8705 }
 0x3c0   : > { %9692 = vst.msk [vmem:[%s15908_s25 + $0x58] sm:$0xff] %vm9680_vm6, %v9435_v12  ;;  %v6437_v31 = vsub.f32 0.0, %v5673_v15  ;;  %v20544_v12 = vsub.f32 1.0, %v20543_v9  ;;  %v6435_v59 = vsub.f32 0.0, %v5665_v38  ;;  %20547 = vst [vmem:[#allocation59_spill] sm:$0xff] %v16177_v14  ;;  %v4274_v37 = vadd.f32 %v15617_v0, %v15638_v30  ;;  %8785 = vrot.lane.b32.xlu1 %v16177_v14, %s13463_s19 }
 0x3c1   : > { %v16175_v15 = vmin.f32 %v7695_v57, 1.0  ;;  %v16186_v10 = vpop.eup %12659  ;;  %v7201_v9 = vadd.f32 1.0, %v12658_v4  ;;  %v4710_v55 = vmax.f32 %v16162_v41, 0.0  ;;  %v6438_v57 = vsub.f32 0.0, %v5676_v61 }
 0x3c2   : > { %v9432_v47 = vsel %vm9423_vm5, %v20544_v12, %v15833_v49  ;;  %v16184_v49 = vpop.f32.mrb[102].mxu1  ;;  %v6779_v12 = vmul.f32 1.442695, %v6437_v31  ;;  %v16193_v20 = vpop.eup %12661  ;;  %v6775_v50 = vmul.f32 1.442695, %v6435_v59  ;;  %v4708_v31 = vmax.f32 %v4274_v37, 0.0 }
 0x3c3   : > { %20546 = vst [vmem:[#allocation58_spill] sm:$0xff] %v16175_v15  ;;  %9689 = vst.msk [vmem:[%s15908_s25 + $0x40] sm:$0xff] %vm9680_vm6, %v9432_v47  ;;  %v16191_v38 = vpop.f32.mrb[103].mxu1  ;;  %8783 = vrot.lane.b32.xlu0 %v16175_v15, %s13463_s19  ;;  %v12664_v41 = vpop.eup %12663  ;;  %12673 = vrcp.f32 %v7201_v9  ;;  %v6781_v61 = vmul.f32 1.442695, %v6438_v57  ;;  %v5668_v4 = vadd.f32 %v15640_v62, %v14727_v35  ;;  %v4285_v59 = vadd.f32 %v15617_v0, %v15647_v6 }
 0x3c4   : > { %20548 = vst [vmem:[#allocation60_spill] sm:$0xff] %v16184_v49  ;;  %20549 = vst [vmem:[#allocation13_spill] sm:$0xff] %v16191_v38  ;;  %v20551_v38 = vsub.f32 1.0, %v20550_v21  ;;  %v12666_v49 = vpop.eup %12665  ;;  %v7199_v15 = vadd.f32 1.0, %v12664_v41  ;;  %12675 = vpow2.f32 %v6779_v12  ;;  %v7701_v37 = vmax.f32 %v15959_v51, 0.0  ;;  %v16212_v9 = vpop.permute.xlu0 %8715 }
 0x3c5   : > { %v16214_v57 = vpop.f32.mrb[248].mxu0  ;;  %v7202_v62 = vadd.f32 1.0, %v12666_v49  ;;  %12677 = vpow2.f32 %v6775_v50  ;;  %v6436_v47 = vsub.f32 0.0, %v5668_v4  ;;  %v16220_v12 = vpop.f32.mrb[104].mxu1  ;;  %v4711_v6 = vmax.f32 %v4285_v59, 0.0  ;;  %v20558_v4 = vld [vmem:[#allocation15_spill] sm:$0xff] }
 0x3c6   : > { %v9433_v30 = vsel %vm9423_vm5, %v20551_v38, %v15783_v60  ;;  %20552 = vst [vmem:[#allocation16_spill] sm:$0xff] %v16214_v57  ;;  %v4277_v60 = vadd.f32 %v15617_v0, %v15656_v19  ;;  %v16218_v21 = vpop.f32.mrb[249].mxu0  ;;  %20554 = vst [vmem:[#allocation113_spill] sm:$0xff] %v16220_v12  ;;  %12679 = vrcp.f32 %v7199_v15  ;;  %v7702_v51 = vmax.f32 %v15994_v26, 0.0  ;;  %v16229_v49 = vpop.f32.mrb[105].mxu1 }
 0x3c7   : > { %9690 = vst.msk [vmem:[%s15908_s25 + $0x48] sm:$0xff] %vm9680_vm6, %v9433_v30  ;;  %20553 = vst [vmem:[#allocation112_spill] sm:$0xff] %v16218_v21  ;;  %v16222_v38 = vpop.eup %12667  ;;  %v16224_v30 = vmin.f32 %v7701_v37, 1.0  ;;  %v16227_v41 = vpop.f32.mrb[250].mxu0  ;;  %12681 = vrcp.f32 %v7202_v62  ;;  %v6777_v0 = vmul.f32 1.442695, %v6436_v47 }
 0x3c8   : > { %20556 = vst [vmem:[#allocation115_spill] sm:$0xff] %v16227_v41  ;;  %20557 = vst [vmem:[#allocation116_spill] sm:$0xff] %v16229_v49  ;;  %v16231_v50 = vpop.eup %12669  ;;  %v4709_v19 = vmax.f32 %v4277_v60, 0.0  ;;  %v20559_v14 = vsub.f32 1.0, %v20558_v4  ;;  %v16237_v59 = vpop.permute.xlu1 %8717  ;;  %12683 = vpow2.f32 %v6781_v61  ;;  %v4867_v41 = vpack.c.bf16 %v4711_v6, %v4710_v55  ;;  %v20563_v60 = vld [vmem:[#allocation18_spill] sm:$0xff]  ;;  %v20571_v49 = vld [vmem:[#allocation17_spill] sm:$0xff] }
 0x3c9   : > { %20555 = vst [vmem:[#allocation114_spill] sm:$0xff] %v16224_v30  ;;  %v16239_v37 = vpop.f32.mrb[251].mxu0  ;;  %v12672_v26 = vpop.eup %12671  ;;  %8795 = vrot.lane.b32.xlu0 %v16224_v30, %s13463_s19  ;;  %v16244_v47 = vmin.f32 %v7702_v51, 1.0  ;;  %12685 = vpow2.f32 %v6777_v0  ;;  %v20564_v4 = vsub.f32 1.0, %v20563_v60  ;;  %v20566_v51 = vld [vmem:[#allocation64_spill] sm:$0xff]  ;;  %v7699_v0 = vmax.f32 %v15988_v32, 0.0 }
 0x3ca   : > { %v9438_v15 = vsel %vm9423_vm5, %v20559_v14, %v15864_v22  ;;  %20560 = vst [vmem:[#allocation15_spill] sm:$0xff] %v16239_v37  ;;  %v16248_v62 = vpop.f32.mrb[106].mxu1  ;;  %v7200_v22 = vadd.f32 1.0, %v12672_v26  ;;  %v4866_v14 = vpack.c.bf16 %v4709_v19, %v4708_v31  ;;  %v20567_v31 = vld [vmem:[#allocation66_spill] sm:$0xff]  ;;  %v16266_v26 = vpop.permute.xlu0 %8711  ;;  %v16272_v60 = vld [vmem:[%s20112_s4] ss:$0 sm:$0xff] }
 0x3cb   : > { %20561 = vst [vmem:[#allocation117_spill] sm:$0xff] %v16244_v47  ;;  %9695 = vst.msk [vmem:[%s15908_s25 + $0x70] sm:$0xff] %vm9680_vm6, %v9438_v15  ;;  %v9439_v61 = vsel %vm9423_vm5, %v20564_v4, %v15825_v53  ;;  %v16254_v55 = vpop.f32.mrb[107].mxu1  ;;  %8797 = vrot.lane.b32.xlu1 %v16244_v47, %s13463_s19  ;;  %v5689_v15 = vadd.f32 %v20566_v51, %v14727_v35  ;;  %v5681_v19 = vadd.f32 %v20567_v31, %v14727_v35  ;;  %v20568_v4 = vld [vmem:[#allocation67_spill] sm:$0xff]  ;;  %v20569_v32 = vld [vmem:[#allocation68_spill] sm:$0xff] }
 0x3cc   : > { %20562 = vst [vmem:[#allocation118_spill] sm:$0xff] %v16248_v62  ;;  %20565 = vst [vmem:[#allocation18_spill] sm:$0xff] %v16254_v55  ;;  %12687 = vrcp.f32 %v7200_v22  ;;  %v7700_v53 = vmax.f32 %v16004_v34, 0.0  ;;  %v5692_v51 = vadd.f32 %v20569_v32, %v14727_v35  ;;  %12057 = vmatprep.mubr.msk.bf16.mxu0 %vm4905_vm4, %v4866_v14  ;;  %v16281_v31 = vpop.permute.xlu1 %8713  ;;  %v16283_v6 = vmin.f32 %v7699_v0, 1.0  ;;  %v16301_v62 = vpop.f32.mrb[108].mxu1 }
 0x3cd   : > { %9696 = vst.msk [vmem:[%s15908_s25 + $0x78] sm:$0xff] %vm9680_vm6, %v9439_v61  ;;  %v16276_v61 = vadd.f32 %v16272_v60, %v20568_v4  ;;  %v6441_v22 = vsub.f32 0.0, %v5689_v15  ;;  %v6439_v34 = vsub.f32 0.0, %v5681_v19  ;;  %v20572_v47 = vsub.f32 1.0, %v20571_v49  ;;  %12058 = vmatmul.mubr.msk.bf16.gmra.mrb[68].mxu0 %vm4905_vm4, %v4867_v41  ;;  %v16290_v4 = vpop.eup %12673  ;;  %v20574_v15 = vld [vmem:[#allocation69_spill] sm:$0xff]  ;;  %v16299_v19 = vpop.f32.mrb[252].mxu0 }
 0x3ce   : > { %20570 = vst [vmem:[#allocation64_spill] sm:$0xff] %v16283_v6  ;;  %v16292_v55 = vmin.f32 %v7700_v53, 1.0  ;;  %v6442_v14 = vsub.f32 0.0, %v5692_v51  ;;  %v4290_v0 = vadd.f32 %v16272_v60, %v20574_v15  ;;  %20575 = vst [vmem:[#allocation67_spill] sm:$0xff] %v16299_v19  ;;  %v12676_v49 = vpop.eup %12675  ;;  %8791 = vrot.lane.b32.xlu0 %v16283_v6, %s13463_s19  ;;  %v20577_v53 = vld [vmem:[#allocation70_spill] sm:$0xff]  ;;  %v16308_v51 = vpop.f32.mrb[253].mxu0 }
 0x3cf   : > { %v9436_v30 = vsel %vm9423_vm5, %v20572_v47, %v15889_v17  ;;  %v4714_v32 = vmax.f32 %v16276_v61, 0.0  ;;  %20576 = vst [vmem:[#allocation68_spill] sm:$0xff] %v16301_v62  ;;  %v6787_v17 = vmul.f32 1.442695, %v6441_v22  ;;  %v6783_v47 = vmul.f32 1.442695, %v6439_v34 }
 0x3d0   : > { %20573 = vst [vmem:[#allocation66_spill] sm:$0xff] %v16292_v55  ;;  %9693 = vst.msk [vmem:[%s15908_s25 + $0x60] sm:$0xff] %vm9680_vm6, %v9436_v30  ;;  %v5684_v61 = vadd.f32 %v20577_v53, %v14727_v35  ;;  %v12678_v30 = vpop.eup %12677  ;;  %v7205_v15 = vadd.f32 1.0, %v12676_v49  ;;  %8793 = vrot.lane.b32.xlu1 %v16292_v55, %s13463_s19  ;;  %v6789_v22 = vmul.f32 1.442695, %v6442_v14  ;;  %v4712_v62 = vmax.f32 %v4290_v0, 0.0  ;;  %v16321_v49 = vpop.permute.xlu0 %8723 }
 0x3d1   : > { %20578 = vst [vmem:[#allocation17_spill] sm:$0xff] %v16308_v51  ;;  %v16313_v41 = vpop.f32.mrb[254].mxu0  ;;  %v16315_v37 = vpop.eup %12679  ;;  %v7203_v34 = vadd.f32 1.0, %v12678_v30  ;;  %12689 = vpow2.f32 %v6787_v17  ;;  %v20580_v53 = vld [vmem:[#allocation20_spill] sm:$0xff]  ;;  %v20583_v14 = vld [vmem:[#allocation71_spill] sm:$0xff]  ;;  %v7705_v17 = vmax.f32 %v16032_v29, 0.0 }
 0x3d2   : > { %20579 = vst [vmem:[#allocation69_spill] sm:$0xff] %v16313_v41  ;;  %v6440_v6 = vsub.f32 0.0, %v5684_v61  ;;  %v20581_v51 = vsub.f32 1.0, %v20580_v53  ;;  %v16323_v19 = vpop.f32.mrb[109].mxu1  ;;  %v16325_v21 = vpop.eup %12681  ;;  %12691 = vrcp.f32 %v7205_v15  ;;  %v4301_v0 = vadd.f32 %v16272_v60, %v20583_v14  ;;  %v20584_v61 = vld [vmem:[#allocation72_spill] sm:$0xff] }
 0x3d3   : > { %20582 = vst [vmem:[#allocation70_spill] sm:$0xff] %v16323_v19  ;;  %v4293_v30 = vadd.f32 %v16272_v60, %v20584_v61  ;;  %v16334_v53 = vpop.permute.xlu1 %8725  ;;  %12693 = vrcp.f32 %v7203_v34  ;;  %v7706_v15 = vmax.f32 %v16094_v33, 0.0  ;;  %v16343_v41 = vpop.f32.mrb[110].mxu1  ;;  %v16345_v58 = vmin.f32 %v7705_v17, 1.0 }
 0x3d4   : > { %v9437_v12 = vsel %vm9423_vm5, %v20581_v51, %v15852_v3  ;;  %v16336_v3 = vpop.f32.mrb[255].mxu0  ;;  %v12684_v51 = vpop.eup %12683  ;;  %v6785_v55 = vmul.f32 1.442695, %v6440_v6  ;;  %12695 = vpow2.f32 %v6783_v47  ;;  %v4715_v61 = vmax.f32 %v4301_v0, 0.0  ;;  %v20591_v0 = vld [vmem:[#allocation22_spill] sm:$0xff]  ;;  %v20601_v47 = vld [vmem:[#allocation79_spill] sm:$0xff] }
 0x3d5   : > { %9694 = vst.msk [vmem:[%s15908_s25 + $0x68] sm:$0xff] %vm9680_vm6, %v9437_v12  ;;  %20585 = vst [vmem:[#allocation20_spill] sm:$0xff] %v16336_v3  ;;  %v20586_v12 = vld [vmem:[#allocation19_spill] sm:$0xff]  ;;  %v12686_v29 = vpop.eup %12685  ;;  %v7206_v57 = vadd.f32 1.0, %v12684_v51  ;;  %v16349_v3 = vpop.f32.mrb[111].mxu1  ;;  %12697 = vpow2.f32 %v6789_v22  ;;  %v4713_v33 = vmax.f32 %v4293_v30, 0.0  ;;  %8803 = vrot.lane.b32.xlu0 %v16345_v58, %s13463_s19 }
 0x3d6   : > { %v20587_v19 = vsub.f32 1.0, %v20586_v12  ;;  %20588 = vst [vmem:[#allocation71_spill] sm:$0xff] %v16345_v58  ;;  %20589 = vst [vmem:[#allocation72_spill] sm:$0xff] %v16349_v3  ;;  %v7204_v6 = vadd.f32 1.0, %v12686_v29  ;;  %v16351_v34 = vmin.f32 %v7706_v15, 1.0  ;;  %v16353_v12 = vpop.permute.xlu0 %8719  ;;  %v20592_v17 = vsub.f32 1.0, %v20591_v0 }
 0x3d7   : > { %12699 = vrcp.f32 %v7206_v57  ;;  %v16364_v51 = vpop.f32.mrb[0].mxu0  ;;  %v16366_v30 = vpop.f32.mrb[112].mxu1  ;;  %v4868_v15 = vpack.c.bf16 %v4713_v33, %v4712_v62  ;;  %v20595_v57 = vld [vmem:[#allocation75_spill] sm:$0xff]  ;;  %v20597_v62 = vld [vmem:[#allocation76_spill] sm:$0xff]  ;;  %v7704_v33 = vmax.f32 %v16106_v39, 0.0 }
 0x3d8   : > { %v9442_v14 = vsel %vm9423_vm5, %v20587_v19, %v15932_v48  ;;  %20590 = vst [vmem:[#allocation19_spill] sm:$0xff] %v16351_v34  ;;  %v16355_v48 = vpop.eup %12687  ;;  %v4869_v19 = vpack.c.bf16 %v4715_v61, %v4714_v32  ;;  %v9443_v22 = vsel %vm9423_vm5, %v20592_v17, %v15896_v2  ;;  %20593 = vst [vmem:[#allocation22_spill] sm:$0xff] %v16364_v51  ;;  %12701 = vrcp.f32 %v7204_v6  ;;  %v16375_v29 = vpop.permute.xlu1 %8721 }
 0x3d9   : > { %9699 = vst.msk [vmem:[%s15908_s25 + $0x90] sm:$0xff] %vm9680_vm6, %v9442_v14  ;;  %20594 = vst [vmem:[#allocation119_spill] sm:$0xff] %v16366_v30  ;;  %8805 = vrot.lane.b32.xlu1 %v16351_v34, %s13463_s19  ;;  %v5705_v32 = vadd.f32 %v20595_v57, %v14727_v35  ;;  %v16377_v61 = vpop.f32.mrb[1].mxu0  ;;  %12703 = vpow2.f32 %v6785_v55  ;;  %v7703_v2 = vmax.f32 %v16085_v28, 0.0  ;;  %v5697_v6 = vadd.f32 %v20597_v62, %v14727_v35  ;;  %v16385_v17 = vpop.f32.mrb[113].mxu1  ;;  %v20600_v14 = vld [vmem:[#allocation78_spill] sm:$0xff] }
 0x3da   : > { %9700 = vst.msk [vmem:[%s15908_s25 + $0x98] sm:$0xff] %vm9680_vm6, %v9443_v22  ;;  %20596 = vst [vmem:[#allocation75_spill] sm:$0xff] %v16377_v61  ;;  %v16383_v0 = vpop.f32.mrb[2].mxu0  ;;  %v4314_v57 = vadd.f32 %v16272_v60, %v20600_v14  ;;  %v5708_v34 = vadd.f32 %v20601_v47, %v14727_v35  ;;  %v20602_v55 = vld [vmem:[#allocation21_spill] sm:$0xff]  ;;  %12061 = vmatprep.mubr.msk.bf16.mxu0 %vm4905_vm4, %v4868_v15  ;;  %v16398_v39 = vpop.f32.mrb[114].mxu1  ;;  %v20608_v14 = vld [vmem:[#allocation80_spill] sm:$0xff] }
 0x3db   : > { %20598 = vst [vmem:[#allocation76_spill] sm:$0xff] %v16383_v0  ;;  %20599 = vst [vmem:[#allocation120_spill] sm:$0xff] %v16385_v17  ;;  %v6445_v22 = vsub.f32 0.0, %v5705_v32  ;;  %v20603_v58 = vsub.f32 1.0, %v20602_v55  ;;  %v16396_v62 = vpop.f32.mrb[3].mxu0  ;;  %v16400_v0 = vmin.f32 %v7703_v2, 1.0  ;;  %v4306_v47 = vadd.f32 %v16272_v60, %v20608_v14  ;;  %12062 = vmatmul.mubr.msk.bf16.gmra.mrb[72].mxu0 %vm4905_vm4, %v4869_v19  ;;  %v16423_v14 = vpop.permute.xlu0 %8731 }
 0x3dc   : > { %20604 = vst [vmem:[#allocation78_spill] sm:$0xff] %v16396_v62  ;;  %20605 = vst [vmem:[#allocation79_spill] sm:$0xff] %v16398_v39  ;;  %v6443_v32 = vsub.f32 0.0, %v5697_v6  ;;  %v16402_v17 = vmin.f32 %v7704_v33, 1.0  ;;  %v16409_v55 = vpop.f32.mrb[115].mxu1  ;;  %v4718_v15 = vmax.f32 %v4314_v57, 0.0  ;;  %v16432_v61 = vpop.permute.xlu1 %8733 }
 0x3dd   : > { %v9440_v28 = vsel %vm9423_vm5, %v20603_v58, %v15977_v54  ;;  %20606 = vst [vmem:[#allocation21_spill] sm:$0xff] %v16400_v0  ;;  %20609 = vst [vmem:[#allocation80_spill] sm:$0xff] %v16409_v55  ;;  %v12690_v54 = vpop.eup %12689  ;;  %v6795_v58 = vmul.f32 1.442695, %v6445_v22  ;;  %v6446_v62 = vsub.f32 0.0, %v5708_v34  ;;  %v20610_v39 = vld [vmem:[#allocation81_spill] sm:$0xff]  ;;  %8799 = vrot.lane.b32.xlu0 %v16400_v0, %s13463_s19 }
 0x3de   : > { %20607 = vst [vmem:[#allocation121_spill] sm:$0xff] %v16402_v17  ;;  %9697 = vst.msk [vmem:[%s15908_s25 + $0x80] sm:$0xff] %vm9680_vm6, %v9440_v28  ;;  %v5700_v2 = vadd.f32 %v20610_v39, %v14727_v35  ;;  %v16413_v30 = vpop.eup %12691  ;;  %v7209_v6 = vadd.f32 1.0, %v12690_v54  ;;  %v6791_v28 = vmul.f32 1.442695, %v6443_v32  ;;  %8801 = vrot.lane.b32.xlu1 %v16402_v17, %s13463_s19  ;;  %v4716_v57 = vmax.f32 %v4306_v47, 0.0 }
 0x3df   : > { %v16421_v22 = vpop.eup %12693  ;;  %12705 = vpow2.f32 %v6795_v58  ;;  %v6797_v34 = vmul.f32 1.442695, %v6446_v62  ;;  %v20611_v33 = vld [vmem:[#allocation24_spill] sm:$0xff]  ;;  %v20613_v19 = vld [vmem:[#allocation82_spill] sm:$0xff]  ;;  %v7709_v17 = vmax.f32 %v16186_v10, 0.0  ;;  %v16434_v58 = vpop.f32.mrb[116].mxu1 }
 0x3e0   : > { %v6444_v39 = vsub.f32 0.0, %v5700_v2  ;;  %v12696_v54 = vpop.eup %12695  ;;  %12707 = vrcp.f32 %v7209_v6  ;;  %v20612_v0 = vsub.f32 1.0, %v20611_v33  ;;  %v4317_v55 = vadd.f32 %v16272_v60, %v20613_v19  ;;  %20614 = vst [vmem:[#allocation81_spill] sm:$0xff] %v16434_v58  ;;  %v20615_v6 = vld [vmem:[#allocation84_spill] sm:$0xff]  ;;  %v16440_v51 = vpop.f32.mrb[117].mxu1 }
 0x3e1   : > { %v12698_v62 = vpop.eup %12697  ;;  %v7207_v47 = vadd.f32 1.0, %v12696_v54  ;;  %12709 = vpow2.f32 %v6791_v28  ;;  %v4309_v33 = vadd.f32 %v16272_v60, %v20615_v6  ;;  %20616 = vst [vmem:[#allocation24_spill] sm:$0xff] %v16440_v51  ;;  %v16444_v19 = vmin.f32 %v7709_v17, 1.0  ;;  %v16446_v58 = vpop.f32.mrb[118].mxu1 }
 0x3e2   : > { %v9441_v32 = vsel %vm9423_vm5, %v20612_v0, %v15967_v45  ;;  %v6793_v2 = vmul.f32 1.442695, %v6444_v39  ;;  %v16442_v45 = vpop.eup %12699  ;;  %v7210_v0 = vadd.f32 1.0, %v12698_v62  ;;  %12711 = vpow2.f32 %v6797_v34  ;;  %20618 = vst [vmem:[#allocation84_spill] sm:$0xff] %v16446_v58  ;;  %v16455_v62 = vpop.f32.mrb[119].mxu1 }
 0x3e3   : > { %9698 = vst.msk [vmem:[%s15908_s25 + $0x88] sm:$0xff] %vm9680_vm6, %v9441_v32  ;;  %v4719_v10 = vmax.f32 %v4317_v55, 0.0  ;;  %20617 = vst [vmem:[#allocation82_spill] sm:$0xff] %v16444_v19  ;;  %v16448_v54 = vpop.eup %12701  ;;  %12713 = vrcp.f32 %v7207_v47  ;;  %v4717_v28 = vmax.f32 %v4309_v33, 0.0  ;;  %v7710_v39 = vmax.f32 %v16222_v38, 0.0  ;;  %v20619_v32 = vld [vmem:[#allocation23_spill] sm:$0xff]  ;;  %8811 = vrot.lane.b32.xlu0 %v16444_v19, %s13463_s19 }
 0x3e4   : > { %v20620_v6 = vsub.f32 1.0, %v20619_v32  ;;  %20621 = vst [vmem:[#allocation23_spill] sm:$0xff] %v16455_v62  ;;  %v12704_v34 = vpop.eup %12703  ;;  %12715 = vrcp.f32 %v7210_v0  ;;  %v20622_v47 = vld [vmem:[#allocation26_spill] sm:$0xff]  ;;  %v20625_v0 = vld [vmem:[#allocation39_spill] sm:$0xff]  ;;  %v7707_v55 = vmax.f32 %v16193_v20, 0.0  ;;  %v20629_v20 = vld [vmem:[#allocation88_spill] sm:$0xff] }
 0x3e5   : > { %v4871_v17 = vpack.c.bf16 %v4719_v10, %v4718_v15  ;;  %v20623_v38 = vsub.f32 1.0, %v20622_v47  ;;  %v7208_v32 = vadd.f32 1.0, %v12704_v34  ;;  %12717 = vpow2.f32 %v6793_v2  ;;  %v16470_v15 = vpop.permute.xlu0 %8727  ;;  %v16480_v2 = vpop.f32.mrb[4].mxu0 }
 0x3e6   : > { %v9446_v51 = vsel %vm9423_vm5, %v20620_v6, %v16000_v24  ;;  %v4870_v24 = vpack.c.bf16 %v4717_v28, %v4716_v57  ;;  %v16466_v6 = vmin.f32 %v7710_v39, 1.0  ;;  %v5721_v10 = vadd.f32 %v20625_v0, %v14727_v35  ;;  %20627 = vst [vmem:[#allocation39_spill] sm:$0xff] %v16480_v2  ;;  %v20628_v28 = vld [vmem:[#allocation86_spill] sm:$0xff]  ;;  %v16499_v57 = vpop.f32.mrb[120].mxu1 }
 0x3e7   : > { %9703 = vst.msk [vmem:[%s15908_s25 + $0xb0] sm:$0xff] %vm9680_vm6, %v9446_v51  ;;  %v9447_v33 = vsel %vm9423_vm5, %v20623_v38, %v16010_v27  ;;  %v20626_v51 = vld [vmem:[#allocation41_spill] sm:$0xff]  ;;  %v7708_v47 = vmax.f32 %v16231_v50, 0.0  ;;  %v16478_v27 = vpop.permute.xlu1 %8729  ;;  %12719 = vrcp.f32 %v7208_v32  ;;  %v4330_v39 = vadd.f32 %v16272_v60, %v20628_v28  ;;  %v16490_v38 = vpop.f32.mrb[5].mxu0  ;;  %20634 = vst [vmem:[#allocation123_spill] sm:$0xff] %v16499_v57 }
 0x3e8   : > { %20624 = vst [vmem:[#allocation26_spill] sm:$0xff] %v16466_v6  ;;  %9704 = vst.msk [vmem:[%s15908_s25 + $0xb8] sm:$0xff] %vm9680_vm6, %v9447_v33  ;;  %v5713_v19 = vadd.f32 %v20626_v51, %v14727_v35  ;;  %8813 = vrot.lane.b32.xlu1 %v16466_v6, %s13463_s19  ;;  %v5724_v34 = vadd.f32 %v20629_v20, %v14727_v35  ;;  %12065 = vmatprep.mubr.msk.bf16.mxu0 %vm4905_vm4, %v4870_v24  ;;  %v6449_v50 = vsub.f32 0.0, %v5721_v10  ;;  %v16497_v51 = vpop.f32.mrb[6].mxu0  ;;  %v20635_v24 = vld [vmem:[#allocation25_spill] sm:$0xff] }
 0x3e9   : > { %20630 = vst [vmem:[#allocation41_spill] sm:$0xff] %v16490_v38  ;;  %v16492_v33 = vmin.f32 %v7707_v55, 1.0  ;;  %v16494_v32 = vmin.f32 %v7708_v47, 1.0  ;;  %12066 = vmatmul.mubr.msk.bf16.gmra.mrb[76].mxu0 %vm4905_vm4, %v4871_v17  ;;  %20633 = vst [vmem:[#allocation122_spill] sm:$0xff] %v16497_v51  ;;  %v12706_v28 = vpop.eup %12705  ;;  %v4722_v6 = vmax.f32 %v4330_v39, 0.0  ;;  %v20636_v62 = vsub.f32 1.0, %v20635_v24 }
 0x3ea   : > { %v6447_v0 = vsub.f32 0.0, %v5713_v19  ;;  %v6450_v20 = vsub.f32 0.0, %v5724_v34  ;;  %v20637_v55 = vld [vmem:[#allocation89_spill] sm:$0xff]  ;;  %v16507_v47 = vpop.f32.mrb[7].mxu0  ;;  %v16509_v58 = vpop.eup %12707  ;;  %v7213_v17 = vadd.f32 1.0, %v12706_v28  ;;  %v20639_v28 = vld [vmem:[#allocation90_spill] sm:$0xff] }
 0x3eb   : > { %20631 = vst [vmem:[#allocation86_spill] sm:$0xff] %v16492_v33  ;;  %20632 = vst [vmem:[#allocation88_spill] sm:$0xff] %v16494_v32  ;;  %v9444_v10 = vsel %vm9423_vm5, %v20636_v62, %v16065_v23  ;;  %v4322_v19 = vadd.f32 %v16272_v60, %v20637_v55  ;;  %v6803_v38 = vmul.f32 1.442695, %v6449_v50  ;;  %8807 = vrot.lane.b32.xlu0 %v16492_v33, %s13463_s19  ;;  %v12710_v34 = vpop.eup %12709  ;;  %v16521_v55 = vpop.permute.xlu0 %8739 }
 0x3ec   : > { %20638 = vst [vmem:[#allocation25_spill] sm:$0xff] %v16507_v47  ;;  %v6799_v39 = vmul.f32 1.442695, %v6447_v0  ;;  %9701 = vst.msk [vmem:[%s15908_s25 + $0xa0] sm:$0xff] %vm9680_vm6, %v9444_v10  ;;  %8809 = vrot.lane.b32.xlu1 %v16494_v32, %s13463_s19  ;;  %v6805_v62 = vmul.f32 1.442695, %v6450_v20  ;;  %v5716_v50 = vadd.f32 %v20639_v28, %v14727_v35  ;;  %v12712_v33 = vpop.eup %12711  ;;  %12721 = vrcp.f32 %v7213_v17  ;;  %v16531_v32 = vpop.permute.xlu1 %8741 }
 0x3ed   : > { %v4720_v24 = vmax.f32 %v4322_v19, 0.0  ;;  %v16523_v51 = vpop.f32.mrb[121].mxu1  ;;  %v7211_v0 = vadd.f32 1.0, %v12710_v34  ;;  %v20641_v10 = vld [vmem:[#allocation28_spill] sm:$0xff]  ;;  %v20643_v47 = vld [vmem:[#allocation91_spill] sm:$0xff]  ;;  %v16535_v28 = vpop.eup %12713  ;;  %v7214_v2 = vadd.f32 1.0, %v12712_v33  ;;  %12723 = vpow2.f32 %v6803_v38 }
 0x3ee   : > { %20640 = vst [vmem:[#allocation89_spill] sm:$0xff] %v16523_v51  ;;  %v20642_v57 = vsub.f32 1.0, %v20641_v10  ;;  %v4333_v20 = vadd.f32 %v16272_v60, %v20643_v47  ;;  %v16533_v19 = vpop.f32.mrb[122].mxu1  ;;  %v6448_v51 = vsub.f32 0.0, %v5716_v50  ;;  %v7713_v17 = vmax.f32 %v16290_v4, 0.0  ;;  %v20646_v47 = vld [vmem:[#allocation92_spill] sm:$0xff] }
 0x3ef   : > { %20644 = vst [vmem:[#allocation90_spill] sm:$0xff] %v16533_v19  ;;  %v16540_v34 = vpop.f32.mrb[123].mxu1  ;;  %12725 = vrcp.f32 %v7211_v0  ;;  %v4325_v10 = vadd.f32 %v16272_v60, %v20646_v47  ;;  %v7714_v19 = vmax.f32 %v16325_v21, 0.0 }
 0x3f0   : > { %v9445_v23 = vsel %vm9423_vm5, %v20642_v57, %v16073_v7  ;;  %20645 = vst [vmem:[#allocation28_spill] sm:$0xff] %v16540_v34  ;;  %v16542_v7 = vpop.eup %12715  ;;  %v4723_v57 = vmax.f32 %v4333_v20, 0.0  ;;  %12727 = vrcp.f32 %v7214_v2  ;;  %v6801_v38 = vmul.f32 1.442695, %v6448_v51  ;;  %v20651_v51 = vld [vmem:[#allocation30_spill] sm:$0xff] }
 0x3f1   : > { %9702 = vst.msk [vmem:[%s15908_s25 + $0xa8] sm:$0xff] %vm9680_vm6, %v9445_v23  ;;  %v12718_v3 = vpop.eup %12717  ;;  %v16547_v33 = vmin.f32 %v7713_v17, 1.0  ;;  %v20648_v23 = vld [vmem:[#allocation27_spill] sm:$0xff]  ;;  %12729 = vpow2.f32 %v6799_v39  ;;  %v4721_v20 = vmax.f32 %v4325_v10, 0.0  ;;  %v16560_v2 = vmin.f32 %v7714_v19, 1.0  ;;  %v20653_v39 = vld [vmem:[#allocation44_spill] sm:$0xff]  ;;  %v16573_v10 = vpop.permute.xlu1 %8737 }
 0x3f2   : > { %v20649_v4 = vsub.f32 1.0, %v20648_v23  ;;  %v7212_v34 = vadd.f32 1.0, %v12718_v3  ;;  %v4873_v0 = vpack.c.bf16 %v4723_v57, %v4722_v6  ;;  %v16555_v47 = vpop.eup %12719  ;;  %12731 = vpow2.f32 %v6805_v62  ;;  %v16566_v3 = vpop.permute.xlu0 %8735 }
 0x3f3   : > { %20647 = vst [vmem:[#allocation91_spill] sm:$0xff] %v16547_v33  ;;  %8819 = vrot.lane.b32.xlu0 %v16547_v33, %s13463_s19  ;;  %20650 = vst [vmem:[#allocation92_spill] sm:$0xff] %v16560_v2  ;;  %v20652_v17 = vsub.f32 1.0, %v20651_v51  ;;  %v4872_v6 = vpack.c.bf16 %v4721_v20, %v4720_v24  ;;  %v5737_v62 = vadd.f32 %v20653_v39, %v14727_v35  ;;  %v7711_v57 = vmax.f32 %v16315_v37, 0.0  ;;  %v16575_v19 = vpop.f32.mrb[8].mxu0  ;;  %v20658_v51 = vld [vmem:[#allocation46_spill] sm:$0xff] }
 0x3f4   : > { %v9450_v50 = vsel %vm9423_vm5, %v20649_v4, %v16115_v5  ;;  %12733 = vrcp.f32 %v7212_v34  ;;  %8821 = vrot.lane.b32.xlu1 %v16560_v2, %s13463_s19  ;;  %v7712_v34 = vmax.f32 %v16355_v48, 0.0  ;;  %v16583_v4 = vpop.f32.mrb[9].mxu0  ;;  %v20665_v2 = vld [vmem:[#allocation94_spill] sm:$0xff] }
 0x3f5   : > { %9707 = vst.msk [vmem:[%s15908_s25 + $0xd0] sm:$0xff] %vm9680_vm6, %v9450_v50  ;;  %v9451_v5 = vsel %vm9423_vm5, %v20652_v17, %v16130_v11  ;;  %12735 = vpow2.f32 %v6801_v38  ;;  %v20654_v11 = vld [vmem:[#allocation45_spill] sm:$0xff]  ;;  %20655 = vst [vmem:[#allocation27_spill] sm:$0xff] %v16583_v4  ;;  %v16585_v50 = vpop.f32.mrb[124].mxu1  ;;  %v6453_v37 = vsub.f32 0.0, %v5737_v62  ;;  %v16587_v20 = vmin.f32 %v7711_v57, 1.0  ;;  %12069 = vmatprep.mubr.msk.bf16.mxu0 %vm4905_vm4, %v4872_v6 }
 0x3f6   : > { %9708 = vst.msk [vmem:[%s15908_s25 + $0xd8] sm:$0xff] %vm9680_vm6, %v9451_v5  ;;  %v5729_v24 = vadd.f32 %v20654_v11, %v14727_v35  ;;  %20656 = vst [vmem:[#allocation30_spill] sm:$0xff] %v16585_v50  ;;  %v4346_v38 = vadd.f32 %v16272_v60, %v20658_v51  ;;  %v20659_v17 = vld [vmem:[#allocation93_spill] sm:$0xff]  ;;  %v16594_v39 = vpop.f32.mrb[10].mxu0  ;;  %v16596_v11 = vpop.f32.mrb[125].mxu1  ;;  %v16598_v23 = vmin.f32 %v7712_v34, 1.0  ;;  %v4338_v51 = vadd.f32 %v16272_v60, %v20665_v2 }
 0x3f7   : > { %20657 = vst [vmem:[#allocation44_spill] sm:$0xff] %v16587_v20  ;;  %v5740_v5 = vadd.f32 %v20659_v17, %v14727_v35  ;;  %20660 = vst [vmem:[#allocation45_spill] sm:$0xff] %v16594_v39  ;;  %v20663_v62 = vld [vmem:[#allocation29_spill] sm:$0xff]  ;;  %12070 = vmatmul.mubr.msk.bf16.gmra.mrb[80].mxu0 %vm4905_vm4, %v4873_v0  ;;  %v16607_v17 = vpop.f32.mrb[11].mxu0  ;;  %v16609_v6 = vpop.eup %12721  ;;  %v6811_v33 = vmul.f32 1.442695, %v6453_v37  ;;  %8815 = vrot.lane.b32.xlu0 %v16587_v20, %s13463_s19 }
 0x3f8   : > { %20661 = vst [vmem:[#allocation46_spill] sm:$0xff] %v16596_v11  ;;  %v6451_v48 = vsub.f32 0.0, %v5729_v24  ;;  %20662 = vst [vmem:[#allocation93_spill] sm:$0xff] %v16598_v23  ;;  %v20664_v57 = vsub.f32 1.0, %v20663_v62  ;;  %v4726_v24 = vmax.f32 %v4346_v38, 0.0  ;;  %v12724_v2 = vpop.eup %12723  ;;  %8817 = vrot.lane.b32.xlu1 %v16598_v23, %s13463_s19  ;;  %v4724_v37 = vmax.f32 %v4338_v51, 0.0 }
 0x3f9   : > { %20666 = vst [vmem:[#allocation29_spill] sm:$0xff] %v16607_v17  ;;  %v6454_v34 = vsub.f32 0.0, %v5740_v5  ;;  %v16625_v38 = vpop.eup %12725  ;;  %v7217_v5 = vadd.f32 1.0, %v12724_v2  ;;  %12737 = vpow2.f32 %v6811_v33  ;;  %v20670_v20 = vld [vmem:[#allocation32_spill] sm:$0xff]  ;;  %v16638_v2 = vpop.permute.xlu0 %8747 }
 0x3fa   : > { %v9448_v21 = vsel %vm9423_vm5, %v20664_v57, %v16158_v1  ;;  %v16616_v1 = vpop.f32.mrb[126].mxu1  ;;  %v6807_v62 = vmul.f32 1.442695, %v6451_v48  ;;  %v20668_v57 = vld [vmem:[#allocation95_spill] sm:$0xff]  ;;  %v16631_v0 = vpop.eup %12727  ;;  %v20672_v51 = vld [vmem:[#allocation96_spill] sm:$0xff] }
 0x3fb   : > { %9705 = vst.msk [vmem:[%s15908_s25 + $0xc0] sm:$0xff] %vm9680_vm6, %v9448_v21  ;;  %20667 = vst [vmem:[#allocation94_spill] sm:$0xff] %v16616_v1  ;;  %v5732_v11 = vadd.f32 %v20668_v57, %v14727_v35  ;;  %v16623_v50 = vpop.f32.mrb[127].mxu1  ;;  %v6813_v21 = vmul.f32 1.442695, %v6454_v34  ;;  %v20671_v1 = vsub.f32 1.0, %v20670_v20  ;;  %v4349_v57 = vadd.f32 %v16272_v60, %v20672_v51  ;;  %v12730_v33 = vpop.eup %12729 }
 0x3fc   : > { %20669 = vst [vmem:[#allocation95_spill] sm:$0xff] %v16623_v50  ;;  %12739 = vpow2.f32 %v6807_v62  ;;  %v7717_v50 = vmax.f32 %v16413_v30, 0.0  ;;  %v4341_v20 = vadd.f32 %v16272_v60, %v15887_v42  ;;  %v20673_v34 = vld [vmem:[#allocation31_spill] sm:$0xff]  ;;  %v16647_v62 = vpop.permute.xlu1 %8749  ;;  %v7215_v51 = vadd.f32 1.0, %v12730_v33 }
 0x3fd   : > { %v9449_v48 = vsel %vm9423_vm5, %v20671_v1, %v16189_v13  ;;  %v6452_v23 = vsub.f32 0.0, %v5732_v11  ;;  %12741 = vrcp.f32 %v7217_v5  ;;  %v7718_v13 = vmax.f32 %v16442_v45, 0.0 }
 0x3fe   : > { %9706 = vst.msk [vmem:[%s15908_s25 + $0xc8] sm:$0xff] %vm9680_vm6, %v9449_v48  ;;  %v20674_v11 = vsub.f32 1.0, %v20673_v34  ;;  %v12732_v48 = vpop.eup %12731  ;;  %12743 = vpow2.f32 %v6813_v21  ;;  %v4727_v17 = vmax.f32 %v4349_v57, 0.0  ;;  %v16653_v39 = vmin.f32 %v7717_v50, 1.0 }
 0x3ff   : > { %v6809_v30 = vmul.f32 1.442695, %v6452_v23  ;;  %v16651_v5 = vpop.eup %12733  ;;  %v7218_v42 = vadd.f32 1.0, %v12732_v48  ;;  %v4725_v45 = vmax.f32 %v4341_v20, 0.0  ;;  %v16655_v4 = vmin.f32 %v7718_v13, 1.0  ;;  %v16674_v20 = vpop.permute.xlu0 %8743 }
 0x400   : > { %v9454_v1 = vsel %vm9423_vm5, %v20674_v11, %v16212_v9  ;;  %20675 = vst [vmem:[#allocation32_spill] sm:$0xff] %v16653_v39  ;;  %v12736_v34 = vpop.eup %12735  ;;  %12745 = vrcp.f32 %v7215_v51  ;;  %v4875_v9 = vpack.c.bf16 %v4727_v17, %v4726_v24  ;;  %v20677_v11 = vld [vmem:[#allocation33_spill] sm:$0xff]  ;;  %v5753_v21 = vadd.f32 %v15905_v56, %v14727_v35  ;;  %8827 = vrot.lane.b32.xlu0 %v16653_v39, %s13463_s19  ;;  %v16670_v17 = vpop.f32.mrb[12].mxu0 }
 0x401   : > { %9711 = vst.msk [vmem:[%s15908_s25 + $0xf0] sm:$0xff] %vm9680_vm6, %v9454_v1  ;;  %20676 = vst [vmem:[#allocation96_spill] sm:$0xff] %v16655_v4  ;;  %v20678_v33 = vsub.f32 1.0, %v20677_v11  ;;  %12747 = vrcp.f32 %v7218_v42  ;;  %v7216_v57 = vadd.f32 1.0, %v12736_v34  ;;  %v4874_v50 = vpack.c.bf16 %v4725_v45, %v4724_v37  ;;  %8829 = vrot.lane.b32.xlu1 %v16655_v4, %s13463_s19  ;;  %v16676_v13 = vpop.f32.mrb[13].mxu0 }
 0x402   : > { %12749 = vpow2.f32 %v6809_v30  ;;  %v6457_v24 = vsub.f32 0.0, %v5753_v21  ;;  %v7715_v56 = vmax.f32 %v16421_v22, 0.0  ;;  %v5745_v37 = vadd.f32 %v15919_v52, %v14727_v35  ;;  %v16684_v30 = vpop.permute.xlu1 %8745  ;;  %v16686_v42 = vpop.f32.mrb[14].mxu0  ;;  %v20680_v52 = vld [vmem:[#allocation34_spill] sm:$0xff] }
 0x403   : > { %v9455_v23 = vsel %vm9423_vm5, %v20678_v33, %v16237_v59  ;;  %12751 = vrcp.f32 %v7216_v57  ;;  %v7716_v48 = vmax.f32 %v16448_v54, 0.0  ;;  %v4362_v51 = vadd.f32 %v16272_v60, %v15934_v25  ;;  %12073 = vmatprep.mubr.msk.bf16.mxu0 %vm4905_vm4, %v4874_v50  ;;  %v16697_v25 = vpop.f32.mrb[15].mxu0  ;;  %v12738_v33 = vpop.eup %12737  ;;  %v20683_v50 = vld [vmem:[#allocation4_spill] sm:$0xff] }
 0x404   : > { %9712 = vst.msk [vmem:[%s15908_s25 + $0xf8] sm:$0xff] %vm9680_vm6, %v9455_v23  ;;  %v6819_v22 = vmul.f32 1.442695, %v6457_v24  ;;  %v16688_v45 = vmin.f32 %v7715_v56, 1.0  ;;  %v5756_v34 = vadd.f32 %v15946_v36, %v14727_v35  ;;  %v20681_v11 = vsub.f32 1.0, %v20680_v52  ;;  %12074 = vmatmul.mubr.msk.bf16.gmra.mrb[84].mxu0 %vm4905_vm4, %v4875_v9  ;;  %v20685_v52 = vld [vmem:[#allocation35_spill] sm:$0xff]  ;;  %v16719_v1 = vpop.permute.xlu0 %8755 }
 0x405   : > { %v6455_v23 = vsub.f32 0.0, %v5745_v37  ;;  %v16699_v21 = vmin.f32 %v7716_v48, 1.0  ;;  %v4730_v57 = vmax.f32 %v4362_v51, 0.0  ;;  %v4354_v24 = vadd.f32 %v16272_v60, %v20683_v50  ;;  %v20688_v51 = vld [vmem:[#allocation101_spill] sm:$0xff] }
 0x406   : > { %20679 = vst [vmem:[#allocation31_spill] sm:$0xff] %v16688_v45  ;;  %v9452_v54 = vsel %vm9423_vm5, %v20681_v11, %v16266_v26  ;;  %v12740_v36 = vpop.eup %12739  ;;  %v7221_v56 = vadd.f32 1.0, %v12738_v33  ;;  %12753 = vpow2.f32 %v6819_v22  ;;  %8823 = vrot.lane.b32.xlu0 %v16688_v45, %s13463_s19  ;;  %v6458_v26 = vsub.f32 0.0, %v5756_v34  ;;  %v20684_v33 = vld [vmem:[#allocation98_spill] sm:$0xff] }
 0x407   : > { %20682 = vst [vmem:[#allocation33_spill] sm:$0xff] %v16699_v21  ;;  %9709 = vst.msk [vmem:[%s15908_s25 + $0xe0] sm:$0xff] %vm9680_vm6, %v9452_v54  ;;  %v16708_v9 = vpop.eup %12741  ;;  %v7219_v37 = vadd.f32 1.0, %v12740_v36  ;;  %v6815_v48 = vmul.f32 1.442695, %v6455_v23  ;;  %8825 = vrot.lane.b32.xlu1 %v16699_v21, %s13463_s19  ;;  %v4728_v11 = vmax.f32 %v4354_v24, 0.0  ;;  %v5748_v50 = vadd.f32 %v20684_v33, %v14727_v35 }
 0x408   : > { %v12744_v54 = vpop.eup %12743  ;;  %12755 = vrcp.f32 %v7221_v56  ;;  %v6821_v22 = vmul.f32 1.442695, %v6458_v26  ;;  %v20686_v59 = vsub.f32 1.0, %v20685_v52  ;;  %v20687_v36 = vld [vmem:[#allocation99_spill] sm:$0xff]  ;;  %v7721_v56 = vmax.f32 %v16509_v58, 0.0  ;;  %v16726_v26 = vpop.permute.xlu1 %8757  ;;  %v20690_v58 = vld [vmem:[#allocation36_spill] sm:$0xff] }
 0x409   : > { %12757 = vrcp.f32 %v7219_v37  ;;  %v7222_v23 = vadd.f32 1.0, %v12744_v54  ;;  %v4365_v24 = vadd.f32 %v16272_v60, %v20687_v36  ;;  %v6456_v52 = vsub.f32 0.0, %v5748_v50 }
 0x40a   : > { %v9453_v34 = vsel %vm9423_vm5, %v20686_v59, %v16281_v31  ;;  %v16728_v33 = vpop.eup %12745  ;;  %12759 = vpow2.f32 %v6815_v48  ;;  %v4357_v31 = vadd.f32 %v16272_v60, %v20688_v51  ;;  %v7722_v59 = vmax.f32 %v16542_v7, 0.0  ;;  %v16745_v7 = vpop.f32.mrb[16].mxu0 }
 0x40b   : > { %9710 = vst.msk [vmem:[%s15908_s25 + $0xe8] sm:$0xff] %vm9680_vm6, %v9453_v34  ;;  %v16733_v37 = vpop.eup %12747  ;;  %12761 = vrcp.f32 %v7222_v23  ;;  %v4731_v54 = vmax.f32 %v4365_v24, 0.0  ;;  %v16735_v34 = vmin.f32 %v7721_v56, 1.0  ;;  %v20691_v36 = vsub.f32 1.0, %v20690_v58  ;;  %v20700_v56 = vld [vmem:[#allocation38_spill] sm:$0xff] }
 0x40c   : > { %v12750_v45 = vpop.eup %12749  ;;  %12763 = vpow2.f32 %v6821_v22  ;;  %v6817_v48 = vmul.f32 1.442695, %v6456_v52  ;;  %v4729_v50 = vmax.f32 %v4357_v31, 0.0  ;;  %v16741_v4 = vmin.f32 %v7722_v59, 1.0  ;;  %v16756_v31 = vpop.f32.mrb[17].mxu0 }
 0x40d   : > { %20689 = vst [vmem:[#allocation34_spill] sm:$0xff] %v16735_v34  ;;  %v9458_v21 = vsel %vm9423_vm5, %v20691_v36, %v16321_v49  ;;  %v16747_v51 = vpop.eup %12751  ;;  %v7220_v23 = vadd.f32 1.0, %v12750_v45  ;;  %v4877_v24 = vpack.c.bf16 %v4731_v54, %v4730_v57  ;;  %8835 = vrot.lane.b32.xlu0 %v16735_v34, %s13463_s19  ;;  %v20693_v49 = vld [vmem:[#allocation37_spill] sm:$0xff]  ;;  %v16765_v54 = vpop.permute.xlu0 %8751 }
 0x40e   : > { %20692 = vst [vmem:[#allocation4_spill] sm:$0xff] %v16741_v4  ;;  %9715 = vst.msk [vmem:[%s15908_s25 + $0x110] sm:$0xff] %vm9680_vm6, %v9458_v21  ;;  %v20694_v22 = vsub.f32 1.0, %v20693_v49  ;;  %12765 = vpow2.f32 %v6817_v48  ;;  %v4876_v21 = vpack.c.bf16 %v4729_v50, %v4728_v11  ;;  %8837 = vrot.lane.b32.xlu1 %v16741_v4, %s13463_s19  ;;  %v20695_v45 = vld [vmem:[#allocation5_spill] sm:$0xff]  ;;  %v16767_v58 = vpop.f32.mrb[18].mxu0  ;;  %v20697_v11 = vld [vmem:[#allocation102_spill] sm:$0xff]  ;;  %v16773_v50 = vpop.permute.xlu1 %8753 }
 0x40f   : > { %v5769_v57 = vadd.f32 %v20695_v45, %v14727_v35  ;;  %20696 = vst [vmem:[#allocation98_spill] sm:$0xff] %v16767_v58  ;;  %12767 = vrcp.f32 %v7220_v23  ;;  %v5761_v36 = vadd.f32 %v20697_v11, %v14727_v35  ;;  %v7720_v48 = vmax.f32 %v16555_v47, 0.0  ;;  %v16775_v49 = vpop.f32.mrb[19].mxu0  ;;  %v20699_v45 = vld [vmem:[#allocation51_spill] sm:$0xff] }
 0x410   : > { %v9459_v52 = vsel %vm9423_vm5, %v20694_v22, %v16334_v53  ;;  %v7719_v53 = vmax.f32 %v16535_v28, 0.0  ;;  %20698 = vst [vmem:[#allocation35_spill] sm:$0xff] %v16775_v49  ;;  %v12754_v22 = vpop.eup %12753  ;;  %v4378_v59 = vadd.f32 %v16272_v60, %v20699_v45  ;;  %v5772_v23 = vadd.f32 %v16012_v46, %v14727_v35  ;;  %12077 = vmatprep.mubr.msk.bf16.mxu0 %vm4905_vm4, %v4876_v21  ;;  %v20707_v21 = vld [vmem:[#allocation104_spill] sm:$0xff] }
 0x411   : > { %9716 = vst.msk [vmem:[%s15908_s25 + $0x118] sm:$0xff] %vm9680_vm6, %v9459_v52  ;;  %v6461_v52 = vsub.f32 0.0, %v5769_v57  ;;  %v20701_v28 = vsub.f32 1.0, %v20700_v56  ;;  %v7225_v47 = vadd.f32 1.0, %v12754_v22  ;;  %v6459_v34 = vsub.f32 0.0, %v5761_v36  ;;  %12078 = vmatmul.mubr.msk.bf16.gmra.mrb[88].mxu0 %vm4905_vm4, %v4877_v24 }
 0x412   : > { %v16786_v11 = vmin.f32 %v7719_v53, 1.0  ;;  %v16788_v39 = vmin.f32 %v7720_v48, 1.0  ;;  %v16793_v57 = vpop.eup %12755  ;;  %v4734_v45 = vmax.f32 %v4378_v59, 0.0  ;;  %v6462_v49 = vsub.f32 0.0, %v5772_v23  ;;  %v16807_v48 = vpop.permute.xlu0 %8763 }
 0x413   : > { %v9456_v4 = vsel %vm9423_vm5, %v20701_v28, %v16353_v12  ;;  %v6827_v46 = vmul.f32 1.442695, %v6461_v52  ;;  %v4370_v12 = vadd.f32 %v16272_v60, %v16020_v63  ;;  %v16797_v56 = vpop.eup %12757  ;;  %12769 = vrcp.f32 %v7225_v47  ;;  %v20706_v47 = vld [vmem:[#allocation7_spill] sm:$0xff] }
 0x414   : > { %20702 = vst [vmem:[#allocation99_spill] sm:$0xff] %v16786_v11  ;;  %20703 = vst [vmem:[#allocation101_spill] sm:$0xff] %v16788_v39  ;;  %8831 = vrot.lane.b32.xlu0 %v16786_v11, %s13463_s19  ;;  %v6823_v53 = vmul.f32 1.442695, %v6459_v34  ;;  %8833 = vrot.lane.b32.xlu1 %v16788_v39, %s13463_s19  ;;  %v12760_v24 = vpop.eup %12759  ;;  %v6829_v59 = vmul.f32 1.442695, %v6462_v49  ;;  %v5764_v63 = vadd.f32 %v16022_v18, %v14727_v35 }
 0x415   : > { %9713 = vst.msk [vmem:[%s15908_s25 + $0x100] sm:$0xff] %vm9680_vm6, %v9456_v4  ;;  %12771 = vpow2.f32 %v6827_v46  ;;  %v4732_v36 = vmax.f32 %v4370_v12, 0.0  ;;  %v16809_v22 = vpop.eup %12761  ;;  %v7223_v52 = vadd.f32 1.0, %v12760_v24  ;;  %v20704_v34 = vld [vmem:[#allocation40_spill] sm:$0xff]  ;;  %v4381_v4 = vadd.f32 %v16272_v60, %v20706_v47  ;;  %v16817_v46 = vpop.permute.xlu1 %8765 }
 0x416   : > { %12773 = vpow2.f32 %v6823_v53  ;;  %v20705_v23 = vsub.f32 1.0, %v20704_v34  ;;  %v12764_v49 = vpop.eup %12763  ;;  %v6460_v12 = vsub.f32 0.0, %v5764_v63  ;;  %v7725_v18 = vmax.f32 %v16609_v6, 0.0  ;;  %v16831_v6 = vpop.f32.mrb[20].mxu0 }
 0x417   : > { %12775 = vpow2.f32 %v6829_v59  ;;  %v4373_v53 = vadd.f32 %v16272_v60, %v20707_v21  ;;  %v7226_v24 = vadd.f32 1.0, %v12764_v49  ;;  %v4735_v34 = vmax.f32 %v4381_v4, 0.0  ;;  %v20709_v59 = vld [vmem:[#allocation47_spill] sm:$0xff]  ;;  %20711 = vst [vmem:[#allocation37_spill] sm:$0xff] %v16831_v6 }
 0x418   : > { %v9457_v28 = vsel %vm9423_vm5, %v20705_v23, %v16375_v29  ;;  %12777 = vrcp.f32 %v7223_v52  ;;  %v7726_v29 = vmax.f32 %v16631_v0, 0.0  ;;  %v12766_v23 = vpop.eup %12765  ;;  %v6825_v47 = vmul.f32 1.442695, %v6460_v12  ;;  %v16839_v0 = vpop.f32.mrb[21].mxu0  ;;  %v20714_v12 = vld [vmem:[#allocation48_spill] sm:$0xff] }
 0x419   : > { %9714 = vst.msk [vmem:[%s15908_s25 + $0x108] sm:$0xff] %vm9680_vm6, %v9457_v28  ;;  %v16825_v39 = vmin.f32 %v7725_v18, 1.0  ;;  %v4733_v11 = vmax.f32 %v4373_v53, 0.0  ;;  %v20710_v63 = vsub.f32 1.0, %v20709_v59  ;;  %v16833_v58 = vpop.eup %12767  ;;  %12779 = vrcp.f32 %v7226_v24  ;;  %20713 = vst [vmem:[#allocation102_spill] sm:$0xff] %v16839_v0  ;;  %v16848_v24 = vpop.permute.xlu0 %8759 }
 0x41a   : > { %v7224_v21 = vadd.f32 1.0, %v12766_v23  ;;  %v4879_v4 = vpack.c.bf16 %v4735_v34, %v4734_v45  ;;  %v16835_v52 = vmin.f32 %v7726_v29, 1.0  ;;  %12781 = vpow2.f32 %v6825_v47  ;;  %v16850_v45 = vpop.f32.mrb[22].mxu0  ;;  %v20717_v29 = vld [vmem:[#allocation106_spill] sm:$0xff]  ;;  %v16860_v23 = vpop.permute.xlu1 %8761  ;;  %v20719_v47 = vld [vmem:[#allocation107_spill] sm:$0xff]  ;;  %v20723_v34 = vld [vmem:[#allocation49_spill] sm:$0xff] }
 0x41b   : > { %20708 = vst [vmem:[#allocation36_spill] sm:$0xff] %v16825_v39  ;;  %v9462_v28 = vsel %vm9423_vm5, %v20710_v63, %v16423_v14  ;;  %8843 = vrot.lane.b32.xlu0 %v16825_v39, %s13463_s19  ;;  %v4878_v14 = vpack.c.bf16 %v4733_v11, %v4732_v36  ;;  %v20715_v18 = vsub.f32 1.0, %v20714_v12  ;;  %20716 = vst [vmem:[#allocation51_spill] sm:$0xff] %v16850_v45  ;;  %v7723_v36 = vmax.f32 %v16625_v38, 0.0  ;;  %v20721_v12 = vld [vmem:[#allocation109_spill] sm:$0xff] }
 0x41c   : > { %20712 = vst [vmem:[#allocation5_spill] sm:$0xff] %v16835_v52  ;;  %9719 = vst.msk [vmem:[%s15908_s25 + $0x130] sm:$0xff] %vm9680_vm6, %v9462_v28  ;;  %12783 = vrcp.f32 %v7224_v21  ;;  %8845 = vrot.lane.b32.xlu1 %v16835_v52, %s13463_s19  ;;  %v5785_v11 = vadd.f32 %v20717_v29, %v14727_v35  ;;  %v5777_v59 = vadd.f32 %v20719_v47, %v14727_v35  ;;  %v7724_v63 = vmax.f32 %v16651_v5, 0.0  ;;  %v20720_v28 = vld [vmem:[#allocation108_spill] sm:$0xff]  ;;  %v20725_v52 = vld [vmem:[#allocation110_spill] sm:$0xff] }
 0x41d   : > { %v9463_v53 = vsel %vm9423_vm5, %v20715_v18, %v16432_v61  ;;  %v16862_v61 = vpop.f32.mrb[23].mxu0  ;;  %v4394_v21 = vadd.f32 %v16272_v60, %v20720_v28  ;;  %v5788_v18 = vadd.f32 %v20721_v12, %v14727_v35  ;;  %12081 = vmatprep.mubr.msk.bf16.mxu0 %vm4905_vm4, %v4878_v14  ;;  %v16874_v29 = vmin.f32 %v7723_v36, 1.0 }
 0x41e   : > { %9720 = vst.msk [vmem:[%s15908_s25 + $0x138] sm:$0xff] %vm9680_vm6, %v9463_v53  ;;  %20718 = vst [vmem:[#allocation38_spill] sm:$0xff] %v16862_v61  ;;  %v16872_v53 = vpop.eup %12769  ;;  %v6465_v38 = vsub.f32 0.0, %v5785_v11  ;;  %v20724_v49 = vsub.f32 1.0, %v20723_v34  ;;  %v4386_v5 = vadd.f32 %v16272_v60, %v20725_v52  ;;  %12082 = vmatmul.mubr.msk.bf16.gmra.mrb[92].mxu0 %vm4905_vm4, %v4879_v4  ;;  %v6463_v39 = vsub.f32 0.0, %v5777_v59 }
 0x41f   : > { %20722 = vst [vmem:[#allocation40_spill] sm:$0xff] %v16874_v29  ;;  %v12772_v28 = vpop.eup %12771  ;;  %v16883_v12 = vmin.f32 %v7724_v63, 1.0  ;;  %v4738_v14 = vmax.f32 %v4394_v21, 0.0  ;;  %v6466_v61 = vsub.f32 0.0, %v5788_v18  ;;  %8839 = vrot.lane.b32.xlu0 %v16874_v29, %s13463_s19  ;;  %v16893_v63 = vpop.permute.xlu0 %8771 }
 0x420   : > { %v9460_v47 = vsel %vm9423_vm5, %v20724_v49, %v16470_v15  ;;  %v12774_v11 = vpop.eup %12773  ;;  %v7229_v36 = vadd.f32 1.0, %v12772_v28  ;;  %v6835_v45 = vmul.f32 1.442695, %v6465_v38  ;;  %v4736_v60 = vmax.f32 %v4386_v5, 0.0  ;;  %v20727_v38 = vld [vmem:[#allocation12_spill] sm:$0xff]  ;;  %v20728_v5 = vld [vmem:[#allocation50_spill] sm:$0xff] }
 0x421   : > { %20726 = vst [vmem:[#allocation7_spill] sm:$0xff] %v16883_v12  ;;  %9717 = vst.msk [vmem:[%s15908_s25 + $0x120] sm:$0xff] %vm9680_vm6, %v9460_v47  ;;  %v12776_v15 = vpop.eup %12775  ;;  %v7227_v4 = vadd.f32 1.0, %v12774_v11  ;;  %v6831_v52 = vmul.f32 1.442695, %v6463_v39  ;;  %8841 = vrot.lane.b32.xlu1 %v16883_v12, %s13463_s19  ;;  %v5780_v47 = vadd.f32 %v20727_v38, %v14727_v35  ;;  %v20729_v28 = vsub.f32 1.0, %v20728_v5  ;;  %v16903_v11 = vpop.permute.xlu1 %8773 }
 0x422   : > { %v6837_v59 = vmul.f32 1.442695, %v6466_v61  ;;  %v16895_v21 = vpop.eup %12777  ;;  %12785 = vrcp.f32 %v7229_v36  ;;  %v7230_v18 = vadd.f32 1.0, %v12776_v15  ;;  %v16910_v61 = vld [vmem:[%s20112_s4] ss:$0 sm:$0xff]  ;;  %v20730_v36 = vld [vmem:[#allocation111_spill] sm:$0xff] }
 0x423   : > { %v9461_v39 = vsel %vm9423_vm5, %v20729_v28, %v16478_v27  ;;  %12787 = vrcp.f32 %v7227_v4  ;;  %v4397_v15 = vadd.f32 %v16910_v61, %v20730_v36  ;;  %v7729_v38 = vmax.f32 %v16708_v9, 0.0  ;;  %v20731_v49 = vld [vmem:[#allocation54_spill] sm:$0xff]  ;;  %v16917_v27 = vpop.eup %12779  ;;  %v16924_v29 = vpop.f32.mrb[24].mxu0 }
 0x424   : > { %9718 = vst.msk [vmem:[%s15908_s25 + $0x128] sm:$0xff] %vm9680_vm6, %v9461_v39  ;;  %v4389_v5 = vadd.f32 %v16910_v61, %v20731_v49  ;;  %12789 = vrcp.f32 %v7230_v18  ;;  %v6464_v4 = vsub.f32 0.0, %v5780_v47  ;;  %v7730_v28 = vmax.f32 %v16733_v37, 0.0  ;;  %v20732_v39 = vld [vmem:[#allocation52_spill] sm:$0xff]  ;;  %v12782_v0 = vpop.eup %12781  ;;  %v16930_v49 = vpop.f32.mrb[25].mxu0 }
 0x425   : > { %v20733_v34 = vsub.f32 1.0, %v20732_v39  ;;  %12791 = vpow2.f32 %v6835_v45  ;;  %v4739_v36 = vmax.f32 %v4397_v15, 0.0  ;;  %v16926_v9 = vmin.f32 %v7729_v38, 1.0  ;;  %v16941_v15 = vpop.permute.xlu0 %8767 }
 0x426   : > { %v4737_v6 = vmax.f32 %v4389_v5, 0.0  ;;  %v16932_v18 = vpop.eup %12783  ;;  %v7228_v37 = vadd.f32 1.0, %v12782_v0  ;;  %12793 = vpow2.f32 %v6831_v52  ;;  %v6833_v47 = vmul.f32 1.442695, %v6464_v4  ;;  %v20736_v52 = vld [vmem:[#allocation53_spill] sm:$0xff] }
 0x427   : > { %v9466_v12 = vsel %vm9423_vm5, %v20733_v34, %v16521_v55  ;;  %20734 = vst [vmem:[#allocation104_spill] sm:$0xff] %v16926_v9  ;;  %v16934_v39 = vmin.f32 %v7730_v28, 1.0  ;;  %v16936_v55 = vpop.f32.mrb[26].mxu0  ;;  %12795 = vpow2.f32 %v6837_v59  ;;  %v4881_v45 = vpack.c.bf16 %v4739_v36, %v4738_v14  ;;  %8851 = vrot.lane.b32.xlu0 %v16926_v9, %s13463_s19 }
 0x428   : > { %9723 = vst.msk [vmem:[%s15908_s25 + $0x150] sm:$0xff] %vm9680_vm6, %v9466_v12  ;;  %v4880_v12 = vpack.c.bf16 %v4737_v6, %v4736_v60  ;;  %v16943_v38 = vpop.f32.mrb[27].mxu0  ;;  %12797 = vrcp.f32 %v7228_v37  ;;  %v20737_v59 = vsub.f32 1.0, %v20736_v52  ;;  %v5801_v5 = vadd.f32 %v16132_v40, %v14727_v35  ;;  %v16954_v6 = vpop.permute.xlu1 %8769  ;;  %v20738_v37 = vld [vmem:[#allocation55_spill] sm:$0xff] }
 0x429   : > { %20735 = vst [vmem:[#allocation47_spill] sm:$0xff] %v16934_v39  ;;  %8853 = vrot.lane.b32.xlu1 %v16934_v39, %s13463_s19  ;;  %12799 = vpow2.f32 %v6833_v47  ;;  %v7727_v60 = vmax.f32 %v16728_v33, 0.0  ;;  %v5793_v4 = vadd.f32 %v16141_v8, %v14727_v35  ;;  %v7728_v28 = vmax.f32 %v16747_v51, 0.0  ;;  %v17008_v34 = vpop.f32.mrb[28].mxu0 }
 0x42a   : > { %v9467_v14 = vsel %vm9423_vm5, %v20737_v59, %v16531_v32  ;;  %12085 = vmatprep.mubr.msk.bf16.mxu0 %vm4905_vm4, %v4880_v12  ;;  %v6469_v36 = vsub.f32 0.0, %v5801_v5  ;;  %v4410_v32 = vadd.f32 %v16910_v61, %v16150_v43  ;;  %v5804_v40 = vadd.f32 %v16152_v44, %v14727_v35 }
 0x42b   : > { %9724 = vst.msk [vmem:[%s15908_s25 + $0x158] sm:$0xff] %vm9680_vm6, %v9467_v14  ;;  %v20739_v47 = vsub.f32 1.0, %v20738_v37  ;;  %12086 = vmatmul.mubr.msk.bf16.gmra.mrb[96].mxu0 %vm4905_vm4, %v4881_v45  ;;  %v16972_v33 = vmin.f32 %v7727_v60, 1.0  ;;  %v6467_v8 = vsub.f32 0.0, %v5793_v4  ;;  %v16974_v51 = vmin.f32 %v7728_v28, 1.0  ;;  %v16996_v37 = vpop.permute.xlu0 %8779 }
 0x42c   : > { %v4402_v43 = vadd.f32 %v16910_v61, %v16171_v16  ;;  %v16980_v12 = vpop.eup %12785  ;;  %v6843_v44 = vmul.f32 1.442695, %v6469_v36  ;;  %v4742_v59 = vmax.f32 %v4410_v32, 0.0  ;;  %v6470_v14 = vsub.f32 0.0, %v5804_v40  ;;  %v20743_v16 = vld [vmem:[#allocation56_spill] sm:$0xff] }
 0x42d   : > { %v9464_v52 = vsel %vm9423_vm5, %v20739_v47, %v16566_v3  ;;  %20740 = vst [vmem:[#allocation48_spill] sm:$0xff] %v16972_v33  ;;  %20741 = vst [vmem:[#allocation106_spill] sm:$0xff] %v16974_v51  ;;  %v20742_v3 = vld [vmem:[#allocation14_spill] sm:$0xff]  ;;  %v16984_v45 = vpop.eup %12787  ;;  %8847 = vrot.lane.b32.xlu0 %v16972_v33, %s13463_s19  ;;  %v6839_v60 = vmul.f32 1.442695, %v6467_v8  ;;  %8849 = vrot.lane.b32.xlu1 %v16974_v51, %s13463_s19  ;;  %v20744_v28 = vsub.f32 1.0, %v20743_v16 }
 0x42e   : > { %9721 = vst.msk [vmem:[%s15908_s25 + $0x140] sm:$0xff] %vm9680_vm6, %v9464_v52  ;;  %v5796_v5 = vadd.f32 %v20742_v3, %v14727_v35  ;;  %v4740_v4 = vmax.f32 %v4402_v43, 0.0  ;;  %v20745_v32 = vld [vmem:[#allocation60_spill] sm:$0xff]  ;;  %v16998_v47 = vpop.eup %12789  ;;  %12801 = vpow2.f32 %v6843_v44  ;;  %v6845_v52 = vmul.f32 1.442695, %v6470_v14  ;;  %v17003_v43 = vpop.permute.xlu1 %8781 }
 0x42f   : > { %v9465_v36 = vsel %vm9423_vm5, %v20744_v28, %v16573_v10  ;;  %v4413_v40 = vadd.f32 %v16910_v61, %v20745_v32  ;;  %v7733_v8 = vmax.f32 %v16793_v57, 0.0  ;;  %v12792_v0 = vpop.eup %12791  ;;  %12803 = vpow2.f32 %v6839_v60  ;;  %v20746_v10 = vld [vmem:[#allocation13_spill] sm:$0xff] }
 0x430   : > { %v6468_v3 = vsub.f32 0.0, %v5796_v5  ;;  %9722 = vst.msk [vmem:[%s15908_s25 + $0x148] sm:$0xff] %vm9680_vm6, %v9465_v36  ;;  %v4405_v28 = vadd.f32 %v16910_v61, %v20746_v10  ;;  %v7734_v32 = vmax.f32 %v16809_v22, 0.0  ;;  %v12794_v51 = vpop.eup %12793  ;;  %v7233_v44 = vadd.f32 1.0, %v12792_v0  ;;  %v17012_v36 = vpop.f32.mrb[29].mxu0 }
 0x431   : > { %v4743_v16 = vmax.f32 %v4413_v40, 0.0  ;;  %12805 = vpow2.f32 %v6845_v52  ;;  %v17010_v5 = vmin.f32 %v7733_v8, 1.0  ;;  %v12796_v57 = vpop.eup %12795  ;;  %v7231_v33 = vadd.f32 1.0, %v12794_v51  ;;  %v17016_v10 = vpop.f32.mrb[30].mxu0  ;;  %v20749_v52 = vld [vmem:[#allocation61_spill] sm:$0xff] }
 0x432   : > { %v6841_v14 = vmul.f32 1.442695, %v6468_v3  ;;  %v4741_v40 = vmax.f32 %v4405_v28, 0.0  ;;  %v17014_v39 = vmin.f32 %v7734_v32, 1.0  ;;  %v17018_v22 = vpop.eup %12797  ;;  %12807 = vrcp.f32 %v7233_v44  ;;  %v17030_v28 = vpop.f32.mrb[31].mxu0  ;;  %v20754_v44 = vld [vmem:[#allocation16_spill] sm:$0xff] }
 0x433   : > { %20747 = vst [vmem:[#allocation107_spill] sm:$0xff] %v17010_v5  ;;  %v4883_v60 = vpack.c.bf16 %v4743_v16, %v4742_v59  ;;  %v7234_v0 = vadd.f32 1.0, %v12796_v57  ;;  %8859 = vrot.lane.b32.xlu0 %v17010_v5, %s13463_s19  ;;  %v20750_v3 = vsub.f32 1.0, %v20749_v52  ;;  %v20751_v59 = vld [vmem:[#allocation62_spill] sm:$0xff]  ;;  %20753 = vst [vmem:[#allocation109_spill] sm:$0xff] %v17030_v28  ;;  %v12800_v32 = vpop.eup %12799  ;;  %12809 = vrcp.f32 %v7231_v33  ;;  %v17041_v52 = vpop.permute.xlu0 %8775 }
 0x434   : > { %20748 = vst [vmem:[#allocation108_spill] sm:$0xff] %v17014_v39  ;;  %v20752_v8 = vsub.f32 1.0, %v20751_v59  ;;  %v4882_v9 = vpack.c.bf16 %v4741_v40, %v4740_v4  ;;  %8861 = vrot.lane.b32.xlu1 %v17014_v39, %s13463_s19  ;;  %v7731_v57 = vmax.f32 %v16797_v56, 0.0  ;;  %v7732_v4 = vmax.f32 %v16833_v58, 0.0  ;;  %v17046_v40 = vpop.permute.xlu1 %8777 }
 0x435   : > { %v9470_v51 = vsel %vm9423_vm5, %v20750_v3, %v16638_v2  ;;  %v5817_v2 = vadd.f32 %v20754_v44, %v14727_v35  ;;  %12811 = vrcp.f32 %v7234_v0  ;;  %v20755_v3 = vld [vmem:[#allocation112_spill] sm:$0xff] }
 0x436   : > { %v9471_v16 = vsel %vm9423_vm5, %v20752_v8, %v16647_v62  ;;  %9727 = vst.msk [vmem:[%s15908_s25 + $0x170] sm:$0xff] %vm9680_vm6, %v9470_v51  ;;  %v7232_v62 = vadd.f32 1.0, %v12800_v32  ;;  %v5809_v33 = vadd.f32 %v20755_v3, %v14727_v35  ;;  %12813 = vpow2.f32 %v6841_v14  ;;  %v20757_v8 = vld [vmem:[#allocation113_spill] sm:$0xff]  ;;  %12089 = vmatprep.mubr.msk.bf16.mxu0 %vm4905_vm4, %v4882_v9  ;;  %v20759_v32 = vld [vmem:[#allocation115_spill] sm:$0xff] }
 0x437   : > { %9728 = vst.msk [vmem:[%s15908_s25 + $0x178] sm:$0xff] %vm9680_vm6, %v9471_v16  ;;  %v6473_v51 = vsub.f32 0.0, %v5817_v2  ;;  %v17048_v59 = vmin.f32 %v7731_v57, 1.0  ;;  %v4426_v16 = vadd.f32 %v16910_v61, %v20757_v8  ;;  %v17053_v0 = vmin.f32 %v7732_v4, 1.0  ;;  %12090 = vmatmul.mubr.msk.bf16.gmra.mrb[100].mxu0 %vm4905_vm4, %v4883_v60  ;;  %v20760_v2 = vld [vmem:[#allocation63_spill] sm:$0xff] }
 0x438   : > { %12815 = vrcp.f32 %v7232_v62  ;;  %v6471_v56 = vsub.f32 0.0, %v5809_v33  ;;  %v5820_v44 = vadd.f32 %v20759_v32, %v14727_v35  ;;  %v20761_v57 = vsub.f32 1.0, %v20760_v2  ;;  %v20762_v62 = vld [vmem:[#allocation116_spill] sm:$0xff]  ;;  %v12802_v33 = vpop.eup %12801  ;;  %v17082_v5 = vpop.permute.xlu1 %8789 }
 0x439   : > { %20756 = vst [vmem:[#allocation49_spill] sm:$0xff] %v17048_v59  ;;  %20758 = vst [vmem:[#allocation110_spill] sm:$0xff] %v17053_v0  ;;  %v6851_v58 = vmul.f32 1.442695, %v6473_v51  ;;  %8855 = vrot.lane.b32.xlu0 %v17048_v59, %s13463_s19  ;;  %v4746_v14 = vmax.f32 %v4426_v16, 0.0  ;;  %v4418_v3 = vadd.f32 %v16910_v61, %v20762_v62  ;;  %8857 = vrot.lane.b32.xlu1 %v17053_v0, %s13463_s19  ;;  %v20763_v51 = vld [vmem:[#allocation15_spill] sm:$0xff] }
 0x43a   : > { %v9468_v9 = vsel %vm9423_vm5, %v20761_v57, %v16674_v20  ;;  %v6847_v4 = vmul.f32 1.442695, %v6471_v56  ;;  %v6474_v60 = vsub.f32 0.0, %v5820_v44  ;;  %v5812_v8 = vadd.f32 %v20763_v51, %v14727_v35  ;;  %v20764_v16 = vld [vmem:[#allocation65_spill] sm:$0xff]  ;;  %v12804_v20 = vpop.eup %12803  ;;  %v20766_v56 = vld [vmem:[#allocation118_spill] sm:$0xff]  ;;  %v17080_v44 = vpop.permute.xlu0 %8787 }
 0x43b   : > { %9725 = vst.msk [vmem:[%s15908_s25 + $0x160] sm:$0xff] %vm9680_vm6, %v9468_v9  ;;  %v20765_v32 = vsub.f32 1.0, %v20764_v16  ;;  %v7237_v57 = vadd.f32 1.0, %v12802_v33  ;;  %12817 = vpow2.f32 %v6851_v58  ;;  %v4744_v62 = vmax.f32 %v4418_v3, 0.0  ;;  %v12806_v9 = vpop.eup %12805 }
 0x43c   : > { %v4429_v0 = vadd.f32 %v16910_v61, %v20766_v56  ;;  %v7235_v59 = vadd.f32 1.0, %v12804_v20  ;;  %12819 = vpow2.f32 %v6847_v4  ;;  %v6853_v51 = vmul.f32 1.442695, %v6474_v60  ;;  %v17085_v3 = vpop.eup %12807  ;;  %v17090_v4 = vpop.f32.mrb[32].mxu0 }
 0x43d   : > { %v9469_v2 = vsel %vm9423_vm5, %v20765_v32, %v16684_v30  ;;  %v6472_v39 = vsub.f32 0.0, %v5812_v8  ;;  %12821 = vrcp.f32 %v7237_v57  ;;  %v7238_v30 = vadd.f32 1.0, %v12806_v9  ;;  %v20767_v32 = vld [vmem:[#allocation18_spill] sm:$0xff]  ;;  %20768 = vst [vmem:[#allocation12_spill] sm:$0xff] %v17090_v4  ;;  %v17092_v60 = vpop.eup %12809 }
 0x43e   : > { %9726 = vst.msk [vmem:[%s15908_s25 + $0x168] sm:$0xff] %vm9680_vm6, %v9469_v2  ;;  %v4747_v16 = vmax.f32 %v4429_v0, 0.0  ;;  %v7737_v58 = vmax.f32 %v16872_v53, 0.0  ;;  %12823 = vrcp.f32 %v7235_v59  ;;  %v4421_v2 = vadd.f32 %v16910_v61, %v20767_v32  ;;  %v20770_v53 = vld [vmem:[#allocation73_spill] sm:$0xff] }
 0x43f   : > { %v6849_v33 = vmul.f32 1.442695, %v6472_v39  ;;  %v7738_v20 = vmax.f32 %v16917_v27, 0.0  ;;  %12825 = vrcp.f32 %v7238_v30  ;;  %v20771_v57 = vsub.f32 1.0, %v20770_v53  ;;  %v17100_v39 = vpop.f32.mrb[33].mxu0  ;;  %v17102_v56 = vpop.eup %12811  ;;  %v20774_v30 = vld [vmem:[#allocation74_spill] sm:$0xff] }
 0x440   : > { %v4885_v8 = vpack.c.bf16 %v4747_v16, %v4746_v14  ;;  %v17094_v0 = vmin.f32 %v7737_v58, 1.0  ;;  %20772 = vst [vmem:[#allocation111_spill] sm:$0xff] %v17100_v39  ;;  %12827 = vpow2.f32 %v6853_v51  ;;  %v4745_v27 = vmax.f32 %v4421_v2, 0.0  ;;  %v17112_v58 = vpop.f32.mrb[34].mxu0  ;;  %v12814_v32 = vpop.eup %12813 }
 0x441   : > { %v9474_v59 = vsel %vm9423_vm5, %v20771_v57, %v16719_v1  ;;  %v17104_v9 = vmin.f32 %v7738_v20, 1.0  ;;  %v20775_v14 = vsub.f32 1.0, %v20774_v30  ;;  %20776 = vst [vmem:[#allocation52_spill] sm:$0xff] %v17112_v58  ;;  %12829 = vpow2.f32 %v6849_v33  ;;  %v20777_v1 = vld [vmem:[#allocation67_spill] sm:$0xff]  ;;  %v20778_v20 = vld [vmem:[#allocation17_spill] sm:$0xff]  ;;  %v17123_v57 = vpop.permute.xlu0 %8783 }
 0x442   : > { %20769 = vst [vmem:[#allocation50_spill] sm:$0xff] %v17094_v0  ;;  %9731 = vst.msk [vmem:[%s15908_s25 + $0x190] sm:$0xff] %vm9680_vm6, %v9474_v59  ;;  %8867 = vrot.lane.b32.xlu0 %v17094_v0, %s13463_s19  ;;  %v5833_v51 = vadd.f32 %v20777_v1, %v14727_v35  ;;  %v7735_v2 = vmax.f32 %v16895_v21, 0.0  ;;  %v5825_v53 = vadd.f32 %v20778_v20, %v14727_v35  ;;  %v17127_v59 = vpop.eup %12815  ;;  %v7236_v33 = vadd.f32 1.0, %v12814_v32  ;;  %v17134_v21 = vpop.permute.xlu1 %8785  ;;  %v20784_v32 = vld [vmem:[#allocation77_spill] sm:$0xff] }
 0x443   : > { %20773 = vst [vmem:[#allocation54_spill] sm:$0xff] %v17104_v9  ;;  %v9475_v16 = vsel %vm9423_vm5, %v20775_v14, %v16726_v26  ;;  %v17125_v26 = vpop.f32.mrb[35].mxu0  ;;  %v4884_v30 = vpack.c.bf16 %v4745_v27, %v4744_v62  ;;  %8869 = vrot.lane.b32.xlu1 %v17104_v9, %s13463_s19  ;;  %v7736_v14 = vmax.f32 %v16932_v18, 0.0  ;;  %v20785_v18 = vsub.f32 1.0, %v20784_v32 }
 0x444   : > { %9732 = vst.msk [vmem:[%s15908_s25 + $0x198] sm:$0xff] %vm9680_vm6, %v9475_v16  ;;  %20779 = vst [vmem:[#allocation53_spill] sm:$0xff] %v17125_v26  ;;  %v20780_v16 = vld [vmem:[#allocation68_spill] sm:$0xff]  ;;  %v6477_v20 = vsub.f32 0.0, %v5833_v51  ;;  %v17136_v0 = vmin.f32 %v7735_v2, 1.0  ;;  %v6475_v58 = vsub.f32 0.0, %v5825_v53  ;;  %12831 = vrcp.f32 %v7236_v33 }
 0x445   : > { %v4442_v1 = vadd.f32 %v16910_v61, %v20780_v16  ;;  %v20782_v26 = vld [vmem:[#allocation69_spill] sm:$0xff]  ;;  %v17140_v62 = vmin.f32 %v7736_v14, 1.0  ;;  %v9472_v9 = vsel %vm9423_vm5, %v20785_v18, %v16765_v54  ;;  %12093 = vmatprep.mubr.msk.bf16.mxu0 %vm4905_vm4, %v4884_v30  ;;  %v12818_v16 = vpop.eup %12817  ;;  %v20786_v53 = vld [vmem:[#allocation70_spill] sm:$0xff]  ;;  %v20787_v54 = vld [vmem:[#allocation20_spill] sm:$0xff] }
 0x446   : > { %20781 = vst [vmem:[#allocation55_spill] sm:$0xff] %v17136_v0  ;;  %v5836_v39 = vadd.f32 %v20782_v26, %v14727_v35  ;;  %v6859_v4 = vmul.f32 1.442695, %v6477_v20  ;;  %8863 = vrot.lane.b32.xlu0 %v17136_v0, %s13463_s19  ;;  %v6855_v51 = vmul.f32 1.442695, %v6475_v58  ;;  %9729 = vst.msk [vmem:[%s15908_s25 + $0x180] sm:$0xff] %vm9680_vm6, %v9472_v9  ;;  %v4434_v26 = vadd.f32 %v16910_v61, %v20786_v53  ;;  %v12820_v33 = vpop.eup %12819 }
 0x447   : > { %20783 = vst [vmem:[#allocation14_spill] sm:$0xff] %v17140_v62  ;;  %v4750_v27 = vmax.f32 %v4442_v1, 0.0  ;;  %12094 = vmatmul.mubr.msk.bf16.gmra.mrb[104].mxu0 %vm4905_vm4, %v4885_v8  ;;  %v7241_v14 = vadd.f32 1.0, %v12818_v16  ;;  %8865 = vrot.lane.b32.xlu1 %v17140_v62, %s13463_s19  ;;  %v5828_v30 = vadd.f32 %v20787_v54, %v14727_v35  ;;  %v20788_v1 = vld [vmem:[#allocation83_spill] sm:$0xff]  ;;  %v4445_v9 = vadd.f32 %v16910_v61, %v16343_v41  ;;  %v17164_v20 = vpop.eup %12821  ;;  %v17168_v16 = vpop.permute.xlu0 %8795 }
 0x448   : > { %v6478_v2 = vsub.f32 0.0, %v5836_v39  ;;  %v20789_v58 = vsub.f32 1.0, %v20788_v1  ;;  %v7239_v32 = vadd.f32 1.0, %v12820_v33  ;;  %12833 = vpow2.f32 %v6859_v4  ;;  %v17170_v53 = vpop.eup %12823  ;;  %v20790_v4 = vld [vmem:[#allocation72_spill] sm:$0xff]  ;;  %v20791_v33 = vld [vmem:[#allocation85_spill] sm:$0xff]  ;;  %v17184_v62 = vpop.f32.mrb[36].mxu0 }
 0x449   : > { %v4748_v18 = vmax.f32 %v4434_v26, 0.0  ;;  %12835 = vrcp.f32 %v7241_v14  ;;  %v6476_v54 = vsub.f32 0.0, %v5828_v30  ;;  %v4751_v1 = vmax.f32 %v4445_v9, 0.0  ;;  %v17175_v41 = vpop.eup %12825 }
 0x44a   : > { %v9473_v39 = vsel %vm9423_vm5, %v20789_v58, %v16773_v50  ;;  %v6861_v8 = vmul.f32 1.442695, %v6478_v2  ;;  %v7741_v50 = vmax.f32 %v16980_v12, 0.0  ;;  %v17173_v58 = vpop.permute.xlu1 %8797  ;;  %12837 = vrcp.f32 %v7239_v32  ;;  %v12828_v30 = vpop.eup %12827 }
 0x44b   : > { %9730 = vst.msk [vmem:[%s15908_s25 + $0x188] sm:$0xff] %vm9680_vm6, %v9473_v39  ;;  %v4437_v2 = vadd.f32 %v16910_v61, %v20790_v4  ;;  %v7742_v26 = vmax.f32 %v16998_v47, 0.0  ;;  %v20792_v39 = vsub.f32 1.0, %v20791_v33  ;;  %12839 = vpow2.f32 %v6855_v51  ;;  %v17190_v32 = vpop.f32.mrb[37].mxu0  ;;  %v12830_v4 = vpop.eup %12829 }
 0x44c   : > { %v6857_v12 = vmul.f32 1.442695, %v6476_v54  ;;  %v4887_v9 = vpack.c.bf16 %v4751_v1, %v4750_v27  ;;  %v17186_v0 = vmin.f32 %v7741_v50, 1.0  ;;  %20794 = vst [vmem:[#allocation60_spill] sm:$0xff] %v17190_v32  ;;  %v7242_v47 = vadd.f32 1.0, %v12828_v30  ;;  %v20797_v27 = vld [vmem:[#allocation87_spill] sm:$0xff] }
 0x44d   : > { %v9478_v14 = vsel %vm9423_vm5, %v20792_v39, %v16807_v48  ;;  %12841 = vpow2.f32 %v6861_v8  ;;  %v4749_v28 = vmax.f32 %v4437_v2, 0.0  ;;  %v17192_v33 = vmin.f32 %v7742_v26, 1.0  ;;  %v17194_v48 = vpop.f32.mrb[38].mxu0  ;;  %v20799_v1 = vld [vmem:[#allocation22_spill] sm:$0xff]  ;;  %v20801_v26 = vld [vmem:[#allocation75_spill] sm:$0xff] }
 0x44e   : > { %20793 = vst [vmem:[#allocation56_spill] sm:$0xff] %v17186_v0  ;;  %9735 = vst.msk [vmem:[%s15908_s25 + $0x1b0] sm:$0xff] %vm9680_vm6, %v9478_v14  ;;  %v7240_v39 = vadd.f32 1.0, %v12830_v4  ;;  %12843 = vpow2.f32 %v6857_v12  ;;  %8875 = vrot.lane.b32.xlu0 %v17186_v0, %s13463_s19  ;;  %v20798_v51 = vsub.f32 1.0, %v20797_v27  ;;  %v5849_v50 = vadd.f32 %v20799_v1, %v14727_v35  ;;  %v17204_v14 = vpop.f32.mrb[39].mxu0  ;;  %v17213_v12 = vpop.permute.xlu0 %8791 }
 0x44f   : > { %20795 = vst [vmem:[#allocation13_spill] sm:$0xff] %v17192_v33  ;;  %20796 = vst [vmem:[#allocation61_spill] sm:$0xff] %v17194_v48  ;;  %12845 = vrcp.f32 %v7242_v47  ;;  %v4886_v8 = vpack.c.bf16 %v4749_v28, %v4748_v18  ;;  %8877 = vrot.lane.b32.xlu1 %v17192_v33, %s13463_s19  ;;  %v7739_v2 = vmax.f32 %v16984_v45, 0.0  ;;  %v5841_v30 = vadd.f32 %v20801_v26, %v14727_v35  ;;  %v20802_v28 = vld [vmem:[#allocation119_spill] sm:$0xff]  ;;  %v17220_v27 = vpop.permute.xlu1 %8793  ;;  %v20805_v26 = vld [vmem:[#allocation42_spill] sm:$0xff] }
 0x450   : > { %v9479_v54 = vsel %vm9423_vm5, %v20798_v51, %v16817_v46  ;;  %20800 = vst [vmem:[#allocation62_spill] sm:$0xff] %v17204_v14  ;;  %v17215_v46 = vpop.eup %12831  ;;  %12847 = vrcp.f32 %v7240_v39  ;;  %v6481_v4 = vsub.f32 0.0, %v5849_v50  ;;  %v7740_v47 = vmax.f32 %v17018_v22, 0.0 }
 0x451   : > { %9736 = vst.msk [vmem:[%s15908_s25 + $0x1b8] sm:$0xff] %vm9680_vm6, %v9479_v54  ;;  %v4458_v18 = vadd.f32 %v16910_v61, %v20802_v28  ;;  %v17222_v51 = vmin.f32 %v7739_v2, 1.0  ;;  %v6479_v45 = vsub.f32 0.0, %v5841_v30  ;;  %v20804_v54 = vld [vmem:[#allocation76_spill] sm:$0xff]  ;;  %v20806_v33 = vsub.f32 1.0, %v20805_v26  ;;  %12097 = vmatprep.mubr.msk.bf16.mxu0 %vm4905_vm4, %v4886_v8 }
 0x452   : > { %v5852_v1 = vadd.f32 %v20804_v54, %v14727_v35  ;;  %v6867_v39 = vmul.f32 1.442695, %v6481_v4  ;;  %v17231_v22 = vmin.f32 %v7740_v47, 1.0  ;;  %v20808_v2 = vld [vmem:[#allocation120_spill] sm:$0xff]  ;;  %12098 = vmatmul.mubr.msk.bf16.gmra.mrb[108].mxu0 %vm4905_vm4, %v4887_v9  ;;  %v12834_v28 = vpop.eup %12833  ;;  %v20810_v4 = vld [vmem:[#allocation43_spill] sm:$0xff] }
 0x453   : > { %20803 = vst [vmem:[#allocation16_spill] sm:$0xff] %v17222_v51  ;;  %v9476_v0 = vsel %vm9423_vm5, %v20806_v33, %v16848_v24  ;;  %v4754_v50 = vmax.f32 %v4458_v18, 0.0  ;;  %v4450_v30 = vadd.f32 %v16910_v61, %v20808_v2  ;;  %8871 = vrot.lane.b32.xlu0 %v17222_v51, %s13463_s19  ;;  %v6863_v54 = vmul.f32 1.442695, %v6479_v45  ;;  %v20809_v33 = vld [vmem:[#allocation78_spill] sm:$0xff]  ;;  %v20812_v45 = vld [vmem:[#allocation79_spill] sm:$0xff] }
 0x454   : > { %20807 = vst [vmem:[#allocation112_spill] sm:$0xff] %v17231_v22  ;;  %9733 = vst.msk [vmem:[%s15908_s25 + $0x1a0] sm:$0xff] %vm9680_vm6, %v9476_v0  ;;  %v6482_v24 = vsub.f32 0.0, %v5852_v1  ;;  %v5844_v8 = vadd.f32 %v20809_v33, %v14727_v35  ;;  %v20811_v47 = vsub.f32 1.0, %v20810_v4  ;;  %v17246_v0 = vpop.eup %12835  ;;  %v7245_v26 = vadd.f32 1.0, %v12834_v28  ;;  %8873 = vrot.lane.b32.xlu1 %v17231_v22, %s13463_s19  ;;  %v20813_v51 = vld [vmem:[#allocation80_spill] sm:$0xff]  ;;  %v17262_v22 = vpop.permute.xlu1 %8805 }
 0x455   : > { %12849 = vpow2.f32 %v6867_v39  ;;  %v4752_v9 = vmax.f32 %v4450_v30, 0.0  ;;  %v4461_v1 = vadd.f32 %v16910_v61, %v20812_v45  ;;  %v17254_v2 = vpop.eup %12837  ;;  %v4453_v30 = vadd.f32 %v16910_v61, %v20813_v51  ;;  %v17264_v45 = vpop.f32.mrb[40].mxu0 }
 0x456   : > { %v9477_v18 = vsel %vm9423_vm5, %v20811_v47, %v16860_v23  ;;  %12851 = vpow2.f32 %v6863_v54  ;;  %v6869_v33 = vmul.f32 1.442695, %v6482_v24  ;;  %v6480_v4 = vsub.f32 0.0, %v5844_v8  ;;  %v17257_v47 = vpop.permute.xlu0 %8803  ;;  %v12840_v28 = vpop.eup %12839  ;;  %20814 = vst [vmem:[#allocation113_spill] sm:$0xff] %v17264_v45 }
 0x457   : > { %9734 = vst.msk [vmem:[%s15908_s25 + $0x1a8] sm:$0xff] %vm9680_vm6, %v9477_v18  ;;  %v7745_v23 = vmax.f32 %v17085_v3, 0.0  ;;  %12853 = vrcp.f32 %v7245_v26  ;;  %v4755_v39 = vmax.f32 %v4461_v1, 0.0  ;;  %v7746_v18 = vmax.f32 %v17102_v56, 0.0  ;;  %v12842_v14 = vpop.eup %12841  ;;  %v17268_v3 = vpop.f32.mrb[41].mxu0 }
 0x458   : > { %v7243_v54 = vadd.f32 1.0, %v12840_v28  ;;  %12855 = vpow2.f32 %v6869_v33  ;;  %v6865_v24 = vmul.f32 1.442695, %v6480_v4  ;;  %20816 = vst [vmem:[#allocation63_spill] sm:$0xff] %v17268_v3  ;;  %v12844_v48 = vpop.eup %12843  ;;  %v7246_v26 = vadd.f32 1.0, %v12842_v14  ;;  %v20818_v33 = vld [vmem:[#allocation97_spill] sm:$0xff] }
 0x459   : > { %v17266_v8 = vmin.f32 %v7745_v23, 1.0  ;;  %v4889_v1 = vpack.c.bf16 %v4755_v39, %v4754_v50  ;;  %v4753_v51 = vmax.f32 %v4453_v30, 0.0  ;;  %v17270_v32 = vmin.f32 %v7746_v18, 1.0  ;;  %v17272_v56 = vpop.eup %12845  ;;  %v20820_v28 = vld [vmem:[#allocation6_spill] sm:$0xff]  ;;  %v17284_v39 = vpop.f32.mrb[42].mxu0 }
 0x45a   : > { %12857 = vrcp.f32 %v7243_v54  ;;  %v7244_v45 = vadd.f32 1.0, %v12844_v48  ;;  %v20819_v4 = vsub.f32 1.0, %v20818_v33  ;;  %v20821_v14 = vsub.f32 1.0, %v20820_v28  ;;  %20822 = vst [vmem:[#allocation15_spill] sm:$0xff] %v17284_v39  ;;  %v17286_v30 = vpop.eup %12847  ;;  %v17297_v33 = vpop.f32.mrb[43].mxu0 }
 0x45b   : > { %20815 = vst [vmem:[#allocation115_spill] sm:$0xff] %v17266_v8  ;;  %20817 = vst [vmem:[#allocation116_spill] sm:$0xff] %v17270_v32  ;;  %8883 = vrot.lane.b32.xlu0 %v17266_v8, %s13463_s19  ;;  %12859 = vrcp.f32 %v7246_v26  ;;  %v4888_v18 = vpack.c.bf16 %v4753_v51, %v4752_v9  ;;  %8885 = vrot.lane.b32.xlu1 %v17270_v32, %s13463_s19  ;;  %v7743_v54 = vmax.f32 %v17092_v60, 0.0  ;;  %v7744_v9 = vmax.f32 %v17127_v59, 0.0  ;;  %v20826_v26 = vld [vmem:[#allocation81_spill] sm:$0xff]  ;;  %v17304_v28 = vpop.permute.xlu0 %8799  ;;  %v20828_v60 = vld [vmem:[#allocation122_spill] sm:$0xff] }
 0x45c   : > { %v9482_v23 = vsel %vm9423_vm5, %v20819_v4, %v16893_v63  ;;  %v9483_v50 = vsel %vm9423_vm5, %v20821_v14, %v16903_v11  ;;  %v20823_v63 = vld [vmem:[#allocation39_spill] sm:$0xff]  ;;  %20824 = vst [vmem:[#allocation65_spill] sm:$0xff] %v17297_v33  ;;  %12861 = vrcp.f32 %v7244_v45  ;;  %v20825_v11 = vld [vmem:[#allocation41_spill] sm:$0xff]  ;;  %v4474_v51 = vadd.f32 %v16910_v61, %v20826_v26  ;;  %v17311_v45 = vpop.permute.xlu1 %8801 }
 0x45d   : > { %9739 = vst.msk [vmem:[%s15908_s25 + $0x1d0] sm:$0xff] %vm9680_vm6, %v9482_v23  ;;  %9740 = vst.msk [vmem:[%s15908_s25 + $0x1d8] sm:$0xff] %vm9680_vm6, %v9483_v50  ;;  %v5865_v48 = vadd.f32 %v20823_v63, %v14727_v35  ;;  %v5857_v4 = vadd.f32 %v20825_v11, %v14727_v35  ;;  %12863 = vpow2.f32 %v6865_v24  ;;  %v17306_v14 = vmin.f32 %v7743_v54, 1.0  ;;  %12101 = vmatprep.mubr.msk.bf16.mxu0 %vm4905_vm4, %v4888_v18  ;;  %v20830_v26 = vld [vmem:[#allocation9_spill] sm:$0xff]  ;;  %v20832_v54 = vld [vmem:[#allocation24_spill] sm:$0xff] }
 0x45e   : > { %v5868_v50 = vadd.f32 %v20828_v60, %v14727_v35  ;;  %v17313_v11 = vmin.f32 %v7744_v9, 1.0  ;;  %v4758_v59 = vmax.f32 %v4474_v51, 0.0  ;;  %v20831_v32 = vsub.f32 1.0, %v20830_v26  ;;  %12102 = vmatmul.mubr.msk.bf16.gmra.mrb[112].mxu0 %vm4905_vm4, %v4889_v1  ;;  %v20833_v9 = vld [vmem:[#allocation25_spill] sm:$0xff] }
 0x45f   : > { %v6485_v23 = vsub.f32 0.0, %v5865_v48  ;;  %20827 = vst [vmem:[#allocation118_spill] sm:$0xff] %v17306_v14  ;;  %v6483_v63 = vsub.f32 0.0, %v5857_v4  ;;  %v12850_v24 = vpop.eup %12849  ;;  %8879 = vrot.lane.b32.xlu0 %v17306_v14, %s13463_s19  ;;  %v4466_v4 = vadd.f32 %v16910_v61, %v20832_v54  ;;  %v5860_v51 = vadd.f32 %v20833_v9, %v14727_v35 }
 0x460   : > { %20829 = vst [vmem:[#allocation18_spill] sm:$0xff] %v17313_v11  ;;  %v9480_v8 = vsel %vm9423_vm5, %v20831_v32, %v16941_v15  ;;  %v6486_v18 = vsub.f32 0.0, %v5868_v50  ;;  %v12852_v60 = vpop.eup %12851  ;;  %v7249_v26 = vadd.f32 1.0, %v12850_v24  ;;  %8881 = vrot.lane.b32.xlu1 %v17313_v11, %s13463_s19  ;;  %v20834_v32 = vld [vmem:[#allocation100_spill] sm:$0xff]  ;;  %v7749_v39 = vmax.f32 %v17164_v20, 0.0 }
 0x461   : > { %v6875_v48 = vmul.f32 1.442695, %v6485_v23  ;;  %9737 = vst.msk [vmem:[%s15908_s25 + $0x1c0] sm:$0xff] %vm9680_vm6, %v9480_v8  ;;  %v6871_v15 = vmul.f32 1.442695, %v6483_v63  ;;  %v20835_v1 = vsub.f32 1.0, %v20834_v32  ;;  %v17336_v14 = vpop.eup %12853  ;;  %v17341_v32 = vpop.permute.xlu0 %8811 }
 0x462   : > { %v20836_v50 = vld [vmem:[#allocation84_spill] sm:$0xff]  ;;  %v7247_v54 = vadd.f32 1.0, %v12852_v60  ;;  %v6877_v33 = vmul.f32 1.442695, %v6486_v18  ;;  %v4756_v9 = vmax.f32 %v4466_v4, 0.0  ;;  %v12856_v63 = vpop.eup %12855  ;;  %v6484_v24 = vsub.f32 0.0, %v5860_v51  ;;  %v17348_v18 = vpop.permute.xlu1 %8813 }
 0x463   : > { %v9481_v23 = vsel %vm9423_vm5, %v20835_v1, %v16954_v6  ;;  %v4477_v8 = vadd.f32 %v16910_v61, %v20836_v50  ;;  %12865 = vpow2.f32 %v6875_v48  ;;  %v17343_v6 = vpop.f32.mrb[44].mxu0  ;;  %v7250_v1 = vadd.f32 1.0, %v12856_v63  ;;  %v20838_v50 = vld [vmem:[#allocation23_spill] sm:$0xff] }
 0x464   : > { %9738 = vst.msk [vmem:[%s15908_s25 + $0x1c8] sm:$0xff] %vm9680_vm6, %v9481_v23  ;;  %12867 = vrcp.f32 %v7249_v26  ;;  %20837 = vst [vmem:[#allocation73_spill] sm:$0xff] %v17343_v6  ;;  %v4469_v60 = vadd.f32 %v16910_v61, %v20838_v50  ;;  %v7750_v48 = vmax.f32 %v17175_v41, 0.0  ;;  %v17350_v4 = vpop.f32.mrb[45].mxu0  ;;  %v17352_v51 = vpop.eup %12857  ;;  %v6873_v20 = vmul.f32 1.442695, %v6484_v24 }
 0x465   : > { %v4759_v11 = vmax.f32 %v4477_v8, 0.0  ;;  %12869 = vrcp.f32 %v7247_v54  ;;  %20839 = vst [vmem:[#allocation74_spill] sm:$0xff] %v17350_v4  ;;  %v17354_v23 = vmin.f32 %v7749_v39, 1.0  ;;  %v17356_v8 = vpop.f32.mrb[46].mxu0  ;;  %v17358_v54 = vpop.eup %12859  ;;  %v20842_v50 = vld [vmem:[#allocation8_spill] sm:$0xff]  ;;  %v20845_v39 = vld [vmem:[#allocation103_spill] sm:$0xff]  ;;  %v5881_v24 = vadd.f32 %v16575_v19, %v14727_v35 }
 0x466   : > { %12871 = vpow2.f32 %v6871_v15  ;;  %v4757_v63 = vmax.f32 %v4469_v60, 0.0  ;;  %v17360_v41 = vmin.f32 %v7750_v48, 1.0  ;;  %v20843_v4 = vsub.f32 1.0, %v20842_v50  ;;  %v17366_v3 = vpop.f32.mrb[47].mxu0  ;;  %v17368_v15 = vpop.eup %12861  ;;  %v20849_v19 = vld [vmem:[#allocation123_spill] sm:$0xff] }
 0x467   : > { %v4891_v26 = vpack.c.bf16 %v4759_v11, %v4758_v59  ;;  %20840 = vst [vmem:[#allocation67_spill] sm:$0xff] %v17354_v23  ;;  %12873 = vrcp.f32 %v7250_v1  ;;  %20844 = vst [vmem:[#allocation68_spill] sm:$0xff] %v17366_v3  ;;  %8891 = vrot.lane.b32.xlu0 %v17354_v23, %s13463_s19  ;;  %v20846_v11 = vsub.f32 1.0, %v20845_v39  ;;  %v12864_v1 = vpop.eup %12863  ;;  %v7748_v48 = vmax.f32 %v17215_v46, 0.0  ;;  %v20851_v39 = vld [vmem:[#allocation45_spill] sm:$0xff] }
 0x468   : > { %20841 = vst [vmem:[#allocation17_spill] sm:$0xff] %v17360_v41  ;;  %v9486_v6 = vsel %vm9423_vm5, %v20843_v4, %v16996_v37  ;;  %12875 = vpow2.f32 %v6877_v33  ;;  %v7747_v37 = vmax.f32 %v17170_v53, 0.0  ;;  %v4890_v60 = vpack.c.bf16 %v4757_v63, %v4756_v9  ;;  %8893 = vrot.lane.b32.xlu1 %v17360_v41, %s13463_s19  ;;  %v20847_v33 = vld [vmem:[#allocation27_spill] sm:$0xff]  ;;  %v20863_v23 = vld [vmem:[#allocation57_spill] sm:$0xff] }
 0x469   : > { %9743 = vst.msk [vmem:[%s15908_s25 + $0x1f0] sm:$0xff] %vm9680_vm6, %v9486_v6  ;;  %v9487_v59 = vsel %vm9423_vm5, %v20846_v11, %v17003_v43  ;;  %12877 = vpow2.f32 %v6873_v20  ;;  %v5873_v6 = vadd.f32 %v20847_v33, %v14727_v35  ;;  %v7248_v43 = vadd.f32 1.0, %v12864_v1  ;;  %v17392_v20 = vpop.permute.xlu0 %8807 }
 0x46a   : > { %9744 = vst.msk [vmem:[%s15908_s25 + $0x1f8] sm:$0xff] %vm9680_vm6, %v9487_v59  ;;  %v6489_v4 = vsub.f32 0.0, %v5881_v24  ;;  %v17388_v50 = vmin.f32 %v7747_v37, 1.0  ;;  %v4490_v53 = vadd.f32 %v16910_v61, %v20849_v19  ;;  %v17394_v63 = vmin.f32 %v7748_v48, 1.0  ;;  %v20852_v59 = vld [vmem:[#allocation105_spill] sm:$0xff]  ;;  %12105 = vmatprep.mubr.msk.bf16.mxu0 %vm4905_vm4, %v4890_v60  ;;  %v17403_v24 = vpop.permute.xlu1 %8809 }
 0x46b   : > { %v6487_v9 = vsub.f32 0.0, %v5873_v6  ;;  %v5884_v11 = vadd.f32 %v20851_v39, %v14727_v35  ;;  %v20853_v33 = vsub.f32 1.0, %v20852_v59  ;;  %12879 = vrcp.f32 %v7248_v43  ;;  %v20854_v6 = vld [vmem:[#allocation89_spill] sm:$0xff]  ;;  %12106 = vmatmul.mubr.msk.bf16.gmra.mrb[116].mxu0 %vm4905_vm4, %v4891_v26  ;;  %v20856_v39 = vld [vmem:[#allocation10_spill] sm:$0xff] }
 0x46c   : > { %20848 = vst [vmem:[#allocation69_spill] sm:$0xff] %v17388_v50  ;;  %20850 = vst [vmem:[#allocation77_spill] sm:$0xff] %v17394_v63  ;;  %v6883_v37 = vmul.f32 1.442695, %v6489_v4  ;;  %8887 = vrot.lane.b32.xlu0 %v17388_v50, %s13463_s19  ;;  %v4762_v1 = vmax.f32 %v4490_v53, 0.0  ;;  %v4482_v48 = vadd.f32 %v16910_v61, %v20854_v6  ;;  %8889 = vrot.lane.b32.xlu1 %v17394_v63, %s13463_s19  ;;  %v20855_v43 = vld [vmem:[#allocation29_spill] sm:$0xff] }
 0x46d   : > { %v9484_v46 = vsel %vm9423_vm5, %v20853_v33, %v17041_v52  ;;  %v12866_v19 = vpop.eup %12865  ;;  %v6879_v52 = vmul.f32 1.442695, %v6487_v9  ;;  %v6490_v60 = vsub.f32 0.0, %v5884_v11  ;;  %v5876_v4 = vadd.f32 %v20855_v43, %v14727_v35  ;;  %v20858_v26 = vld [vmem:[#allocation90_spill] sm:$0xff] }
 0x46e   : > { %9741 = vst.msk [vmem:[%s15908_s25 + $0x1e0] sm:$0xff] %vm9680_vm6, %v9484_v46  ;;  %v20857_v59 = vsub.f32 1.0, %v20856_v39  ;;  %v17420_v33 = vpop.eup %12867  ;;  %v7253_v46 = vadd.f32 1.0, %v12866_v19  ;;  %12881 = vpow2.f32 %v6883_v37  ;;  %v4760_v6 = vmax.f32 %v4482_v48, 0.0  ;;  %v17432_v48 = vpop.permute.xlu0 %8819 }
 0x46f   : > { %v4493_v9 = vadd.f32 %v16910_v61, %v20858_v26  ;;  %v17426_v63 = vpop.eup %12869  ;;  %12883 = vpow2.f32 %v6879_v52  ;;  %v6885_v11 = vmul.f32 1.442695, %v6490_v60  ;;  %v6488_v43 = vsub.f32 0.0, %v5876_v4 }
 0x470   : > { %v9485_v53 = vsel %vm9423_vm5, %v20857_v59, %v17046_v40  ;;  %v7753_v50 = vmax.f32 %v17246_v0, 0.0  ;;  %v12872_v39 = vpop.eup %12871  ;;  %12885 = vrcp.f32 %v7253_v46  ;;  %v20859_v59 = vld [vmem:[#allocation28_spill] sm:$0xff]  ;;  %v7754_v37 = vmax.f32 %v17272_v56, 0.0  ;;  %v17440_v0 = vpop.permute.xlu1 %8821 }
 0x471   : > { %9742 = vst.msk [vmem:[%s15908_s25 + $0x1e8] sm:$0xff] %vm9680_vm6, %v9485_v53  ;;  %v4763_v40 = vmax.f32 %v4493_v9, 0.0  ;;  %v4485_v19 = vadd.f32 %v16910_v61, %v20859_v59  ;;  %v17434_v53 = vpop.f32.mrb[48].mxu0  ;;  %v17436_v26 = vpop.eup %12873  ;;  %v7251_v41 = vadd.f32 1.0, %v12872_v39  ;;  %12887 = vpow2.f32 %v6885_v11 }
 0x472   : > { %20860 = vst [vmem:[#allocation70_spill] sm:$0xff] %v17434_v53  ;;  %v6881_v52 = vmul.f32 1.442695, %v6488_v43  ;;  %v17438_v60 = vmin.f32 %v7753_v50, 1.0  ;;  %v17442_v4 = vpop.f32.mrb[49].mxu0  ;;  %v12876_v46 = vpop.eup %12875  ;;  %v17444_v56 = vmin.f32 %v7754_v37, 1.0 }
 0x473   : > { %v4893_v9 = vpack.c.bf16 %v4763_v40, %v4762_v1  ;;  %v4761_v59 = vmax.f32 %v4485_v19, 0.0  ;;  %v20864_v53 = vsub.f32 1.0, %v20863_v23  ;;  %v17450_v3 = vpop.f32.mrb[50].mxu0  ;;  %v12878_v11 = vpop.eup %12877  ;;  %12889 = vrcp.f32 %v7251_v41  ;;  %v20865_v1 = vld [vmem:[#allocation11_spill] sm:$0xff] }
 0x474   : > { %20861 = vst [vmem:[#allocation20_spill] sm:$0xff] %v17438_v60  ;;  %20862 = vst [vmem:[#allocation83_spill] sm:$0xff] %v17444_v56  ;;  %v7254_v50 = vadd.f32 1.0, %v12876_v46  ;;  %8899 = vrot.lane.b32.xlu0 %v17438_v60, %s13463_s19  ;;  %v20866_v43 = vsub.f32 1.0, %v20865_v1  ;;  %v5897_v23 = vadd.f32 %v16670_v17, %v14727_v35  ;;  %v17462_v19 = vpop.f32.mrb[51].mxu0  ;;  %12891 = vpow2.f32 %v6881_v52  ;;  %8901 = vrot.lane.b32.xlu1 %v17444_v56, %s13463_s19 }
 0x475   : > { %v9490_v39 = vsel %vm9423_vm5, %v20864_v53, %v17080_v44  ;;  %v7252_v44 = vadd.f32 1.0, %v12878_v11  ;;  %v4892_v37 = vpack.c.bf16 %v4761_v59, %v4760_v6  ;;  %v7751_v41 = vmax.f32 %v17254_v2, 0.0  ;;  %v17472_v17 = vpop.eup %12879  ;;  %v20868_v6 = vld [vmem:[#allocation30_spill] sm:$0xff]  ;;  %v17481_v2 = vpop.permute.xlu0 %8815 }
 0x476   : > { %9747 = vst.msk [vmem:[%s15908_s25 + $0x210] sm:$0xff] %vm9680_vm6, %v9490_v39  ;;  %v9491_v40 = vsel %vm9423_vm5, %v20866_v43, %v17082_v5  ;;  %12893 = vrcp.f32 %v7254_v50  ;;  %v6493_v53 = vsub.f32 0.0, %v5897_v23  ;;  %v5889_v5 = vadd.f32 %v16676_v13, %v14727_v35 }
 0x477   : > { %9748 = vst.msk [vmem:[%s15908_s25 + $0x218] sm:$0xff] %vm9680_vm6, %v9491_v40  ;;  %v7752_v46 = vmax.f32 %v17286_v30, 0.0  ;;  %12895 = vrcp.f32 %v7252_v44  ;;  %v17474_v52 = vmin.f32 %v7751_v41, 1.0  ;;  %v4506_v59 = vadd.f32 %v16910_v61, %v20868_v6  ;;  %12109 = vmatprep.mubr.msk.bf16.mxu0 %vm4905_vm4, %v4892_v37  ;;  %v20870_v30 = vld [vmem:[#allocation58_spill] sm:$0xff]  ;;  %v17490_v40 = vpop.permute.xlu1 %8817 }
 0x478   : > { %v5900_v39 = vadd.f32 %v16686_v42, %v14727_v35  ;;  %v6891_v11 = vmul.f32 1.442695, %v6493_v53  ;;  %v6491_v13 = vsub.f32 0.0, %v5889_v5  ;;  %v20871_v1 = vsub.f32 1.0, %v20870_v30  ;;  %12110 = vmatmul.mubr.msk.bf16.gmra.mrb[120].mxu0 %vm4905_vm4, %v4893_v9  ;;  %v12882_v23 = vpop.eup %12881  ;;  %v20872_v37 = vld [vmem:[#allocation46_spill] sm:$0xff] }
 0x479   : > { %20867 = vst [vmem:[#allocation72_spill] sm:$0xff] %v17474_v52  ;;  %v17483_v50 = vmin.f32 %v7752_v46, 1.0  ;;  %8895 = vrot.lane.b32.xlu0 %v17474_v52, %s13463_s19  ;;  %v4766_v42 = vmax.f32 %v4506_v59, 0.0  ;;  %v4498_v41 = vadd.f32 %v16910_v61, %v20872_v37  ;;  %v5892_v53 = vadd.f32 %v16697_v25, %v14727_v35  ;;  %v20873_v46 = vld [vmem:[#allocation59_spill] sm:$0xff] }
 0x47a   : > { %v9488_v43 = vsel %vm9423_vm5, %v20871_v1, %v17123_v57  ;;  %v6494_v44 = vsub.f32 0.0, %v5900_v39  ;;  %v12884_v57 = vpop.eup %12883  ;;  %v7257_v5 = vadd.f32 1.0, %v12882_v23  ;;  %12897 = vpow2.f32 %v6891_v11  ;;  %v20875_v11 = vld [vmem:[#allocation94_spill] sm:$0xff] }
 0x47b   : > { %20869 = vst [vmem:[#allocation85_spill] sm:$0xff] %v17483_v50  ;;  %9745 = vst.msk [vmem:[%s15908_s25 + $0x200] sm:$0xff] %vm9680_vm6, %v9488_v43  ;;  %v6887_v9 = vmul.f32 1.442695, %v6491_v13  ;;  %8897 = vrot.lane.b32.xlu1 %v17483_v50, %s13463_s19  ;;  %v20874_v6 = vsub.f32 1.0, %v20873_v46  ;;  %v17506_v39 = vpop.eup %12885  ;;  %v7255_v30 = vadd.f32 1.0, %v12884_v57  ;;  %v4509_v13 = vadd.f32 %v16910_v61, %v20875_v11  ;;  %v17524_v11 = vpop.permute.xlu1 %8829 }
 0x47c   : > { %v6893_v1 = vmul.f32 1.442695, %v6494_v44  ;;  %v4764_v43 = vmax.f32 %v4498_v41, 0.0  ;;  %v6492_v37 = vsub.f32 0.0, %v5892_v53  ;;  %v12888_v25 = vpop.eup %12887  ;;  %12899 = vrcp.f32 %v7257_v5  ;;  %v20876_v50 = vld [vmem:[#allocation95_spill] sm:$0xff]  ;;  %v17516_v44 = vpop.permute.xlu0 %8827 }
 0x47d   : > { %v9489_v59 = vsel %vm9423_vm5, %v20874_v6, %v17134_v21  ;;  %v7757_v23 = vmax.f32 %v17336_v14, 0.0  ;;  %v4501_v46 = vadd.f32 %v16910_v61, %v20876_v50  ;;  %12901 = vrcp.f32 %v7255_v30  ;;  %v17518_v41 = vpop.f32.mrb[52].mxu0  ;;  %v17520_v53 = vpop.eup %12889  ;;  %v20878_v30 = vld [vmem:[#allocation114_spill] sm:$0xff] }
 0x47e   : > { %9746 = vst.msk [vmem:[%s15908_s25 + $0x208] sm:$0xff] %vm9680_vm6, %v9489_v59  ;;  %v7258_v21 = vadd.f32 1.0, %v12888_v25  ;;  %v6889_v6 = vmul.f32 1.442695, %v6492_v37  ;;  %v7758_v57 = vmax.f32 %v17358_v54, 0.0  ;;  %12903 = vpow2.f32 %v6887_v9  ;;  %v17526_v61 = vpop.f32.mrb[53].mxu0  ;;  %v12892_v50 = vpop.eup %12891 }
 0x47f   : > { %v4767_v5 = vmax.f32 %v4509_v13, 0.0  ;;  %v17522_v59 = vmin.f32 %v7757_v23, 1.0  ;;  %v4765_v14 = vmax.f32 %v4501_v46, 0.0  ;;  %v20879_v37 = vsub.f32 1.0, %v20878_v30  ;;  %v20880_v9 = vld [vmem:[#allocation117_spill] sm:$0xff]  ;;  %v17538_v46 = vpop.f32.mrb[54].mxu0 }
 0x480   : > { %12905 = vrcp.f32 %v7258_v21  ;;  %v17528_v54 = vmin.f32 %v7758_v57, 1.0  ;;  %v20881_v13 = vsub.f32 1.0, %v20880_v9  ;;  %v17540_v52 = vpop.eup %12893  ;;  %v7256_v56 = vadd.f32 1.0, %v12892_v50  ;;  %v20883_v50 = vld [vmem:[#allocation64_spill] sm:$0xff] }
 0x481   : > { %v9494_v25 = vsel %vm9423_vm5, %v20879_v37, %v17168_v16  ;;  %12907 = vpow2.f32 %v6893_v1  ;;  %v4895_v60 = vpack.c.bf16 %v4767_v5, %v4766_v42  ;;  %8907 = vrot.lane.b32.xlu0 %v17522_v59, %s13463_s19  ;;  %v4894_v21 = vpack.c.bf16 %v4765_v14, %v4764_v43  ;;  %v17548_v16 = vpop.f32.mrb[55].mxu0  ;;  %v17550_v57 = vpop.eup %12895  ;;  %v20882_v5 = vld [vmem:[#allocation98_spill] sm:$0xff] }
 0x482   : > { %20877 = vst [vmem:[#allocation87_spill] sm:$0xff] %v17528_v54  ;;  %v9495_v23 = vsel %vm9423_vm5, %v20881_v13, %v17173_v58  ;;  %9751 = vst.msk [vmem:[%s15908_s25 + $0x230] sm:$0xff] %vm9680_vm6, %v9494_v25  ;;  %12909 = vpow2.f32 %v6889_v6  ;;  %8909 = vrot.lane.b32.xlu1 %v17528_v54, %s13463_s19  ;;  %v5913_v58 = vadd.f32 %v16745_v7, %v14727_v35  ;;  %v7755_v42 = vmax.f32 %v17352_v51, 0.0  ;;  %v20888_v13 = vld [vmem:[#allocation66_spill] sm:$0xff] }
 0x483   : > { %9752 = vst.msk [vmem:[%s15908_s25 + $0x238] sm:$0xff] %vm9680_vm6, %v9495_v23  ;;  %v5905_v1 = vadd.f32 %v16756_v31, %v14727_v35  ;;  %12911 = vrcp.f32 %v7256_v56  ;;  %v7756_v43 = vmax.f32 %v17368_v15, 0.0  ;;  %v5916_v14 = vadd.f32 %v20882_v5, %v14727_v35  ;;  %12113 = vmatprep.mubr.msk.bf16.mxu0 %vm4905_vm4, %v4894_v21  ;;  %v20886_v31 = vld [vmem:[#allocation35_spill] sm:$0xff]  ;;  %v17574_v56 = vpop.permute.xlu0 %8823 }
 0x484   : > { %v20884_v6 = vsub.f32 1.0, %v20883_v50  ;;  %v6497_v37 = vsub.f32 0.0, %v5913_v58  ;;  %v17567_v7 = vmin.f32 %v7755_v42, 1.0  ;;  %v5908_v15 = vadd.f32 %v20886_v31, %v14727_v35  ;;  %12114 = vmatmul.mubr.msk.bf16.gmra.mrb[124].mxu0 %vm4905_vm4, %v4895_v60  ;;  %v12898_v25 = vpop.eup %12897  ;;  %v17583_v42 = vpop.permute.xlu1 %8825 }
 0x485   : > { %v6495_v51 = vsub.f32 0.0, %v5905_v1  ;;  %v17576_v9 = vmin.f32 %v7756_v43, 1.0  ;;  %v20889_v23 = vsub.f32 1.0, %v20888_v13  ;;  %v7761_v58 = vmax.f32 %v17420_v33, 0.0  ;;  %v20895_v13 = vld [vmem:[#allocation37_spill] sm:$0xff] }
 0x486   : > { %v9492_v30 = vsel %vm9423_vm5, %v20884_v6, %v17213_v12  ;;  %20885 = vst [vmem:[#allocation22_spill] sm:$0xff] %v17567_v7  ;;  %v6498_v12 = vsub.f32 0.0, %v5916_v14  ;;  %v7261_v1 = vadd.f32 1.0, %v12898_v25  ;;  %v6899_v5 = vmul.f32 1.442695, %v6497_v37  ;;  %8903 = vrot.lane.b32.xlu0 %v17567_v7, %s13463_s19  ;;  %v17589_v43 = vpop.eup %12899  ;;  %v20891_v6 = vld [vmem:[#allocation71_spill] sm:$0xff] }
 0x487   : > { %9749 = vst.msk [vmem:[%s15908_s25 + $0x220] sm:$0xff] %vm9680_vm6, %v9492_v30  ;;  %20887 = vst [vmem:[#allocation75_spill] sm:$0xff] %v17576_v9  ;;  %v9493_v21 = vsel %vm9423_vm5, %v20889_v23, %v17220_v27  ;;  %v6895_v60 = vmul.f32 1.442695, %v6495_v51  ;;  %v6496_v50 = vsub.f32 0.0, %v5908_v15  ;;  %8905 = vrot.lane.b32.xlu1 %v17576_v9, %s13463_s19  ;;  %v17593_v33 = vmin.f32 %v7761_v58, 1.0  ;;  %v17600_v51 = vpop.eup %12901 }
 0x488   : > { %9750 = vst.msk [vmem:[%s15908_s25 + $0x228] sm:$0xff] %vm9680_vm6, %v9493_v21  ;;  %v6901_v27 = vmul.f32 1.442695, %v6498_v12  ;;  %v7762_v14 = vmax.f32 %v17436_v26, 0.0  ;;  %v20892_v30 = vsub.f32 1.0, %v20891_v6  ;;  %12913 = vrcp.f32 %v7261_v1  ;;  %v20893_v15 = vld [vmem:[#allocation19_spill] sm:$0xff]  ;;  %v12904_v26 = vpop.eup %12903 }
 0x489   : > { %20890 = vst [vmem:[#allocation119_spill] sm:$0xff] %v17593_v33  ;;  %v6897_v31 = vmul.f32 1.442695, %v6496_v50  ;;  %v20894_v25 = vsub.f32 1.0, %v20893_v15  ;;  %v5929_v23 = vadd.f32 %v20895_v13, %v14727_v35  ;;  %12915 = vpow2.f32 %v6899_v5  ;;  %v20897_v58 = vld [vmem:[#allocation102_spill] sm:$0xff]  ;;  %v17617_v50 = vpop.f32.mrb[56].mxu0  ;;  %v17634_v13 = vpop.permute.xlu1 %8837 }
 0x48a   : > { %v9498_v37 = vsel %vm9423_vm5, %v20892_v30, %v17257_v47  ;;  %v17610_v21 = vmin.f32 %v7762_v14, 1.0  ;;  %v7759_v47 = vmax.f32 %v17426_v63, 0.0  ;;  %v5921_v1 = vadd.f32 %v20897_v58, %v14727_v35  ;;  %v17619_v6 = vpop.eup %12905  ;;  %8915 = vrot.lane.b32.xlu0 %v17593_v33, %s13463_s19  ;;  %v17624_v14 = vpop.permute.xlu0 %8835  ;;  %v20904_v7 = vld [vmem:[#allocation121_spill] sm:$0xff] }
 0x48b   : > { %9755 = vst.msk [vmem:[%s15908_s25 + $0x250] sm:$0xff] %vm9680_vm6, %v9498_v37  ;;  %v9499_v12 = vsel %vm9423_vm5, %v20894_v25, %v17262_v22  ;;  %v7259_v30 = vadd.f32 1.0, %v12904_v26  ;;  %12917 = vpow2.f32 %v6895_v60  ;;  %v6501_v22 = vsub.f32 0.0, %v5929_v23  ;;  %v17626_v37 = vpop.f32.mrb[57].mxu0  ;;  %v12908_v63 = vpop.eup %12907  ;;  %v20899_v60 = vld [vmem:[#allocation51_spill] sm:$0xff] }
 0x48c   : > { %20896 = vst [vmem:[#allocation76_spill] sm:$0xff] %v17610_v21  ;;  %9756 = vst.msk [vmem:[%s15908_s25 + $0x258] sm:$0xff] %vm9680_vm6, %v9499_v12  ;;  %v7760_v5 = vmax.f32 %v17472_v17, 0.0  ;;  %12919 = vpow2.f32 %v6901_v27  ;;  %8917 = vrot.lane.b32.xlu1 %v17610_v21, %s13463_s19  ;;  %v17630_v15 = vmin.f32 %v7759_v47, 1.0  ;;  %v6499_v25 = vsub.f32 0.0, %v5921_v1  ;;  %v17636_v23 = vpop.f32.mrb[58].mxu0  ;;  %v12910_v17 = vpop.eup %12909 }
 0x48d   : > { %v5932_v12 = vadd.f32 %v20899_v60, %v14727_v35  ;;  %12921 = vrcp.f32 %v7259_v30  ;;  %v7262_v26 = vadd.f32 1.0, %v12908_v63  ;;  %v6907_v58 = vmul.f32 1.442695, %v6501_v22  ;;  %v17640_v27 = vpop.f32.mrb[59].mxu0  ;;  %v17642_v47 = vpop.eup %12911  ;;  %v20901_v30 = vld [vmem:[#allocation21_spill] sm:$0xff] }
 0x48e   : > { %20898 = vst [vmem:[#allocation42_spill] sm:$0xff] %v17630_v15  ;;  %v17638_v33 = vmin.f32 %v7760_v5, 1.0  ;;  %v7260_v1 = vadd.f32 1.0, %v12910_v17  ;;  %12923 = vpow2.f32 %v6897_v31  ;;  %v6903_v21 = vmul.f32 1.442695, %v6499_v25  ;;  %8911 = vrot.lane.b32.xlu0 %v17630_v15, %s13463_s19  ;;  %v20903_v5 = vld [vmem:[#allocation38_spill] sm:$0xff] }
 0x48f   : > { %v6502_v60 = vsub.f32 0.0, %v5932_v12  ;;  %12925 = vrcp.f32 %v7262_v26  ;;  %v20902_v63 = vsub.f32 1.0, %v20901_v30  ;;  %v5924_v9 = vadd.f32 %v20903_v5, %v14727_v35  ;;  %v20908_v26 = vld [vmem:[#allocation26_spill] sm:$0xff]  ;;  %v17672_v30 = vpop.permute.xlu0 %8831 }
 0x490   : > { %20900 = vst [vmem:[#allocation120_spill] sm:$0xff] %v17638_v33  ;;  %v20905_v54 = vsub.f32 1.0, %v20904_v7  ;;  %12927 = vrcp.f32 %v7260_v1  ;;  %8913 = vrot.lane.b32.xlu1 %v17638_v33, %s13463_s19  ;;  %v7766_v25 = vmax.f32 %v17540_v52, 0.0  ;;  %v20906_v7 = vld [vmem:[#allocation82_spill] sm:$0xff]  ;;  %v20909_v1 = vsub.f32 1.0, %v20908_v26 }
 0x491   : > { %v9496_v22 = vsel %vm9423_vm5, %v20902_v63, %v17304_v28  ;;  %v6909_v31 = vmul.f32 1.442695, %v6502_v60  ;;  %v7765_v28 = vmax.f32 %v17506_v39, 0.0  ;;  %12929 = vpow2.f32 %v6907_v58 }
 0x492   : > { %v9497_v17 = vsel %vm9423_vm5, %v20905_v54, %v17311_v45  ;;  %9753 = vst.msk [vmem:[%s15908_s25 + $0x240] sm:$0xff] %vm9680_vm6, %v9496_v22  ;;  %v6500_v12 = vsub.f32 0.0, %v5924_v9  ;;  %v20907_v45 = vsub.f32 1.0, %v20906_v7  ;;  %v9503_v60 = vsel %vm9423_vm5, %v20909_v1, %v17348_v18  ;;  %v17686_v9 = vpop.eup %12913 }
 0x493   : > { %9754 = vst.msk [vmem:[%s15908_s25 + $0x248] sm:$0xff] %vm9680_vm6, %v9497_v17  ;;  %12931 = vpow2.f32 %v6903_v21  ;;  %v17674_v63 = vmin.f32 %v7765_v28, 1.0  ;;  %v17676_v39 = vmin.f32 %v7766_v25, 1.0  ;;  %9760 = vst.msk [vmem:[%s15908_s25 + $0x278] sm:$0xff] %vm9680_vm6, %v9503_v60  ;;  %v5945_v52 = vadd.f32 %v16924_v29, %v14727_v35  ;;  %v12916_v22 = vpop.eup %12915 }
 0x494   : > { %v9502_v54 = vsel %vm9423_vm5, %v20907_v45, %v17341_v32  ;;  %v17684_v32 = vpop.permute.xlu1 %8833  ;;  %12933 = vpow2.f32 %v6909_v31  ;;  %v6905_v18 = vmul.f32 1.442695, %v6500_v12  ;;  %v7763_v21 = vmax.f32 %v17520_v53, 0.0  ;;  %v20912_v31 = vld [vmem:[#allocation86_spill] sm:$0xff] }
 0x495   : > { %20910 = vst [vmem:[#allocation78_spill] sm:$0xff] %v17674_v63  ;;  %20911 = vst [vmem:[#allocation43_spill] sm:$0xff] %v17676_v39  ;;  %v5937_v58 = vadd.f32 %v16930_v49, %v14727_v35  ;;  %8923 = vrot.lane.b32.xlu0 %v17674_v63, %s13463_s19  ;;  %8925 = vrot.lane.b32.xlu1 %v17676_v39, %s13463_s19  ;;  %v6505_v29 = vsub.f32 0.0, %v5945_v52  ;;  %v7764_v5 = vmax.f32 %v17550_v57, 0.0  ;;  %v20913_v28 = vsub.f32 1.0, %v20912_v31  ;;  %v12918_v25 = vpop.eup %12917 }
 0x496   : > { %9759 = vst.msk [vmem:[%s15908_s25 + $0x270] sm:$0xff] %vm9680_vm6, %v9502_v54  ;;  %v5948_v17 = vadd.f32 %v16936_v55, %v14727_v35  ;;  %v7265_v49 = vadd.f32 1.0, %v12916_v22  ;;  %12935 = vpow2.f32 %v6905_v18  ;;  %v17702_v12 = vmin.f32 %v7763_v21, 1.0  ;;  %v12920_v45 = vpop.eup %12919  ;;  %v17712_v18 = vpop.permute.xlu0 %8843  ;;  %v20916_v22 = vld [vmem:[#allocation88_spill] sm:$0xff] }
 0x497   : > { %v9500_v53 = vsel %vm9423_vm5, %v20913_v28, %v17392_v20  ;;  %v6503_v7 = vsub.f32 0.0, %v5937_v58  ;;  %v7263_v54 = vadd.f32 1.0, %v12918_v25  ;;  %v6915_v26 = vmul.f32 1.442695, %v6505_v29  ;;  %v17708_v55 = vpop.eup %12921 }
 0x498   : > { %20914 = vst [vmem:[#allocation79_spill] sm:$0xff] %v17702_v12  ;;  %9757 = vst.msk [vmem:[%s15908_s25 + $0x260] sm:$0xff] %vm9680_vm6, %v9500_v53  ;;  %v17706_v57 = vmin.f32 %v7764_v5, 1.0  ;;  %v6506_v1 = vsub.f32 0.0, %v5948_v17  ;;  %12937 = vrcp.f32 %v7265_v49  ;;  %v7266_v60 = vadd.f32 1.0, %v12920_v45  ;;  %v12924_v21 = vpop.eup %12923  ;;  %v17723_v31 = vpop.permute.xlu1 %8845  ;;  %v20919_v45 = vld [vmem:[#allocation91_spill] sm:$0xff] }
 0x499   : > { %v6911_v52 = vmul.f32 1.442695, %v6503_v7  ;;  %v5940_v20 = vadd.f32 %v16943_v38, %v14727_v35  ;;  %12939 = vrcp.f32 %v7263_v54  ;;  %8919 = vrot.lane.b32.xlu0 %v17702_v12, %s13463_s19  ;;  %v20917_v29 = vsub.f32 1.0, %v20916_v22  ;;  %v17725_v38 = vpop.f32.mrb[60].mxu0  ;;  %v17727_v28 = vpop.eup %12925 }
 0x49a   : > { %20915 = vst [vmem:[#allocation80_spill] sm:$0xff] %v17706_v57  ;;  %8921 = vrot.lane.b32.xlu1 %v17706_v57, %s13463_s19  ;;  %v6917_v58 = vmul.f32 1.442695, %v6506_v1  ;;  %v7769_v17 = vmax.f32 %v17589_v43, 0.0  ;;  %12941 = vrcp.f32 %v7266_v60  ;;  %v7264_v53 = vadd.f32 1.0, %v12924_v21  ;;  %v17732_v7 = vpop.f32.mrb[61].mxu0 }
 0x49b   : > { %v9501_v5 = vsel %vm9423_vm5, %v20917_v29, %v17403_v24  ;;  %v6504_v25 = vsub.f32 0.0, %v5940_v20  ;;  %v7770_v49 = vmax.f32 %v17619_v6, 0.0  ;;  %v17734_v24 = vpop.eup %12927  ;;  %12943 = vpow2.f32 %v6915_v26  ;;  %v20921_v60 = vld [vmem:[#allocation92_spill] sm:$0xff]  ;;  %v17746_v22 = vpop.f32.mrb[62].mxu0 }
 0x49c   : > { %9758 = vst.msk [vmem:[%s15908_s25 + $0x268] sm:$0xff] %vm9680_vm6, %v9501_v5  ;;  %v17736_v43 = vmin.f32 %v7769_v17, 1.0  ;;  %v20920_v54 = vsub.f32 1.0, %v20919_v45  ;;  %v20922_v21 = vsub.f32 1.0, %v20921_v60  ;;  %v12930_v6 = vpop.eup %12929  ;;  %12945 = vrcp.f32 %v7264_v53 }
 0x49d   : > { %v6913_v29 = vmul.f32 1.442695, %v6504_v25  ;;  %v17748_v5 = vmin.f32 %v7770_v49, 1.0  ;;  %v5961_v26 = vadd.f32 %v17008_v34, %v14727_v35  ;;  %v12932_v17 = vpop.eup %12931  ;;  %v7269_v45 = vadd.f32 1.0, %v12930_v6 }
 0x49e   : > { %20918 = vst [vmem:[#allocation97_spill] sm:$0xff] %v17736_v43  ;;  %v9506_v1 = vsel %vm9423_vm5, %v20920_v54, %v17432_v48  ;;  %v9507_v20 = vsel %vm9423_vm5, %v20922_v21, %v17440_v0  ;;  %v17756_v48 = vpop.f32.mrb[63].mxu0  ;;  %12947 = vpow2.f32 %v6911_v52  ;;  %8931 = vrot.lane.b32.xlu0 %v17736_v43, %s13463_s19  ;;  %v7767_v0 = vmax.f32 %v17600_v51, 0.0  ;;  %v12934_v25 = vpop.eup %12933 }
 0x49f   : > { %20923 = vst [vmem:[#allocation6_spill] sm:$0xff] %v17748_v5  ;;  %9763 = vst.msk [vmem:[%s15908_s25 + $0x290] sm:$0xff] %vm9680_vm6, %v9506_v1  ;;  %v5953_v53 = vadd.f32 %v17012_v36, %v14727_v35  ;;  %v7267_v49 = vadd.f32 1.0, %v12932_v17  ;;  %12949 = vpow2.f32 %v6917_v58  ;;  %8933 = vrot.lane.b32.xlu1 %v17748_v5, %s13463_s19  ;;  %v6509_v34 = vsub.f32 0.0, %v5961_v26  ;;  %v17766_v1 = vpop.permute.xlu0 %8839  ;;  %v17770_v51 = vpop.permute.xlu1 %8841  ;;  %v20926_v17 = vld [vmem:[#allocation44_spill] sm:$0xff] }
 0x4a0   : > { %9764 = vst.msk [vmem:[%s15908_s25 + $0x298] sm:$0xff] %vm9680_vm6, %v9507_v20  ;;  %v7768_v54 = vmax.f32 %v17642_v47, 0.0  ;;  %12951 = vrcp.f32 %v7269_v45  ;;  %v7270_v52 = vadd.f32 1.0, %v12934_v25  ;;  %v17768_v60 = vmin.f32 %v7767_v0, 1.0  ;;  %v12936_v36 = vpop.eup %12935 }
 0x4a1   : > { %v6507_v21 = vsub.f32 0.0, %v5953_v53  ;;  %12953 = vrcp.f32 %v7267_v49  ;;  %v6923_v20 = vmul.f32 1.442695, %v6509_v34  ;;  %v5964_v6 = vadd.f32 %v17016_v10, %v14727_v35  ;;  %v20928_v10 = vld [vmem:[#allocation109_spill] sm:$0xff] }
 0x4a2   : > { %20924 = vst [vmem:[#allocation39_spill] sm:$0xff] %v17768_v60  ;;  %v17772_v58 = vmin.f32 %v7768_v54, 1.0  ;;  %12955 = vrcp.f32 %v7270_v52  ;;  %v7268_v47 = vadd.f32 1.0, %v12936_v36  ;;  %8927 = vrot.lane.b32.xlu0 %v17768_v60, %s13463_s19  ;;  %v20927_v45 = vsub.f32 1.0, %v20926_v17  ;;  %v17782_v53 = vpop.eup %12937  ;;  %v20929_v34 = vld [vmem:[#allocation93_spill] sm:$0xff]  ;;  %v20931_v36 = vld [vmem:[#allocation32_spill] sm:$0xff] }
 0x4a3   : > { %v6919_v26 = vmul.f32 1.442695, %v6507_v21  ;;  %12957 = vpow2.f32 %v6913_v29  ;;  %v6510_v25 = vsub.f32 0.0, %v5964_v6  ;;  %v5956_v49 = vadd.f32 %v20928_v10, %v14727_v35  ;;  %v17794_v21 = vpop.eup %12939 }
 0x4a4   : > { %20925 = vst [vmem:[#allocation41_spill] sm:$0xff] %v17772_v58  ;;  %v9504_v0 = vsel %vm9423_vm5, %v20927_v45, %v17481_v2  ;;  %8929 = vrot.lane.b32.xlu1 %v17772_v58, %s13463_s19  ;;  %v20930_v54 = vsub.f32 1.0, %v20929_v34  ;;  %12959 = vrcp.f32 %v7268_v47  ;;  %v7773_v2 = vmax.f32 %v17686_v9, 0.0  ;;  %v17804_v45 = vpop.eup %12941  ;;  %v20933_v47 = vld [vmem:[#allocation96_spill] sm:$0xff]  ;;  %v17812_v9 = vpop.permute.xlu0 %8851 }
 0x4a5   : > { %9761 = vst.msk [vmem:[%s15908_s25 + $0x280] sm:$0xff] %vm9680_vm6, %v9504_v0  ;;  %v7774_v29 = vmax.f32 %v17727_v28, 0.0  ;;  %v20932_v6 = vsub.f32 1.0, %v20931_v36  ;;  %12961 = vpow2.f32 %v6923_v20  ;;  %v6925_v0 = vmul.f32 1.442695, %v6510_v25  ;;  %v12944_v28 = vpop.eup %12943  ;;  %v17822_v25 = vpop.permute.xlu1 %8853 }
 0x4a6   : > { %v9505_v52 = vsel %vm9423_vm5, %v20930_v54, %v17490_v40  ;;  %v6508_v40 = vsub.f32 0.0, %v5956_v49  ;;  %v20934_v10 = vsub.f32 1.0, %v20933_v47  ;;  %12963 = vpow2.f32 %v6919_v26  ;;  %v17824_v49 = vpop.f32.mrb[64].mxu0  ;;  %v17826_v36 = vpop.eup %12945  ;;  %v20938_v47 = vld [vmem:[#allocation111_spill] sm:$0xff] }
 0x4a7   : > { %9762 = vst.msk [vmem:[%s15908_s25 + $0x288] sm:$0xff] %vm9680_vm6, %v9505_v52  ;;  %v9510_v17 = vsel %vm9423_vm5, %v20932_v6, %v17516_v44  ;;  %v17814_v54 = vmin.f32 %v7773_v2, 1.0  ;;  %v17816_v52 = vmin.f32 %v7774_v29, 1.0  ;;  %v20937_v44 = vld [vmem:[#allocation12_spill] sm:$0xff]  ;;  %12965 = vpow2.f32 %v6925_v0  ;;  %v17829_v2 = vpop.f32.mrb[65].mxu0 }
 0x4a8   : > { %9767 = vst.msk [vmem:[%s15908_s25 + $0x2b0] sm:$0xff] %vm9680_vm6, %v9510_v17  ;;  %v9511_v34 = vsel %vm9423_vm5, %v20934_v10, %v17524_v11  ;;  %v5977_v20 = vadd.f32 %v20937_v44, %v14727_v35  ;;  %v7273_v11 = vadd.f32 1.0, %v12944_v28  ;;  %v6921_v6 = vmul.f32 1.442695, %v6508_v40  ;;  %v12948_v29 = vpop.eup %12947  ;;  %v20939_v0 = vld [vmem:[#allocation52_spill] sm:$0xff] }
 0x4a9   : > { %20935 = vst [vmem:[#allocation81_spill] sm:$0xff] %v17814_v54  ;;  %20936 = vst [vmem:[#allocation122_spill] sm:$0xff] %v17816_v52  ;;  %v7771_v26 = vmax.f32 %v17708_v55, 0.0  ;;  %8939 = vrot.lane.b32.xlu0 %v17814_v54, %s13463_s19  ;;  %8941 = vrot.lane.b32.xlu1 %v17816_v52, %s13463_s19  ;;  %v5969_v10 = vadd.f32 %v20938_v47, %v14727_v35  ;;  %v5980_v40 = vadd.f32 %v20939_v0, %v14727_v35  ;;  %v17840_v55 = vpop.f32.mrb[66].mxu0  ;;  %v12950_v28 = vpop.eup %12949  ;;  %v20941_v54 = vld [vmem:[#allocation31_spill] sm:$0xff] }
 0x4aa   : > { %9768 = vst.msk [vmem:[%s15908_s25 + $0x2b8] sm:$0xff] %vm9680_vm6, %v9511_v34  ;;  %v6513_v17 = vsub.f32 0.0, %v5977_v20  ;;  %v7772_v34 = vmax.f32 %v17734_v24, 0.0  ;;  %12967 = vrcp.f32 %v7273_v11  ;;  %v7271_v44 = vadd.f32 1.0, %v12948_v29  ;;  %v17848_v60 = vpop.f32.mrb[67].mxu0  ;;  %v17850_v47 = vpop.eup %12951 }
 0x4ab   : > { %v17842_v58 = vmin.f32 %v7771_v26, 1.0  ;;  %v20942_v52 = vsub.f32 1.0, %v20941_v54  ;;  %v7274_v24 = vadd.f32 1.0, %v12950_v28  ;;  %12969 = vpow2.f32 %v6921_v6  ;;  %v17854_v43 = vpop.eup %12953  ;;  %v20944_v54 = vld [vmem:[#allocation53_spill] sm:$0xff] }
 0x4ac   : > { %v6931_v5 = vmul.f32 1.442695, %v6513_v17  ;;  %v6511_v0 = vsub.f32 0.0, %v5969_v10  ;;  %12971 = vrcp.f32 %v7271_v44  ;;  %v17856_v11 = vmin.f32 %v7772_v34, 1.0  ;;  %v17862_v29 = vpop.eup %12955  ;;  %v20945_v17 = vld [vmem:[#allocation33_spill] sm:$0xff] }
 0x4ad   : > { %20940 = vst [vmem:[#allocation9_spill] sm:$0xff] %v17842_v58  ;;  %v9508_v20 = vsel %vm9423_vm5, %v20942_v52, %v17574_v56  ;;  %v6514_v26 = vsub.f32 0.0, %v5980_v40  ;;  %v5972_v56 = vadd.f32 %v20944_v54, %v14727_v35  ;;  %v17860_v52 = vpop.permute.xlu0 %8847  ;;  %12973 = vrcp.f32 %v7274_v24  ;;  %8935 = vrot.lane.b32.xlu0 %v17842_v58, %s13463_s19  ;;  %v17871_v40 = vpop.permute.xlu1 %8849 }
 0x4ae   : > { %9765 = vst.msk [vmem:[%s15908_s25 + $0x2a0] sm:$0xff] %vm9680_vm6, %v9508_v20  ;;  %20943 = vst [vmem:[#allocation24_spill] sm:$0xff] %v17856_v11  ;;  %v6927_v6 = vmul.f32 1.442695, %v6511_v0  ;;  %v20946_v10 = vsub.f32 1.0, %v20945_v17  ;;  %v7777_v28 = vmax.f32 %v17782_v53, 0.0  ;;  %v12958_v44 = vpop.eup %12957  ;;  %12975 = vpow2.f32 %v6931_v5  ;;  %8937 = vrot.lane.b32.xlu1 %v17856_v11, %s13463_s19 }
 0x4af   : > { %v6933_v20 = vmul.f32 1.442695, %v6514_v26  ;;  %v6512_v24 = vsub.f32 0.0, %v5972_v56  ;;  %v7778_v0 = vmax.f32 %v17804_v45, 0.0  ;;  %v17878_v54 = vpop.eup %12959  ;;  %v20948_v17 = vld [vmem:[#allocation34_spill] sm:$0xff]  ;;  %v20951_v45 = vld [vmem:[#allocation4_spill] sm:$0xff] }
 0x4b0   : > { %v9509_v34 = vsel %vm9423_vm5, %v20946_v10, %v17583_v42  ;;  %v7272_v42 = vadd.f32 1.0, %v12958_v44  ;;  %12977 = vpow2.f32 %v6927_v6  ;;  %v17880_v53 = vmin.f32 %v7777_v28, 1.0  ;;  %v12962_v58 = vpop.eup %12961 }
 0x4b1   : > { %9766 = vst.msk [vmem:[%s15908_s25 + $0x2a8] sm:$0xff] %vm9680_vm6, %v9509_v34  ;;  %v20949_v10 = vsub.f32 1.0, %v20948_v17  ;;  %12979 = vpow2.f32 %v6933_v20  ;;  %v6929_v26 = vmul.f32 1.442695, %v6512_v24  ;;  %v17886_v56 = vmin.f32 %v7778_v0, 1.0  ;;  %v12964_v6 = vpop.eup %12963  ;;  %v17906_v17 = vpop.permute.xlu0 %8859 }
 0x4b2   : > { %20947 = vst [vmem:[#allocation25_spill] sm:$0xff] %v17880_v53  ;;  %v20952_v34 = vsub.f32 1.0, %v20951_v45  ;;  %12981 = vrcp.f32 %v7272_v42  ;;  %v7277_v28 = vadd.f32 1.0, %v12962_v58  ;;  %8947 = vrot.lane.b32.xlu0 %v17880_v53, %s13463_s19  ;;  %v7775_v20 = vmax.f32 %v17794_v21, 0.0  ;;  %v12966_v24 = vpop.eup %12965  ;;  %v17912_v21 = vpop.f32.mrb[68].mxu0 }
 0x4b3   : > { %v9514_v5 = vsel %vm9423_vm5, %v20949_v10, %v17624_v14  ;;  %20950 = vst [vmem:[#allocation100_spill] sm:$0xff] %v17886_v56  ;;  %v5993_v14 = vadd.f32 %v17184_v62, %v14727_v35  ;;  %v7275_v0 = vadd.f32 1.0, %v12964_v6  ;;  %12983 = vpow2.f32 %v6929_v26  ;;  %8949 = vrot.lane.b32.xlu1 %v17886_v56, %s13463_s19  ;;  %v17910_v62 = vpop.permute.xlu1 %8861 }
 0x4b4   : > { %9771 = vst.msk [vmem:[%s15908_s25 + $0x2d0] sm:$0xff] %vm9680_vm6, %v9514_v5  ;;  %v9515_v44 = vsel %vm9423_vm5, %v20952_v34, %v17634_v13  ;;  %v20953_v13 = vld [vmem:[#allocation60_spill] sm:$0xff]  ;;  %v7776_v58 = vmax.f32 %v17826_v36, 0.0  ;;  %12985 = vrcp.f32 %v7277_v28  ;;  %v7278_v10 = vadd.f32 1.0, %v12966_v24  ;;  %v17914_v26 = vpop.eup %12967  ;;  %v20956_v36 = vld [vmem:[#allocation61_spill] sm:$0xff] }
 0x4b5   : > { %9772 = vst.msk [vmem:[%s15908_s25 + $0x2d8] sm:$0xff] %vm9680_vm6, %v9515_v44  ;;  %v5985_v42 = vadd.f32 %v20953_v13, %v14727_v35  ;;  %v6517_v5 = vsub.f32 0.0, %v5993_v14  ;;  %v17908_v45 = vmin.f32 %v7775_v20, 1.0  ;;  %12987 = vrcp.f32 %v7275_v0  ;;  %v17920_v13 = vpop.f32.mrb[69].mxu0  ;;  %v12970_v28 = vpop.eup %12969  ;;  %v20957_v20 = vld [vmem:[#allocation99_spill] sm:$0xff] }
 0x4b6   : > { %v17916_v44 = vmin.f32 %v7776_v58, 1.0  ;;  %v5996_v6 = vadd.f32 %v20956_v36, %v14727_v35  ;;  %12989 = vrcp.f32 %v7278_v10  ;;  %v20958_v24 = vsub.f32 1.0, %v20957_v20  ;;  %v17930_v56 = vpop.f32.mrb[70].mxu0  ;;  %v17932_v36 = vpop.eup %12971 }
 0x4b7   : > { %20954 = vst [vmem:[#allocation84_spill] sm:$0xff] %v17908_v45  ;;  %v6515_v34 = vsub.f32 0.0, %v5985_v42  ;;  %v6939_v14 = vmul.f32 1.442695, %v6517_v5  ;;  %8943 = vrot.lane.b32.xlu0 %v17908_v45, %s13463_s19  ;;  %v20959_v42 = vld [vmem:[#allocation62_spill] sm:$0xff]  ;;  %v7276_v53 = vadd.f32 1.0, %v12970_v28  ;;  %v17958_v57 = vpop.permute.xlu0 %8855 }
 0x4b8   : > { %20955 = vst [vmem:[#allocation23_spill] sm:$0xff] %v17916_v44  ;;  %v9512_v0 = vsel %vm9423_vm5, %v20958_v24, %v17672_v30  ;;  %v5988_v58 = vadd.f32 %v20959_v42, %v14727_v35  ;;  %8945 = vrot.lane.b32.xlu1 %v17916_v44, %s13463_s19  ;;  %v6518_v10 = vsub.f32 0.0, %v5996_v6  ;;  %v20960_v5 = vld [vmem:[#allocation101_spill] sm:$0xff]  ;;  %v17942_v24 = vpop.f32.mrb[71].mxu0  ;;  %v17944_v42 = vpop.eup %12973  ;;  %v7782_v6 = vmax.f32 %v17862_v29, 0.0 }
 0x4b9   : > { %v6935_v11 = vmul.f32 1.442695, %v6515_v34  ;;  %9769 = vst.msk [vmem:[%s15908_s25 + $0x2c0] sm:$0xff] %vm9680_vm6, %v9512_v0  ;;  %v20961_v20 = vsub.f32 1.0, %v20960_v5  ;;  %12991 = vpow2.f32 %v6939_v14  ;;  %v7781_v34 = vmax.f32 %v17850_v47, 0.0  ;;  %v12976_v28 = vpop.eup %12975  ;;  %v20962_v5 = vld [vmem:[#allocation36_spill] sm:$0xff] }
 0x4ba   : > { %v6516_v45 = vsub.f32 0.0, %v5988_v58  ;;  %12993 = vrcp.f32 %v7276_v53  ;;  %v6941_v0 = vmul.f32 1.442695, %v6518_v10  ;;  %v20964_v44 = vld [vmem:[#allocation5_spill] sm:$0xff]  ;;  %v7281_v12 = vadd.f32 1.0, %v12976_v28  ;;  %v17966_v53 = vpop.permute.xlu1 %8857 }
 0x4bb   : > { %v9513_v30 = vsel %vm9423_vm5, %v20961_v20, %v17684_v32  ;;  %v20963_v32 = vsub.f32 1.0, %v20962_v5  ;;  %v20965_v14 = vsub.f32 1.0, %v20964_v44  ;;  %12995 = vpow2.f32 %v6935_v11 }
 0x4bc   : > { %9770 = vst.msk [vmem:[%s15908_s25 + $0x2c8] sm:$0xff] %vm9680_vm6, %v9513_v30  ;;  %v12978_v30 = vpop.eup %12977  ;;  %v6937_v47 = vmul.f32 1.442695, %v6516_v45  ;;  %v17960_v29 = vmin.f32 %v7781_v34, 1.0  ;;  %12997 = vpow2.f32 %v6941_v0  ;;  %v17968_v44 = vmin.f32 %v7782_v6, 1.0  ;;  %v20969_v34 = vld [vmem:[#allocation63_spill] sm:$0xff] }
 0x4bd   : > { %v9518_v20 = vsel %vm9423_vm5, %v20963_v32, %v17712_v18  ;;  %v9519_v58 = vsel %vm9423_vm5, %v20965_v14, %v17723_v31  ;;  %v12980_v18 = vpop.eup %12979  ;;  %v7279_v10 = vadd.f32 1.0, %v12978_v30  ;;  %v20968_v31 = vld [vmem:[#allocation113_spill] sm:$0xff]  ;;  %12999 = vrcp.f32 %v7281_v12  ;;  %v20970_v14 = vld [vmem:[#allocation15_spill] sm:$0xff] }
 0x4be   : > { %20966 = vst [vmem:[#allocation8_spill] sm:$0xff] %v17960_v29  ;;  %9775 = vst.msk [vmem:[%s15908_s25 + $0x2f0] sm:$0xff] %vm9680_vm6, %v9518_v20  ;;  %v6009_v5 = vadd.f32 %v20968_v31, %v14727_v35  ;;  %v17972_v32 = vpop.eup %12981  ;;  %v7282_v11 = vadd.f32 1.0, %v12980_v18  ;;  %8955 = vrot.lane.b32.xlu0 %v17960_v29, %s13463_s19  ;;  %v7779_v45 = vmax.f32 %v17854_v43, 0.0  ;;  %v6001_v28 = vadd.f32 %v20969_v34, %v14727_v35 }
 0x4bf   : > { %9776 = vst.msk [vmem:[%s15908_s25 + $0x2f8] sm:$0xff] %vm9680_vm6, %v9519_v58  ;;  %20967 = vst [vmem:[#allocation103_spill] sm:$0xff] %v17968_v44  ;;  %v12984_v20 = vpop.eup %12983  ;;  %13001 = vrcp.f32 %v7279_v10  ;;  %8957 = vrot.lane.b32.xlu1 %v17968_v44, %s13463_s19  ;;  %v7780_v0 = vmax.f32 %v17878_v54, 0.0  ;;  %v6012_v12 = vadd.f32 %v20970_v14, %v14727_v35  ;;  %v17992_v44 = vpop.permute.xlu0 %8867 }
 0x4c0   : > { %v6521_v6 = vsub.f32 0.0, %v6009_v5  ;;  %v17984_v58 = vpop.eup %12985  ;;  %13003 = vrcp.f32 %v7282_v11  ;;  %v7280_v30 = vadd.f32 1.0, %v12984_v20  ;;  %v17986_v18 = vmin.f32 %v7779_v45, 1.0  ;;  %v20973_v45 = vld [vmem:[#allocation40_spill] sm:$0xff] }
 0x4c1   : > { %v6519_v43 = vsub.f32 0.0, %v6001_v28  ;;  %v17988_v31 = vpop.eup %12987  ;;  %13005 = vpow2.f32 %v6937_v47  ;;  %v17990_v34 = vmin.f32 %v7780_v0, 1.0  ;;  %v6522_v5 = vsub.f32 0.0, %v6012_v12  ;;  %v20975_v47 = vld [vmem:[#allocation65_spill] sm:$0xff]  ;;  %v18004_v0 = vpop.permute.xlu1 %8869  ;;  %v20976_v12 = vld [vmem:[#allocation7_spill] sm:$0xff] }
 0x4c2   : > { %20971 = vst [vmem:[#allocation27_spill] sm:$0xff] %v17986_v18  ;;  %v6947_v10 = vmul.f32 1.442695, %v6521_v6  ;;  %v17994_v54 = vpop.eup %12989  ;;  %13007 = vrcp.f32 %v7280_v30  ;;  %8951 = vrot.lane.b32.xlu0 %v17986_v18, %s13463_s19  ;;  %v20974_v28 = vsub.f32 1.0, %v20973_v45  ;;  %v6004_v6 = vadd.f32 %v20975_v47, %v14727_v35  ;;  %v18015_v45 = vpop.f32.mrb[72].mxu0  ;;  %v20978_v47 = vld [vmem:[#allocation104_spill] sm:$0xff] }
 0x4c3   : > { %20972 = vst [vmem:[#allocation123_spill] sm:$0xff] %v17990_v34  ;;  %v6943_v11 = vmul.f32 1.442695, %v6519_v43  ;;  %8953 = vrot.lane.b32.xlu1 %v17990_v34, %s13463_s19  ;;  %v6949_v14 = vmul.f32 1.442695, %v6522_v5  ;;  %v20977_v30 = vsub.f32 1.0, %v20976_v12 }
 0x4c4   : > { %v9516_v20 = vsel %vm9423_vm5, %v20974_v28, %v17766_v1  ;;  %13009 = vpow2.f32 %v6947_v10  ;;  %v7785_v1 = vmax.f32 %v17914_v26, 0.0  ;;  %v12992_v28 = vpop.eup %12991  ;;  %v6520_v10 = vsub.f32 0.0, %v6004_v6  ;;  %v18024_v12 = vpop.f32.mrb[73].mxu0 }
 0x4c5   : > { %9773 = vst.msk [vmem:[%s15908_s25 + $0x2e0] sm:$0xff] %vm9680_vm6, %v9516_v20  ;;  %v9517_v43 = vsel %vm9423_vm5, %v20977_v30, %v17770_v51  ;;  %13011 = vpow2.f32 %v6943_v11  ;;  %v7786_v5 = vmax.f32 %v17944_v42, 0.0  ;;  %v20979_v20 = vsub.f32 1.0, %v20978_v47  ;;  %v18026_v51 = vpop.eup %12993  ;;  %v20981_v11 = vld [vmem:[#allocation47_spill] sm:$0xff] }
 0x4c6   : > { %9774 = vst.msk [vmem:[%s15908_s25 + $0x2e8] sm:$0xff] %vm9680_vm6, %v9517_v43  ;;  %v7285_v26 = vadd.f32 1.0, %v12992_v28  ;;  %13013 = vpow2.f32 %v6949_v14  ;;  %v18028_v30 = vmin.f32 %v7785_v1, 1.0  ;;  %v20982_v6 = vsub.f32 1.0, %v20981_v11  ;;  %v18036_v43 = vpop.f32.mrb[74].mxu0  ;;  %v12996_v47 = vpop.eup %12995  ;;  %v20984_v28 = vld [vmem:[#allocation73_spill] sm:$0xff] }
 0x4c7   : > { %v9522_v34 = vsel %vm9423_vm5, %v20979_v20, %v17812_v9  ;;  %v6945_v18 = vmul.f32 1.442695, %v6520_v10  ;;  %v18038_v9 = vmin.f32 %v7786_v5, 1.0  ;;  %v6025_v14 = vadd.f32 %v20984_v28, %v14727_v35  ;;  %v18045_v20 = vpop.permute.xlu0 %8863  ;;  %v12998_v11 = vpop.eup %12997  ;;  %v20985_v10 = vld [vmem:[#allocation74_spill] sm:$0xff] }
 0x4c8   : > { %20980 = vst [vmem:[#allocation45_spill] sm:$0xff] %v18028_v30  ;;  %9779 = vst.msk [vmem:[%s15908_s25 + $0x310] sm:$0xff] %vm9680_vm6, %v9522_v34  ;;  %v9523_v42 = vsel %vm9423_vm5, %v20982_v6, %v17822_v25  ;;  %v7783_v1 = vmax.f32 %v17932_v36, 0.0  ;;  %v18047_v34 = vpop.f32.mrb[75].mxu0  ;;  %13015 = vrcp.f32 %v7285_v26  ;;  %v7283_v25 = vadd.f32 1.0, %v12996_v47  ;;  %8963 = vrot.lane.b32.xlu0 %v18028_v30, %s13463_s19  ;;  %v18056_v28 = vpop.eup %12999 }
 0x4c9   : > { %20983 = vst [vmem:[#allocation105_spill] sm:$0xff] %v18038_v9  ;;  %9780 = vst.msk [vmem:[%s15908_s25 + $0x318] sm:$0xff] %vm9680_vm6, %v9523_v42  ;;  %v6017_v5 = vadd.f32 %v20985_v10, %v14727_v35  ;;  %v7784_v6 = vmax.f32 %v17972_v32, 0.0  ;;  %v18054_v42 = vpop.permute.xlu1 %8865  ;;  %v7286_v36 = vadd.f32 1.0, %v12998_v11  ;;  %13017 = vpow2.f32 %v6945_v18  ;;  %8965 = vrot.lane.b32.xlu1 %v18038_v9, %s13463_s19  ;;  %v18062_v47 = vpop.eup %13001  ;;  %v20988_v18 = vld [vmem:[#allocation48_spill] sm:$0xff] }
 0x4ca   : > { %v6525_v29 = vsub.f32 0.0, %v6025_v14  ;;  %v18060_v26 = vmin.f32 %v7783_v1, 1.0  ;;  %13019 = vrcp.f32 %v7283_v25  ;;  %v6028_v32 = vadd.f32 %v17356_v8, %v14727_v35  ;;  %v18068_v10 = vpop.eup %13003  ;;  %v20989_v9 = vld [vmem:[#allocation68_spill] sm:$0xff] }
 0x4cb   : > { %v6523_v30 = vsub.f32 0.0, %v6017_v5  ;;  %v18064_v39 = vmin.f32 %v7784_v6, 1.0  ;;  %13021 = vrcp.f32 %v7286_v36  ;;  %v8239_v63 = vsub.f32 1.0, %v20988_v18  ;;  %v13006_v1 = vpop.eup %13005  ;;  %v20990_v6 = vld [vmem:[#allocation106_spill] sm:$0xff]  ;;  %v18083_v18 = vpop.permute.xlu0 %8875 }
 0x4cc   : > { %20986 = vst [vmem:[#allocation89_spill] sm:$0xff] %v18060_v26  ;;  %v6955_v11 = vmul.f32 1.442695, %v6525_v29  ;;  %v6020_v14 = vadd.f32 %v20989_v9, %v14727_v35  ;;  %8959 = vrot.lane.b32.xlu0 %v18060_v26, %s13463_s19  ;;  %v6526_v5 = vsub.f32 0.0, %v6028_v32  ;;  %v8240_v33 = vsub.f32 1.0, %v20990_v6  ;;  %v18077_v15 = vpop.eup %13007 }
 0x4cd   : > { %20987 = vst [vmem:[#allocation29_spill] sm:$0xff] %v18064_v39  ;;  %v6951_v25 = vmul.f32 1.442695, %v6523_v30  ;;  %v7789_v8 = vmax.f32 %v17984_v58, 0.0  ;;  %v7284_v36 = vadd.f32 1.0, %v13006_v1  ;;  %8961 = vrot.lane.b32.xlu1 %v18064_v39, %s13463_s19  ;;  %v9520_v29 = vsel %vm9423_vm5, %v8239_v63, %v17860_v52 }
 0x4ce   : > { %13023 = vpow2.f32 %v6955_v11  ;;  %v6524_v9 = vsub.f32 0.0, %v6020_v14  ;;  %v13010_v30 = vpop.eup %13009  ;;  %v6957_v32 = vmul.f32 1.442695, %v6526_v5  ;;  %9777 = vst.msk [vmem:[%s15908_s25 + $0x300] sm:$0xff] %vm9680_vm6, %v9520_v29  ;;  %v9521_v58 = vsel %vm9423_vm5, %v8240_v33, %v17871_v40  ;;  %v18091_v11 = vpop.permute.xlu1 %8877  ;;  %v20993_v40 = vld [vmem:[#allocation108_spill] sm:$0xff] }
 0x4cf   : > { %13025 = vpow2.f32 %v6951_v25  ;;  %v18089_v1 = vmin.f32 %v7789_v8, 1.0  ;;  %v13012_v6 = vpop.eup %13011  ;;  %v7289_v39 = vadd.f32 1.0, %v13010_v30  ;;  %9778 = vst.msk [vmem:[%s15908_s25 + $0x308] sm:$0xff] %vm9680_vm6, %v9521_v58  ;;  %v7790_v63 = vmax.f32 %v17994_v54, 0.0  ;;  %v20992_v25 = vld [vmem:[#allocation107_spill] sm:$0xff]  ;;  %v18100_v8 = vpop.f32.mrb[76].mxu0 }
 0x4d0   : > { %13027 = vrcp.f32 %v7284_v36  ;;  %v6953_v26 = vmul.f32 1.442695, %v6524_v9  ;;  %v13014_v52 = vpop.eup %13013  ;;  %v7287_v14 = vadd.f32 1.0, %v13012_v6  ;;  %v8245_v33 = vsub.f32 1.0, %v20992_v25  ;;  %v20995_v54 = vld [vmem:[#allocation70_spill] sm:$0xff]  ;;  %v18106_v30 = vpop.f32.mrb[77].mxu0 }
 0x4d1   : > { %20991 = vst [vmem:[#allocation10_spill] sm:$0xff] %v18089_v1  ;;  %13029 = vpow2.f32 %v6957_v32  ;;  %8971 = vrot.lane.b32.xlu0 %v18089_v1, %s13463_s19  ;;  %v8246_v5 = vsub.f32 1.0, %v20993_v40  ;;  %v7290_v36 = vadd.f32 1.0, %v13014_v52  ;;  %v18102_v29 = vmin.f32 %v7790_v63, 1.0  ;;  %v18115_v25 = vpop.permute.xlu0 %8871  ;;  %v18117_v63 = vpop.f32.mrb[78].mxu0 }
 0x4d2   : > { %13031 = vrcp.f32 %v7289_v39  ;;  %v6041_v9 = vadd.f32 %v20995_v54, %v14727_v35  ;;  %v18108_v32 = vpop.eup %13015  ;;  %v9526_v58 = vsel %vm9423_vm5, %v8245_v33, %v17906_v17  ;;  %v7787_v39 = vmax.f32 %v17988_v31, 0.0  ;;  %v18128_v31 = vpop.permute.xlu1 %8873 }
 0x4d3   : > { %20994 = vst [vmem:[#allocation90_spill] sm:$0xff] %v18102_v29  ;;  %13033 = vrcp.f32 %v7287_v14  ;;  %v9527_v6 = vsel %vm9423_vm5, %v8246_v5, %v17910_v62  ;;  %v13018_v52 = vpop.eup %13017  ;;  %8973 = vrot.lane.b32.xlu1 %v18102_v29, %s13463_s19  ;;  %9783 = vst.msk [vmem:[%s15908_s25 + $0x330] sm:$0xff] %vm9680_vm6, %v9526_v58  ;;  %v6033_v17 = vadd.f32 %v17442_v4, %v14727_v35  ;;  %v7788_v62 = vmax.f32 %v18026_v51, 0.0  ;;  %v18130_v33 = vpop.f32.mrb[79].mxu0  ;;  %v20998_v51 = vld [vmem:[#allocation49_spill] sm:$0xff] }
 0x4d4   : > { %13035 = vrcp.f32 %v7290_v36  ;;  %9784 = vst.msk [vmem:[%s15908_s25 + $0x338] sm:$0xff] %vm9680_vm6, %v9527_v6  ;;  %v6529_v14 = vsub.f32 0.0, %v6041_v9  ;;  %v18132_v40 = vpop.eup %13019  ;;  %v7288_v5 = vadd.f32 1.0, %v13018_v52  ;;  %v18134_v36 = vmin.f32 %v7787_v39, 1.0  ;;  %v20999_v39 = vld [vmem:[#allocation110_spill] sm:$0xff] }
 0x4d5   : > { %13037 = vpow2.f32 %v6953_v26  ;;  %v6044_v54 = vadd.f32 %v17450_v3, %v14727_v35  ;;  %v18138_v58 = vpop.eup %13021  ;;  %v6527_v6 = vsub.f32 0.0, %v6033_v17  ;;  %v18140_v4 = vmin.f32 %v7788_v62, 1.0 }
 0x4d6   : > { %20996 = vst [vmem:[#allocation28_spill] sm:$0xff] %v18134_v36  ;;  %v6963_v9 = vmul.f32 1.442695, %v6529_v14  ;;  %v8243_v29 = vsub.f32 1.0, %v20998_v51  ;;  %13039 = vrcp.f32 %v7288_v5  ;;  %8967 = vrot.lane.b32.xlu0 %v18134_v36, %s13463_s19  ;;  %v6036_v26 = vadd.f32 %v17462_v19, %v14727_v35  ;;  %v18157_v36 = vpop.permute.xlu0 %8883 }
 0x4d7   : > { %20997 = vst [vmem:[#allocation57_spill] sm:$0xff] %v18140_v4  ;;  %v6530_v52 = vsub.f32 0.0, %v6044_v54  ;;  %v8244_v1 = vsub.f32 1.0, %v20999_v39  ;;  %v6959_v14 = vmul.f32 1.442695, %v6527_v6  ;;  %8969 = vrot.lane.b32.xlu1 %v18140_v4, %s13463_s19  ;;  %v7793_v62 = vmax.f32 %v18056_v28, 0.0 }
 0x4d8   : > { %v13024_v3 = vpop.eup %13023  ;;  %13041 = vpow2.f32 %v6963_v9  ;;  %v9524_v17 = vsel %vm9423_vm5, %v8243_v29, %v17958_v57  ;;  %v6528_v19 = vsub.f32 0.0, %v6036_v26  ;;  %v7794_v28 = vmax.f32 %v18068_v10, 0.0  ;;  %v18166_v29 = vpop.permute.xlu1 %8885 }
 0x4d9   : > { %v13026_v5 = vpop.eup %13025  ;;  %v7293_v51 = vadd.f32 1.0, %v13024_v3  ;;  %v6965_v54 = vmul.f32 1.442695, %v6530_v52  ;;  %9781 = vst.msk [vmem:[%s15908_s25 + $0x320] sm:$0xff] %vm9680_vm6, %v9524_v17  ;;  %v9525_v39 = vsel %vm9423_vm5, %v8244_v1, %v17966_v53  ;;  %13043 = vpow2.f32 %v6959_v14  ;;  %v21001_v3 = vld [vmem:[#allocation50_spill] sm:$0xff] }
 0x4da   : > { %v18159_v9 = vpop.eup %13027  ;;  %v7291_v6 = vadd.f32 1.0, %v13026_v5  ;;  %9782 = vst.msk [vmem:[%s15908_s25 + $0x328] sm:$0xff] %vm9680_vm6, %v9525_v39  ;;  %v18163_v57 = vmin.f32 %v7793_v62, 1.0  ;;  %v6961_v26 = vmul.f32 1.442695, %v6528_v19  ;;  %v8249_v17 = vsub.f32 1.0, %v21001_v3 }
 0x4db   : > { %v13030_v52 = vpop.eup %13029  ;;  %13045 = vrcp.f32 %v7293_v51  ;;  %v21002_v53 = vld [vmem:[#allocation54_spill] sm:$0xff]  ;;  %v18174_v62 = vmin.f32 %v7794_v28, 1.0  ;;  %v6057_v10 = vadd.f32 %v17518_v41, %v14727_v35  ;;  %v7791_v39 = vmax.f32 %v18062_v47, 0.0  ;;  %v18196_v28 = vpop.f32.mrb[80].mxu0  ;;  %v21005_v3 = vld [vmem:[#allocation55_spill] sm:$0xff] }
 0x4dc   : > { %21000 = vst [vmem:[#allocation11_spill] sm:$0xff] %v18163_v57  ;;  %v8250_v1 = vsub.f32 1.0, %v21002_v53  ;;  %v18170_v4 = vpop.eup %13031  ;;  %13047 = vrcp.f32 %v7291_v6  ;;  %v7294_v14 = vadd.f32 1.0, %v13030_v52  ;;  %8979 = vrot.lane.b32.xlu0 %v18163_v57, %s13463_s19  ;;  %v9530_v51 = vsel %vm9423_vm5, %v8249_v17, %v17992_v44  ;;  %v18203_v53 = vpop.permute.xlu0 %8879 }
 0x4dd   : > { %21003 = vst [vmem:[#allocation30_spill] sm:$0xff] %v18174_v62  ;;  %v18178_v5 = vpop.eup %13033  ;;  %13049 = vpow2.f32 %v6965_v54  ;;  %8981 = vrot.lane.b32.xlu1 %v18174_v62, %s13463_s19  ;;  %9787 = vst.msk [vmem:[%s15908_s25 + $0x350] sm:$0xff] %vm9680_vm6, %v9530_v51  ;;  %v6533_v41 = vsub.f32 0.0, %v6057_v10  ;;  %v6049_v54 = vadd.f32 %v17526_v61, %v14727_v35  ;;  %v7792_v44 = vmax.f32 %v18077_v15, 0.0  ;;  %v18209_v51 = vpop.permute.xlu1 %8881 }
 0x4de   : > { %v9531_v19 = vsel %vm9423_vm5, %v8250_v1, %v18004_v0  ;;  %v18185_v6 = vpop.eup %13035  ;;  %13051 = vrcp.f32 %v7294_v14  ;;  %v18198_v47 = vmin.f32 %v7791_v39, 1.0  ;;  %v6060_v52 = vadd.f32 %v17538_v46, %v14727_v35  ;;  %v18205_v1 = vpop.f32.mrb[81].mxu0 }
 0x4df   : > { %9788 = vst.msk [vmem:[%s15908_s25 + $0x358] sm:$0xff] %vm9680_vm6, %v9531_v19  ;;  %v13038_v0 = vpop.eup %13037  ;;  %13053 = vpow2.f32 %v6961_v26  ;;  %v8247_v17 = vsub.f32 1.0, %v21005_v3  ;;  %v6971_v10 = vmul.f32 1.442695, %v6533_v41  ;;  %v6531_v61 = vsub.f32 0.0, %v6049_v54  ;;  %v18211_v26 = vpop.f32.mrb[82].mxu0 }
 0x4e0   : > { %21004 = vst [vmem:[#allocation58_spill] sm:$0xff] %v18198_v47  ;;  %v7292_v14 = vadd.f32 1.0, %v13038_v0  ;;  %v18207_v15 = vmin.f32 %v7792_v44, 1.0  ;;  %v18213_v19 = vpop.eup %13039  ;;  %8975 = vrot.lane.b32.xlu0 %v18198_v47, %s13463_s19  ;;  %v6534_v46 = vsub.f32 0.0, %v6060_v52  ;;  %v6052_v41 = vadd.f32 %v17548_v16, %v14727_v35  ;;  %v21007_v0 = vld [vmem:[#allocation14_spill] sm:$0xff]  ;;  %v18222_v44 = vpop.f32.mrb[83].mxu0 }
 0x4e1   : > { %v9528_v39 = vsel %vm9423_vm5, %v8247_v17, %v18045_v20  ;;  %v8248_v54 = vsub.f32 1.0, %v21007_v0  ;;  %v6967_v62 = vmul.f32 1.442695, %v6531_v61  ;;  %v7797_v52 = vmax.f32 %v18108_v32, 0.0 }
 0x4e2   : > { %21006 = vst [vmem:[#allocation46_spill] sm:$0xff] %v18207_v15  ;;  %v13042_v3 = vpop.eup %13041  ;;  %13055 = vrcp.f32 %v7292_v14  ;;  %8977 = vrot.lane.b32.xlu1 %v18207_v15, %s13463_s19  ;;  %9785 = vst.msk [vmem:[%s15908_s25 + $0x340] sm:$0xff] %vm9680_vm6, %v9528_v39  ;;  %v7798_v20 = vmax.f32 %v18138_v58, 0.0  ;;  %v6973_v16 = vmul.f32 1.442695, %v6534_v46  ;;  %v6532_v47 = vsub.f32 0.0, %v6052_v41  ;;  %v18241_v46 = vpop.permute.xlu0 %8891 }
 0x4e3   : > { %v7297_v17 = vadd.f32 1.0, %v13042_v3  ;;  %13057 = vpow2.f32 %v6971_v10  ;;  %v13044_v0 = vpop.eup %13043  ;;  %v9529_v14 = vsel %vm9423_vm5, %v8248_v54, %v18054_v42  ;;  %v18232_v61 = vmin.f32 %v7797_v52, 1.0  ;;  %v21009_v58 = vld [vmem:[#allocation56_spill] sm:$0xff]  ;;  %v21010_v42 = vld [vmem:[#allocation13_spill] sm:$0xff]  ;;  %v18253_v3 = vpop.permute.xlu1 %8893 }
 0x4e4   : > { %13059 = vpow2.f32 %v6967_v62  ;;  %v18234_v57 = vmin.f32 %v7798_v20, 1.0  ;;  %v7295_v39 = vadd.f32 1.0, %v13044_v0  ;;  %v6969_v32 = vmul.f32 1.442695, %v6532_v47  ;;  %9786 = vst.msk [vmem:[%s15908_s25 + $0x348] sm:$0xff] %vm9680_vm6, %v9529_v14 }
 0x4e5   : > { %v18236_v15 = vpop.eup %13045  ;;  %13061 = vrcp.f32 %v7297_v17  ;;  %v8253_v10 = vsub.f32 1.0, %v21009_v58  ;;  %8987 = vrot.lane.b32.xlu0 %v18232_v61, %s13463_s19  ;;  %v8254_v62 = vsub.f32 1.0, %v21010_v42  ;;  %v6073_v47 = vadd.f32 %v17617_v50, %v14727_v35  ;;  %v21013_v42 = vld [vmem:[#allocation16_spill] sm:$0xff] }
 0x4e6   : > { %21008 = vst [vmem:[#allocation59_spill] sm:$0xff] %v18234_v57  ;;  %v18243_v41 = vpop.eup %13047  ;;  %13063 = vpow2.f32 %v6973_v16  ;;  %8989 = vrot.lane.b32.xlu1 %v18234_v57, %s13463_s19  ;;  %v7795_v54 = vmax.f32 %v18132_v40, 0.0  ;;  %v6065_v17 = vadd.f32 %v17626_v37, %v14727_v35  ;;  %v7796_v16 = vmax.f32 %v18159_v9, 0.0 }
 0x4e7   : > { %v13050_v52 = vpop.eup %13049  ;;  %13065 = vrcp.f32 %v7295_v39  ;;  %v9534_v20 = vsel %vm9423_vm5, %v8253_v10, %v18083_v18  ;;  %v9535_v50 = vsel %vm9423_vm5, %v8254_v62, %v18091_v11  ;;  %v6537_v40 = vsub.f32 0.0, %v6073_v47  ;;  %v18277_v11 = vpop.f32.mrb[84].mxu0 }
 0x4e8   : > { %v18260_v0 = vpop.eup %13051  ;;  %v7298_v14 = vadd.f32 1.0, %v13050_v52  ;;  %13067 = vpow2.f32 %v6969_v32  ;;  %9791 = vst.msk [vmem:[%s15908_s25 + $0x370] sm:$0xff] %vm9680_vm6, %v9534_v20  ;;  %9792 = vst.msk [vmem:[%s15908_s25 + $0x378] sm:$0xff] %vm9680_vm6, %v9535_v50  ;;  %v18268_v39 = vmin.f32 %v7795_v54, 1.0  ;;  %v6535_v18 = vsub.f32 0.0, %v6065_v17  ;;  %v18275_v20 = vpop.permute.xlu0 %8887  ;;  %v21014_v54 = vld [vmem:[#allocation112_spill] sm:$0xff] }
 0x4e9   : > { %v13054_v58 = vpop.eup %13053  ;;  %v18270_v10 = vmin.f32 %v7796_v16, 1.0  ;;  %v6076_v37 = vadd.f32 %v17636_v23, %v14727_v35  ;;  %v6979_v32 = vmul.f32 1.442695, %v6537_v40  ;;  %v8251_v52 = vsub.f32 1.0, %v21013_v42  ;;  %v18286_v16 = vpop.permute.xlu1 %8889 }
 0x4ea   : > { %21011 = vst [vmem:[#allocation94_spill] sm:$0xff] %v18268_v39  ;;  %13069 = vrcp.f32 %v7298_v14  ;;  %v7296_v9 = vadd.f32 1.0, %v13054_v58  ;;  %8983 = vrot.lane.b32.xlu0 %v18268_v39, %s13463_s19  ;;  %v6975_v62 = vmul.f32 1.442695, %v6535_v18  ;;  %v6068_v23 = vadd.f32 %v17640_v27, %v14727_v35  ;;  %v18288_v14 = vpop.f32.mrb[85].mxu0 }
 0x4eb   : > { %21012 = vst [vmem:[#allocation95_spill] sm:$0xff] %v18270_v10  ;;  %8985 = vrot.lane.b32.xlu1 %v18270_v10, %s13463_s19  ;;  %v6538_v47 = vsub.f32 0.0, %v6076_v37  ;;  %v8252_v17 = vsub.f32 1.0, %v21014_v54  ;;  %v9532_v40 = vsel %vm9423_vm5, %v8251_v52, %v18115_v25  ;;  %v7801_v58 = vmax.f32 %v18170_v4, 0.0  ;;  %v18296_v37 = vpop.f32.mrb[86].mxu0 }
 0x4ec   : > { %v18290_v50 = vpop.eup %13055  ;;  %13071 = vrcp.f32 %v7296_v9  ;;  %v7802_v18 = vmax.f32 %v18185_v6, 0.0  ;;  %9789 = vst.msk [vmem:[%s15908_s25 + $0x360] sm:$0xff] %vm9680_vm6, %v9532_v40  ;;  %v6536_v54 = vsub.f32 0.0, %v6068_v23  ;;  %v18302_v39 = vpop.f32.mrb[87].mxu0 }
 0x4ed   : > { %v13058_v27 = vpop.eup %13057  ;;  %13073 = vpow2.f32 %v6979_v32  ;;  %v6981_v42 = vmul.f32 1.442695, %v6538_v47  ;;  %v9533_v10 = vsel %vm9423_vm5, %v8252_v17, %v18128_v31  ;;  %v18306_v25 = vmin.f32 %v7801_v58, 1.0  ;;  %v21015_v47 = vld [vmem:[#allocation115_spill] sm:$0xff]  ;;  %v21016_v31 = vld [vmem:[#allocation116_spill] sm:$0xff]  ;;  %v18321_v58 = vpop.permute.xlu0 %8899 }
 0x4ee   : > { %v13060_v9 = vpop.eup %13059  ;;  %v7301_v57 = vadd.f32 1.0, %v13058_v27  ;;  %13075 = vpow2.f32 %v6975_v62  ;;  %9790 = vst.msk [vmem:[%s15908_s25 + $0x368] sm:$0xff] %vm9680_vm6, %v9533_v10  ;;  %v18308_v4 = vmin.f32 %v7802_v18, 1.0  ;;  %v6977_v52 = vmul.f32 1.442695, %v6536_v54  ;;  %v18329_v54 = vpop.permute.xlu1 %8901 }
 0x4ef   : > { %v18310_v6 = vpop.eup %13061  ;;  %v7299_v32 = vadd.f32 1.0, %v13060_v9  ;;  %13077 = vpow2.f32 %v6981_v42  ;;  %v8257_v23 = vsub.f32 1.0, %v21015_v47  ;;  %8995 = vrot.lane.b32.xlu0 %v18306_v25, %s13463_s19  ;;  %v8258_v10 = vsub.f32 1.0, %v21016_v31 }
 0x4f0   : > { %v13064_v40 = vpop.eup %13063  ;;  %13079 = vrcp.f32 %v7301_v57  ;;  %8997 = vrot.lane.b32.xlu1 %v18308_v4, %s13463_s19  ;;  %v6089_v62 = vadd.f32 %v17725_v38, %v14727_v35  ;;  %v7799_v17 = vmax.f32 %v18178_v5, 0.0  ;;  %v6081_v42 = vadd.f32 %v17732_v7, %v14727_v35 }
 0x4f1   : > { %v18323_v18 = vpop.eup %13065  ;;  %13081 = vrcp.f32 %v7299_v32  ;;  %v7302_v57 = vadd.f32 1.0, %v13064_v40  ;;  %v9538_v27 = vsel %vm9423_vm5, %v8257_v23, %v18157_v36  ;;  %v9539_v38 = vsel %vm9423_vm5, %v8258_v10, %v18166_v29  ;;  %v21018_v29 = vld [vmem:[#allocation118_spill] sm:$0xff] }
 0x4f2   : > { %v13068_v9 = vpop.eup %13067  ;;  %13083 = vpow2.f32 %v6977_v52  ;;  %9795 = vst.msk [vmem:[%s15908_s25 + $0x390] sm:$0xff] %vm9680_vm6, %v9538_v27  ;;  %v6541_v5 = vsub.f32 0.0, %v6089_v62  ;;  %v18335_v47 = vmin.f32 %v7799_v17, 1.0  ;;  %9796 = vst.msk [vmem:[%s15908_s25 + $0x398] sm:$0xff] %vm9680_vm6, %v9539_v38  ;;  %v6539_v36 = vsub.f32 0.0, %v6081_v42  ;;  %v18356_v38 = vpop.permute.xlu0 %8895 }
 0x4f3   : > { %13085 = vrcp.f32 %v7302_v57  ;;  %v7300_v32 = vadd.f32 1.0, %v13068_v9  ;;  %v7800_v23 = vmax.f32 %v18213_v19, 0.0  ;;  %v6092_v52 = vadd.f32 %v17746_v22, %v14727_v35  ;;  %v21020_v19 = vld [vmem:[#allocation18_spill] sm:$0xff] }
 0x4f4   : > { %21017 = vst [vmem:[#allocation114_spill] sm:$0xff] %v18335_v47  ;;  %v18340_v7 = vpop.eup %13069  ;;  %v6987_v40 = vmul.f32 1.442695, %v6541_v5  ;;  %8991 = vrot.lane.b32.xlu0 %v18335_v47, %s13463_s19  ;;  %v8255_v31 = vsub.f32 1.0, %v21018_v29  ;;  %v6084_v10 = vadd.f32 %v17756_v48, %v14727_v35  ;;  %v6983_v62 = vmul.f32 1.442695, %v6539_v36 }
 0x4f5   : > { %13087 = vrcp.f32 %v7300_v32  ;;  %v18349_v17 = vmin.f32 %v7800_v23, 1.0  ;;  %v8256_v57 = vsub.f32 1.0, %v21020_v19  ;;  %v6542_v42 = vsub.f32 0.0, %v6092_v52  ;;  %v18366_v23 = vpop.permute.xlu1 %8897 }
 0x4f6   : > { %v18352_v27 = vpop.eup %13071  ;;  %13089 = vpow2.f32 %v6987_v40  ;;  %v9536_v9 = vsel %vm9423_vm5, %v8255_v31, %v18203_v53  ;;  %v6540_v22 = vsub.f32 0.0, %v6084_v10  ;;  %v7805_v32 = vmax.f32 %v18236_v15, 0.0  ;;  %v18368_v53 = vpop.f32.mrb[88].mxu0  ;;  %v21021_v10 = vld [vmem:[#allocation67_spill] sm:$0xff] }
 0x4f7   : > { %21019 = vst [vmem:[#allocation117_spill] sm:$0xff] %v18349_v17  ;;  %v13074_v5 = vpop.eup %13073  ;;  %13091 = vpow2.f32 %v6983_v62  ;;  %8993 = vrot.lane.b32.xlu1 %v18349_v17, %s13463_s19  ;;  %9793 = vst.msk [vmem:[%s15908_s25 + $0x380] sm:$0xff] %vm9680_vm6, %v9536_v9  ;;  %v9537_v48 = vsel %vm9423_vm5, %v8256_v57, %v18209_v51  ;;  %v7806_v36 = vmax.f32 %v18260_v0, 0.0  ;;  %v6989_v29 = vmul.f32 1.442695, %v6542_v42  ;;  %v21024_v0 = vld [vmem:[#allocation17_spill] sm:$0xff] }
 0x4f8   : > { %v13076_v40 = vpop.eup %13075  ;;  %v7305_v52 = vadd.f32 1.0, %v13074_v5  ;;  %v6985_v31 = vmul.f32 1.442695, %v6540_v22  ;;  %9794 = vst.msk [vmem:[%s15908_s25 + $0x388] sm:$0xff] %vm9680_vm6, %v9537_v48  ;;  %v8261_v62 = vsub.f32 1.0, %v21021_v10  ;;  %v18373_v51 = vmin.f32 %v7805_v32, 1.0 }
 0x4f9   : > { %v13078_v19 = vpop.eup %13077  ;;  %v7303_v9 = vadd.f32 1.0, %v13076_v40  ;;  %v18375_v15 = vmin.f32 %v7806_v36, 1.0  ;;  %v8262_v57 = vsub.f32 1.0, %v21024_v0  ;;  %v18378_v17 = vpop.f32.mrb[89].mxu0  ;;  %v6105_v5 = vadd.f32 %v17824_v49, %v14727_v35 }
 0x4fa   : > { %21022 = vst [vmem:[#allocation98_spill] sm:$0xff] %v18373_v51  ;;  %v18380_v47 = vpop.eup %13079  ;;  %13093 = vrcp.f32 %v7305_v52  ;;  %v7306_v42 = vadd.f32 1.0, %v13078_v19  ;;  %v9542_v22 = vsel %vm9423_vm5, %v8261_v62, %v18241_v46  ;;  %v18386_v48 = vpop.f32.mrb[90].mxu0  ;;  %9003 = vrot.lane.b32.xlu0 %v18373_v51, %s13463_s19  ;;  %v7803_v46 = vmax.f32 %v18243_v41, 0.0 }
 0x4fb   : > { %21023 = vst [vmem:[#allocation64_spill] sm:$0xff] %v18375_v15  ;;  %v18388_v32 = vpop.eup %13081  ;;  %13095 = vrcp.f32 %v7303_v9  ;;  %9005 = vrot.lane.b32.xlu1 %v18375_v15, %s13463_s19  ;;  %9799 = vst.msk [vmem:[%s15908_s25 + $0x3b0] sm:$0xff] %vm9680_vm6, %v9542_v22  ;;  %v9543_v36 = vsel %vm9423_vm5, %v8262_v57, %v18253_v3  ;;  %v6097_v49 = vadd.f32 %v17829_v2, %v14727_v35  ;;  %v18401_v40 = vpop.f32.mrb[91].mxu0  ;;  %v6545_v10 = vsub.f32 0.0, %v6105_v5 }
 0x4fc   : > { %v13084_v52 = vpop.eup %13083  ;;  %13097 = vrcp.f32 %v7306_v42  ;;  %9800 = vst.msk [vmem:[%s15908_s25 + $0x3b8] sm:$0xff] %vm9680_vm6, %v9543_v36  ;;  %v7804_v62 = vmax.f32 %v18290_v50, 0.0  ;;  %v6108_v19 = vadd.f32 %v17840_v55, %v14727_v35  ;;  %v18408_v9 = vpop.permute.xlu0 %8907  ;;  %v18412_v0 = vmin.f32 %v7803_v46, 1.0  ;;  %v21027_v36 = vld [vmem:[#allocation69_spill] sm:$0xff] }
 0x4fd   : > { %v18410_v3 = vpop.eup %13085  ;;  %v7304_v41 = vadd.f32 1.0, %v13084_v52  ;;  %13099 = vpow2.f32 %v6989_v29  ;;  %v6543_v2 = vsub.f32 0.0, %v6097_v49  ;;  %v18414_v57 = vpop.permute.xlu1 %8909  ;;  %v6995_v42 = vmul.f32 1.442695, %v6545_v10  ;;  %v21028_v49 = vld [vmem:[#allocation77_spill] sm:$0xff] }
 0x4fe   : > { %21025 = vst [vmem:[#allocation35_spill] sm:$0xff] %v18412_v0  ;;  %13101 = vpow2.f32 %v6985_v31  ;;  %v18416_v22 = vmin.f32 %v7804_v62, 1.0  ;;  %v6546_v5 = vsub.f32 0.0, %v6108_v19  ;;  %8999 = vrot.lane.b32.xlu0 %v18412_v0, %s13463_s19  ;;  %v8259_v52 = vsub.f32 1.0, %v21027_v36 }
 0x4ff   : > { %v18418_v50 = vpop.eup %13087  ;;  %13103 = vrcp.f32 %v7304_v41  ;;  %v6991_v55 = vmul.f32 1.442695, %v6543_v2  ;;  %v6100_v29 = vadd.f32 %v17848_v60, %v14727_v35  ;;  %v8260_v10 = vsub.f32 1.0, %v21028_v49 }
 0x500   : > { %21026 = vst [vmem:[#allocation66_spill] sm:$0xff] %v18416_v22  ;;  %v13090_v46 = vpop.eup %13089  ;;  %13105 = vpow2.f32 %v6995_v42  ;;  %9001 = vrot.lane.b32.xlu1 %v18416_v22, %s13463_s19  ;;  %v6997_v31 = vmul.f32 1.442695, %v6546_v5  ;;  %v7809_v62 = vmax.f32 %v18310_v6, 0.0  ;;  %v9540_v2 = vsel %vm9423_vm5, %v8259_v52, %v18275_v20  ;;  %v18431_v0 = vpop.permute.xlu0 %8903 }
 0x501   : > { %v13092_v19 = vpop.eup %13091  ;;  %v7309_v41 = vadd.f32 1.0, %v13090_v46  ;;  %13107 = vpow2.f32 %v6991_v55  ;;  %v6544_v36 = vsub.f32 0.0, %v6100_v29  ;;  %9797 = vst.msk [vmem:[%s15908_s25 + $0x3a0] sm:$0xff] %vm9680_vm6, %v9540_v2  ;;  %v9541_v42 = vsel %vm9423_vm5, %v8260_v10, %v18286_v16  ;;  %v18439_v49 = vpop.permute.xlu1 %8905  ;;  %v21030_v55 = vld [vmem:[#allocation20_spill] sm:$0xff]  ;;  %v21031_v16 = vld [vmem:[#allocation83_spill] sm:$0xff] }
 0x502   : > { %v7307_v60 = vadd.f32 1.0, %v13092_v19  ;;  %13109 = vpow2.f32 %v6997_v31  ;;  %v18437_v5 = vmin.f32 %v7809_v62, 1.0  ;;  %9798 = vst.msk [vmem:[%s15908_s25 + $0x3a8] sm:$0xff] %vm9680_vm6, %v9541_v42  ;;  %v7810_v20 = vmax.f32 %v18340_v7, 0.0  ;;  %v18445_v29 = vpop.f32.mrb[92].mxu0 }
 0x503   : > { %13111 = vrcp.f32 %v7309_v41  ;;  %v6993_v6 = vmul.f32 1.442695, %v6544_v36  ;;  %v8265_v52 = vsub.f32 1.0, %v21030_v55  ;;  %v8266_v31 = vsub.f32 1.0, %v21031_v16  ;;  %v18455_v19 = vpop.f32.mrb[93].mxu0 }
 0x504   : > { %21029 = vst [vmem:[#allocation71_spill] sm:$0xff] %v18437_v5  ;;  %v18447_v46 = vpop.eup %13093  ;;  %13113 = vrcp.f32 %v7307_v60  ;;  %9011 = vrot.lane.b32.xlu0 %v18437_v5, %s13463_s19  ;;  %v6121_v10 = vadd.f32 %v17912_v21, %v14727_v35  ;;  %v7807_v62 = vmax.f32 %v18323_v18, 0.0  ;;  %v18459_v41 = vmin.f32 %v7810_v20, 1.0  ;;  %v18465_v60 = vpop.permute.xlu0 %8915 }
 0x505   : > { %v18457_v7 = vpop.eup %13095  ;;  %13115 = vpow2.f32 %v6993_v6  ;;  %v9546_v2 = vsel %vm9423_vm5, %v8265_v52, %v18321_v58  ;;  %v6113_v36 = vadd.f32 %v17920_v13, %v14727_v35  ;;  %v18467_v42 = vpop.f32.mrb[94].mxu0  ;;  %v9547_v18 = vsel %vm9423_vm5, %v8266_v31, %v18329_v54  ;;  %v21034_v54 = vld [vmem:[#allocation72_spill] sm:$0xff] }
 0x506   : > { %21032 = vst [vmem:[#allocation19_spill] sm:$0xff] %v18459_v41  ;;  %v18469_v21 = vpop.eup %13097  ;;  %9803 = vst.msk [vmem:[%s15908_s25 + $0x3d0] sm:$0xff] %vm9680_vm6, %v9546_v2  ;;  %v6549_v6 = vsub.f32 0.0, %v6121_v10  ;;  %v18475_v20 = vmin.f32 %v7807_v62, 1.0  ;;  %v7808_v55 = vmax.f32 %v18352_v27, 0.0  ;;  %v18478_v58 = vpop.permute.xlu1 %8917  ;;  %9013 = vrot.lane.b32.xlu1 %v18459_v41, %s13463_s19  ;;  %v6124_v2 = vadd.f32 %v17930_v56, %v14727_v35  ;;  %v21035_v41 = vld [vmem:[#allocation85_spill] sm:$0xff] }
 0x507   : > { %v18480_v52 = vpop.f32.mrb[95].mxu0  ;;  %v13100_v13 = vpop.eup %13099  ;;  %9804 = vst.msk [vmem:[%s15908_s25 + $0x3d8] sm:$0xff] %vm9680_vm6, %v9547_v18  ;;  %v6547_v16 = vsub.f32 0.0, %v6113_v36  ;;  %v8263_v31 = vsub.f32 1.0, %v21034_v54  ;;  %v6116_v27 = vadd.f32 %v17942_v24, %v14727_v35  ;;  %v8264_v18 = vsub.f32 1.0, %v21035_v41 }
 0x508   : > { %21033 = vst [vmem:[#allocation37_spill] sm:$0xff] %v18475_v20  ;;  %v13102_v10 = vpop.eup %13101  ;;  %v7310_v62 = vadd.f32 1.0, %v13100_v13  ;;  %v7003_v5 = vmul.f32 1.442695, %v6549_v6  ;;  %9007 = vrot.lane.b32.xlu0 %v18475_v20, %s13463_s19  ;;  %v18493_v22 = vmin.f32 %v7808_v55, 1.0  ;;  %v6550_v54 = vsub.f32 0.0, %v6124_v2  ;;  %v18500_v24 = vpop.permute.xlu0 %8911 }
 0x509   : > { %v18496_v36 = vpop.eup %13103  ;;  %v7308_v15 = vadd.f32 1.0, %v13102_v10  ;;  %v6999_v56 = vmul.f32 1.442695, %v6547_v16  ;;  %v9544_v51 = vsel %vm9423_vm5, %v8263_v31, %v18356_v38  ;;  %v6548_v6 = vsub.f32 0.0, %v6116_v27 }
 0x50a   : > { %v13106_v13 = vpop.eup %13105  ;;  %13117 = vrcp.f32 %v7310_v62  ;;  %9801 = vst.msk [vmem:[%s15908_s25 + $0x3c0] sm:$0xff] %vm9680_vm6, %v9544_v51  ;;  %v9545_v55 = vsel %vm9423_vm5, %v8264_v18, %v18366_v23  ;;  %v7813_v41 = vmax.f32 %v18380_v47, 0.0  ;;  %v18507_v20 = vpop.permute.xlu1 %8913  ;;  %9009 = vrot.lane.b32.xlu1 %v18493_v22, %s13463_s19  ;;  %v7005_v38 = vmul.f32 1.442695, %v6550_v54 }
 0x50b   : > { %v13108_v16 = vpop.eup %13107  ;;  %13119 = vrcp.f32 %v7308_v15  ;;  %v7313_v2 = vadd.f32 1.0, %v13106_v13  ;;  %9802 = vst.msk [vmem:[%s15908_s25 + $0x3c8] sm:$0xff] %vm9680_vm6, %v9545_v55  ;;  %v7814_v31 = vmax.f32 %v18410_v3, 0.0  ;;  %v7001_v10 = vmul.f32 1.442695, %v6548_v6  ;;  %v21037_v3 = vld [vmem:[#allocation87_spill] sm:$0xff] }
 0x50c   : > { %v13110_v51 = vpop.eup %13109  ;;  %v7311_v27 = vadd.f32 1.0, %v13108_v16  ;;  %13121 = vpow2.f32 %v7003_v5  ;;  %v18514_v23 = vmin.f32 %v7813_v41, 1.0  ;;  %v8269_v18 = vsub.f32 1.0, %v17522_v59  ;;  %v18529_v55 = vpop.permute.xlu0 %8923 }
 0x50d   : > { %v18516_v47 = vpop.eup %13111  ;;  %13123 = vrcp.f32 %v7313_v2  ;;  %v7314_v62 = vadd.f32 1.0, %v13110_v51  ;;  %v18518_v15 = vmin.f32 %v7814_v31, 1.0  ;;  %v8270_v5 = vsub.f32 1.0, %v21037_v3  ;;  %v18540_v31 = vpop.f32.mrb[96].mxu0 }
 0x50e   : > { %v18521_v13 = vpop.eup %13113  ;;  %13125 = vrcp.f32 %v7311_v27  ;;  %9019 = vrot.lane.b32.xlu0 %v18514_v23, %s13463_s19  ;;  %v6137_v54 = vadd.f32 %v18015_v45, %v14727_v35  ;;  %v7811_v6 = vmax.f32 %v18388_v32, 0.0  ;;  %v18531_v41 = vpop.permute.xlu1 %8925  ;;  %v9550_v16 = vsel %vm9423_vm5, %v8269_v18, %v18408_v9 }
 0x50f   : > { %21036 = vst [vmem:[#allocation102_spill] sm:$0xff] %v18518_v15  ;;  %v13116_v59 = vpop.eup %13115  ;;  %13127 = vrcp.f32 %v7314_v62  ;;  %9021 = vrot.lane.b32.xlu1 %v18518_v15, %s13463_s19  ;;  %v6129_v2 = vadd.f32 %v18024_v12, %v14727_v35  ;;  %v7812_v45 = vmax.f32 %v18418_v50, 0.0  ;;  %9807 = vst.msk [vmem:[%s15908_s25 + $0x3f0] sm:$0xff] %vm9680_vm6, %v9550_v16  ;;  %v9551_v51 = vsel %vm9423_vm5, %v8270_v5, %v18414_v57  ;;  %v18546_v62 = vpop.f32.mrb[97].mxu0  ;;  %v21041_v16 = vld [vmem:[#allocation75_spill] sm:$0xff] }
 0x510   : > { %v7312_v32 = vadd.f32 1.0, %v13116_v59  ;;  %13129 = vpow2.f32 %v6999_v56  ;;  %v6553_v27 = vsub.f32 0.0, %v6137_v54  ;;  %9808 = vst.msk [vmem:[%s15908_s25 + $0x3f8] sm:$0xff] %vm9680_vm6, %v9551_v51  ;;  %v18550_v9 = vmin.f32 %v7811_v6, 1.0  ;;  %v18554_v50 = vpop.f32.mrb[98].mxu0  ;;  %v21040_v59 = vld [vmem:[#allocation22_spill] sm:$0xff]  ;;  %v18559_v5 = vpop.permute.xlu0 %8919 }
 0x511   : > { %13131 = vpow2.f32 %v7005_v38  ;;  %v6551_v12 = vsub.f32 0.0, %v6129_v2  ;;  %v18552_v18 = vmin.f32 %v7812_v45, 1.0  ;;  %v6140_v3 = vadd.f32 %v18036_v43, %v14727_v35  ;;  %v18570_v2 = vpop.f32.mrb[99].mxu0 }
 0x512   : > { %21038 = vst [vmem:[#allocation51_spill] sm:$0xff] %v18550_v9  ;;  %13133 = vrcp.f32 %v7312_v32  ;;  %v7011_v56 = vmul.f32 1.442695, %v6553_v27  ;;  %v8267_v57 = vsub.f32 1.0, %v21040_v59  ;;  %v18561_v38 = vpop.permute.xlu1 %8921  ;;  %9015 = vrot.lane.b32.xlu0 %v18550_v9, %s13463_s19  ;;  %v6132_v6 = vadd.f32 %v18047_v34, %v14727_v35 }
 0x513   : > { %21039 = vst [vmem:[#allocation21_spill] sm:$0xff] %v18552_v18  ;;  %13135 = vpow2.f32 %v7001_v10  ;;  %v7007_v54 = vmul.f32 1.442695, %v6551_v12  ;;  %9017 = vrot.lane.b32.xlu1 %v18552_v18, %s13463_s19  ;;  %v8268_v43 = vsub.f32 1.0, %v21041_v16  ;;  %v6554_v32 = vsub.f32 0.0, %v6140_v3 }
 0x514   : > { %v18572_v45 = vpop.eup %13117  ;;  %13137 = vpow2.f32 %v7011_v56  ;;  %v9548_v10 = vsel %vm9423_vm5, %v8267_v57, %v18431_v0  ;;  %v7817_v51 = vmax.f32 %v18447_v46, 0.0  ;;  %v6552_v34 = vsub.f32 0.0, %v6132_v6  ;;  %v21043_v0 = vld [vmem:[#allocation119_spill] sm:$0xff]  ;;  %v21044_v46 = vld [vmem:[#allocation76_spill] sm:$0xff]  ;;  %v18590_v9 = vpop.permute.xlu0 %8931 }
 0x515   : > { %v18577_v27 = vpop.eup %13119  ;;  %13139 = vpow2.f32 %v7007_v54  ;;  %9805 = vst.msk [vmem:[%s15908_s25 + $0x3e0] sm:$0xff] %vm9680_vm6, %v9548_v10  ;;  %v9549_v12 = vsel %vm9423_vm5, %v8268_v43, %v18439_v49  ;;  %v7818_v59 = vmax.f32 %v18469_v21, 0.0  ;;  %v7013_v18 = vmul.f32 1.442695, %v6554_v32 }
 0x516   : > { %v13122_v16 = vpop.eup %13121  ;;  %9806 = vst.msk [vmem:[%s15908_s25 + $0x3e8] sm:$0xff] %vm9680_vm6, %v9549_v12  ;;  %v18586_v56 = vmin.f32 %v7817_v51, 1.0  ;;  %v8273_v3 = vsub.f32 1.0, %v21043_v0  ;;  %v8274_v57 = vsub.f32 1.0, %v21044_v46  ;;  %v7009_v49 = vmul.f32 1.442695, %v6552_v34  ;;  %v18598_v32 = vpop.permute.xlu1 %8933 }
 0x517   : > { %v18592_v54 = vpop.eup %13123  ;;  %v7317_v6 = vadd.f32 1.0, %v13122_v16  ;;  %v18594_v43 = vmin.f32 %v7818_v59, 1.0  ;;  %v6153_v21 = vadd.f32 %v18100_v8, %v14727_v35  ;;  %13141 = vpow2.f32 %v7013_v18  ;;  %v21047_v0 = vld [vmem:[#allocation42_spill] sm:$0xff] }
 0x518   : > { %21042 = vst [vmem:[#allocation38_spill] sm:$0xff] %v18586_v56  ;;  %v18600_v10 = vpop.eup %13125  ;;  %9027 = vrot.lane.b32.xlu0 %v18586_v56, %s13463_s19  ;;  %v9554_v51 = vsel %vm9423_vm5, %v8273_v3, %v18465_v60  ;;  %v9555_v12 = vsel %vm9423_vm5, %v8274_v57, %v18478_v58  ;;  %v7815_v34 = vmax.f32 %v18457_v7, 0.0  ;;  %v6145_v18 = vadd.f32 %v18106_v30, %v14727_v35  ;;  %v18625_v46 = vpop.permute.xlu0 %8927 }
 0x519   : > { %21045 = vst [vmem:[#allocation121_spill] sm:$0xff] %v18594_v43  ;;  %v18609_v59 = vpop.eup %13127  ;;  %13143 = vrcp.f32 %v7317_v6  ;;  %9029 = vrot.lane.b32.xlu1 %v18594_v43, %s13463_s19  ;;  %9811 = vst.msk [vmem:[%s15908_s25 + $0x410] sm:$0xff] %vm9680_vm6, %v9554_v51  ;;  %v6557_v8 = vsub.f32 0.0, %v6153_v21  ;;  %v7816_v60 = vmax.f32 %v18496_v36, 0.0  ;;  %v6156_v7 = vadd.f32 %v18117_v63, %v14727_v35  ;;  %v18631_v36 = vpop.f32.mrb[100].mxu0 }
 0x51a   : > { %9812 = vst.msk [vmem:[%s15908_s25 + $0x418] sm:$0xff] %vm9680_vm6, %v9555_v12  ;;  %v13130_v16 = vpop.eup %13129  ;;  %13145 = vpow2.f32 %v7009_v49  ;;  %v18620_v58 = vmin.f32 %v7815_v34, 1.0  ;;  %v8271_v3 = vsub.f32 1.0, %v21047_v0  ;;  %v6555_v21 = vsub.f32 0.0, %v6145_v18  ;;  %v18629_v30 = vpop.permute.xlu1 %8929 }
 0x51b   : > { %v13132_v57 = vpop.eup %13131  ;;  %v7315_v6 = vadd.f32 1.0, %v13130_v16  ;;  %v7019_v51 = vmul.f32 1.442695, %v6557_v8  ;;  %v18627_v12 = vmin.f32 %v7816_v60, 1.0  ;;  %v6558_v63 = vsub.f32 0.0, %v6156_v7  ;;  %v18641_v18 = vpop.f32.mrb[101].mxu0 }
 0x51c   : > { %21046 = vst [vmem:[#allocation82_spill] sm:$0xff] %v18620_v58  ;;  %v18633_v49 = vpop.eup %13133  ;;  %v7318_v34 = vadd.f32 1.0, %v13132_v57  ;;  %9023 = vrot.lane.b32.xlu0 %v18620_v58, %s13463_s19  ;;  %v9552_v0 = vsel %vm9423_vm5, %v8271_v3, %v18500_v24  ;;  %v6148_v8 = vadd.f32 %v18130_v33, %v14727_v35  ;;  %v7015_v16 = vmul.f32 1.442695, %v6555_v21  ;;  %v21049_v57 = vld [vmem:[#allocation120_spill] sm:$0xff]  ;;  %v18649_v58 = vpop.f32.mrb[102].mxu0 }
 0x51d   : > { %21048 = vst [vmem:[#allocation26_spill] sm:$0xff] %v18627_v12  ;;  %v13136_v60 = vpop.eup %13135  ;;  %13147 = vrcp.f32 %v7315_v6  ;;  %9025 = vrot.lane.b32.xlu1 %v18627_v12, %s13463_s19  ;;  %9809 = vst.msk [vmem:[%s15908_s25 + $0x400] sm:$0xff] %vm9680_vm6, %v9552_v0  ;;  %v8272_v43 = vsub.f32 1.0, %v21049_v57  ;;  %v7821_v7 = vmax.f32 %v18516_v47, 0.0  ;;  %v7021_v3 = vmul.f32 1.442695, %v6558_v63 }
 0x51e   : > { %v13138_v24 = vpop.eup %13137  ;;  %13149 = vrcp.f32 %v7318_v34  ;;  %v7316_v33 = vadd.f32 1.0, %v13136_v60  ;;  %v6556_v56 = vsub.f32 0.0, %v6148_v8  ;;  %v18651_v15 = vpop.f32.mrb[103].mxu0  ;;  %v7822_v34 = vmax.f32 %v18572_v45, 0.0 }
 0x51f   : > { %v13140_v6 = vpop.eup %13139  ;;  %v7321_v21 = vadd.f32 1.0, %v13138_v24  ;;  %13151 = vpow2.f32 %v7019_v51  ;;  %v9553_v0 = vsel %vm9423_vm5, %v8272_v43, %v18507_v20  ;;  %v18655_v12 = vmin.f32 %v7821_v7, 1.0  ;;  %v18660_v60 = vpop.permute.xlu0 %8939  ;;  %v21050_v51 = vld [vmem:[#allocation78_spill] sm:$0xff]  ;;  %v21051_v20 = vld [vmem:[#allocation43_spill] sm:$0xff] }
 0x520   : > { %13153 = vrcp.f32 %v7316_v33  ;;  %v7319_v47 = vadd.f32 1.0, %v13140_v6  ;;  %v7017_v57 = vmul.f32 1.442695, %v6556_v56  ;;  %9810 = vst.msk [vmem:[%s15908_s25 + $0x408] sm:$0xff] %vm9680_vm6, %v9553_v0  ;;  %v18662_v63 = vpop.permute.xlu1 %8941  ;;  %v8277_v8 = vsub.f32 1.0, %v21050_v51 }
 0x521   : > { %13155 = vrcp.f32 %v7321_v21  ;;  %9035 = vrot.lane.b32.xlu0 %v18655_v12, %s13463_s19  ;;  %v8278_v43 = vsub.f32 1.0, %v21051_v20  ;;  %v6169_v56 = vadd.f32 %v18196_v28, %v14727_v35  ;;  %v13142_v7 = vpop.eup %13141  ;;  %v18670_v45 = vmin.f32 %v7822_v34, 1.0 }
 0x522   : > { %13157 = vrcp.f32 %v7319_v47  ;;  %v7819_v24 = vmax.f32 %v18521_v13, 0.0  ;;  %v6161_v33 = vadd.f32 %v18205_v1, %v14727_v35  ;;  %v7322_v21 = vadd.f32 1.0, %v13142_v7 }
 0x523   : > { %21052 = vst [vmem:[#allocation86_spill] sm:$0xff] %v18670_v45  ;;  %v18675_v6 = vpop.eup %13143  ;;  %13159 = vpow2.f32 %v7015_v16  ;;  %v9558_v0 = vsel %vm9423_vm5, %v8277_v8, %v18529_v55  ;;  %v9559_v51 = vsel %vm9423_vm5, %v8278_v43, %v18531_v41  ;;  %9037 = vrot.lane.b32.xlu1 %v18670_v45, %s13463_s19  ;;  %v6561_v1 = vsub.f32 0.0, %v6169_v56  ;;  %v18689_v16 = vpop.permute.xlu0 %8935  ;;  %v21054_v43 = vld [vmem:[#allocation79_spill] sm:$0xff] }
 0x524   : > { %v13146_v28 = vpop.eup %13145  ;;  %13161 = vpow2.f32 %v7021_v3  ;;  %9815 = vst.msk [vmem:[%s15908_s25 + $0x430] sm:$0xff] %vm9680_vm6, %v9558_v0  ;;  %9816 = vst.msk [vmem:[%s15908_s25 + $0x438] sm:$0xff] %vm9680_vm6, %v9559_v51  ;;  %v18687_v13 = vmin.f32 %v7819_v24, 1.0  ;;  %v6559_v47 = vsub.f32 0.0, %v6161_v33  ;;  %v7820_v34 = vmax.f32 %v18577_v27, 0.0  ;;  %v18694_v3 = vpop.permute.xlu1 %8937 }
 0x525   : > { %13163 = vrcp.f32 %v7322_v21  ;;  %v7320_v55 = vadd.f32 1.0, %v13146_v28  ;;  %v6172_v41 = vadd.f32 %v18211_v26, %v14727_v35  ;;  %v7027_v8 = vmul.f32 1.442695, %v6561_v1  ;;  %v21056_v21 = vld [vmem:[#allocation80_spill] sm:$0xff]  ;;  %v18713_v1 = vpop.f32.mrb[104].mxu0 }
 0x526   : > { %21053 = vst [vmem:[#allocation88_spill] sm:$0xff] %v18687_v13  ;;  %13165 = vpow2.f32 %v7017_v57  ;;  %9031 = vrot.lane.b32.xlu0 %v18687_v13, %s13463_s19  ;;  %v7023_v20 = vmul.f32 1.442695, %v6559_v47  ;;  %v8275_v56 = vsub.f32 1.0, %v21054_v43  ;;  %v18701_v24 = vmin.f32 %v7820_v34, 1.0 }
 0x527   : > { %v18699_v7 = vpop.eup %13147  ;;  %13167 = vrcp.f32 %v7320_v55  ;;  %v6562_v27 = vsub.f32 0.0, %v6172_v41  ;;  %v6164_v26 = vadd.f32 %v18222_v44, %v14727_v35  ;;  %v8276_v0 = vsub.f32 1.0, %v21056_v21  ;;  %v18711_v28 = vpop.permute.xlu0 %8947 }
 0x528   : > { %21055 = vst [vmem:[#allocation91_spill] sm:$0xff] %v18701_v24  ;;  %v18705_v33 = vpop.eup %13149  ;;  %13169 = vpow2.f32 %v7027_v8  ;;  %v9556_v57 = vsel %vm9423_vm5, %v8275_v56, %v18559_v5  ;;  %v7825_v51 = vmax.f32 %v18592_v54, 0.0  ;;  %9033 = vrot.lane.b32.xlu1 %v18701_v24, %s13463_s19  ;;  %v7826_v5 = vmax.f32 %v18609_v59, 0.0  ;;  %v18720_v34 = vpop.permute.xlu1 %8949  ;;  %v21058_v56 = vld [vmem:[#allocation97_spill] sm:$0xff]  ;;  %v21060_v24 = vld [vmem:[#allocation6_spill] sm:$0xff] }
 0x529   : > { %v13152_v47 = vpop.eup %13151  ;;  %13171 = vpow2.f32 %v7023_v20  ;;  %v7029_v44 = vmul.f32 1.442695, %v6562_v27  ;;  %9813 = vst.msk [vmem:[%s15908_s25 + $0x420] sm:$0xff] %vm9680_vm6, %v9556_v57  ;;  %v6560_v55 = vsub.f32 0.0, %v6164_v26  ;;  %v18722_v41 = vpop.f32.mrb[105].mxu0  ;;  %v9557_v20 = vsel %vm9423_vm5, %v8276_v0, %v18561_v38 }
 0x52a   : > { %v18724_v54 = vpop.eup %13153  ;;  %v7325_v8 = vadd.f32 1.0, %v13152_v47  ;;  %v18728_v43 = vmin.f32 %v7825_v51, 1.0  ;;  %v8281_v21 = vsub.f32 1.0, %v21058_v56  ;;  %v18731_v27 = vpop.f32.mrb[106].mxu0  ;;  %9814 = vst.msk [vmem:[%s15908_s25 + $0x428] sm:$0xff] %vm9680_vm6, %v9557_v20  ;;  %v18737_v26 = vmin.f32 %v7826_v5, 1.0 }
 0x52b   : > { %v18733_v57 = vpop.eup %13155  ;;  %13173 = vpow2.f32 %v7029_v44  ;;  %v7025_v59 = vmul.f32 1.442695, %v6560_v55  ;;  %v8282_v47 = vsub.f32 1.0, %v21060_v24  ;;  %v18740_v13 = vpop.f32.mrb[107].mxu0  ;;  %v6185_v51 = vadd.f32 %v18277_v11, %v14727_v35 }
 0x52c   : > { %21057 = vst [vmem:[#allocation92_spill] sm:$0xff] %v18728_v43  ;;  %21059 = vst [vmem:[#allocation44_spill] sm:$0xff] %v18737_v26  ;;  %v18742_v38 = vpop.eup %13157  ;;  %13175 = vrcp.f32 %v7325_v8  ;;  %9043 = vrot.lane.b32.xlu0 %v18728_v43, %s13463_s19  ;;  %v9562_v0 = vsel %vm9423_vm5, %v8281_v21, %v18590_v9  ;;  %v7823_v44 = vmax.f32 %v18600_v10, 0.0  ;;  %v18751_v55 = vpop.permute.xlu0 %8943  ;;  %9045 = vrot.lane.b32.xlu1 %v18737_v26, %s13463_s19  ;;  %v7824_v8 = vmax.f32 %v18633_v49, 0.0 }
 0x52d   : > { %v13160_v24 = vpop.eup %13159  ;;  %13177 = vpow2.f32 %v7025_v59  ;;  %9819 = vst.msk [vmem:[%s15908_s25 + $0x450] sm:$0xff] %vm9680_vm6, %v9562_v0  ;;  %v9563_v5 = vsel %vm9423_vm5, %v8282_v47, %v18598_v32  ;;  %v6177_v9 = vadd.f32 %v18288_v14, %v14727_v35  ;;  %v18762_v11 = vpop.permute.xlu1 %8945  ;;  %v6565_v56 = vsub.f32 0.0, %v6185_v51  ;;  %v21063_v14 = vld [vmem:[#allocation39_spill] sm:$0xff] }
 0x52e   : > { %v13162_v10 = vpop.eup %13161  ;;  %v7323_v20 = vadd.f32 1.0, %v13160_v24  ;;  %9820 = vst.msk [vmem:[%s15908_s25 + $0x458] sm:$0xff] %vm9680_vm6, %v9563_v5  ;;  %v18766_v21 = vmin.f32 %v7823_v44, 1.0  ;;  %v6188_v59 = vadd.f32 %v18296_v37, %v14727_v35  ;;  %v18772_v26 = vmin.f32 %v7824_v8, 1.0 }
 0x52f   : > { %v18770_v0 = vpop.eup %13163  ;;  %v7326_v32 = vadd.f32 1.0, %v13162_v10  ;;  %v6563_v47 = vsub.f32 0.0, %v6177_v9  ;;  %v8279_v49 = vsub.f32 1.0, %v21063_v14  ;;  %v7035_v24 = vmul.f32 1.442695, %v6565_v56 }
 0x530   : > { %21061 = vst [vmem:[#allocation109_spill] sm:$0xff] %v18766_v21  ;;  %21062 = vst [vmem:[#allocation93_spill] sm:$0xff] %v18772_v26  ;;  %v13166_v43 = vpop.eup %13165  ;;  %13179 = vrcp.f32 %v7323_v20  ;;  %9039 = vrot.lane.b32.xlu0 %v18766_v21, %s13463_s19  ;;  %v6566_v51 = vsub.f32 0.0, %v6188_v59  ;;  %v6180_v44 = vadd.f32 %v18302_v39, %v14727_v35  ;;  %9041 = vrot.lane.b32.xlu1 %v18772_v26, %s13463_s19  ;;  %v21064_v59 = vld [vmem:[#allocation41_spill] sm:$0xff]  ;;  %v18788_v39 = vpop.permute.xlu0 %8955  ;;  %v7830_v26 = vmax.f32 %v18705_v33, 0.0 }
 0x531   : > { %v18779_v37 = vpop.eup %13167  ;;  %13181 = vrcp.f32 %v7326_v32  ;;  %v7324_v5 = vadd.f32 1.0, %v13166_v43  ;;  %v7031_v9 = vmul.f32 1.442695, %v6563_v47  ;;  %v9560_v8 = vsel %vm9423_vm5, %v8279_v49, %v18625_v46  ;;  %v18792_v21 = vpop.permute.xlu1 %8957  ;;  %v21067_v33 = vld [vmem:[#allocation81_spill] sm:$0xff] }
 0x532   : > { %v13170_v10 = vpop.eup %13169  ;;  %13183 = vpow2.f32 %v7035_v24  ;;  %v7037_v20 = vmul.f32 1.442695, %v6566_v51  ;;  %9817 = vst.msk [vmem:[%s15908_s25 + $0x440] sm:$0xff] %vm9680_vm6, %v9560_v8  ;;  %v6564_v56 = vsub.f32 0.0, %v6180_v44  ;;  %v8280_v14 = vsub.f32 1.0, %v21064_v59  ;;  %v18794_v46 = vpop.f32.mrb[108].mxu0 }
 0x533   : > { %v13172_v32 = vpop.eup %13171  ;;  %13185 = vrcp.f32 %v7324_v5  ;;  %v7329_v43 = vadd.f32 1.0, %v13170_v10  ;;  %v7829_v47 = vmax.f32 %v18675_v6, 0.0  ;;  %v18798_v44 = vpop.f32.mrb[109].mxu0  ;;  %v18804_v6 = vmin.f32 %v7830_v26, 1.0 }
 0x534   : > { %v7327_v49 = vadd.f32 1.0, %v13172_v32  ;;  %13187 = vpow2.f32 %v7031_v9  ;;  %v7033_v24 = vmul.f32 1.442695, %v6564_v56  ;;  %v9561_v51 = vsel %vm9423_vm5, %v8280_v14, %v18629_v30  ;;  %v18807_v59 = vpop.f32.mrb[110].mxu0  ;;  %v21068_v30 = vld [vmem:[#allocation122_spill] sm:$0xff] }
 0x535   : > { %v13174_v8 = vpop.eup %13173  ;;  %13189 = vrcp.f32 %v7329_v43  ;;  %9818 = vst.msk [vmem:[%s15908_s25 + $0x448] sm:$0xff] %vm9680_vm6, %v9561_v51  ;;  %v18802_v5 = vmin.f32 %v7829_v47, 1.0  ;;  %21066 = vst [vmem:[#allocation96_spill] sm:$0xff] %v18804_v6  ;;  %v8285_v10 = vsub.f32 1.0, %v21067_v33  ;;  %v8286_v56 = vsub.f32 1.0, %v21068_v30  ;;  %v18814_v43 = vpop.permute.xlu0 %8951  ;;  %9053 = vrot.lane.b32.xlu1 %v18804_v6, %s13463_s19 }
 0x536   : > { %v18809_v32 = vpop.eup %13175  ;;  %13191 = vrcp.f32 %v7327_v49  ;;  %v7330_v9 = vadd.f32 1.0, %v13174_v8  ;;  %v6201_v14 = vadd.f32 %v18368_v53, %v14727_v35  ;;  %v18816_v47 = vpop.f32.mrb[111].mxu0  ;;  %v7827_v51 = vmax.f32 %v18699_v7, 0.0 }
 0x537   : > { %21065 = vst [vmem:[#allocation32_spill] sm:$0xff] %v18802_v5  ;;  %v13178_v26 = vpop.eup %13177  ;;  %13193 = vpow2.f32 %v7037_v20  ;;  %9051 = vrot.lane.b32.xlu0 %v18802_v5, %s13463_s19  ;;  %v9566_v49 = vsel %vm9423_vm5, %v8285_v10, %v18660_v60  ;;  %v6193_v53 = vadd.f32 %v18378_v17, %v14727_v35  ;;  %v18827_v8 = vpop.permute.xlu1 %8953  ;;  %v9567_v20 = vsel %vm9423_vm5, %v8286_v56, %v18662_v63  ;;  %v21072_v56 = vld [vmem:[#allocation24_spill] sm:$0xff] }
 0x538   : > { %13195 = vrcp.f32 %v7330_v9  ;;  %v7328_v33 = vadd.f32 1.0, %v13178_v26  ;;  %9823 = vst.msk [vmem:[%s15908_s25 + $0x470] sm:$0xff] %vm9680_vm6, %v9566_v49  ;;  %v6569_v30 = vsub.f32 0.0, %v6201_v14  ;;  %9824 = vst.msk [vmem:[%s15908_s25 + $0x478] sm:$0xff] %vm9680_vm6, %v9567_v20  ;;  %v18835_v6 = vmin.f32 %v7827_v51, 1.0  ;;  %v21070_v26 = vld [vmem:[#allocation9_spill] sm:$0xff] }
 0x539   : > { %13197 = vpow2.f32 %v7033_v24  ;;  %v6567_v60 = vsub.f32 0.0, %v6193_v53  ;;  %v7828_v7 = vmax.f32 %v18724_v54, 0.0  ;;  %v6204_v9 = vadd.f32 %v18386_v48, %v14727_v35 }
 0x53a   : > { %21069 = vst [vmem:[#allocation12_spill] sm:$0xff] %v18835_v6  ;;  %v18838_v10 = vpop.eup %13179  ;;  %13199 = vrcp.f32 %v7328_v33  ;;  %v7043_v17 = vmul.f32 1.442695, %v6569_v30  ;;  %v8283_v49 = vsub.f32 1.0, %v21070_v26  ;;  %v6196_v54 = vadd.f32 %v18401_v40, %v14727_v35  ;;  %v18852_v51 = vpop.permute.xlu0 %8963 }
 0x53b   : > { %v18843_v5 = vpop.eup %13181  ;;  %9047 = vrot.lane.b32.xlu0 %v18835_v6, %s13463_s19  ;;  %v7039_v63 = vmul.f32 1.442695, %v6567_v60  ;;  %v18847_v24 = vmin.f32 %v7828_v7, 1.0  ;;  %v8284_v14 = vsub.f32 1.0, %v21072_v56  ;;  %v6570_v53 = vsub.f32 0.0, %v6204_v9  ;;  %v18857_v30 = vpop.permute.xlu1 %8965 }
 0x53c   : > { %v13184_v48 = vpop.eup %13183  ;;  %13201 = vpow2.f32 %v7043_v17  ;;  %v9564_v33 = vsel %vm9423_vm5, %v8283_v49, %v18689_v16  ;;  %v7833_v20 = vmax.f32 %v18733_v57, 0.0  ;;  %v6568_v40 = vsub.f32 0.0, %v6196_v54  ;;  %v21074_v49 = vld [vmem:[#allocation25_spill] sm:$0xff] }
 0x53d   : > { %21071 = vst [vmem:[#allocation111_spill] sm:$0xff] %v18847_v24  ;;  %v18859_v60 = vpop.eup %13185  ;;  %v7333_v7 = vadd.f32 1.0, %v13184_v48  ;;  %13203 = vpow2.f32 %v7039_v63  ;;  %9049 = vrot.lane.b32.xlu1 %v18847_v24, %s13463_s19  ;;  %9821 = vst.msk [vmem:[%s15908_s25 + $0x460] sm:$0xff] %vm9680_vm6, %v9564_v33  ;;  %v9565_v17 = vsel %vm9423_vm5, %v8284_v14, %v18694_v3  ;;  %v7045_v26 = vmul.f32 1.442695, %v6570_v53  ;;  %v18873_v63 = vpop.f32.mrb[112].mxu0 }
 0x53e   : > { %v13188_v9 = vpop.eup %13187  ;;  %9822 = vst.msk [vmem:[%s15908_s25 + $0x468] sm:$0xff] %vm9680_vm6, %v9565_v17  ;;  %v18869_v16 = vmin.f32 %v7833_v20, 1.0  ;;  %v7834_v57 = vmax.f32 %v18770_v0, 0.0  ;;  %v8289_v56 = vsub.f32 1.0, %v21074_v49  ;;  %v7041_v33 = vmul.f32 1.442695, %v6568_v40  ;;  %v18878_v14 = vpop.permute.xlu0 %8959 }
 0x53f   : > { %v18875_v48 = vpop.eup %13189  ;;  %13205 = vrcp.f32 %v7333_v7  ;;  %v7331_v54 = vadd.f32 1.0, %v13188_v9  ;;  %v21075_v24 = vld [vmem:[#allocation100_spill] sm:$0xff]  ;;  %v18880_v53 = vpop.f32.mrb[113].mxu0  ;;  %v6217_v40 = vadd.f32 %v18445_v29, %v14727_v35  ;;  %v6209_v49 = vadd.f32 %v18455_v19, %v14727_v35 }
 0x540   : > { %21073 = vst [vmem:[#allocation52_spill] sm:$0xff] %v18869_v16  ;;  %v8290_v3 = vsub.f32 1.0, %v21075_v24  ;;  %v18882_v20 = vpop.eup %13191  ;;  %13207 = vpow2.f32 %v7045_v26  ;;  %9059 = vrot.lane.b32.xlu0 %v18869_v16, %s13463_s19  ;;  %v18886_v0 = vmin.f32 %v7834_v57, 1.0  ;;  %v9570_v7 = vsel %vm9423_vm5, %v8289_v56, %v18711_v28  ;;  %v18892_v24 = vpop.permute.xlu1 %8961  ;;  %v21078_v16 = vld [vmem:[#allocation84_spill] sm:$0xff] }
 0x541   : > { %v18894_v17 = vpop.f32.mrb[114].mxu0  ;;  %v13194_v9 = vpop.eup %13193  ;;  %13209 = vrcp.f32 %v7331_v54  ;;  %9827 = vst.msk [vmem:[%s15908_s25 + $0x490] sm:$0xff] %vm9680_vm6, %v9570_v7  ;;  %v7831_v57 = vmax.f32 %v18742_v38, 0.0  ;;  %v6573_v54 = vsub.f32 0.0, %v6217_v40  ;;  %v7832_v7 = vmax.f32 %v18779_v37, 0.0 }
 0x542   : > { %21076 = vst [vmem:[#allocation31_spill] sm:$0xff] %v18886_v0  ;;  %v9571_v26 = vsel %vm9423_vm5, %v8290_v3, %v18720_v34  ;;  %v18903_v28 = vpop.f32.mrb[115].mxu0  ;;  %v18905_v56 = vpop.eup %13195  ;;  %v7334_v29 = vadd.f32 1.0, %v13194_v9  ;;  %13211 = vpow2.f32 %v7041_v33  ;;  %9061 = vrot.lane.b32.xlu1 %v18886_v0, %s13463_s19  ;;  %v6571_v38 = vsub.f32 0.0, %v6209_v49 }
 0x543   : > { %9828 = vst.msk [vmem:[%s15908_s25 + $0x498] sm:$0xff] %vm9680_vm6, %v9571_v26  ;;  %v13198_v34 = vpop.eup %13197  ;;  %v18912_v3 = vmin.f32 %v7831_v57, 1.0  ;;  %v6220_v19 = vadd.f32 %v18467_v42, %v14727_v35  ;;  %v8287_v6 = vsub.f32 1.0, %v21078_v16  ;;  %v18917_v9 = vpop.permute.xlu0 %8971  ;;  %v7051_v26 = vmul.f32 1.442695, %v6573_v54 }
 0x544   : > { %v18919_v33 = vpop.eup %13199  ;;  %13213 = vrcp.f32 %v7334_v29  ;;  %v7332_v0 = vadd.f32 1.0, %v13198_v34  ;;  %v18921_v40 = vmin.f32 %v7832_v7, 1.0  ;;  %v7047_v37 = vmul.f32 1.442695, %v6571_v38  ;;  %v21080_v29 = vld [vmem:[#allocation23_spill] sm:$0xff] }
 0x545   : > { %21077 = vst [vmem:[#allocation53_spill] sm:$0xff] %v18912_v3  ;;  %9055 = vrot.lane.b32.xlu0 %v18912_v3, %s13463_s19  ;;  %v6574_v57 = vsub.f32 0.0, %v6220_v19  ;;  %v9568_v42 = vsel %vm9423_vm5, %v8287_v6, %v18751_v55  ;;  %v6212_v16 = vadd.f32 %v18480_v52, %v14727_v35  ;;  %v8288_v54 = vsub.f32 1.0, %v21080_v29  ;;  %v18936_v38 = vpop.permute.xlu1 %8973  ;;  %v21083_v3 = vld [vmem:[#allocation8_spill] sm:$0xff] }
 0x546   : > { %21079 = vst [vmem:[#allocation33_spill] sm:$0xff] %v18921_v40  ;;  %v13202_v49 = vpop.eup %13201  ;;  %13215 = vrcp.f32 %v7332_v0  ;;  %9057 = vrot.lane.b32.xlu1 %v18921_v40, %s13463_s19  ;;  %9825 = vst.msk [vmem:[%s15908_s25 + $0x480] sm:$0xff] %vm9680_vm6, %v9568_v42  ;;  %v7837_v7 = vmax.f32 %v18809_v32, 0.0  ;;  %v7838_v34 = vmax.f32 %v18843_v5, 0.0 }
 0x547   : > { %v13204_v55 = vpop.eup %13203  ;;  %v7337_v6 = vadd.f32 1.0, %v13202_v49  ;;  %13217 = vpow2.f32 %v7051_v26  ;;  %v7053_v52 = vmul.f32 1.442695, %v6574_v57  ;;  %v6572_v19 = vsub.f32 0.0, %v6212_v16 }
 0x548   : > { %v7335_v0 = vadd.f32 1.0, %v13204_v55  ;;  %13219 = vpow2.f32 %v7047_v37  ;;  %v9569_v40 = vsel %vm9423_vm5, %v8288_v54, %v18762_v11  ;;  %v18940_v42 = vmin.f32 %v7837_v7, 1.0  ;;  %v18949_v26 = vpop.permute.xlu0 %8967  ;;  %v21084_v11 = vld [vmem:[#allocation103_spill] sm:$0xff]  ;;  %v18959_v7 = vpop.f32.mrb[116].mxu0 }
 0x549   : > { %v18942_v29 = vpop.eup %13205  ;;  %13221 = vrcp.f32 %v7337_v6  ;;  %v7049_v32 = vmul.f32 1.442695, %v6572_v19  ;;  %9826 = vst.msk [vmem:[%s15908_s25 + $0x488] sm:$0xff] %vm9680_vm6, %v9569_v40  ;;  %v18946_v5 = vmin.f32 %v7838_v34, 1.0  ;;  %v8293_v49 = vsub.f32 1.0, %v21083_v3  ;;  %v18957_v40 = vpop.permute.xlu1 %8969 }
 0x54a   : > { %21081 = vst [vmem:[#allocation34_spill] sm:$0xff] %v18940_v42  ;;  %v13208_v57 = vpop.eup %13207  ;;  %13223 = vrcp.f32 %v7335_v0  ;;  %9067 = vrot.lane.b32.xlu0 %v18940_v42, %s13463_s19  ;;  %v8294_v37 = vsub.f32 1.0, %v21084_v11  ;;  %v6233_v16 = vadd.f32 %v18540_v31, %v14727_v35  ;;  %v7835_v54 = vmax.f32 %v18838_v10, 0.0  ;;  %v18969_v6 = vpop.f32.mrb[117].mxu0 }
 0x54b   : > { %21082 = vst [vmem:[#allocation4_spill] sm:$0xff] %v18946_v5  ;;  %v18961_v3 = vpop.eup %13209  ;;  %v7338_v34 = vadd.f32 1.0, %v13208_v57  ;;  %13225 = vpow2.f32 %v7053_v52  ;;  %9069 = vrot.lane.b32.xlu1 %v18946_v5, %s13463_s19  ;;  %v9574_v55 = vsel %vm9423_vm5, %v8293_v49, %v18788_v39  ;;  %v6225_v31 = vadd.f32 %v18546_v62, %v14727_v35  ;;  %v18977_v57 = vpop.f32.mrb[118].mxu0 }
 0x54c   : > { %v13212_v10 = vpop.eup %13211  ;;  %13227 = vpow2.f32 %v7049_v32  ;;  %9831 = vst.msk [vmem:[%s15908_s25 + $0x4b0] sm:$0xff] %vm9680_vm6, %v9574_v55  ;;  %v9575_v19 = vsel %vm9423_vm5, %v8294_v37, %v18792_v21  ;;  %v6577_v0 = vsub.f32 0.0, %v6233_v16  ;;  %v18975_v52 = vmin.f32 %v7835_v54, 1.0  ;;  %v18982_v49 = vpop.f32.mrb[119].mxu0  ;;  %v21086_v37 = vld [vmem:[#allocation27_spill] sm:$0xff] }
 0x54d   : > { %13229 = vrcp.f32 %v7338_v34  ;;  %v7336_v11 = vadd.f32 1.0, %v13212_v10  ;;  %9832 = vst.msk [vmem:[%s15908_s25 + $0x4b8] sm:$0xff] %vm9680_vm6, %v9575_v19  ;;  %v6575_v39 = vsub.f32 0.0, %v6225_v31  ;;  %v7836_v62 = vmax.f32 %v18859_v60, 0.0  ;;  %v21088_v10 = vld [vmem:[#allocation123_spill] sm:$0xff] }
 0x54e   : > { %21085 = vst [vmem:[#allocation60_spill] sm:$0xff] %v18975_v52  ;;  %v18984_v32 = vpop.eup %13213  ;;  %v7059_v55 = vmul.f32 1.442695, %v6577_v0  ;;  %9063 = vrot.lane.b32.xlu0 %v18975_v52, %s13463_s19  ;;  %v6236_v21 = vadd.f32 %v18554_v50, %v14727_v35  ;;  %v8291_v16 = vsub.f32 1.0, %v21086_v37  ;;  %v6228_v54 = vadd.f32 %v18570_v2, %v14727_v35  ;;  %v18993_v34 = vpop.permute.xlu0 %8979 }
 0x54f   : > { %13231 = vrcp.f32 %v7336_v11  ;;  %v7055_v60 = vmul.f32 1.442695, %v6575_v39  ;;  %v18995_v31 = vmin.f32 %v7836_v62, 1.0  ;;  %v8292_v19 = vsub.f32 1.0, %v21088_v10  ;;  %v19002_v5 = vpop.permute.xlu1 %8981 }
 0x550   : > { %v18998_v0 = vpop.eup %13215  ;;  %13233 = vpow2.f32 %v7059_v55  ;;  %v6578_v52 = vsub.f32 0.0, %v6236_v21  ;;  %v9572_v50 = vsel %vm9423_vm5, %v8291_v16, %v18814_v43  ;;  %v6576_v37 = vsub.f32 0.0, %v6228_v54  ;;  %v21089_v54 = vld [vmem:[#allocation45_spill] sm:$0xff] }
 0x551   : > { %21087 = vst [vmem:[#allocation61_spill] sm:$0xff] %v18995_v31  ;;  %v13218_v2 = vpop.eup %13217  ;;  %13235 = vpow2.f32 %v7055_v60  ;;  %9065 = vrot.lane.b32.xlu1 %v18995_v31, %s13463_s19  ;;  %9829 = vst.msk [vmem:[%s15908_s25 + $0x4a0] sm:$0xff] %vm9680_vm6, %v9572_v50  ;;  %v9573_v11 = vsel %vm9423_vm5, %v8292_v19, %v18827_v8  ;;  %v7841_v39 = vmax.f32 %v18875_v48, 0.0  ;;  %v7842_v62 = vmax.f32 %v18905_v56, 0.0  ;;  %v21092_v8 = vld [vmem:[#allocation105_spill] sm:$0xff] }
 0x552   : > { %v13220_v55 = vpop.eup %13219  ;;  %v7341_v21 = vadd.f32 1.0, %v13218_v2  ;;  %v7061_v43 = vmul.f32 1.442695, %v6578_v52  ;;  %v7057_v16 = vmul.f32 1.442695, %v6576_v37  ;;  %9830 = vst.msk [vmem:[%s15908_s25 + $0x4a8] sm:$0xff] %vm9680_vm6, %v9573_v11  ;;  %v19022_v19 = vpop.permute.xlu0 %8975  ;;  %v6249_v37 = vadd.f32 %v18631_v36, %v14727_v35 }
 0x553   : > { %v8297_v60 = vsub.f32 1.0, %v21089_v54  ;;  %v19015_v10 = vpop.eup %13221  ;;  %v7339_v31 = vadd.f32 1.0, %v13220_v55  ;;  %v19017_v50 = vmin.f32 %v7841_v39, 1.0  ;;  %v19019_v42 = vmin.f32 %v7842_v62, 1.0  ;;  %v19044_v62 = vpop.f32.mrb[120].mxu0 }
 0x554   : > { %v8298_v48 = vsub.f32 1.0, %v21092_v8  ;;  %v19024_v56 = vpop.eup %13223  ;;  %13237 = vrcp.f32 %v7341_v21  ;;  %v7839_v2 = vmax.f32 %v18882_v20, 0.0  ;;  %v19031_v11 = vpop.permute.xlu1 %8977  ;;  %v6241_v36 = vadd.f32 %v18641_v18, %v14727_v35 }
 0x555   : > { %21090 = vst [vmem:[#allocation99_spill] sm:$0xff] %v19017_v50  ;;  %21091 = vst [vmem:[#allocation62_spill] sm:$0xff] %v19019_v42  ;;  %v9578_v52 = vsel %vm9423_vm5, %v8297_v60, %v18852_v51  ;;  %v13226_v39 = vpop.eup %13225  ;;  %13239 = vrcp.f32 %v7339_v31  ;;  %9075 = vrot.lane.b32.xlu0 %v19017_v50, %s13463_s19  ;;  %9077 = vrot.lane.b32.xlu1 %v19019_v42, %s13463_s19  ;;  %v7840_v20 = vmax.f32 %v18919_v33, 0.0  ;;  %v6581_v21 = vsub.f32 0.0, %v6249_v37  ;;  %v19050_v60 = vpop.f32.mrb[121].mxu0 }
 0x556   : > { %9835 = vst.msk [vmem:[%s15908_s25 + $0x4d0] sm:$0xff] %vm9680_vm6, %v9578_v52  ;;  %v9579_v51 = vsel %vm9423_vm5, %v8298_v48, %v18857_v30  ;;  %v13228_v55 = vpop.eup %13227  ;;  %v7342_v31 = vadd.f32 1.0, %v13226_v39  ;;  %13241 = vpow2.f32 %v7061_v43  ;;  %v19048_v54 = vmin.f32 %v7839_v2, 1.0  ;;  %v19056_v33 = vpop.f32.mrb[122].mxu0  ;;  %v21095_v39 = vld [vmem:[#allocation89_spill] sm:$0xff] }
 0x557   : > { %9836 = vst.msk [vmem:[%s15908_s25 + $0x4d8] sm:$0xff] %vm9680_vm6, %v9579_v51  ;;  %v19052_v8 = vpop.eup %13229  ;;  %v7340_v30 = vadd.f32 1.0, %v13228_v55  ;;  %13243 = vpow2.f32 %v7057_v16  ;;  %v6579_v48 = vsub.f32 0.0, %v6241_v36  ;;  %v19054_v18 = vmin.f32 %v7840_v20, 1.0  ;;  %v19061_v2 = vpop.permute.xlu0 %8987  ;;  %v21096_v36 = vld [vmem:[#allocation29_spill] sm:$0xff] }
 0x558   : > { %21093 = vst [vmem:[#allocation101_spill] sm:$0xff] %v19048_v54  ;;  %13245 = vrcp.f32 %v7342_v31  ;;  %v7067_v52 = vmul.f32 1.442695, %v6581_v21  ;;  %v6252_v43 = vadd.f32 %v18649_v58, %v14727_v35  ;;  %v8295_v37 = vsub.f32 1.0, %v21095_v39  ;;  %v19063_v51 = vpop.permute.xlu1 %8989  ;;  %v19074_v55 = vpop.f32.mrb[123].mxu0 }
 0x559   : > { %21094 = vst [vmem:[#allocation36_spill] sm:$0xff] %v19054_v18  ;;  %v19065_v42 = vpop.eup %13231  ;;  %13247 = vrcp.f32 %v7340_v30  ;;  %9071 = vrot.lane.b32.xlu0 %v19048_v54, %s13463_s19  ;;  %v7063_v16 = vmul.f32 1.442695, %v6579_v48  ;;  %9073 = vrot.lane.b32.xlu1 %v19054_v18, %s13463_s19  ;;  %v6244_v58 = vadd.f32 %v18651_v15, %v14727_v35  ;;  %v8296_v20 = vsub.f32 1.0, %v21096_v36 }
 0x55a   : > { %v13234_v31 = vpop.eup %13233  ;;  %13249 = vpow2.f32 %v7067_v52  ;;  %v6582_v21 = vsub.f32 0.0, %v6252_v43  ;;  %v9576_v30 = vsel %vm9423_vm5, %v8295_v37, %v18878_v14  ;;  %v7845_v39 = vmax.f32 %v18942_v29, 0.0  ;;  %v21097_v29 = vld [vmem:[#allocation10_spill] sm:$0xff] }
 0x55b   : > { %v13236_v48 = vpop.eup %13235  ;;  %v7345_v54 = vadd.f32 1.0, %v13234_v31  ;;  %13251 = vpow2.f32 %v7063_v16  ;;  %9833 = vst.msk [vmem:[%s15908_s25 + $0x4c0] sm:$0xff] %vm9680_vm6, %v9576_v30  ;;  %v6580_v18 = vsub.f32 0.0, %v6244_v58  ;;  %v9577_v15 = vsel %vm9423_vm5, %v8296_v20, %v18892_v24  ;;  %v21098_v31 = vld [vmem:[#allocation90_spill] sm:$0xff] }
 0x55c   : > { %v7343_v36 = vadd.f32 1.0, %v13236_v48  ;;  %v7069_v50 = vmul.f32 1.442695, %v6582_v21  ;;  %9834 = vst.msk [vmem:[%s15908_s25 + $0x4c8] sm:$0xff] %vm9680_vm6, %v9577_v15  ;;  %v19085_v52 = vmin.f32 %v7845_v39, 1.0  ;;  %v7846_v43 = vmax.f32 %v18984_v32, 0.0  ;;  %v19090_v45 = vpop.permute.xlu0 %8983 }
 0x55d   : > { %13253 = vrcp.f32 %v7345_v54  ;;  %v7065_v14 = vmul.f32 1.442695, %v6580_v18  ;;  %v8301_v37 = vsub.f32 1.0, %v21097_v29  ;;  %v8302_v16 = vsub.f32 1.0, %v21098_v31  ;;  %v19092_v58 = vpop.permute.xlu1 %8985 }
 0x55e   : > { %v19094_v24 = vpop.eup %13237  ;;  %13255 = vrcp.f32 %v7343_v36  ;;  %9083 = vrot.lane.b32.xlu0 %v19085_v52, %s13463_s19  ;;  %v19098_v20 = vmin.f32 %v7846_v43, 1.0  ;;  %v6265_v32 = vadd.f32 %v18713_v1, %v14727_v35  ;;  %v7843_v54 = vmax.f32 %v18961_v3, 0.0  ;;  %v21101_v43 = vld [vmem:[#allocation28_spill] sm:$0xff] }
 0x55f   : > { %v19103_v18 = vpop.eup %13239  ;;  %13257 = vpow2.f32 %v7069_v50  ;;  %v9582_v21 = vsel %vm9423_vm5, %v8301_v37, %v18917_v9  ;;  %v9583_v30 = vsel %vm9423_vm5, %v8302_v16, %v18936_v38  ;;  %v6257_v39 = vadd.f32 %v18722_v41, %v14727_v35  ;;  %v19120_v50 = vpop.f32.mrb[124].mxu0 }
 0x560   : > { %21099 = vst [vmem:[#allocation5_spill] sm:$0xff] %v19098_v20  ;;  %v13242_v48 = vpop.eup %13241  ;;  %13259 = vpow2.f32 %v7065_v14  ;;  %9085 = vrot.lane.b32.xlu1 %v19098_v20, %s13463_s19  ;;  %9839 = vst.msk [vmem:[%s15908_s25 + $0x4f0] sm:$0xff] %vm9680_vm6, %v9582_v21  ;;  %v6585_v1 = vsub.f32 0.0, %v6265_v32  ;;  %v19117_v3 = vmin.f32 %v7843_v54, 1.0  ;;  %v7844_v9 = vmax.f32 %v18998_v0, 0.0  ;;  %v19125_v29 = vpop.f32.mrb[125].mxu0 }
 0x561   : > { %9840 = vst.msk [vmem:[%s15908_s25 + $0x4f8] sm:$0xff] %vm9680_vm6, %v9583_v30  ;;  %v13244_v38 = vpop.eup %13243  ;;  %v7346_v15 = vadd.f32 1.0, %v13242_v48  ;;  %v6583_v36 = vsub.f32 0.0, %v6257_v39  ;;  %v6268_v41 = vadd.f32 %v18731_v27, %v14727_v35  ;;  %v8299_v14 = vsub.f32 1.0, %v21101_v43  ;;  %v19135_v54 = vpop.permute.xlu0 %8995 }
 0x562   : > { %21100 = vst [vmem:[#allocation113_spill] sm:$0xff] %v19117_v3  ;;  %v19127_v37 = vpop.eup %13245  ;;  %v7344_v31 = vadd.f32 1.0, %v13244_v38  ;;  %v7075_v16 = vmul.f32 1.442695, %v6585_v1  ;;  %9079 = vrot.lane.b32.xlu0 %v19117_v3, %s13463_s19  ;;  %v19131_v0 = vmin.f32 %v7844_v9, 1.0  ;;  %v6260_v32 = vadd.f32 %v18740_v13, %v14727_v35  ;;  %v19141_v48 = vpop.permute.xlu1 %8997  ;;  %v21103_v9 = vld [vmem:[#allocation57_spill] sm:$0xff] }
 0x563   : > { %v19137_v27 = vpop.eup %13247  ;;  %13261 = vrcp.f32 %v7346_v15  ;;  %v7071_v21 = vmul.f32 1.442695, %v6583_v36  ;;  %v6586_v30 = vsub.f32 0.0, %v6268_v41  ;;  %v9580_v39 = vsel %vm9423_vm5, %v8299_v14, %v18949_v26  ;;  %v19143_v1 = vpop.f32.mrb[126].mxu0 }
 0x564   : > { %21102 = vst [vmem:[#allocation63_spill] sm:$0xff] %v19131_v0  ;;  %v13250_v38 = vpop.eup %13249  ;;  %13263 = vrcp.f32 %v7344_v31  ;;  %9081 = vrot.lane.b32.xlu1 %v19131_v0, %s13463_s19  ;;  %9837 = vst.msk [vmem:[%s15908_s25 + $0x4e0] sm:$0xff] %vm9680_vm6, %v9580_v39  ;;  %v6584_v13 = vsub.f32 0.0, %v6260_v32  ;;  %v8300_v15 = vsub.f32 1.0, %v21103_v9  ;;  %v7849_v36 = vmax.f32 %v19015_v10, 0.0  ;;  %v19151_v41 = vpop.f32.mrb[127].mxu0 }
 0x565   : > { %v13252_v26 = vpop.eup %13251  ;;  %v7349_v43 = vadd.f32 1.0, %v13250_v38  ;;  %13265 = vpow2.f32 %v7075_v16  ;;  %v7077_v14 = vmul.f32 1.442695, %v6586_v30  ;;  %v7850_v3 = vmax.f32 %v19052_v8, 0.0  ;;  %v21104_v38 = vld [vmem:[#allocation11_spill] sm:$0xff] }
 0x566   : > { %v7347_v31 = vadd.f32 1.0, %v13252_v26  ;;  %13267 = vpow2.f32 %v7071_v21  ;;  %v7073_v20 = vmul.f32 1.442695, %v6584_v13  ;;  %v9581_v39 = vsel %vm9423_vm5, %v8300_v15, %v18957_v40  ;;  %v19165_v30 = vpop.permute.xlu0 %8991  ;;  %v21105_v21 = vld [vmem:[#allocation30_spill] sm:$0xff] }
 0x567   : > { %v19156_v0 = vpop.eup %13253  ;;  %13269 = vrcp.f32 %v7349_v43  ;;  %9838 = vst.msk [vmem:[%s15908_s25 + $0x4e8] sm:$0xff] %vm9680_vm6, %v9581_v39  ;;  %v19160_v10 = vmin.f32 %v7849_v36, 1.0  ;;  %v19162_v32 = vmin.f32 %v7850_v3, 1.0  ;;  %v8305_v16 = vsub.f32 1.0, %v21104_v38 }
 0x568   : > { %v19167_v8 = vpop.eup %13255  ;;  %13271 = vrcp.f32 %v7347_v31  ;;  %v8306_v13 = vsub.f32 1.0, %v21105_v21  ;;  %v6281_v40 = vadd.f32 %v18794_v46, %v14727_v35  ;;  %v7847_v9 = vmax.f32 %v19024_v56, 0.0 }
 0x569   : > { %v13258_v15 = vpop.eup %13257  ;;  %13273 = vpow2.f32 %v7077_v14  ;;  %9091 = vrot.lane.b32.xlu0 %v19160_v10, %s13463_s19  ;;  %9093 = vrot.lane.b32.xlu1 %v19162_v32, %s13463_s19  ;;  %v9586_v3 = vsel %vm9423_vm5, %v8305_v16, %v18993_v34  ;;  %v6273_v36 = vadd.f32 %v18798_v44, %v14727_v35  ;;  %v7848_v26 = vmax.f32 %v19065_v42, 0.0  ;;  %v19182_v46 = vpop.permute.xlu1 %8993 }
 0x56a   : > { %v13260_v56 = vpop.eup %13259  ;;  %v7350_v43 = vadd.f32 1.0, %v13258_v15  ;;  %13275 = vpow2.f32 %v7073_v20  ;;  %9843 = vst.msk [vmem:[%s15908_s25 + $0x510] sm:$0xff] %vm9680_vm6, %v9586_v3  ;;  %v9587_v14 = vsel %vm9423_vm5, %v8306_v13, %v19002_v5  ;;  %v6589_v31 = vsub.f32 0.0, %v6281_v40  ;;  %v21106_v20 = vld [vmem:[#allocation58_spill] sm:$0xff] }
 0x56b   : > { %v7348_v39 = vadd.f32 1.0, %v13260_v56  ;;  %9844 = vst.msk [vmem:[%s15908_s25 + $0x518] sm:$0xff] %vm9680_vm6, %v9587_v14  ;;  %v19190_v34 = vmin.f32 %v7847_v9, 1.0  ;;  %v6587_v38 = vsub.f32 0.0, %v6273_v36  ;;  %v19192_v44 = vmin.f32 %v7848_v26, 1.0  ;;  %v21107_v40 = vld [vmem:[#allocation46_spill] sm:$0xff] }
 0x56c   : > { %13277 = vrcp.f32 %v7350_v43  ;;  %v7083_v42 = vmul.f32 1.442695, %v6589_v31  ;;  %v6284_v16 = vadd.f32 %v18807_v59, %v14727_v35  ;;  %v8303_v21 = vsub.f32 1.0, %v21106_v20  ;;  %v19206_v3 = vpop.permute.xlu0 %9003 }
 0x56d   : > { %v19197_v15 = vpop.eup %13261  ;;  %13279 = vrcp.f32 %v7348_v39  ;;  %9087 = vrot.lane.b32.xlu0 %v19190_v34, %s13463_s19  ;;  %v7079_v5 = vmul.f32 1.442695, %v6587_v38  ;;  %9089 = vrot.lane.b32.xlu1 %v19192_v44, %s13463_s19  ;;  %v6276_v13 = vadd.f32 %v18816_v47, %v14727_v35  ;;  %v8304_v9 = vsub.f32 1.0, %v21107_v40  ;;  %v19208_v59 = vpop.permute.xlu1 %9005 }
 0x56e   : > { %v19210_v36 = vpop.eup %13263  ;;  %13281 = vpow2.f32 %v7083_v42  ;;  %v6590_v26 = vsub.f32 0.0, %v6284_v16  ;;  %v9584_v56 = vsel %vm9423_vm5, %v8303_v21, %v19022_v19  ;;  %v7853_v43 = vmax.f32 %v19094_v24, 0.0 }
 0x56f   : > { %v13266_v14 = vpop.eup %13265  ;;  %13283 = vpow2.f32 %v7079_v5  ;;  %9841 = vst.msk [vmem:[%s15908_s25 + $0x500] sm:$0xff] %vm9680_vm6, %v9584_v56  ;;  %v6588_v47 = vsub.f32 0.0, %v6276_v13  ;;  %v9585_v31 = vsel %vm9423_vm5, %v8304_v9, %v19031_v11  ;;  %v7854_v39 = vmax.f32 %v19127_v37, 0.0  ;;  %v21108_v13 = vld [vmem:[#allocation59_spill] sm:$0xff] }
 0x570   : > { %v13268_v38 = vpop.eup %13267  ;;  %v7353_v20 = vadd.f32 1.0, %v13266_v14  ;;  %v7085_v40 = vmul.f32 1.442695, %v6590_v26  ;;  %9842 = vst.msk [vmem:[%s15908_s25 + $0x508] sm:$0xff] %vm9680_vm6, %v9585_v31  ;;  %v19222_v42 = vmin.f32 %v7853_v43, 1.0  ;;  %v8309_v19 = vsub.f32 1.0, %v18232_v61  ;;  %v19230_v9 = vpop.permute.xlu0 %8999 }
 0x571   : > { %v19225_v24 = vpop.eup %13269  ;;  %v7351_v16 = vadd.f32 1.0, %v13268_v38  ;;  %v7081_v21 = vmul.f32 1.442695, %v6588_v47  ;;  %v19227_v5 = vmin.f32 %v7854_v39, 1.0  ;;  %v8310_v11 = vsub.f32 1.0, %v21108_v13 }
 0x572   : > { %v19232_v37 = vpop.eup %13271  ;;  %13285 = vrcp.f32 %v7353_v20  ;;  %9099 = vrot.lane.b32.xlu0 %v19222_v42, %s13463_s19  ;;  %v9590_v61 = vsel %vm9423_vm5, %v8309_v19, %v19061_v2  ;;  %v6297_v26 = vadd.f32 %v18873_v63, %v14727_v35  ;;  %v7851_v56 = vmax.f32 %v19103_v18, 0.0  ;;  %v19250_v31 = vpop.permute.xlu1 %9001 }
 0x573   : > { %v13274_v43 = vpop.eup %13273  ;;  %13287 = vrcp.f32 %v7351_v16  ;;  %9101 = vrot.lane.b32.xlu1 %v19227_v5, %s13463_s19  ;;  %9847 = vst.msk [vmem:[%s15908_s25 + $0x530] sm:$0xff] %vm9680_vm6, %v9590_v61  ;;  %v9591_v14 = vsel %vm9423_vm5, %v8310_v11, %v19063_v51  ;;  %v6289_v47 = vadd.f32 %v18880_v53, %v14727_v35  ;;  %v7852_v2 = vmax.f32 %v19137_v27, 0.0 }
 0x574   : > { %v13276_v63 = vpop.eup %13275  ;;  %v7354_v39 = vadd.f32 1.0, %v13274_v43  ;;  %13289 = vpow2.f32 %v7085_v40  ;;  %9848 = vst.msk [vmem:[%s15908_s25 + $0x538] sm:$0xff] %vm9680_vm6, %v9591_v14  ;;  %v6593_v18 = vsub.f32 0.0, %v6297_v26  ;;  %v19254_v38 = vmin.f32 %v7851_v56, 1.0  ;;  %v21109_v40 = vld [vmem:[#allocation94_spill] sm:$0xff]  ;;  %v21110_v56 = vld [vmem:[#allocation95_spill] sm:$0xff] }
 0x575   : > { %v7352_v20 = vadd.f32 1.0, %v13276_v63  ;;  %13291 = vpow2.f32 %v7081_v21  ;;  %v6591_v19 = vsub.f32 0.0, %v6289_v47  ;;  %v19256_v16 = vmin.f32 %v7852_v2, 1.0 }
 0x576   : > { %v19258_v51 = vpop.eup %13277  ;;  %13293 = vrcp.f32 %v7354_v39  ;;  %v7091_v53 = vmul.f32 1.442695, %v6593_v18  ;;  %9095 = vrot.lane.b32.xlu0 %v19254_v38, %s13463_s19  ;;  %v6300_v27 = vadd.f32 %v18894_v17, %v14727_v35  ;;  %v8307_v13 = vsub.f32 1.0, %v21109_v40  ;;  %v19265_v11 = vpop.permute.xlu0 %9011 }
 0x577   : > { %v19267_v61 = vpop.eup %13279  ;;  %13295 = vrcp.f32 %v7352_v20  ;;  %v7087_v21 = vmul.f32 1.442695, %v6591_v19  ;;  %9097 = vrot.lane.b32.xlu1 %v19256_v16, %s13463_s19  ;;  %v6292_v26 = vadd.f32 %v18903_v28, %v14727_v35  ;;  %v8308_v43 = vsub.f32 1.0, %v21110_v56 }
 0x578   : > { %v13282_v14 = vpop.eup %13281  ;;  %13297 = vpow2.f32 %v7091_v53  ;;  %v6594_v17 = vsub.f32 0.0, %v6300_v27  ;;  %v9588_v47 = vsel %vm9423_vm5, %v8307_v13, %v19090_v45  ;;  %v7857_v2 = vmax.f32 %v19156_v0, 0.0  ;;  %v19281_v20 = vpop.permute.xlu1 %9013 }
 0x579   : > { %v13284_v63 = vpop.eup %13283  ;;  %v7357_v39 = vadd.f32 1.0, %v13282_v14  ;;  %13299 = vpow2.f32 %v7087_v21  ;;  %9845 = vst.msk [vmem:[%s15908_s25 + $0x520] sm:$0xff] %vm9680_vm6, %v9588_v47  ;;  %v6592_v18 = vsub.f32 0.0, %v6292_v26  ;;  %v9589_v28 = vsel %vm9423_vm5, %v8308_v43, %v19092_v58 }
 0x57a   : > { %v7355_v19 = vadd.f32 1.0, %v13284_v63  ;;  %v7093_v40 = vmul.f32 1.442695, %v6594_v17  ;;  %9846 = vst.msk [vmem:[%s15908_s25 + $0x528] sm:$0xff] %vm9680_vm6, %v9589_v28  ;;  %v19285_v53 = vmin.f32 %v7857_v2, 1.0  ;;  %v7858_v45 = vmax.f32 %v19197_v15, 0.0  ;;  %v19288_v0 = vpop.permute.xlu0 %9007 }
 0x57b   : > { %13301 = vrcp.f32 %v7357_v39  ;;  %v7089_v27 = vmul.f32 1.442695, %v6592_v18  ;;  %v8313_v13 = vsub.f32 1.0, %v18306_v25  ;;  %v8314_v21 = vsub.f32 1.0, %v18308_v4  ;;  %v21111_v39 = vld [vmem:[#allocation114_spill] sm:$0xff] }
 0x57c   : > { %v19292_v58 = vpop.eup %13285  ;;  %13303 = vrcp.f32 %v7355_v19  ;;  %9107 = vrot.lane.b32.xlu0 %v19285_v53, %s13463_s19  ;;  %v19296_v26 = vmin.f32 %v7858_v45, 1.0  ;;  %v6313_v15 = vadd.f32 %v18959_v7, %v14727_v35  ;;  %v7855_v56 = vmax.f32 %v19167_v8, 0.0  ;;  %v19309_v17 = vpop.permute.xlu1 %9009 }
 0x57d   : > { %v19301_v43 = vpop.eup %13287  ;;  %13305 = vpow2.f32 %v7093_v40  ;;  %v9594_v25 = vsel %vm9423_vm5, %v8313_v13, %v19135_v54  ;;  %v9595_v4 = vsel %vm9423_vm5, %v8314_v21, %v19141_v48  ;;  %v6305_v14 = vadd.f32 %v18969_v6, %v14727_v35 }
 0x57e   : > { %v13290_v47 = vpop.eup %13289  ;;  %13307 = vpow2.f32 %v7089_v27  ;;  %9109 = vrot.lane.b32.xlu1 %v19296_v26, %s13463_s19  ;;  %9851 = vst.msk [vmem:[%s15908_s25 + $0x550] sm:$0xff] %vm9680_vm6, %v9594_v25  ;;  %9852 = vst.msk [vmem:[%s15908_s25 + $0x558] sm:$0xff] %vm9680_vm6, %v9595_v4  ;;  %v6597_v7 = vsub.f32 0.0, %v6313_v15  ;;  %v19317_v8 = vmin.f32 %v7855_v56, 1.0  ;;  %v7856_v54 = vmax.f32 %v19210_v36, 0.0  ;;  %v21112_v4 = vld [vmem:[#allocation117_spill] sm:$0xff] }
 0x57f   : > { %v13292_v48 = vpop.eup %13291  ;;  %v7358_v2 = vadd.f32 1.0, %v13290_v47  ;;  %v6595_v63 = vsub.f32 0.0, %v6305_v14  ;;  %v6316_v6 = vadd.f32 %v18977_v57, %v14727_v35  ;;  %v8311_v18 = vsub.f32 1.0, %v21111_v39 }
 0x580   : > { %v19323_v28 = vpop.eup %13293  ;;  %v7356_v19 = vadd.f32 1.0, %v13292_v48  ;;  %v7099_v40 = vmul.f32 1.442695, %v6597_v7  ;;  %9103 = vrot.lane.b32.xlu0 %v19317_v8, %s13463_s19  ;;  %v19327_v45 = vmin.f32 %v7856_v54, 1.0  ;;  %v6308_v36 = vadd.f32 %v18982_v49, %v14727_v35  ;;  %v19331_v27 = vpop.permute.xlu0 %9019 }
 0x581   : > { %v19333_v13 = vpop.eup %13295  ;;  %13309 = vrcp.f32 %v7358_v2  ;;  %v7095_v57 = vmul.f32 1.442695, %v6595_v63  ;;  %v6598_v21 = vsub.f32 0.0, %v6316_v6  ;;  %v9592_v15 = vsel %vm9423_vm5, %v8311_v18, %v19165_v30  ;;  %v19337_v56 = vpop.permute.xlu1 %9021 }
 0x582   : > { %v13298_v25 = vpop.eup %13297  ;;  %13311 = vrcp.f32 %v7356_v19  ;;  %9105 = vrot.lane.b32.xlu1 %v19327_v45, %s13463_s19  ;;  %9849 = vst.msk [vmem:[%s15908_s25 + $0x540] sm:$0xff] %vm9680_vm6, %v9592_v15  ;;  %v6596_v49 = vsub.f32 0.0, %v6308_v36  ;;  %v8312_v14 = vsub.f32 1.0, %v21112_v4  ;;  %v7861_v47 = vmax.f32 %v19225_v24, 0.0  ;;  %v21113_v24 = vld [vmem:[#allocation98_spill] sm:$0xff] }
 0x583   : > { %v13300_v7 = vpop.eup %13299  ;;  %v7361_v54 = vadd.f32 1.0, %v13298_v25  ;;  %13313 = vpow2.f32 %v7099_v40  ;;  %v7101_v48 = vmul.f32 1.442695, %v6598_v21  ;;  %v7862_v30 = vmax.f32 %v19258_v51, 0.0 }
 0x584   : > { %13315 = vpow2.f32 %v7095_v57  ;;  %v7097_v2 = vmul.f32 1.442695, %v6596_v49  ;;  %v9593_v63 = vsel %vm9423_vm5, %v8312_v14, %v19182_v46  ;;  %v7359_v39 = vadd.f32 1.0, %v13300_v7  ;;  %v19357_v40 = vpop.permute.xlu0 %9015  ;;  %v21114_v46 = vld [vmem:[#allocation64_spill] sm:$0xff] }
 0x585   : > { %v19348_v6 = vpop.eup %13301  ;;  %9850 = vst.msk [vmem:[%s15908_s25 + $0x548] sm:$0xff] %vm9680_vm6, %v9593_v63  ;;  %v19352_v18 = vmin.f32 %v7861_v47, 1.0  ;;  %v19354_v19 = vmin.f32 %v7862_v30, 1.0  ;;  %v8317_v36 = vsub.f32 1.0, %v21113_v24  ;;  %v19359_v21 = vpop.permute.xlu1 %9017  ;;  %13317 = vrcp.f32 %v7361_v54 }
 0x586   : > { %v19361_v51 = vpop.eup %13303  ;;  %v8318_v57 = vsub.f32 1.0, %v21114_v46  ;;  %v6329_v15 = vadd.f32 %v19044_v62, %v14727_v35  ;;  %v7859_v25 = vmax.f32 %v19232_v37, 0.0  ;;  %13319 = vpow2.f32 %v7101_v48 }
 0x587   : > { %v13306_v49 = vpop.eup %13305  ;;  %9115 = vrot.lane.b32.xlu0 %v19352_v18, %s13463_s19  ;;  %9117 = vrot.lane.b32.xlu1 %v19354_v19, %s13463_s19  ;;  %v9598_v4 = vsel %vm9423_vm5, %v8317_v36, %v19206_v3  ;;  %v6321_v14 = vadd.f32 %v19050_v60, %v14727_v35  ;;  %v7860_v47 = vmax.f32 %v19267_v61, 0.0  ;;  %13321 = vpow2.f32 %v7097_v2  ;;  %v21115_v2 = vld [vmem:[#allocation35_spill] sm:$0xff] }
 0x588   : > { %v13308_v62 = vpop.eup %13307  ;;  %v7362_v7 = vadd.f32 1.0, %v13306_v49  ;;  %9855 = vst.msk [vmem:[%s15908_s25 + $0x570] sm:$0xff] %vm9680_vm6, %v9598_v4  ;;  %v9599_v37 = vsel %vm9423_vm5, %v8318_v57, %v19208_v59  ;;  %v6601_v54 = vsub.f32 0.0, %v6329_v15  ;;  %v19382_v30 = vmin.f32 %v7859_v25, 1.0  ;;  %v21116_v57 = vld [vmem:[#allocation66_spill] sm:$0xff] }
 0x589   : > { %v7360_v48 = vadd.f32 1.0, %v13308_v62  ;;  %9856 = vst.msk [vmem:[%s15908_s25 + $0x578] sm:$0xff] %vm9680_vm6, %v9599_v37  ;;  %v6599_v3 = vsub.f32 0.0, %v6321_v14  ;;  %v19384_v63 = vmin.f32 %v7860_v47, 1.0  ;;  %13323 = vrcp.f32 %v7359_v39 }
 0x58a   : > { %v7107_v60 = vmul.f32 1.442695, %v6601_v54  ;;  %v6332_v61 = vadd.f32 %v19056_v33, %v14727_v35  ;;  %v8315_v24 = vsub.f32 1.0, %v21115_v2  ;;  %v19389_v36 = vpop.permute.xlu0 %9027  ;;  %13325 = vrcp.f32 %v7362_v7 }
 0x58b   : > { %v19391_v59 = vpop.eup %13309  ;;  %9111 = vrot.lane.b32.xlu0 %v19382_v30, %s13463_s19  ;;  %v7103_v46 = vmul.f32 1.442695, %v6599_v3  ;;  %9113 = vrot.lane.b32.xlu1 %v19384_v63, %s13463_s19  ;;  %v6324_v39 = vadd.f32 %v19074_v55, %v14727_v35  ;;  %v8316_v33 = vsub.f32 1.0, %v21116_v57  ;;  %v19400_v15 = vpop.permute.xlu1 %9029  ;;  %v7865_v14 = vmax.f32 %v19292_v58, 0.0 }
 0x58c   : > { %v19402_v25 = vpop.eup %13311  ;;  %13327 = vpow2.f32 %v7107_v60  ;;  %v6602_v49 = vsub.f32 0.0, %v6332_v61  ;;  %v9596_v4 = vsel %vm9423_vm5, %v8315_v24, %v19230_v9  ;;  %v7866_v7 = vmax.f32 %v19323_v28, 0.0  ;;  %v21117_v9 = vld [vmem:[#allocation71_spill] sm:$0xff] }
 0x58d   : > { %v13314_v47 = vpop.eup %13313  ;;  %13329 = vrcp.f32 %v7360_v48  ;;  %9853 = vst.msk [vmem:[%s15908_s25 + $0x560] sm:$0xff] %vm9680_vm6, %v9596_v4  ;;  %v6600_v62 = vsub.f32 0.0, %v6324_v39  ;;  %v9597_v55 = vsel %vm9423_vm5, %v8316_v33, %v19250_v31  ;;  %v19414_v60 = vmin.f32 %v7865_v14, 1.0  ;;  %v21118_v24 = vld [vmem:[#allocation19_spill] sm:$0xff] }
 0x58e   : > { %v13316_v37 = vpop.eup %13315  ;;  %v7365_v54 = vadd.f32 1.0, %v13314_v47  ;;  %v7109_v3 = vmul.f32 1.442695, %v6602_v49  ;;  %9854 = vst.msk [vmem:[%s15908_s25 + $0x568] sm:$0xff] %vm9680_vm6, %v9597_v55  ;;  %v8321_v61 = vsub.f32 1.0, %v21117_v9  ;;  %v19417_v58 = vpop.permute.xlu0 %9023  ;;  %13331 = vpow2.f32 %v7103_v46 }
 0x58f   : > { %v7105_v48 = vmul.f32 1.442695, %v6600_v62  ;;  %v19419_v2 = vmin.f32 %v7866_v7, 1.0  ;;  %v8322_v31 = vsub.f32 1.0, %v21118_v24  ;;  %v19422_v39 = vpop.eup %13317  ;;  %v7363_v28 = vadd.f32 1.0, %v13316_v37  ;;  %9123 = vrot.lane.b32.xlu0 %v19414_v60, %s13463_s19  ;;  %v19431_v49 = vpop.permute.xlu1 %9025 }
 0x590   : > { %v9602_v57 = vsel %vm9423_vm5, %v8321_v61, %v19265_v11  ;;  %v6345_v33 = vadd.f32 %v19120_v50, %v14727_v35  ;;  %v7863_v46 = vmax.f32 %v19301_v43, 0.0  ;;  %v13320_v4 = vpop.eup %13319  ;;  %13333 = vrcp.f32 %v7365_v54 }
 0x591   : > { %9125 = vrot.lane.b32.xlu1 %v19419_v2, %s13463_s19  ;;  %9859 = vst.msk [vmem:[%s15908_s25 + $0x590] sm:$0xff] %vm9680_vm6, %v9602_v57  ;;  %v9603_v14 = vsel %vm9423_vm5, %v8322_v31, %v19281_v20  ;;  %v6337_v11 = vadd.f32 %v19125_v29, %v14727_v35  ;;  %v7864_v47 = vmax.f32 %v19333_v13, 0.0  ;;  %v13322_v50 = vpop.eup %13321  ;;  %v7366_v62 = vadd.f32 1.0, %v13320_v4 }
 0x592   : > { %13335 = vpow2.f32 %v7109_v3  ;;  %9860 = vst.msk [vmem:[%s15908_s25 + $0x598] sm:$0xff] %vm9680_vm6, %v9603_v14  ;;  %v6605_v43 = vsub.f32 0.0, %v6345_v33  ;;  %v19444_v55 = vmin.f32 %v7863_v46, 1.0  ;;  %v7364_v29 = vadd.f32 1.0, %v13322_v50  ;;  %v21119_v3 = vld [vmem:[#allocation37_spill] sm:$0xff] }
 0x593   : > { %13337 = vpow2.f32 %v7105_v48  ;;  %v6603_v7 = vsub.f32 0.0, %v6337_v11  ;;  %v19446_v37 = vmin.f32 %v7864_v47, 1.0  ;;  %v19448_v54 = vpop.permute.xlu0 %9035  ;;  %v19450_v20 = vpop.eup %13323  ;;  %v6348_v13 = vadd.f32 %v19143_v1, %v14727_v35 }
 0x594   : > { %13339 = vrcp.f32 %v7363_v28  ;;  %9119 = vrot.lane.b32.xlu0 %v19444_v55, %s13463_s19  ;;  %v8319_v9 = vsub.f32 1.0, %v21119_v3  ;;  %v19457_v61 = vpop.eup %13325  ;;  %v7115_v48 = vmul.f32 1.442695, %v6605_v43  ;;  %v6340_v31 = vadd.f32 %v19151_v41, %v14727_v35 }
 0x595   : > { %v7111_v24 = vmul.f32 1.442695, %v6603_v7  ;;  %9121 = vrot.lane.b32.xlu1 %v19446_v37, %s13463_s19  ;;  %v8320_v28 = vsub.f32 1.0, %v18493_v22  ;;  %13341 = vrcp.f32 %v7366_v62  ;;  %v6606_v33 = vsub.f32 0.0, %v6348_v13  ;;  %v19467_v4 = vpop.permute.xlu1 %9037  ;;  %v21120_v7 = vld [vmem:[#allocation102_spill] sm:$0xff] }
 0x596   : > { %v13328_v57 = vpop.eup %13327  ;;  %v9600_v1 = vsel %vm9423_vm5, %v8319_v9, %v19288_v0  ;;  %v7869_v46 = vmax.f32 %v19348_v6, 0.0  ;;  %v6604_v35 = vsub.f32 0.0, %v6340_v31  ;;  %v7870_v0 = vmax.f32 %v19391_v59, 0.0 }
 0x597   : > { %v19469_v14 = vpop.eup %13329  ;;  %v7369_v11 = vadd.f32 1.0, %v13328_v57  ;;  %13343 = vpow2.f32 %v7111_v24  ;;  %9857 = vst.msk [vmem:[%s15908_s25 + $0x580] sm:$0xff] %vm9680_vm6, %v9600_v1  ;;  %v9601_v22 = vsel %vm9423_vm5, %v8320_v28, %v19309_v17  ;;  %v7117_v41 = vmul.f32 1.442695, %v6606_v33 }
 0x598   : > { %13345 = vrcp.f32 %v7364_v29  ;;  %9858 = vst.msk [vmem:[%s15908_s25 + $0x588] sm:$0xff] %vm9680_vm6, %v9601_v22  ;;  %v19477_v47 = vmin.f32 %v7869_v46, 1.0  ;;  %v19480_v6 = vpop.permute.xlu0 %9031  ;;  %v13332_v50 = vpop.eup %13331  ;;  %v7113_v62 = vmul.f32 1.442695, %v6604_v35  ;;  %v8325_v43 = vsub.f32 1.0, %v18514_v23 }
 0x599   : > { %13347 = vpow2.f32 %v7115_v48  ;;  %v8326_v13 = vsub.f32 1.0, %v21120_v7  ;;  %v19486_v17 = vmin.f32 %v7870_v0, 1.0  ;;  %v7867_v29 = vmax.f32 %v19361_v51, 0.0  ;;  %v21121_v48 = vld [vmem:[#allocation51_spill] sm:$0xff] }
 0x59a   : > { %13349 = vrcp.f32 %v7369_v11  ;;  %9131 = vrot.lane.b32.xlu0 %v19477_v47, %s13463_s19  ;;  %v7868_v59 = vmax.f32 %v19402_v25, 0.0  ;;  %v19490_v3 = vpop.eup %13333  ;;  %v9606_v23 = vsel %vm9423_vm5, %v8325_v43, %v19331_v27  ;;  %v8323_v24 = vsub.f32 1.0, %v21121_v48  ;;  %v19497_v31 = vpop.permute.xlu1 %9033  ;;  %v21122_v27 = vld [vmem:[#allocation21_spill] sm:$0xff]  ;;  %v21125_v48 = vld [vmem:[#allocation82_spill] sm:$0xff] }
 0x59b   : > { %13351 = vpow2.f32 %v7117_v41  ;;  %v9607_v9 = vsel %vm9423_vm5, %v8326_v13, %v19337_v56  ;;  %9133 = vrot.lane.b32.xlu1 %v19486_v17, %s13463_s19  ;;  %9863 = vst.msk [vmem:[%s15908_s25 + $0x5b0] sm:$0xff] %vm9680_vm6, %v9606_v23  ;;  %v19505_v51 = vmin.f32 %v7867_v29, 1.0  ;;  %v8324_v25 = vsub.f32 1.0, %v21122_v27  ;;  %v21123_v41 = vld [vmem:[#allocation38_spill] sm:$0xff] }
 0x59c   : > { %v13336_v28 = vpop.eup %13335  ;;  %13353 = vpow2.f32 %v7113_v62  ;;  %9864 = vst.msk [vmem:[%s15908_s25 + $0x5b8] sm:$0xff] %vm9680_vm6, %v9607_v9  ;;  %v9604_v33 = vsel %vm9423_vm5, %v8323_v24, %v19357_v40  ;;  %v7873_v1 = vmax.f32 %v19422_v39, 0.0  ;;  %v7874_v46 = vmax.f32 %v19457_v61, 0.0  ;;  %v21124_v62 = vld [vmem:[#allocation121_spill] sm:$0xff] }
 0x59d   : > { %v13338_v57 = vpop.eup %13337  ;;  %v7370_v56 = vadd.f32 1.0, %v13336_v28  ;;  %v19516_v35 = vmin.f32 %v7868_v59, 1.0  ;;  %9861 = vst.msk [vmem:[%s15908_s25 + $0x5a0] sm:$0xff] %vm9680_vm6, %v9604_v33  ;;  %v9605_v22 = vsel %vm9423_vm5, %v8324_v25, %v19359_v21  ;;  %v8329_v0 = vsub.f32 1.0, %v21123_v41  ;;  %v21126_v28 = vld [vmem:[#allocation26_spill] sm:$0xff] }
 0x59e   : > { %v19512_v11 = vpop.eup %13339  ;;  %9127 = vrot.lane.b32.xlu0 %v19505_v51, %s13463_s19  ;;  %v8330_v40 = vsub.f32 1.0, %v21124_v62  ;;  %v19524_v39 = vpop.permute.xlu0 %9043  ;;  %v7367_v61 = vadd.f32 1.0, %v13332_v50  ;;  %v7368_v43 = vadd.f32 1.0, %v13338_v57  ;;  %9862 = vst.msk [vmem:[%s15908_s25 + $0x5a8] sm:$0xff] %vm9680_vm6, %v9605_v22  ;;  %v19528_v7 = vmin.f32 %v7873_v1, 1.0  ;;  %v21128_v62 = vld [vmem:[#allocation88_spill] sm:$0xff] }
 0x59f   : > { %13355 = vrcp.f32 %v7370_v56  ;;  %v19530_v13 = vpop.permute.xlu1 %9045  ;;  %v13342_v29 = vpop.eup %13341  ;;  %9129 = vrot.lane.b32.xlu1 %v19516_v35, %s13463_s19  ;;  %v19534_v21 = vmin.f32 %v7874_v46, 1.0  ;;  %v9610_v59 = vsel %vm9423_vm5, %v8329_v0, %v19389_v36  ;;  %v7871_v23 = vmax.f32 %v19450_v20, 0.0 }
 0x5a0   : > { %v9611_v50 = vsel %vm9423_vm5, %v8330_v40, %v19400_v15  ;;  %9867 = vst.msk [vmem:[%s15908_s25 + $0x5d0] sm:$0xff] %vm9680_vm6, %v9610_v59  ;;  %v8327_v24 = vsub.f32 1.0, %v21125_v48  ;;  %v8328_v27 = vsub.f32 1.0, %v21126_v28  ;;  %v7872_v36 = vmax.f32 %v19469_v14, 0.0 }
 0x5a1   : > { %v13344_v9 = vpop.eup %13343  ;;  %9868 = vst.msk [vmem:[%s15908_s25 + $0x5d8] sm:$0xff] %vm9680_vm6, %v9611_v50  ;;  %v7877_v15 = vmax.f32 %v19490_v3, 0.0  ;;  %13357 = vrcp.f32 %v7367_v61  ;;  %v8333_v1 = vsub.f32 1.0, %v18655_v12  ;;  %v19562_v14 = vmin.f32 %v7871_v23, 1.0  ;;  %v21129_v50 = vld [vmem:[#allocation91_spill] sm:$0xff] }
 0x5a2   : > { %v19547_v25 = vpop.eup %13345  ;;  %v7371_v57 = vadd.f32 1.0, %v13344_v9  ;;  %9139 = vrot.lane.b32.xlu0 %v19528_v7, %s13463_s19  ;;  %v9608_v56 = vsel %vm9423_vm5, %v8327_v24, %v19417_v58  ;;  %v9609_v33 = vsel %vm9423_vm5, %v8328_v27, %v19431_v49  ;;  %v9040_v46 = vpop.permute.xlu0 %9039  ;;  %13359 = vrcp.f32 %v7368_v43  ;;  %v21127_v49 = vld [vmem:[#allocation86_spill] sm:$0xff] }
 0x5a3   : > { %v13348_v20 = vpop.eup %13347  ;;  %v9042_v22 = vpop.permute.xlu1 %9041  ;;  %9141 = vrot.lane.b32.xlu1 %v19534_v21, %s13463_s19  ;;  %9865 = vst.msk [vmem:[%s15908_s25 + $0x5c0] sm:$0xff] %vm9680_vm6, %v9608_v56  ;;  %9866 = vst.msk [vmem:[%s15908_s25 + $0x5c8] sm:$0xff] %vm9680_vm6, %v9609_v33  ;;  %v7878_v58 = vmax.f32 %v13342_v29, 0.0  ;;  %v8334_v3 = vsub.f32 1.0, %v21127_v49  ;;  %v9614_v0 = vsel %vm9423_vm5, %v8333_v1, %v19448_v54  ;;  %v8331_v40 = vsub.f32 1.0, %v21128_v62  ;;  %v21132_v56 = vld [vmem:[#allocation109_spill] sm:$0xff] }
 0x5a4   : > { %v19558_v41 = vpop.eup %13349  ;;  %13361 = vrcp.f32 %v7371_v57  ;;  %v19574_v43 = vmin.f32 %v7872_v36, 1.0  ;;  %v19576_v59 = vmin.f32 %v7877_v15, 1.0  ;;  %9871 = vst.msk [vmem:[%s15908_s25 + $0x5f0] sm:$0xff] %vm9680_vm6, %v9614_v0  ;;  %v8332_v23 = vsub.f32 1.0, %v21129_v50  ;;  %v21130_v57 = vld [vmem:[#allocation92_spill] sm:$0xff]  ;;  %v21133_v49 = vld [vmem:[#allocation93_spill] sm:$0xff] }
 0x5a5   : > { %v13352_v12 = vpop.eup %13351  ;;  %v9615_v29 = vsel %vm9423_vm5, %v8334_v3, %v19467_v4  ;;  %v7373_v54 = vadd.f32 1.0, %v13348_v20  ;;  %v7875_v48 = vmax.f32 %v19512_v11, 0.0  ;;  %v9612_v24 = vsel %vm9423_vm5, %v8331_v40, %v19480_v6  ;;  %v21131_v6 = vld [vmem:[#allocation44_spill] sm:$0xff] }
 0x5a6   : > { %v13354_v61 = vpop.eup %13353  ;;  %9135 = vrot.lane.b32.xlu0 %v19562_v14, %s13463_s19  ;;  %9872 = vst.msk [vmem:[%s15908_s25 + $0x5f8] sm:$0xff] %vm9680_vm6, %v9615_v29  ;;  %v19590_v28 = vmin.f32 %v7878_v58, 1.0  ;;  %v7876_v27 = vmax.f32 %v19547_v25, 0.0  ;;  %9869 = vst.msk [vmem:[%s15908_s25 + $0x5e0] sm:$0xff] %vm9680_vm6, %v9612_v24  ;;  %v9613_v4 = vsel %vm9423_vm5, %v8332_v23, %v19497_v31  ;;  %v8337_v36 = vsub.f32 1.0, %v21130_v57  ;;  %v21135_v50 = vld [vmem:[#allocation96_spill] sm:$0xff] }
 0x5a7   : > { %v7372_v9 = vadd.f32 1.0, %v13354_v61  ;;  %9137 = vrot.lane.b32.xlu1 %v19574_v43, %s13463_s19  ;;  %v7374_v11 = vadd.f32 1.0, %v13352_v12  ;;  %9870 = vst.msk [vmem:[%s15908_s25 + $0x5e8] sm:$0xff] %vm9680_vm6, %v9613_v4  ;;  %v8338_v20 = vsub.f32 1.0, %v21131_v6  ;;  %v8335_v33 = vsub.f32 1.0, %v21132_v56  ;;  %v9054_v1 = vpop.permute.xlu1 %9053  ;;  %v21134_v12 = vld [vmem:[#allocation32_spill] sm:$0xff] }
 0x5a8   : > { %v7881_v31 = vmax.f32 %v19558_v41, 0.0  ;;  %v9618_v58 = vsel %vm9423_vm5, %v8337_v36, %v19524_v39  ;;  %v8336_v3 = vsub.f32 1.0, %v21133_v49  ;;  %v8341_v0 = vsub.f32 1.0, %v21134_v12  ;;  %v21137_v57 = vld [vmem:[#allocation111_spill] sm:$0xff] }
 0x5a9   : > { %v13356_v15 = vpop.eup %13355  ;;  %13363 = vrcp.f32 %v7372_v9  ;;  %v9052_v25 = vpop.permute.xlu0 %9051  ;;  %v19609_v62 = vmin.f32 %v7875_v48, 1.0  ;;  %9875 = vst.msk [vmem:[%s15908_s25 + $0x610] sm:$0xff] %vm9680_vm6, %v9618_v58  ;;  %v9619_v40 = vsel %vm9423_vm5, %v8338_v20, %v19530_v13  ;;  %v9616_v61 = vsel %vm9423_vm5, %v8335_v33, %v9040_v46  ;;  %v21136_v13 = vld [vmem:[#allocation12_spill] sm:$0xff]  ;;  %v21139_v12 = vld [vmem:[#allocation31_spill] sm:$0xff] }
 0x5aa   : > { %9147 = vrot.lane.b32.xlu0 %v19576_v59, %s13463_s19  ;;  %13365 = vrcp.f32 %v7373_v54  ;;  %v7882_v39 = vmax.f32 %v13356_v15, 0.0  ;;  %9876 = vst.msk [vmem:[%s15908_s25 + $0x618] sm:$0xff] %vm9680_vm6, %v9619_v40  ;;  %9873 = vst.msk [vmem:[%s15908_s25 + $0x600] sm:$0xff] %vm9680_vm6, %v9616_v61  ;;  %v9617_v41 = vsel %vm9423_vm5, %v8336_v3, %v9042_v22  ;;  %v9622_v29 = vsel %vm9423_vm5, %v8341_v0, %v9052_v25  ;;  %v21138_v33 = vld [vmem:[#allocation52_spill] sm:$0xff] }
 0x5ab   : > { %9149 = vrot.lane.b32.xlu1 %v19590_v28, %s13463_s19  ;;  %v8342_v23 = vsub.f32 1.0, %v21135_v50  ;;  %v13358_v54 = vpop.eup %13357  ;;  %13367 = vrcp.f32 %v7374_v11  ;;  %9874 = vst.msk [vmem:[%s15908_s25 + $0x608] sm:$0xff] %vm9680_vm6, %v9617_v41  ;;  %9879 = vst.msk [vmem:[%s15908_s25 + $0x630] sm:$0xff] %vm9680_vm6, %v9622_v29  ;;  %v8339_v46 = vsub.f32 1.0, %v21136_v13  ;;  %v19632_v22 = vmin.f32 %v7876_v27, 1.0 }
 0x5ac   : > { %v13360_v48 = vpop.eup %13359  ;;  %v19634_v24 = vmin.f32 %v7881_v31, 1.0  ;;  %v8340_v36 = vsub.f32 1.0, %v21137_v57  ;;  %v19643_v20 = vmin.f32 %v7882_v39, 1.0  ;;  %v7879_v27 = vmax.f32 %v13358_v54, 0.0  ;;  %v21140_v54 = vld [vmem:[#allocation53_spill] sm:$0xff] }
 0x5ad   : > { %v9048_v9 = vpop.permute.xlu0 %9047  ;;  %v9623_v4 = vsel %vm9423_vm5, %v8342_v23, %v9054_v1  ;;  %v8345_v25 = vsub.f32 1.0, %v21138_v33  ;;  %v7880_v1 = vmax.f32 %v13360_v48, 0.0  ;;  %v8346_v0 = vsub.f32 1.0, %v21139_v12  ;;  %v21141_v48 = vld [vmem:[#allocation33_spill] sm:$0xff] }
 0x5ae   : > { %9143 = vrot.lane.b32.xlu0 %v19609_v62, %s13463_s19  ;;  %v13362_v15 = vpop.eup %13361  ;;  %9880 = vst.msk [vmem:[%s15908_s25 + $0x638] sm:$0xff] %vm9680_vm6, %v9623_v4  ;;  %v9620_v11 = vsel %vm9423_vm5, %v8339_v46, %v9048_v9  ;;  %v19657_v40 = vmin.f32 %v7879_v27, 1.0  ;;  %v8343_v13 = vsub.f32 1.0, %v21140_v54  ;;  %v8344_v4 = vsub.f32 1.0, %v21141_v48  ;;  %v21145_v54 = vld [vmem:[#allocation61_spill] sm:$0xff]  ;;  %v21146_v48 = vld [vmem:[#allocation99_spill] sm:$0xff] }
 0x5af   : > { %v9050_v6 = vpop.permute.xlu1 %9049  ;;  %9145 = vrot.lane.b32.xlu1 %v19632_v22, %s13463_s19  ;;  %9877 = vst.msk [vmem:[%s15908_s25 + $0x620] sm:$0xff] %vm9680_vm6, %v9620_v11  ;;  %v7883_v31 = vmax.f32 %v13362_v15, 0.0  ;;  %v19664_v50 = vmin.f32 %v7880_v1, 1.0 }
 0x5b0   : > { %v9621_v56 = vsel %vm9423_vm5, %v8340_v36, %v9050_v6 }
 0x5b1   : > { %9878 = vst.msk [vmem:[%s15908_s25 + $0x628] sm:$0xff] %vm9680_vm6, %v9621_v56  ;;  %v19666_v23 = vmin.f32 %v7883_v31, 1.0  ;;  %v21142_v56 = vld [vmem:[#allocation34_spill] sm:$0xff]  ;;  %v21143_v31 = vld [vmem:[#allocation4_spill] sm:$0xff] }
 0x5b2   : > { %9155 = vrot.lane.b32.xlu0 %v19634_v24, %s13463_s19  ;;  %v9060_v58 = vpop.permute.xlu0 %9059  ;;  %v8349_v33 = vsub.f32 1.0, %v21142_v56 }
 0x5b3   : > { %v13364_v49 = vpop.eup %13363  ;;  %v9626_v3 = vsel %vm9423_vm5, %v8345_v25, %v9060_v58  ;;  %9157 = vrot.lane.b32.xlu1 %v19643_v20, %s13463_s19  ;;  %v8350_v58 = vsub.f32 1.0, %v21143_v31  ;;  %v21149_v31 = vld [vmem:[#allocation36_spill] sm:$0xff] }
 0x5b4   : > { %v7884_v61 = vmax.f32 %v13364_v49, 0.0  ;;  %9883 = vst.msk [vmem:[%s15908_s25 + $0x650] sm:$0xff] %vm9680_vm6, %v9626_v3  ;;  %v9062_v39 = vpop.permute.xlu1 %9061  ;;  %v13366_v41 = vpop.eup %13365 }
 0x5b5   : > { %v9627_v29 = vsel %vm9423_vm5, %v8346_v0, %v9062_v39  ;;  %v13368_v46 = vpop.eup %13367  ;;  %v7885_v36 = vmax.f32 %v13366_v41, 0.0 }
 0x5b6   : > { %9151 = vrot.lane.b32.xlu0 %v19657_v40, %s13463_s19  ;;  %9884 = vst.msk [vmem:[%s15908_s25 + $0x658] sm:$0xff] %vm9680_vm6, %v9627_v29  ;;  %v19674_v57 = vmin.f32 %v7884_v61, 1.0  ;;  %v7886_v27 = vmax.f32 %v13368_v46, 0.0  ;;  %v21144_v61 = vld [vmem:[#allocation60_spill] sm:$0xff] }
 0x5b7   : > { %v9056_v9 = vpop.permute.xlu0 %9055  ;;  %9153 = vrot.lane.b32.xlu1 %v19664_v50, %s13463_s19  ;;  %v19687_v25 = vmin.f32 %v7885_v36, 1.0  ;;  %v8347_v39 = vsub.f32 1.0, %v21144_v61  ;;  %v21147_v36 = vld [vmem:[#allocation62_spill] sm:$0xff] }
 0x5b8   : > { %v9624_v15 = vsel %vm9423_vm5, %v8343_v13, %v9056_v9  ;;  %v9058_v11 = vpop.permute.xlu1 %9057  ;;  %v19693_v12 = vmin.f32 %v7886_v27, 1.0  ;;  %v8348_v13 = vsub.f32 1.0, %v21145_v54  ;;  %v21150_v54 = vld [vmem:[#allocation5_spill] sm:$0xff] }
 0x5b9   : > { %9881 = vst.msk [vmem:[%s15908_s25 + $0x640] sm:$0xff] %vm9680_vm6, %v9624_v15  ;;  %v9625_v6 = vsel %vm9423_vm5, %v8344_v4, %v9058_v11  ;;  %v8353_v4 = vsub.f32 1.0, %v21146_v48  ;;  %v8354_v15 = vsub.f32 1.0, %v21147_v36  ;;  %v21151_v48 = vld [vmem:[#allocation113_spill] sm:$0xff] }
 0x5ba   : > { %9159 = vrot.lane.b32.xlu0 %v19666_v23, %s13463_s19  ;;  %9882 = vst.msk [vmem:[%s15908_s25 + $0x648] sm:$0xff] %vm9680_vm6, %v9625_v6 }
 0x5bb   : > { %9161 = vrot.lane.b32.xlu1 %v19674_v57, %s13463_s19 }
 0x5bc   : > { %v9068_v1 = vpop.permute.xlu0 %9067 }
 0x5bd   : > { %v9630_v49 = vsel %vm9423_vm5, %v8349_v33, %v9068_v1  ;;  %v9070_v3 = vpop.permute.xlu1 %9069  ;;  %v21148_v33 = vld [vmem:[#allocation101_spill] sm:$0xff] }
 0x5be   : > { %9163 = vrot.lane.b32.xlu0 %v19687_v25, %s13463_s19  ;;  %9887 = vst.msk [vmem:[%s15908_s25 + $0x670] sm:$0xff] %vm9680_vm6, %v9630_v49  ;;  %v9631_v0 = vsel %vm9423_vm5, %v8350_v58, %v9070_v3  ;;  %v8351_v1 = vsub.f32 1.0, %v21148_v33  ;;  %v8352_v58 = vsub.f32 1.0, %v21149_v31  ;;  %v8362_v33 = vsub.f32 1.0, %v19162_v32 }
 0x5bf   : > { %9888 = vst.msk [vmem:[%s15908_s25 + $0x678] sm:$0xff] %vm9680_vm6, %v9631_v0  ;;  %9165 = vrot.lane.b32.xlu1 %v19693_v12, %s13463_s19 }
 0x5c0   : > { %v9064_v41 = vpop.permute.xlu0 %9063 }
 0x5c1   : > { %v9628_v29 = vsel %vm9423_vm5, %v8347_v39, %v9064_v41  ;;  %v8357_v39 = vsub.f32 1.0, %v19085_v52  ;;  %v21152_v52 = vld [vmem:[#allocation63_spill] sm:$0xff] }
 0x5c2   : > { %9885 = vst.msk [vmem:[%s15908_s25 + $0x660] sm:$0xff] %vm9680_vm6, %v9628_v29 }
 0x5c3   : > { %v9066_v46 = vpop.permute.xlu1 %9065 }
 0x5c4   : > { %v9629_v9 = vsel %vm9423_vm5, %v8348_v13, %v9066_v46  ;;  %v8358_v13 = vsub.f32 1.0, %v21150_v54  ;;  %v8366_v54 = vsub.f32 1.0, %v19227_v5 }
 0x5c5   : > { %9886 = vst.msk [vmem:[%s15908_s25 + $0x668] sm:$0xff] %vm9680_vm6, %v9629_v9 }
 0x5c7   : > { %v9076_v11 = vpop.permute.xlu0 %9075  ;;  %v9078_v6 = vpop.permute.xlu1 %9077 }
 0x5c8   : > { %v9634_v27 = vsel %vm9423_vm5, %v8353_v4, %v9076_v11  ;;  %v9635_v56 = vsel %vm9423_vm5, %v8354_v15, %v9078_v6  ;;  %v8355_v4 = vsub.f32 1.0, %v21151_v48  ;;  %v8356_v11 = vsub.f32 1.0, %v21152_v52 }
 0x5c9   : > { %9891 = vst.msk [vmem:[%s15908_s25 + $0x690] sm:$0xff] %vm9680_vm6, %v9634_v27  ;;  %9892 = vst.msk [vmem:[%s15908_s25 + $0x698] sm:$0xff] %vm9680_vm6, %v9635_v56  ;;  %v8361_v56 = vsub.f32 1.0, %v19160_v10  ;;  %v8364_v48 = vsub.f32 1.0, %v19256_v16  ;;  %v8370_v52 = vsub.f32 1.0, %v19296_v26 }
 0x5cb   : > { %v9072_v49 = vpop.permute.xlu0 %9071  ;;  %v9074_v3 = vpop.permute.xlu1 %9073 }
 0x5cc   : > { %v9632_v0 = vsel %vm9423_vm5, %v8351_v1, %v9072_v49  ;;  %v9633_v61 = vsel %vm9423_vm5, %v8352_v58, %v9074_v3  ;;  %v8359_v3 = vsub.f32 1.0, %v19190_v34 }
 0x5cd   : > { %9889 = vst.msk [vmem:[%s15908_s25 + $0x680] sm:$0xff] %vm9680_vm6, %v9632_v0  ;;  %9890 = vst.msk [vmem:[%s15908_s25 + $0x688] sm:$0xff] %vm9680_vm6, %v9633_v61  ;;  %v8360_v0 = vsub.f32 1.0, %v19192_v44 }
 0x5d0   : > { %v9084_v41 = vpop.permute.xlu0 %9083 }
 0x5d1   : > { %v9638_v29 = vsel %vm9423_vm5, %v8357_v39, %v9084_v41  ;;  %v8365_v41 = vsub.f32 1.0, %v19222_v42 }
 0x5d2   : > { %9895 = vst.msk [vmem:[%s15908_s25 + $0x6b0] sm:$0xff] %vm9680_vm6, %v9638_v29  ;;  %v9086_v46 = vpop.permute.xlu1 %9085 }
 0x5d3   : > { %v9639_v9 = vsel %vm9423_vm5, %v8358_v13, %v9086_v46  ;;  %v8363_v46 = vsub.f32 1.0, %v19254_v38 }
 0x5d4   : > { %9896 = vst.msk [vmem:[%s15908_s25 + $0x6b8] sm:$0xff] %vm9680_vm6, %v9639_v9  ;;  %v9080_v36 = vpop.permute.xlu0 %9079 }
 0x5d5   : > { %v9636_v15 = vsel %vm9423_vm5, %v8355_v4, %v9080_v36  ;;  %v8369_v36 = vsub.f32 1.0, %v19285_v53  ;;  %v8368_v53 = vsub.f32 1.0, %v19327_v45  ;;  %v8371_v45 = vsub.f32 1.0, %v19382_v30 }
 0x5d6   : > { %9893 = vst.msk [vmem:[%s15908_s25 + $0x6a0] sm:$0xff] %vm9680_vm6, %v9636_v15  ;;  %v9082_v6 = vpop.permute.xlu1 %9081 }
 0x5d7   : > { %v9637_v27 = vsel %vm9423_vm5, %v8356_v11, %v9082_v6  ;;  %v8367_v6 = vsub.f32 1.0, %v19317_v8  ;;  %v8374_v8 = vsub.f32 1.0, %v19354_v19 }
 0x5d8   : > { %9894 = vst.msk [vmem:[%s15908_s25 + $0x6a8] sm:$0xff] %vm9680_vm6, %v9637_v27 }
 0x5db   : > { %v9092_v1 = vpop.permute.xlu0 %9091  ;;  %v9094_v31 = vpop.permute.xlu1 %9093 }
 0x5dc   : > { %v9642_v58 = vsel %vm9423_vm5, %v8361_v56, %v9092_v1  ;;  %v9643_v49 = vsel %vm9423_vm5, %v8362_v33, %v9094_v31  ;;  %v8373_v1 = vsub.f32 1.0, %v19352_v18 }
 0x5dd   : > { %9899 = vst.msk [vmem:[%s15908_s25 + $0x6d0] sm:$0xff] %vm9680_vm6, %v9642_v58  ;;  %9900 = vst.msk [vmem:[%s15908_s25 + $0x6d8] sm:$0xff] %vm9680_vm6, %v9643_v49 }
 0x5df   : > { %v9088_v61 = vpop.permute.xlu0 %9087  ;;  %v9090_v10 = vpop.permute.xlu1 %9089 }
 0x5e0   : > { %v9640_v32 = vsel %vm9423_vm5, %v8359_v3, %v9088_v61  ;;  %v9641_v39 = vsel %vm9423_vm5, %v8360_v0, %v9090_v10  ;;  %v8372_v0 = vsub.f32 1.0, %v19384_v63 }
 0x5e1   : > { %9897 = vst.msk [vmem:[%s15908_s25 + $0x6c0] sm:$0xff] %vm9680_vm6, %v9640_v32  ;;  %9898 = vst.msk [vmem:[%s15908_s25 + $0x6c8] sm:$0xff] %vm9680_vm6, %v9641_v39  ;;  %v8377_v32 = vsub.f32 1.0, %v19414_v60 }
 0x5e4   : > { %v9100_v29 = vpop.permute.xlu0 %9099 }
 0x5e5   : > { %v9646_v34 = vsel %vm9423_vm5, %v8365_v41, %v9100_v29  ;;  %v9102_v44 = vpop.permute.xlu1 %9101  ;;  %v8378_v41 = vsub.f32 1.0, %v19419_v2 }
 0x5e6   : > { %9903 = vst.msk [vmem:[%s15908_s25 + $0x6f0] sm:$0xff] %vm9680_vm6, %v9646_v34  ;;  %v9647_v13 = vsel %vm9423_vm5, %v8366_v54, %v9102_v44  ;;  %v8375_v54 = vsub.f32 1.0, %v19444_v55  ;;  %v8376_v44 = vsub.f32 1.0, %v19446_v37 }
 0x5e7   : > { %9904 = vst.msk [vmem:[%s15908_s25 + $0x6f8] sm:$0xff] %vm9680_vm6, %v9647_v13 }
 0x5e8   : > { %v9096_v9 = vpop.permute.xlu0 %9095 }
 0x5e9   : > { %v9644_v42 = vsel %vm9423_vm5, %v8363_v46, %v9096_v9  ;;  %v9098_v4 = vpop.permute.xlu1 %9097  ;;  %v8381_v46 = vsub.f32 1.0, %v19477_v47 }
 0x5ea   : > { %9901 = vst.msk [vmem:[%s15908_s25 + $0x6e0] sm:$0xff] %vm9680_vm6, %v9644_v42  ;;  %v9645_v5 = vsel %vm9423_vm5, %v8364_v48, %v9098_v4  ;;  %v8382_v48 = vsub.f32 1.0, %v19486_v17  ;;  %v8379_v4 = vsub.f32 1.0, %v19505_v51 }
 0x5eb   : > { %9902 = vst.msk [vmem:[%s15908_s25 + $0x6e8] sm:$0xff] %vm9680_vm6, %v9645_v5 }
 0x5ee   : > { %v9108_v15 = vpop.permute.xlu0 %9107 }
 0x5ef   : > { %v9650_v38 = vsel %vm9423_vm5, %v8369_v36, %v9108_v15  ;;  %v8380_v36 = vsub.f32 1.0, %v19516_v35 }
 0x5f0   : > { %9907 = vst.msk [vmem:[%s15908_s25 + $0x710] sm:$0xff] %vm9680_vm6, %v9650_v38  ;;  %v9110_v16 = vpop.permute.xlu1 %9109  ;;  %v8385_v38 = vsub.f32 1.0, %v19528_v7 }
 0x5f1   : > { %v9651_v11 = vsel %vm9423_vm5, %v8370_v52, %v9110_v16  ;;  %v8386_v16 = vsub.f32 1.0, %v19534_v21 }
 0x5f2   : > { %9908 = vst.msk [vmem:[%s15908_s25 + $0x718] sm:$0xff] %vm9680_vm6, %v9651_v11  ;;  %v9104_v27 = vpop.permute.xlu0 %9103 }
 0x5f3   : > { %v9648_v56 = vsel %vm9423_vm5, %v8367_v6, %v9104_v27  ;;  %v8383_v6 = vsub.f32 1.0, %v19562_v14 }
 0x5f4   : > { %9905 = vst.msk [vmem:[%s15908_s25 + $0x700] sm:$0xff] %vm9680_vm6, %v9648_v56  ;;  %v9106_v33 = vpop.permute.xlu1 %9105  ;;  %v8384_v56 = vsub.f32 1.0, %v19574_v43 }
 0x5f5   : > { %v9649_v26 = vsel %vm9423_vm5, %v8368_v53, %v9106_v33  ;;  %v8389_v33 = vsub.f32 1.0, %v19576_v59 }
 0x5f6   : > { %9906 = vst.msk [vmem:[%s15908_s25 + $0x708] sm:$0xff] %vm9680_vm6, %v9649_v26 }
 0x5f9   : > { %v9116_v31 = vpop.permute.xlu0 %9115  ;;  %v9118_v58 = vpop.permute.xlu1 %9117 }
 0x5fa   : > { %v9654_v49 = vsel %vm9423_vm5, %v8373_v1, %v9116_v31  ;;  %v9655_v3 = vsel %vm9423_vm5, %v8374_v8, %v9118_v58  ;;  %v8390_v1 = vsub.f32 1.0, %v19590_v28  ;;  %v8387_v31 = vsub.f32 1.0, %v19609_v62 }
 0x5fb   : > { %9911 = vst.msk [vmem:[%s15908_s25 + $0x730] sm:$0xff] %vm9680_vm6, %v9654_v49  ;;  %9912 = vst.msk [vmem:[%s15908_s25 + $0x738] sm:$0xff] %vm9680_vm6, %v9655_v3  ;;  %v8388_v49 = vsub.f32 1.0, %v19632_v22 }
 0x5fd   : > { %v9112_v61 = vpop.permute.xlu0 %9111  ;;  %v9114_v18 = vpop.permute.xlu1 %9113 }
 0x5fe   : > { %v9652_v19 = vsel %vm9423_vm5, %v8371_v45, %v9112_v61  ;;  %v9653_v10 = vsel %vm9423_vm5, %v8372_v0, %v9114_v18  ;;  %v8393_v45 = vsub.f32 1.0, %v19634_v24  ;;  %v8394_v61 = vsub.f32 1.0, %v19643_v20 }
 0x5ff   : > { %9909 = vst.msk [vmem:[%s15908_s25 + $0x720] sm:$0xff] %vm9680_vm6, %v9652_v19  ;;  %9910 = vst.msk [vmem:[%s15908_s25 + $0x728] sm:$0xff] %vm9680_vm6, %v9653_v10  ;;  %v8391_v19 = vsub.f32 1.0, %v19657_v40 }
 0x601   : > { %v9124_v39 = vpop.permute.xlu0 %9123 }
 0x602   : > { %v9658_v30 = vsel %vm9423_vm5, %v8377_v32, %v9124_v39  ;;  %v8392_v32 = vsub.f32 1.0, %v19664_v50 }
 0x603   : > { %v9126_v63 = vpop.permute.xlu1 %9125  ;;  %9915 = vst.msk [vmem:[%s15908_s25 + $0x750] sm:$0xff] %vm9680_vm6, %v9658_v30 }
 0x604   : > { %v9659_v29 = vsel %vm9423_vm5, %v8378_v41, %v9126_v63  ;;  %v8395_v41 = vsub.f32 1.0, %v19666_v23  ;;  %v8396_v63 = vsub.f32 1.0, %v19674_v57 }
 0x605   : > { %9916 = vst.msk [vmem:[%s15908_s25 + $0x758] sm:$0xff] %vm9680_vm6, %v9659_v29 }
 0x606   : > { %v9120_v34 = vpop.permute.xlu0 %9119 }
 0x607   : > { %v9656_v60 = vsel %vm9423_vm5, %v8375_v54, %v9120_v34  ;;  %v9122_v13 = vpop.permute.xlu1 %9121  ;;  %v8397_v54 = vsub.f32 1.0, %v19687_v25 }
 0x608   : > { %9913 = vst.msk [vmem:[%s15908_s25 + $0x740] sm:$0xff] %vm9680_vm6, %v9656_v60  ;;  %v9657_v2 = vsel %vm9423_vm5, %v8376_v44, %v9122_v13  ;;  %v8398_v44 = vsub.f32 1.0, %v19693_v12 }
 0x609   : > { %9914 = vst.msk [vmem:[%s15908_s25 + $0x748] sm:$0xff] %vm9680_vm6, %v9657_v2 }
 0x60c   : > { %v9132_v9 = vpop.permute.xlu0 %9131 }
 0x60d   : > { %v9662_v55 = vsel %vm9423_vm5, %v8381_v46, %v9132_v9  ;;  %v9134_v37 = vpop.permute.xlu1 %9133 }
 0x60e   : > { %9919 = vst.msk [vmem:[%s15908_s25 + $0x770] sm:$0xff] %vm9680_vm6, %v9662_v55  ;;  %v9663_v42 = vsel %vm9423_vm5, %v8382_v48, %v9134_v37 }
 0x60f   : > { %9920 = vst.msk [vmem:[%s15908_s25 + $0x778] sm:$0xff] %vm9680_vm6, %v9663_v42 }
 0x610   : > { %v9128_v5 = vpop.permute.xlu0 %9127 }
 0x611   : > { %v9660_v47 = vsel %vm9423_vm5, %v8379_v4, %v9128_v5  ;;  %v9130_v17 = vpop.permute.xlu1 %9129 }
 0x612   : > { %9917 = vst.msk [vmem:[%s15908_s25 + $0x760] sm:$0xff] %vm9680_vm6, %v9660_v47  ;;  %v9661_v15 = vsel %vm9423_vm5, %v8380_v36, %v9130_v17 }
 0x613   : > { %9918 = vst.msk [vmem:[%s15908_s25 + $0x768] sm:$0xff] %vm9680_vm6, %v9661_v15 }
 0x614   : > { %v9140_v51 = vpop.permute.xlu0 %9139 }
 0x615   : > { %v9666_v52 = vsel %vm9423_vm5, %v8385_v38, %v9140_v51  ;;  %v9142_v35 = vpop.permute.xlu1 %9141 }
 0x616   : > { %9923 = vst.msk [vmem:[%s15908_s25 + $0x790] sm:$0xff] %vm9680_vm6, %v9666_v52  ;;  %v9667_v11 = vsel %vm9423_vm5, %v8386_v16, %v9142_v35 }
 0x617   : > { %9924 = vst.msk [vmem:[%s15908_s25 + $0x798] sm:$0xff] %vm9680_vm6, %v9667_v11 }
 0x618   : > { %v9136_v7 = vpop.permute.xlu0 %9135 }
 0x619   : > { %v9664_v27 = vsel %vm9423_vm5, %v8383_v6, %v9136_v7  ;;  %v9138_v21 = vpop.permute.xlu1 %9137 }
 0x61a   : > { %9921 = vst.msk [vmem:[%s15908_s25 + $0x780] sm:$0xff] %vm9680_vm6, %v9664_v27  ;;  %v9665_v53 = vsel %vm9423_vm5, %v8384_v56, %v9138_v21 }
 0x61b   : > { %9922 = vst.msk [vmem:[%s15908_s25 + $0x788] sm:$0xff] %vm9680_vm6, %v9665_v53 }
 0x61c   : > { %v9148_v14 = vpop.permute.xlu0 %9147 }
 0x61d   : > { %v9670_v26 = vsel %vm9423_vm5, %v8389_v33, %v9148_v14  ;;  %v9150_v43 = vpop.permute.xlu1 %9149 }
 0x61e   : > { %9927 = vst.msk [vmem:[%s15908_s25 + $0x7b0] sm:$0xff] %vm9680_vm6, %v9670_v26  ;;  %v9671_v8 = vsel %vm9423_vm5, %v8390_v1, %v9150_v43 }
 0x61f   : > { %9928 = vst.msk [vmem:[%s15908_s25 + $0x7b8] sm:$0xff] %vm9680_vm6, %v9671_v8 }
 0x620   : > { %v9144_v59 = vpop.permute.xlu0 %9143 }
 0x621   : > { %v9668_v58 = vsel %vm9423_vm5, %v8387_v31, %v9144_v59  ;;  %v9146_v28 = vpop.permute.xlu1 %9145 }
 0x622   : > { %9925 = vst.msk [vmem:[%s15908_s25 + $0x7a0] sm:$0xff] %vm9680_vm6, %v9668_v58  ;;  %v9669_v3 = vsel %vm9423_vm5, %v8388_v49, %v9146_v28 }
 0x623   : > { %9926 = vst.msk [vmem:[%s15908_s25 + $0x7a8] sm:$0xff] %vm9680_vm6, %v9669_v3 }
 0x624   : > { %v9156_v62 = vpop.permute.xlu0 %9155 }
 0x625   : > { %v9674_v0 = vsel %vm9423_vm5, %v8393_v45, %v9156_v62  ;;  %v9158_v22 = vpop.permute.xlu1 %9157 }
 0x626   : > { %9931 = vst.msk [vmem:[%s15908_s25 + $0x7d0] sm:$0xff] %vm9680_vm6, %v9674_v0  ;;  %v9675_v18 = vsel %vm9423_vm5, %v8394_v61, %v9158_v22 }
 0x627   : > { %9932 = vst.msk [vmem:[%s15908_s25 + $0x7d8] sm:$0xff] %vm9680_vm6, %v9675_v18 }
 0x628   : > { %v9152_v24 = vpop.permute.xlu0 %9151 }
 0x629   : > { %v9672_v10 = vsel %vm9423_vm5, %v8391_v19, %v9152_v24  ;;  %v9154_v20 = vpop.permute.xlu1 %9153 }
 0x62a   : > { %9929 = vst.msk [vmem:[%s15908_s25 + $0x7c0] sm:$0xff] %vm9680_vm6, %v9672_v10  ;;  %v9673_v39 = vsel %vm9423_vm5, %v8392_v32, %v9154_v20 }
 0x62b   : > { %9930 = vst.msk [vmem:[%s15908_s25 + $0x7c8] sm:$0xff] %vm9680_vm6, %v9673_v39 }
 0x62c   : > { %v9160_v40 = vpop.permute.xlu0 %9159 }
 0x62d   : > { %v9676_v30 = vsel %vm9423_vm5, %v8395_v41, %v9160_v40  ;;  %v9162_v29 = vpop.permute.xlu1 %9161  ;;  %9943 = sbr.rel (!%p13532_p4) target bundleno = 1660 (0x67c), region = 52 }
 0x62e   : > { %9933 = vst.msk [vmem:[%s15908_s25 + $0x7e0] sm:$0xff] %vm9680_vm6, %v9676_v30  ;;  %v9677_v50 = vsel %vm9423_vm5, %v8396_v63, %v9162_v29 }
 0x62f   : > { %9934 = vst.msk [vmem:[%s15908_s25 + $0x7e8] sm:$0xff] %vm9680_vm6, %v9677_v50 }
 0x630   : > { %v9164_v34 = vpop.permute.xlu0 %9163 }
 0x631   : > { %v9678_v23 = vsel %vm9423_vm5, %v8397_v54, %v9164_v34  ;;  %v9166_v60 = vpop.permute.xlu1 %9165 }
 0x632   : > { %9935 = vst.msk [vmem:[%s15908_s25 + $0x7f0] sm:$0xff] %vm9680_vm6, %v9678_v23  ;;  %v9679_v13 = vsel %vm9423_vm5, %v8398_v44, %v9166_v60 }
 0x633   : > { %9936 = vst.msk [vmem:[%s15908_s25 + $0x7f8] sm:$0xff] %vm9680_vm6, %v9679_v13 }
 0x634   : > { %s21162_s12 = smov (!%p9946_p8, %s9945_s12), 256 }
 0x635   : > { %s10932_s18 = sshll.u32 %s21162_s12, 7 }
 0x636   : > { %p10935_p9 = scmp.eq.s32.totalorder %s10932_s18, 0 }
 0x637   : > { %s19915_s19 = sshrl.u32 (!%p10935_p9), %s21162_s12, 6 }
 0x638   : > { %9954 = sbr.rel (%p10935_p9) target bundleno = 1660 (0x67c), region = 56  ;;  %p10936_p10 = scmp.le.s32.totalorder (!%p10935_p9), %s19915_s19, 0 }
 0x63f   : > { %10360 = sbr.rel (%p10936_p10) target bundleno = 1639 (0x667), region = 132  ;;  %s21153_s6 = smov (!%p10936_p10), %s19909_s17 }
 0x640   : > { %s21154_s10 = smov (!%p10936_p10), %s15908_s25  ;;  %s19924_s13 = smov (!%p10936_p10), 0  }
 0x641   : > { %s19926_s20 = smov (!%p10936_p10), 0  }
 0x646 LB: >> { %v10142_v57 = vld [vmem:[%s13437_s10] sm:$0xff]  ;;  %v10144_v25 = vld [vmem:[%s13437_s10 + $0x8] sm:$0xff]  ;;  %v10146_v12 = vld [vmem:[%s13437_s10 + $0x10] sm:$0xff]  ;;  %s10270_s21 = sadd.s32 1, %s13441_s13  ;;  %s10136_s20 = sadd.s32 1, %s13445_s20   ;;  %s13445_s20 = sphi %s19926_s20, %s10136_s20   ;;  %s13441_s13 = sphi %s19924_s13, %s21157_s13   ;;  %s13437_s10 = sphi %s21154_s10, %s21156_s10   ;;  %s13433_s6 = sphi %s21153_s6, %s21155_s6  }
 0x647   : >> { %10143 = vst [vmem:[%s13433_s6] sm:$0xff] %v10142_v57  ;;  %10145 = vst [vmem:[%s13433_s6 + $0x8] sm:$0xff] %v10144_v25  ;;  %v10148_v2 = vld [vmem:[%s13437_s10 + $0x18] sm:$0xff]  ;;  %v10150_v46 = vld [vmem:[%s13437_s10 + $0x20] sm:$0xff]  ;;  %p10271_p11 = scmp.ge.s32.totalorder %s10270_s21, %s19915_s19  ;;  %p10135_p12 = scmp.ge.s32.totalorder %s10136_s20, %s19915_s19 }
 0x648   : >> { %10147 = vst [vmem:[%s13433_s6 + $0x10] sm:$0xff] %v10146_v12  ;;  %v10152_v9 = vld [vmem:[%s13437_s10 + $0x28] sm:$0xff]  ;;  %10149 = vst [vmem:[%s13433_s6 + $0x18] sm:$0xff] %v10148_v2  ;;  %v10154_v55 = vld [vmem:[%s13437_s10 + $0x30] sm:$0xff] }
 0x649   : >> { %10151 = vst [vmem:[%s13433_s6 + $0x20] sm:$0xff] %v10150_v46  ;;  %10153 = vst [vmem:[%s13433_s6 + $0x28] sm:$0xff] %v10152_v9  ;;  %v10156_v48 = vld [vmem:[%s13437_s10 + $0x38] sm:$0xff]  ;;  %v10158_v37 = vld [vmem:[%s13437_s10 + $0x40] sm:$0xff]  ;;  %s21164_s21 = smov (%p10271_p11, %s10270_s21), 0 }
 0x64a   : >> { %10155 = vst [vmem:[%s13433_s6 + $0x30] sm:$0xff] %v10154_v55  ;;  %10157 = vst [vmem:[%s13433_s6 + $0x38] sm:$0xff] %v10156_v48  ;;  %v10160_v42 = vld [vmem:[%s13437_s10 + $0x48] sm:$0xff]  ;;  %v10162_v4 = vld [vmem:[%s13437_s10 + $0x50] sm:$0xff]  ;;  %s10937_s22 = sshll.u32 %s21164_s21, 9  ;;  %s21157_s13 = smov %s21164_s21 }
 0x64b   : >> { %10159 = vst [vmem:[%s13433_s6 + $0x40] sm:$0xff] %v10158_v37  ;;  %v10164_v5 = vld [vmem:[%s13437_s10 + $0x58] sm:$0xff]  ;;  %10161 = vst [vmem:[%s13433_s6 + $0x48] sm:$0xff] %v10160_v42  ;;  %v10166_v47 = vld [vmem:[%s13437_s10 + $0x60] sm:$0xff]  ;;  %s19982_s23 = scalar_lea.vmem %s15908_s25, %s10937_s22 [#allocation3]   ;;  %s19985_s24 = scalar_lea.vmem %s19909_s17, %s10937_s22  }
 0x64c   : >> { %10163 = vst [vmem:[%s13433_s6 + $0x50] sm:$0xff] %v10162_v4  ;;  %10165 = vst [vmem:[%s13433_s6 + $0x58] sm:$0xff] %v10164_v5  ;;  %v10168_v36 = vld [vmem:[%s13437_s10 + $0x68] sm:$0xff]  ;;  %v10170_v17 = vld [vmem:[%s13437_s10 + $0x70] sm:$0xff] }
 0x64d   : >> { %10167 = vst [vmem:[%s13433_s6 + $0x60] sm:$0xff] %v10166_v47  ;;  %10169 = vst [vmem:[%s13433_s6 + $0x68] sm:$0xff] %v10168_v36  ;;  %v10172_v15 = vld [vmem:[%s13437_s10 + $0x78] sm:$0xff]  ;;  %v10174_v38 = vld [vmem:[%s13437_s10 + $0x80] sm:$0xff] }
 0x64e   : >> { %10171 = vst [vmem:[%s13433_s6 + $0x70] sm:$0xff] %v10170_v17  ;;  %v10176_v51 = vld [vmem:[%s13437_s10 + $0x88] sm:$0xff]  ;;  %10173 = vst [vmem:[%s13433_s6 + $0x78] sm:$0xff] %v10172_v15  ;;  %v10178_v52 = vld [vmem:[%s13437_s10 + $0x90] sm:$0xff] }
 0x64f   : >> { %10175 = vst [vmem:[%s13433_s6 + $0x80] sm:$0xff] %v10174_v38  ;;  %10177 = vst [vmem:[%s13433_s6 + $0x88] sm:$0xff] %v10176_v51  ;;  %v10180_v16 = vld [vmem:[%s13437_s10 + $0x98] sm:$0xff]  ;;  %v10182_v35 = vld [vmem:[%s13437_s10 + $0xa0] sm:$0xff] }
 0x650   : >> { %10179 = vst [vmem:[%s13433_s6 + $0x90] sm:$0xff] %v10178_v52  ;;  %10181 = vst [vmem:[%s13433_s6 + $0x98] sm:$0xff] %v10180_v16  ;;  %v10184_v11 = vld [vmem:[%s13437_s10 + $0xa8] sm:$0xff]  ;;  %v10186_v6 = vld [vmem:[%s13437_s10 + $0xb0] sm:$0xff] }
 0x651   : >> { %10183 = vst [vmem:[%s13433_s6 + $0xa0] sm:$0xff] %v10182_v35  ;;  %v10188_v7 = vld [vmem:[%s13437_s10 + $0xb8] sm:$0xff]  ;;  %10185 = vst [vmem:[%s13433_s6 + $0xa8] sm:$0xff] %v10184_v11  ;;  %v10190_v27 = vld [vmem:[%s13437_s10 + $0xc0] sm:$0xff] }
 0x652   : >> { %10187 = vst [vmem:[%s13433_s6 + $0xb0] sm:$0xff] %v10186_v6  ;;  %10189 = vst [vmem:[%s13433_s6 + $0xb8] sm:$0xff] %v10188_v7  ;;  %v10192_v56 = vld [vmem:[%s13437_s10 + $0xc8] sm:$0xff]  ;;  %v10194_v21 = vld [vmem:[%s13437_s10 + $0xd0] sm:$0xff] }
 0x653   : >> { %10191 = vst [vmem:[%s13433_s6 + $0xc0] sm:$0xff] %v10190_v27  ;;  %10193 = vst [vmem:[%s13433_s6 + $0xc8] sm:$0xff] %v10192_v56  ;;  %v10196_v53 = vld [vmem:[%s13437_s10 + $0xd8] sm:$0xff]  ;;  %v10198_v33 = vld [vmem:[%s13437_s10 + $0xe0] sm:$0xff] }
 0x654   : >> { %10195 = vst [vmem:[%s13433_s6 + $0xd0] sm:$0xff] %v10194_v21  ;;  %v10200_v14 = vld [vmem:[%s13437_s10 + $0xe8] sm:$0xff]  ;;  %10197 = vst [vmem:[%s13433_s6 + $0xd8] sm:$0xff] %v10196_v53  ;;  %v10202_v26 = vld [vmem:[%s13437_s10 + $0xf0] sm:$0xff] }
 0x655   : >> { %10199 = vst [vmem:[%s13433_s6 + $0xe0] sm:$0xff] %v10198_v33  ;;  %10201 = vst [vmem:[%s13433_s6 + $0xe8] sm:$0xff] %v10200_v14  ;;  %v10204_v1 = vld [vmem:[%s13437_s10 + $0xf8] sm:$0xff]  ;;  %v10206_v43 = vld [vmem:[%s13437_s10 + $0x100] sm:$0xff] }
 0x656   : >> { %10203 = vst [vmem:[%s13433_s6 + $0xf0] sm:$0xff] %v10202_v26  ;;  %10205 = vst [vmem:[%s13433_s6 + $0xf8] sm:$0xff] %v10204_v1  ;;  %v10208_v8 = vld [vmem:[%s13437_s10 + $0x108] sm:$0xff]  ;;  %v10210_v31 = vld [vmem:[%s13437_s10 + $0x110] sm:$0xff] }
 0x657   : >> { %10207 = vst [vmem:[%s13433_s6 + $0x100] sm:$0xff] %v10206_v43  ;;  %v10212_v59 = vld [vmem:[%s13437_s10 + $0x118] sm:$0xff]  ;;  %10209 = vst [vmem:[%s13433_s6 + $0x108] sm:$0xff] %v10208_v8  ;;  %v10214_v58 = vld [vmem:[%s13437_s10 + $0x120] sm:$0xff] }
 0x658   : >> { %10211 = vst [vmem:[%s13433_s6 + $0x110] sm:$0xff] %v10210_v31  ;;  %10213 = vst [vmem:[%s13433_s6 + $0x118] sm:$0xff] %v10212_v59  ;;  %v10216_v49 = vld [vmem:[%s13437_s10 + $0x128] sm:$0xff]  ;;  %v10218_v28 = vld [vmem:[%s13437_s10 + $0x130] sm:$0xff] }
 0x659   : >> { %10215 = vst [vmem:[%s13433_s6 + $0x120] sm:$0xff] %v10214_v58  ;;  %10217 = vst [vmem:[%s13433_s6 + $0x128] sm:$0xff] %v10216_v49  ;;  %v10220_v3 = vld [vmem:[%s13437_s10 + $0x138] sm:$0xff]  ;;  %v10222_v45 = vld [vmem:[%s13437_s10 + $0x140] sm:$0xff] }
 0x65a   : >> { %10219 = vst [vmem:[%s13433_s6 + $0x130] sm:$0xff] %v10218_v28  ;;  %v10224_v62 = vld [vmem:[%s13437_s10 + $0x148] sm:$0xff]  ;;  %10221 = vst [vmem:[%s13433_s6 + $0x138] sm:$0xff] %v10220_v3  ;;  %v10226_v0 = vld [vmem:[%s13437_s10 + $0x150] sm:$0xff] }
 0x65b   : >> { %10223 = vst [vmem:[%s13433_s6 + $0x140] sm:$0xff] %v10222_v45  ;;  %10225 = vst [vmem:[%s13433_s6 + $0x148] sm:$0xff] %v10224_v62  ;;  %v10228_v61 = vld [vmem:[%s13437_s10 + $0x158] sm:$0xff]  ;;  %v10230_v22 = vld [vmem:[%s13437_s10 + $0x160] sm:$0xff] }
 0x65c   : >> { %10227 = vst [vmem:[%s13433_s6 + $0x150] sm:$0xff] %v10226_v0  ;;  %10229 = vst [vmem:[%s13433_s6 + $0x158] sm:$0xff] %v10228_v61  ;;  %v10232_v18 = vld [vmem:[%s13437_s10 + $0x168] sm:$0xff]  ;;  %v10234_v19 = vld [vmem:[%s13437_s10 + $0x170] sm:$0xff] }
 0x65d   : >> { %10231 = vst [vmem:[%s13433_s6 + $0x160] sm:$0xff] %v10230_v22  ;;  %v10236_v24 = vld [vmem:[%s13437_s10 + $0x178] sm:$0xff]  ;;  %10233 = vst [vmem:[%s13433_s6 + $0x168] sm:$0xff] %v10232_v18  ;;  %v10238_v10 = vld [vmem:[%s13437_s10 + $0x180] sm:$0xff] }
 0x65e   : >> { %10235 = vst [vmem:[%s13433_s6 + $0x170] sm:$0xff] %v10234_v19  ;;  %10237 = vst [vmem:[%s13433_s6 + $0x178] sm:$0xff] %v10236_v24  ;;  %v10240_v32 = vld [vmem:[%s13437_s10 + $0x188] sm:$0xff]  ;;  %v10242_v20 = vld [vmem:[%s13437_s10 + $0x190] sm:$0xff] }
 0x65f   : >> { %10239 = vst [vmem:[%s13433_s6 + $0x180] sm:$0xff] %v10238_v10  ;;  %10241 = vst [vmem:[%s13433_s6 + $0x188] sm:$0xff] %v10240_v32  ;;  %v10244_v39 = vld [vmem:[%s13437_s10 + $0x198] sm:$0xff]  ;;  %v10246_v41 = vld [vmem:[%s13437_s10 + $0x1a0] sm:$0xff] }
 0x660   : >> { %10243 = vst [vmem:[%s13433_s6 + $0x190] sm:$0xff] %v10242_v20  ;;  %v10248_v40 = vld [vmem:[%s13437_s10 + $0x1a8] sm:$0xff]  ;;  %10245 = vst [vmem:[%s13433_s6 + $0x198] sm:$0xff] %v10244_v39  ;;  %v10250_v30 = vld [vmem:[%s13437_s10 + $0x1b0] sm:$0xff]  ;;  %10138 = sbr.rel (!%p10135_p12) target bundleno = 1606 (0x646), region = 138 }
 0x661   : >> { %10247 = vst [vmem:[%s13433_s6 + $0x1a0] sm:$0xff] %v10246_v41  ;;  %10249 = vst [vmem:[%s13433_s6 + $0x1a8] sm:$0xff] %v10248_v40  ;;  %v10252_v63 = vld [vmem:[%s13437_s10 + $0x1b8] sm:$0xff]  ;;  %v10254_v29 = vld [vmem:[%s13437_s10 + $0x1c0] sm:$0xff] }
 0x662   : >> { %10251 = vst [vmem:[%s13433_s6 + $0x1b0] sm:$0xff] %v10250_v30  ;;  %10253 = vst [vmem:[%s13433_s6 + $0x1b8] sm:$0xff] %v10252_v63  ;;  %v10256_v50 = vld [vmem:[%s13437_s10 + $0x1c8] sm:$0xff]  ;;  %v10258_v54 = vld [vmem:[%s13437_s10 + $0x1d0] sm:$0xff] }
 0x663   : >> { %10255 = vst [vmem:[%s13433_s6 + $0x1c0] sm:$0xff] %v10254_v29  ;;  %v10260_v34 = vld [vmem:[%s13437_s10 + $0x1d8] sm:$0xff]  ;;  %10257 = vst [vmem:[%s13433_s6 + $0x1c8] sm:$0xff] %v10256_v50  ;;  %v10262_v23 = vld [vmem:[%s13437_s10 + $0x1e0] sm:$0xff] }
 0x664   : >> { %10259 = vst [vmem:[%s13433_s6 + $0x1d0] sm:$0xff] %v10258_v54  ;;  %10261 = vst [vmem:[%s13433_s6 + $0x1d8] sm:$0xff] %v10260_v34  ;;  %v10264_v44 = vld [vmem:[%s13437_s10 + $0x1e8] sm:$0xff]  ;;  %v10266_v60 = vld [vmem:[%s13437_s10 + $0x1f0] sm:$0xff] }
 0x665   : >> { %10263 = vst [vmem:[%s13433_s6 + $0x1e0] sm:$0xff] %v10262_v23  ;;  %10265 = vst [vmem:[%s13433_s6 + $0x1e8] sm:$0xff] %v10264_v44  ;;  %v10268_v13 = vld [vmem:[%s13437_s10 + $0x1f8] sm:$0xff]  ;;  %s21156_s10 = smov %s19982_s23 }
 0x666   : >> { %10267 = vst [vmem:[%s13433_s6 + $0x1f0] sm:$0xff] %v10266_v60  ;;  %10269 = vst [vmem:[%s13433_s6 + $0x1f8] sm:$0xff] %v10268_v13  ;;  %s21155_s6 = smov %s19985_s24 }
 0x667 PF: > { %s20090_s26 = sand.u32 63, %s21162_s12   ;;  %s10948_s28 = sshll.u32 %s19915_s19, 9 }
 0x668   : > { %s10281_s30 = scalar_lea.vmem %s15908_s25, %s10948_s28 [#allocation3]   ;;  %s10283_s8 = scalar_lea.vmem %s19909_s17, %s10948_s28  }
 0x669   : > { %p10942_p13 = scmp.le.s32.totalorder %s20090_s26, 0 }
 0x66a   : > { %s13447_s11 = smov (!%p10942_p13), %s10283_s8   ;;  %s13451_s14 = smov (!%p10942_p13), %s10281_s30  }
 0x66b   : > { %10374 = sbr.rel (%p10942_p13) target bundleno = 1660 (0x67c), region = 143  ;;  %s13455_s15 = smov (!%p10942_p13), 0  }
 0x66c   : > { %s13459_s16 = smov (!%p10942_p13), 0  }
 0x672 LB: >> { %v10293_v57 = vld [vmem:[%s13453_s14] sm:$0xff]  ;;  %s10295_s12 = sadd.s32 1, %s13457_s15  ;;  %s10287_s16 = sadd.s32 1, %s13461_s16   ;;  %s13461_s16 = sphi %s13459_s16, %s10287_s16   ;;  %s13457_s15 = sphi %s13455_s15, %s13456_s15   ;;  %s13453_s14 = sphi %s13451_s14, %s10300_s14   ;;  %s13449_s11 = sphi %s13447_s11, %s10301_s11  }
 0x673   : >> { %10294 = vst [vmem:[%s13449_s11] sm:$0xff] %v10293_v57  ;;  %p10296_p0 = scmp.ge.s32.totalorder %s10295_s12, %s20090_s26  ;;  %p10286_p1 = scmp.ge.s32.totalorder %s10287_s16, %s20090_s26 }
 0x675   : >> { %s21166_s12 = smov (%p10296_p0, %s10295_s12), 0  ;;  %10289 = sbr.rel (!%p10286_p1) target bundleno = 1650 (0x672), region = 149 }
 0x676   : >> { %s10943_s25 = sshll.u32 %s21166_s12, 3  ;;  %s13456_s15 = smov %s21166_s12  }
 0x677   : >> { %s10300_s14 = scalar_lea.vmem %s10281_s30, %s10943_s25 [#allocation3]   ;;  %s10301_s11 = scalar_lea.vmem %s10283_s8, %s10943_s25  }
 0x67c PF: > { %p15_p2 = scmp.ge.s32.totalorder %s13522_s29, 4   ;;  %s21158_s26 = smov %s13425_s27 }
 0x67d   : > { %s21159_s27 = smov %s13530_s9  ;;  %s21160_s28 = smov %s13522_s29 }
 0x67e   :  { %17 = sbr.rel (!%p15_p2) target bundleno = 4 (0x4), region = 160 }

</bundles_post_ra>
